<compile_context>
chip_gen: v7x
topology: tpu7x:2x2x1
jax: 0.10.0
libtpu: 0.0.40
codegen_flags: <defaults>
</compile_context>

<pallas_src>
import jax
import jax.numpy as jnp
from jax import lax
from jax.experimental import pallas as pl
from jax.experimental.pallas import tpu as pltpu

B = 2          # batch
CIN = 448      # backbone feature channels (tf_efficientnet_b4 last stage)
H = W = 7      # backbone feature spatial size (224 / 32)
COUT = 128     # head conv out channels
KH = KW = 3    # conv kernel
OH = OW = 3    # conv output spatial (k=3, s=2, no pad)
HID = 32       # hidden linear size
NPOS = OH * OW # 9 output positions
NTAP = KH * KW # 9 kernel taps


def head_kernel(x_ref, w1_ref, b1_ref, w2_ref, b2_ref, w3_ref, b3_ref, o_ref, lhs_ref):
    """Fused head: conv3x3/s2 (per-tap bf16 im2col gather + 9 weight-stationary MXU
    matmuls, f32 accumulation) + ReLU + flatten + FC(1152,32) + ReLU + FC(32,1) on the
    VPU + sigmoid (1/temperature pre-folded into FC2)."""
    bsz = x_ref.shape[0]
    m = bsz * NPOS                                       # 18 rows, row index = p*bsz + b

    # Accumulator initialized with the broadcast conv bias (f32).
    acc = jnp.broadcast_to(b1_ref[...], (m, COUT))       # (18, 128) f32

    for kh in range(KH):
        for kw in range(KW):
            t = kh * KW + kw
            # Gather this tap's im2col rows straight from the bf16 feature ref into the
            # small reused bf16 scratch (no f32 round-trip, no full-feature-map value):
            #   lhs_ref[p*bsz + b, ci] = x[b, 2*oh+kh, 2*ow+kw, ci],  p = oh*3 + ow
            for oh in range(OH):
                for ow in range(OW):
                    p = oh * OW + ow
                    lhs_ref[p * bsz:(p + 1) * bsz, :] = x_ref[:, 2 * oh + kh, 2 * ow + kw, :]
            # Weight-stationary tap matmul: (18,448) bf16 x (448,128) bf16 -> f32.
            acc = acc + jnp.dot(lhs_ref[...], w1_ref[t],
                                preferred_element_type=jnp.float32)

    hconv = jnp.maximum(acc, 0.0)                        # (18, 128) conv + bias + ReLU

    # Flatten to (B, 9*128); column order (p, co) matches the permuted fc1 weight.
    h1 = jnp.concatenate([hconv[p * bsz:(p + 1) * bsz, :] for p in range(NPOS)], axis=-1)

    h2 = jnp.maximum(
        jnp.dot(h1.astype(jnp.bfloat16), w2_ref[...],
                preferred_element_type=jnp.float32) + b2_ref[...], 0.0)   # (B, 32) f32

    # fc2 has N=1: compute it on the VPU (mul + lane reduce) instead of an MXU matmul
    # that would fill 1 of 128/256 result lanes.  1/temperature already folded into w3/b3.
    logits = jnp.sum(h2 * w3_ref[...], axis=-1, keepdims=True) + b3_ref[...]  # (B, 1)
    o_ref[...] = jax.nn.sigmoid(logits)


def prepare_params(params, temperature=1.0):
    """One-time parameter layout/dtype prep (hoisted off the per-inference path)."""
    # Conv weight OIHW -> (tap, ci, co), bf16 (halves the dominant HBM->VMEM transfer).
    # TODO(synk): int8 (v5e/v6e) / fp8-e4m3 (v7x) per-output-channel quantization would
    # halve the weight DMA again; kept bf16 here for portability across generations.
    w1 = jnp.transpose(params["conv_w"], (2, 3, 1, 0)).reshape(NTAP, CIN, COUT)
    w1 = w1.astype(jnp.bfloat16)
    b1 = params["conv_b"].reshape(1, COUT).astype(jnp.float32)

    # PyTorch Flatten gives column co*9 + p; kernel flattens as p*128 + co.
    # Permute fc1 columns accordingly and pre-transpose for right-multiplication.
    w2 = params["fc1_w"]                                                  # (32, 1152)
    w2 = (w2.reshape(HID, COUT, NPOS).transpose(0, 2, 1)
            .reshape(HID, NPOS * COUT).T).astype(jnp.bfloat16)            # (1152, 32)
    b2 = params["fc1_b"].reshape(1, HID).astype(jnp.float32)

    # Fold 1/temperature into fc2: sigmoid((h@w3 + b3)/T) == sigmoid(h@(w3/T) + b3/T).
    # fc2 is evaluated on the VPU as a row-product + lane reduce, so keep it as a row.
    inv_t = jnp.float32(1.0 / temperature)
    w3 = (params["fc2_w"] * inv_t).astype(jnp.float32)                    # (1, 32) row
    b3 = (params["fc2_b"].reshape(1, 1) * inv_t).astype(jnp.float32)      # (1, 1)
    return {"w1": w1, "b1": b1, "w2": w2, "b2": b2, "w3": w3, "b3": b3}


def classifier_head(feat_nhwc, prepared):
    """feat_nhwc: (B, 7, 7, 448) NHWC feature map from the backbone (ideally already
    bf16 so the cast below is a no-op; the kernel only needs bf16 activations)."""
    if feat_nhwc.dtype != jnp.bfloat16:
        feat_nhwc = feat_nhwc.astype(jnp.bfloat16)
    bsz = feat_nhwc.shape[0]
    p = prepared
    args = (feat_nhwc, p["w1"], p["b1"], p["w2"], p["b2"], p["w3"], p["b3"])

    flops = (2 * bsz * NPOS * NTAP * CIN * COUT      # conv as matmul
             + 2 * bsz * NPOS * COUT * HID           # fc1
             + 2 * bsz * HID * 1)                    # fc2
    bytes_accessed = sum(int(a.size) * a.dtype.itemsize for a in args) + bsz * 4

    # TODO(synk): for real deployment, prefetch w1/w2 into VMEM with a preceding
    # pallas_call returning a (DMA semaphore, VMEM ref) future so the ~0.6 MB weight DMA
    # hides under the backbone; and add a 'parallel' batch grid axis for v7x dual-TC
    # once the batch grows (single grid point is fine at B=2).
    return pl.pallas_call(
        head_kernel,
        out_shape=jax.ShapeDtypeStruct((bsz, 1), jnp.float32),
        in_specs=[pl.BlockSpec(memory_space=pltpu.VMEM)] * len(args),
        out_specs=pl.BlockSpec(memory_space=pltpu.VMEM),
        scratch_shapes=[pltpu.VMEM((bsz * NPOS, CIN), jnp.bfloat16)],  # 16 KB reused im2col slab
        cost_estimate=pl.CostEstimate(flops=flops, transcendentals=bsz,
                                      bytes_accessed=bytes_accessed),
    )(*args)


def init_params(key):
    """Deterministic synthetic parameters matching the PyTorch head shapes."""
    k1, k2, k3, k4, k5, k6 = jax.random.split(key, 6)
    return {
        "conv_w": jax.random.normal(k1, (COUT, CIN, 3, 3), jnp.float32) * 0.02,
        "conv_b": jax.random.normal(k2, (COUT,), jnp.float32) * 0.02,
        "fc1_w": jax.random.normal(k3, (HID, COUT * NPOS), jnp.float32) * 0.02,
        "fc1_b": jax.random.normal(k4, (HID,), jnp.float32) * 0.02,
        "fc2_w": jax.random.normal(k5, (1, HID), jnp.float32) * 0.05,
        "fc2_b": jax.random.normal(k6, (1,), jnp.float32) * 0.05,
    }


def ref_head(feat_nchw, p, temperature=1.0):
    """Pure-JAX reference with PyTorch semantics (NCHW conv, Flatten, Linear, sigmoid)."""
    c = lax.conv_general_dilated(
        feat_nchw, p["conv_w"], window_strides=(2, 2), padding="VALID",
        dimension_numbers=("NCHW", "OIHW", "NCHW"))
    c = jax.nn.relu(c + p["conv_b"][None, :, None, None])                # (B, 128, 3, 3)
    flat = c.reshape(c.shape[0], -1)                                     # (B, 1152), (co,oh,ow)
    h = jax.nn.relu(flat @ p["fc1_w"].T + p["fc1_b"])
    y = h @ p["fc2_w"].T + p["fc2_b"]
    return jax.nn.sigmoid(y / temperature)


if __name__ == "__main__":
    key = jax.random.PRNGKey(0)
    kf, kp = jax.random.split(key)
    # Synthetic "features[-1]" from the (not re-implemented) backbone.
    feat_nchw = jax.random.normal(kf, (B, CIN, H, W), jnp.float32)
    params = init_params(kp)

    prepared = prepare_params(params, temperature=1.0)   # one-time prep, off the hot path
    # Backbone hand-off: NHWC bf16 (one-time cast/transpose; ideally the backbone's last
    # stage emits this layout/dtype directly so no extra HBM round-trip is needed).
    feat_nhwc = jnp.transpose(feat_nchw, (0, 2, 3, 1)).astype(jnp.bfloat16)

    out = classifier_head(feat_nhwc, prepared)
    out = jax.block_until_ready(out)

    expected = ref_head(feat_nchw, params, temperature=1.0)
    assert out.shape == (B, 1), out.shape
    assert jnp.allclose(out, expected, atol=1e-2, rtol=5e-2), (out, expected)

    print("KERNEL_OK")
</pallas_src>

<mosaic_0001>
module attributes {stable_mosaic.version = 11 : i64} {
  func.func @head_kernel(%arg0: memref<2x7x7x448xbf16, #tpu.memory_space<vmem>>, %arg1: memref<9x448x128xbf16, #tpu.memory_space<vmem>>, %arg2: memref<1x128xf32, #tpu.memory_space<vmem>>, %arg3: memref<1152x32xbf16, #tpu.memory_space<vmem>>, %arg4: memref<1x32xf32, #tpu.memory_space<vmem>>, %arg5: memref<1x32xf32, #tpu.memory_space<vmem>>, %arg6: memref<1x1xf32, #tpu.memory_space<vmem>>, %arg7: memref<2x1xf32, #tpu.memory_space<vmem>>, %arg8: memref<18x448xbf16, #tpu.memory_space<vmem>>) attributes {dimension_semantics = [], scalar_prefetch = 0 : i64, scratch_operands = 1 : i64, tpu.core_type = #tpu.core_type<tc>} {
    %c0 = arith.constant 0 : index
    %c0_0 = arith.constant 0 : index
    %0 = vector.load %arg2[%c0, %c0_0] : memref<1x128xf32, #tpu.memory_space<vmem>>, vector<1x128xf32>
    %1 = vector.shape_cast %0 : vector<1x128xf32> to vector<1x128xf32>
    %2 = vector.broadcast %1 : vector<1x128xf32> to vector<18x128xf32>
    %c0_1 = arith.constant 0 : index
    %c0_2 = arith.constant 0 : index
    %c0_3 = arith.constant 0 : index
    %c0_4 = arith.constant 0 : index
    %3 = vector.load %arg0[%c0_1, %c0_2, %c0_3, %c0_4] : memref<2x7x7x448xbf16, #tpu.memory_space<vmem>>, vector<2x1x1x448xbf16>
    %4 = vector.shape_cast %3 : vector<2x1x1x448xbf16> to vector<2x448xbf16>
    %c0_5 = arith.constant 0 : index
    %c0_6 = arith.constant 0 : index
    %5 = vector.load %arg8[%c0_5, %c0_6] : memref<18x448xbf16, #tpu.memory_space<vmem>>, vector<2x448xbf16>
    tpu.vector_store %arg8[%c0_5, %c0_6], %4 {strides = array<i32>} : memref<18x448xbf16, #tpu.memory_space<vmem>>, vector<2x448xbf16>,
    %c0_7 = arith.constant 0 : index
    %c0_8 = arith.constant 0 : index
    %c2 = arith.constant 2 : index
    %c0_9 = arith.constant 0 : index
    %6 = vector.load %arg0[%c0_7, %c0_8, %c2, %c0_9] : memref<2x7x7x448xbf16, #tpu.memory_space<vmem>>, vector<2x1x1x448xbf16>
    %7 = vector.shape_cast %6 : vector<2x1x1x448xbf16> to vector<2x448xbf16>
    %c2_10 = arith.constant 2 : index
    %c0_11 = arith.constant 0 : index
    %8 = vector.load %arg8[%c2_10, %c0_11] : memref<18x448xbf16, #tpu.memory_space<vmem>>, vector<2x448xbf16>
    tpu.vector_store %arg8[%c2_10, %c0_11], %7 {strides = array<i32>} : memref<18x448xbf16, #tpu.memory_space<vmem>>, vector<2x448xbf16>,
    %c0_12 = arith.constant 0 : index
    %c0_13 = arith.constant 0 : index
    %c4 = arith.constant 4 : index
    %c0_14 = arith.constant 0 : index
    %9 = vector.load %arg0[%c0_12, %c0_13, %c4, %c0_14] : memref<2x7x7x448xbf16, #tpu.memory_space<vmem>>, vector<2x1x1x448xbf16>
    %10 = vector.shape_cast %9 : vector<2x1x1x448xbf16> to vector<2x448xbf16>
    %c4_15 = arith.constant 4 : index
    %c0_16 = arith.constant 0 : index
    %11 = vector.load %arg8[%c4_15, %c0_16] : memref<18x448xbf16, #tpu.memory_space<vmem>>, vector<2x448xbf16>
    tpu.vector_store %arg8[%c4_15, %c0_16], %10 {strides = array<i32>} : memref<18x448xbf16, #tpu.memory_space<vmem>>, vector<2x448xbf16>,
    %c0_17 = arith.constant 0 : index
    %c2_18 = arith.constant 2 : index
    %c0_19 = arith.constant 0 : index
    %c0_20 = arith.constant 0 : index
    %12 = vector.load %arg0[%c0_17, %c2_18, %c0_19, %c0_20] : memref<2x7x7x448xbf16, #tpu.memory_space<vmem>>, vector<2x1x1x448xbf16>
    %13 = vector.shape_cast %12 : vector<2x1x1x448xbf16> to vector<2x448xbf16>
    %c6 = arith.constant 6 : index
    %c0_21 = arith.constant 0 : index
    %14 = vector.load %arg8[%c6, %c0_21] : memref<18x448xbf16, #tpu.memory_space<vmem>>, vector<2x448xbf16>
    tpu.vector_store %arg8[%c6, %c0_21], %13 {strides = array<i32>} : memref<18x448xbf16, #tpu.memory_space<vmem>>, vector<2x448xbf16>,
    %c0_22 = arith.constant 0 : index
    %c2_23 = arith.constant 2 : index
    %c2_24 = arith.constant 2 : index
    %c0_25 = arith.constant 0 : index
    %15 = vector.load %arg0[%c0_22, %c2_23, %c2_24, %c0_25] : memref<2x7x7x448xbf16, #tpu.memory_space<vmem>>, vector<2x1x1x448xbf16>
    %16 = vector.shape_cast %15 : vector<2x1x1x448xbf16> to vector<2x448xbf16>
    %c8 = arith.constant 8 : index
    %c0_26 = arith.constant 0 : index
    %17 = vector.load %arg8[%c8, %c0_26] : memref<18x448xbf16, #tpu.memory_space<vmem>>, vector<2x448xbf16>
    tpu.vector_store %arg8[%c8, %c0_26], %16 {strides = array<i32>} : memref<18x448xbf16, #tpu.memory_space<vmem>>, vector<2x448xbf16>,
    %c0_27 = arith.constant 0 : index
    %c2_28 = arith.constant 2 : index
    %c4_29 = arith.constant 4 : index
    %c0_30 = arith.constant 0 : index
    %18 = vector.load %arg0[%c0_27, %c2_28, %c4_29, %c0_30] : memref<2x7x7x448xbf16, #tpu.memory_space<vmem>>, vector<2x1x1x448xbf16>
    %19 = vector.shape_cast %18 : vector<2x1x1x448xbf16> to vector<2x448xbf16>
    %c10 = arith.constant 10 : index
    %c0_31 = arith.constant 0 : index
    %20 = vector.load %arg8[%c10, %c0_31] : memref<18x448xbf16, #tpu.memory_space<vmem>>, vector<2x448xbf16>
    tpu.vector_store %arg8[%c10, %c0_31], %19 {strides = array<i32>} : memref<18x448xbf16, #tpu.memory_space<vmem>>, vector<2x448xbf16>,
    %c0_32 = arith.constant 0 : index
    %c4_33 = arith.constant 4 : index
    %c0_34 = arith.constant 0 : index
    %c0_35 = arith.constant 0 : index
    %21 = vector.load %arg0[%c0_32, %c4_33, %c0_34, %c0_35] : memref<2x7x7x448xbf16, #tpu.memory_space<vmem>>, vector<2x1x1x448xbf16>
    %22 = vector.shape_cast %21 : vector<2x1x1x448xbf16> to vector<2x448xbf16>
    %c12 = arith.constant 12 : index
    %c0_36 = arith.constant 0 : index
    %23 = vector.load %arg8[%c12, %c0_36] : memref<18x448xbf16, #tpu.memory_space<vmem>>, vector<2x448xbf16>
    tpu.vector_store %arg8[%c12, %c0_36], %22 {strides = array<i32>} : memref<18x448xbf16, #tpu.memory_space<vmem>>, vector<2x448xbf16>,
    %c0_37 = arith.constant 0 : index
    %c4_38 = arith.constant 4 : index
    %c2_39 = arith.constant 2 : index
    %c0_40 = arith.constant 0 : index
    %24 = vector.load %arg0[%c0_37, %c4_38, %c2_39, %c0_40] : memref<2x7x7x448xbf16, #tpu.memory_space<vmem>>, vector<2x1x1x448xbf16>
    %25 = vector.shape_cast %24 : vector<2x1x1x448xbf16> to vector<2x448xbf16>
    %c14 = arith.constant 14 : index
    %c0_41 = arith.constant 0 : index
    %26 = vector.load %arg8[%c14, %c0_41] : memref<18x448xbf16, #tpu.memory_space<vmem>>, vector<2x448xbf16>
    tpu.vector_store %arg8[%c14, %c0_41], %25 {strides = array<i32>} : memref<18x448xbf16, #tpu.memory_space<vmem>>, vector<2x448xbf16>,
    %c0_42 = arith.constant 0 : index
    %c4_43 = arith.constant 4 : index
    %c4_44 = arith.constant 4 : index
    %c0_45 = arith.constant 0 : index
    %27 = vector.load %arg0[%c0_42, %c4_43, %c4_44, %c0_45] : memref<2x7x7x448xbf16, #tpu.memory_space<vmem>>, vector<2x1x1x448xbf16>
    %28 = vector.shape_cast %27 : vector<2x1x1x448xbf16> to vector<2x448xbf16>
    %c16 = arith.constant 16 : index
    %c0_46 = arith.constant 0 : index
    %29 = vector.load %arg8[%c16, %c0_46] : memref<18x448xbf16, #tpu.memory_space<vmem>>, vector<2x448xbf16>
    tpu.vector_store %arg8[%c16, %c0_46], %28 {strides = array<i32>} : memref<18x448xbf16, #tpu.memory_space<vmem>>, vector<2x448xbf16>,
    %c0_47 = arith.constant 0 : index
    %c0_48 = arith.constant 0 : index
    %30 = vector.load %arg8[%c0_47, %c0_48] : memref<18x448xbf16, #tpu.memory_space<vmem>>, vector<18x448xbf16>
    %c0_49 = arith.constant 0 : index
    %c0_50 = arith.constant 0 : index
    %c0_51 = arith.constant 0 : index
    %31 = vector.load %arg1[%c0_49, %c0_50, %c0_51] : memref<9x448x128xbf16, #tpu.memory_space<vmem>>, vector<1x448x128xbf16>
    %32 = vector.shape_cast %31 : vector<1x448x128xbf16> to vector<448x128xbf16>
    %cst = arith.constant dense<0.000000e+00> : vector<18x128xf32>
    %33 = tpu.matmul %30, %32, %cst {dimension_numbers = #tpu.dot_dimension_numbers<[1], [0], [0], [1], [0, 0, 1, 1], [], []>} : vector<18x448xbf16>, vector<448x128xbf16>, vector<18x128xf32> -> vector<18x128xf32>
    %34 = arith.addf %2, %33 : vector<18x128xf32>
    %c0_52 = arith.constant 0 : index
    %c0_53 = arith.constant 0 : index
    %c1 = arith.constant 1 : index
    %c0_54 = arith.constant 0 : index
    %35 = vector.load %arg0[%c0_52, %c0_53, %c1, %c0_54] : memref<2x7x7x448xbf16, #tpu.memory_space<vmem>>, vector<2x1x1x448xbf16>
    %36 = vector.shape_cast %35 : vector<2x1x1x448xbf16> to vector<2x448xbf16>
    %c0_55 = arith.constant 0 : index
    %c0_56 = arith.constant 0 : index
    %37 = vector.load %arg8[%c0_55, %c0_56] : memref<18x448xbf16, #tpu.memory_space<vmem>>, vector<2x448xbf16>
    tpu.vector_store %arg8[%c0_55, %c0_56], %36 {strides = array<i32>} : memref<18x448xbf16, #tpu.memory_space<vmem>>, vector<2x448xbf16>,
    %c0_57 = arith.constant 0 : index
    %c0_58 = arith.constant 0 : index
    %c3 = arith.constant 3 : index
    %c0_59 = arith.constant 0 : index
    %38 = vector.load %arg0[%c0_57, %c0_58, %c3, %c0_59] : memref<2x7x7x448xbf16, #tpu.memory_space<vmem>>, vector<2x1x1x448xbf16>
    %39 = vector.shape_cast %38 : vector<2x1x1x448xbf16> to vector<2x448xbf16>
    %c2_60 = arith.constant 2 : index
    %c0_61 = arith.constant 0 : index
    %40 = vector.load %arg8[%c2_60, %c0_61] : memref<18x448xbf16, #tpu.memory_space<vmem>>, vector<2x448xbf16>
    tpu.vector_store %arg8[%c2_60, %c0_61], %39 {strides = array<i32>} : memref<18x448xbf16, #tpu.memory_space<vmem>>, vector<2x448xbf16>,
    %c0_62 = arith.constant 0 : index
    %c0_63 = arith.constant 0 : index
    %c5 = arith.constant 5 : index
    %c0_64 = arith.constant 0 : index
    %41 = vector.load %arg0[%c0_62, %c0_63, %c5, %c0_64] : memref<2x7x7x448xbf16, #tpu.memory_space<vmem>>, vector<2x1x1x448xbf16>
    %42 = vector.shape_cast %41 : vector<2x1x1x448xbf16> to vector<2x448xbf16>
    %c4_65 = arith.constant 4 : index
    %c0_66 = arith.constant 0 : index
    %43 = vector.load %arg8[%c4_65, %c0_66] : memref<18x448xbf16, #tpu.memory_space<vmem>>, vector<2x448xbf16>
    tpu.vector_store %arg8[%c4_65, %c0_66], %42 {strides = array<i32>} : memref<18x448xbf16, #tpu.memory_space<vmem>>, vector<2x448xbf16>,
    %c0_67 = arith.constant 0 : index
    %c2_68 = arith.constant 2 : index
    %c1_69 = arith.constant 1 : index
    %c0_70 = arith.constant 0 : index
    %44 = vector.load %arg0[%c0_67, %c2_68, %c1_69, %c0_70] : memref<2x7x7x448xbf16, #tpu.memory_space<vmem>>, vector<2x1x1x448xbf16>
    %45 = vector.shape_cast %44 : vector<2x1x1x448xbf16> to vector<2x448xbf16>
    %c6_71 = arith.constant 6 : index
    %c0_72 = arith.constant 0 : index
    %46 = vector.load %arg8[%c6_71, %c0_72] : memref<18x448xbf16, #tpu.memory_space<vmem>>, vector<2x448xbf16>
    tpu.vector_store %arg8[%c6_71, %c0_72], %45 {strides = array<i32>} : memref<18x448xbf16, #tpu.memory_space<vmem>>, vector<2x448xbf16>,
    %c0_73 = arith.constant 0 : index
    %c2_74 = arith.constant 2 : index
    %c3_75 = arith.constant 3 : index
    %c0_76 = arith.constant 0 : index
    %47 = vector.load %arg0[%c0_73, %c2_74, %c3_75, %c0_76] : memref<2x7x7x448xbf16, #tpu.memory_space<vmem>>, vector<2x1x1x448xbf16>
    %48 = vector.shape_cast %47 : vector<2x1x1x448xbf16> to vector<2x448xbf16>
    %c8_77 = arith.constant 8 : index
    %c0_78 = arith.constant 0 : index
    %49 = vector.load %arg8[%c8_77, %c0_78] : memref<18x448xbf16, #tpu.memory_space<vmem>>, vector<2x448xbf16>
    tpu.vector_store %arg8[%c8_77, %c0_78], %48 {strides = array<i32>} : memref<18x448xbf16, #tpu.memory_space<vmem>>, vector<2x448xbf16>,
    %c0_79 = arith.constant 0 : index
    %c2_80 = arith.constant 2 : index
    %c5_81 = arith.constant 5 : index
    %c0_82 = arith.constant 0 : index
    %50 = vector.load %arg0[%c0_79, %c2_80, %c5_81, %c0_82] : memref<2x7x7x448xbf16, #tpu.memory_space<vmem>>, vector<2x1x1x448xbf16>
    %51 = vector.shape_cast %50 : vector<2x1x1x448xbf16> to vector<2x448xbf16>
    %c10_83 = arith.constant 10 : index
    %c0_84 = arith.constant 0 : index
    %52 = vector.load %arg8[%c10_83, %c0_84] : memref<18x448xbf16, #tpu.memory_space<vmem>>, vector<2x448xbf16>
    tpu.vector_store %arg8[%c10_83, %c0_84], %51 {strides = array<i32>} : memref<18x448xbf16, #tpu.memory_space<vmem>>, vector<2x448xbf16>,
    %c0_85 = arith.constant 0 : index
    %c4_86 = arith.constant 4 : index
    %c1_87 = arith.constant 1 : index
    %c0_88 = arith.constant 0 : index
    %53 = vector.load %arg0[%c0_85, %c4_86, %c1_87, %c0_88] : memref<2x7x7x448xbf16, #tpu.memory_space<vmem>>, vector<2x1x1x448xbf16>
    %54 = vector.shape_cast %53 : vector<2x1x1x448xbf16> to vector<2x448xbf16>
    %c12_89 = arith.constant 12 : index
    %c0_90 = arith.constant 0 : index
    %55 = vector.load %arg8[%c12_89, %c0_90] : memref<18x448xbf16, #tpu.memory_space<vmem>>, vector<2x448xbf16>
    tpu.vector_store %arg8[%c12_89, %c0_90], %54 {strides = array<i32>} : memref<18x448xbf16, #tpu.memory_space<vmem>>, vector<2x448xbf16>,
    %c0_91 = arith.constant 0 : index
    %c4_92 = arith.constant 4 : index
    %c3_93 = arith.constant 3 : index
    %c0_94 = arith.constant 0 : index
    %56 = vector.load %arg0[%c0_91, %c4_92, %c3_93, %c0_94] : memref<2x7x7x448xbf16, #tpu.memory_space<vmem>>, vector<2x1x1x448xbf16>
    %57 = vector.shape_cast %56 : vector<2x1x1x448xbf16> to vector<2x448xbf16>
    %c14_95 = arith.constant 14 : index
    %c0_96 = arith.constant 0 : index
    %58 = vector.load %arg8[%c14_95, %c0_96] : memref<18x448xbf16, #tpu.memory_space<vmem>>, vector<2x448xbf16>
    tpu.vector_store %arg8[%c14_95, %c0_96], %57 {strides = array<i32>} : memref<18x448xbf16, #tpu.memory_space<vmem>>, vector<2x448xbf16>,
    %c0_97 = arith.constant 0 : index
    %c4_98 = arith.constant 4 : index
    %c5_99 = arith.constant 5 : index
    %c0_100 = arith.constant 0 : index
    %59 = vector.load %arg0[%c0_97, %c4_98, %c5_99, %c0_100] : memref<2x7x7x448xbf16, #tpu.memory_space<vmem>>, vector<2x1x1x448xbf16>
    %60 = vector.shape_cast %59 : vector<2x1x1x448xbf16> to vector<2x448xbf16>
    %c16_101 = arith.constant 16 : index
    %c0_102 = arith.constant 0 : index
    %61 = vector.load %arg8[%c16_101, %c0_102] : memref<18x448xbf16, #tpu.memory_space<vmem>>, vector<2x448xbf16>
    tpu.vector_store %arg8[%c16_101, %c0_102], %60 {strides = array<i32>} : memref<18x448xbf16, #tpu.memory_space<vmem>>, vector<2x448xbf16>,
    %c0_103 = arith.constant 0 : index
    %c0_104 = arith.constant 0 : index
    %62 = vector.load %arg8[%c0_103, %c0_104] : memref<18x448xbf16, #tpu.memory_space<vmem>>, vector<18x448xbf16>
    %c1_105 = arith.constant 1 : index
    %c0_106 = arith.constant 0 : index
    %c0_107 = arith.constant 0 : index
    %63 = vector.load %arg1[%c1_105, %c0_106, %c0_107] : memref<9x448x128xbf16, #tpu.memory_space<vmem>>, vector<1x448x128xbf16>
    %64 = vector.shape_cast %63 : vector<1x448x128xbf16> to vector<448x128xbf16>
    %cst_108 = arith.constant dense<0.000000e+00> : vector<18x128xf32>
    %65 = tpu.matmul %62, %64, %cst_108 {dimension_numbers = #tpu.dot_dimension_numbers<[1], [0], [0], [1], [0, 0, 1, 1], [], []>} : vector<18x448xbf16>, vector<448x128xbf16>, vector<18x128xf32> -> vector<18x128xf32>
    %66 = arith.addf %34, %65 : vector<18x128xf32>
    %c0_109 = arith.constant 0 : index
    %c0_110 = arith.constant 0 : index
    %c2_111 = arith.constant 2 : index
    %c0_112 = arith.constant 0 : index
    %67 = vector.load %arg0[%c0_109, %c0_110, %c2_111, %c0_112] : memref<2x7x7x448xbf16, #tpu.memory_space<vmem>>, vector<2x1x1x448xbf16>
    %68 = vector.shape_cast %67 : vector<2x1x1x448xbf16> to vector<2x448xbf16>
    %c0_113 = arith.constant 0 : index
    %c0_114 = arith.constant 0 : index
    %69 = vector.load %arg8[%c0_113, %c0_114] : memref<18x448xbf16, #tpu.memory_space<vmem>>, vector<2x448xbf16>
    tpu.vector_store %arg8[%c0_113, %c0_114], %68 {strides = array<i32>} : memref<18x448xbf16, #tpu.memory_space<vmem>>, vector<2x448xbf16>,
    %c0_115 = arith.constant 0 : index
    %c0_116 = arith.constant 0 : index
    %c4_117 = arith.constant 4 : index
    %c0_118 = arith.constant 0 : index
    %70 = vector.load %arg0[%c0_115, %c0_116, %c4_117, %c0_118] : memref<2x7x7x448xbf16, #tpu.memory_space<vmem>>, vector<2x1x1x448xbf16>
    %71 = vector.shape_cast %70 : vector<2x1x1x448xbf16> to vector<2x448xbf16>
    %c2_119 = arith.constant 2 : index
    %c0_120 = arith.constant 0 : index
    %72 = vector.load %arg8[%c2_119, %c0_120] : memref<18x448xbf16, #tpu.memory_space<vmem>>, vector<2x448xbf16>
    tpu.vector_store %arg8[%c2_119, %c0_120], %71 {strides = array<i32>} : memref<18x448xbf16, #tpu.memory_space<vmem>>, vector<2x448xbf16>,
    %c0_121 = arith.constant 0 : index
    %c0_122 = arith.constant 0 : index
    %c6_123 = arith.constant 6 : index
    %c0_124 = arith.constant 0 : index
    %73 = vector.load %arg0[%c0_121, %c0_122, %c6_123, %c0_124] : memref<2x7x7x448xbf16, #tpu.memory_space<vmem>>, vector<2x1x1x448xbf16>
    %74 = vector.shape_cast %73 : vector<2x1x1x448xbf16> to vector<2x448xbf16>
    %c4_125 = arith.constant 4 : index
    %c0_126 = arith.constant 0 : index
    %75 = vector.load %arg8[%c4_125, %c0_126] : memref<18x448xbf16, #tpu.memory_space<vmem>>, vector<2x448xbf16>
    tpu.vector_store %arg8[%c4_125, %c0_126], %74 {strides = array<i32>} : memref<18x448xbf16, #tpu.memory_space<vmem>>, vector<2x448xbf16>,
    %c0_127 = arith.constant 0 : index
    %c2_128 = arith.constant 2 : index
    %c2_129 = arith.constant 2 : index
    %c0_130 = arith.constant 0 : index
    %76 = vector.load %arg0[%c0_127, %c2_128, %c2_129, %c0_130] : memref<2x7x7x448xbf16, #tpu.memory_space<vmem>>, vector<2x1x1x448xbf16>
    %77 = vector.shape_cast %76 : vector<2x1x1x448xbf16> to vector<2x448xbf16>
    %c6_131 = arith.constant 6 : index
    %c0_132 = arith.constant 0 : index
    %78 = vector.load %arg8[%c6_131, %c0_132] : memref<18x448xbf16, #tpu.memory_space<vmem>>, vector<2x448xbf16>
    tpu.vector_store %arg8[%c6_131, %c0_132], %77 {strides = array<i32>} : memref<18x448xbf16, #tpu.memory_space<vmem>>, vector<2x448xbf16>,
    %c0_133 = arith.constant 0 : index
    %c2_134 = arith.constant 2 : index
    %c4_135 = arith.constant 4 : index
    %c0_136 = arith.constant 0 : index
    %79 = vector.load %arg0[%c0_133, %c2_134, %c4_135, %c0_136] : memref<2x7x7x448xbf16, #tpu.memory_space<vmem>>, vector<2x1x1x448xbf16>
    %80 = vector.shape_cast %79 : vector<2x1x1x448xbf16> to vector<2x448xbf16>
    %c8_137 = arith.constant 8 : index
    %c0_138 = arith.constant 0 : index
    %81 = vector.load %arg8[%c8_137, %c0_138] : memref<18x448xbf16, #tpu.memory_space<vmem>>, vector<2x448xbf16>
    tpu.vector_store %arg8[%c8_137, %c0_138], %80 {strides = array<i32>} : memref<18x448xbf16, #tpu.memory_space<vmem>>, vector<2x448xbf16>,
    %c0_139 = arith.constant 0 : index
    %c2_140 = arith.constant 2 : index
    %c6_141 = arith.constant 6 : index
    %c0_142 = arith.constant 0 : index
    %82 = vector.load %arg0[%c0_139, %c2_140, %c6_141, %c0_142] : memref<2x7x7x448xbf16, #tpu.memory_space<vmem>>, vector<2x1x1x448xbf16>
    %83 = vector.shape_cast %82 : vector<2x1x1x448xbf16> to vector<2x448xbf16>
    %c10_143 = arith.constant 10 : index
    %c0_144 = arith.constant 0 : index
    %84 = vector.load %arg8[%c10_143, %c0_144] : memref<18x448xbf16, #tpu.memory_space<vmem>>, vector<2x448xbf16>
    tpu.vector_store %arg8[%c10_143, %c0_144], %83 {strides = array<i32>} : memref<18x448xbf16, #tpu.memory_space<vmem>>, vector<2x448xbf16>,
    %c0_145 = arith.constant 0 : index
    %c4_146 = arith.constant 4 : index
    %c2_147 = arith.constant 2 : index
    %c0_148 = arith.constant 0 : index
    %85 = vector.load %arg0[%c0_145, %c4_146, %c2_147, %c0_148] : memref<2x7x7x448xbf16, #tpu.memory_space<vmem>>, vector<2x1x1x448xbf16>
    %86 = vector.shape_cast %85 : vector<2x1x1x448xbf16> to vector<2x448xbf16>
    %c12_149 = arith.constant 12 : index
    %c0_150 = arith.constant 0 : index
    %87 = vector.load %arg8[%c12_149, %c0_150] : memref<18x448xbf16, #tpu.memory_space<vmem>>, vector<2x448xbf16>
    tpu.vector_store %arg8[%c12_149, %c0_150], %86 {strides = array<i32>} : memref<18x448xbf16, #tpu.memory_space<vmem>>, vector<2x448xbf16>,
    %c0_151 = arith.constant 0 : index
    %c4_152 = arith.constant 4 : index
    %c4_153 = arith.constant 4 : index
    %c0_154 = arith.constant 0 : index
    %88 = vector.load %arg0[%c0_151, %c4_152, %c4_153, %c0_154] : memref<2x7x7x448xbf16, #tpu.memory_space<vmem>>, vector<2x1x1x448xbf16>
    %89 = vector.shape_cast %88 : vector<2x1x1x448xbf16> to vector<2x448xbf16>
    %c14_155 = arith.constant 14 : index
    %c0_156 = arith.constant 0 : index
    %90 = vector.load %arg8[%c14_155, %c0_156] : memref<18x448xbf16, #tpu.memory_space<vmem>>, vector<2x448xbf16>
    tpu.vector_store %arg8[%c14_155, %c0_156], %89 {strides = array<i32>} : memref<18x448xbf16, #tpu.memory_space<vmem>>, vector<2x448xbf16>,
    %c0_157 = arith.constant 0 : index
    %c4_158 = arith.constant 4 : index
    %c6_159 = arith.constant 6 : index
    %c0_160 = arith.constant 0 : index
    %91 = vector.load %arg0[%c0_157, %c4_158, %c6_159, %c0_160] : memref<2x7x7x448xbf16, #tpu.memory_space<vmem>>, vector<2x1x1x448xbf16>
    %92 = vector.shape_cast %91 : vector<2x1x1x448xbf16> to vector<2x448xbf16>
    %c16_161 = arith.constant 16 : index
    %c0_162 = arith.constant 0 : index
    %93 = vector.load %arg8[%c16_161, %c0_162] : memref<18x448xbf16, #tpu.memory_space<vmem>>, vector<2x448xbf16>
    tpu.vector_store %arg8[%c16_161, %c0_162], %92 {strides = array<i32>} : memref<18x448xbf16, #tpu.memory_space<vmem>>, vector<2x448xbf16>,
    %c0_163 = arith.constant 0 : index
    %c0_164 = arith.constant 0 : index
    %94 = vector.load %arg8[%c0_163, %c0_164] : memref<18x448xbf16, #tpu.memory_space<vmem>>, vector<18x448xbf16>
    %c2_165 = arith.constant 2 : index
    %c0_166 = arith.constant 0 : index
    %c0_167 = arith.constant 0 : index
    %95 = vector.load %arg1[%c2_165, %c0_166, %c0_167] : memref<9x448x128xbf16, #tpu.memory_space<vmem>>, vector<1x448x128xbf16>
    %96 = vector.shape_cast %95 : vector<1x448x128xbf16> to vector<448x128xbf16>
    %cst_168 = arith.constant dense<0.000000e+00> : vector<18x128xf32>
    %97 = tpu.matmul %94, %96, %cst_168 {dimension_numbers = #tpu.dot_dimension_numbers<[1], [0], [0], [1], [0, 0, 1, 1], [], []>} : vector<18x448xbf16>, vector<448x128xbf16>, vector<18x128xf32> -> vector<18x128xf32>
    %98 = arith.addf %66, %97 : vector<18x128xf32>
    %c0_169 = arith.constant 0 : index
    %c1_170 = arith.constant 1 : index
    %c0_171 = arith.constant 0 : index
    %c0_172 = arith.constant 0 : index
    %99 = vector.load %arg0[%c0_169, %c1_170, %c0_171, %c0_172] : memref<2x7x7x448xbf16, #tpu.memory_space<vmem>>, vector<2x1x1x448xbf16>
    %100 = vector.shape_cast %99 : vector<2x1x1x448xbf16> to vector<2x448xbf16>
    %c0_173 = arith.constant 0 : index
    %c0_174 = arith.constant 0 : index
    %101 = vector.load %arg8[%c0_173, %c0_174] : memref<18x448xbf16, #tpu.memory_space<vmem>>, vector<2x448xbf16>
    tpu.vector_store %arg8[%c0_173, %c0_174], %100 {strides = array<i32>} : memref<18x448xbf16, #tpu.memory_space<vmem>>, vector<2x448xbf16>,
    %c0_175 = arith.constant 0 : index
    %c1_176 = arith.constant 1 : index
    %c2_177 = arith.constant 2 : index
    %c0_178 = arith.constant 0 : index
    %102 = vector.load %arg0[%c0_175, %c1_176, %c2_177, %c0_178] : memref<2x7x7x448xbf16, #tpu.memory_space<vmem>>, vector<2x1x1x448xbf16>
    %103 = vector.shape_cast %102 : vector<2x1x1x448xbf16> to vector<2x448xbf16>
    %c2_179 = arith.constant 2 : index
    %c0_180 = arith.constant 0 : index
    %104 = vector.load %arg8[%c2_179, %c0_180] : memref<18x448xbf16, #tpu.memory_space<vmem>>, vector<2x448xbf16>
    tpu.vector_store %arg8[%c2_179, %c0_180], %103 {strides = array<i32>} : memref<18x448xbf16, #tpu.memory_space<vmem>>, vector<2x448xbf16>,
    %c0_181 = arith.constant 0 : index
    %c1_182 = arith.constant 1 : index
    %c4_183 = arith.constant 4 : index
    %c0_184 = arith.constant 0 : index
    %105 = vector.load %arg0[%c0_181, %c1_182, %c4_183, %c0_184] : memref<2x7x7x448xbf16, #tpu.memory_space<vmem>>, vector<2x1x1x448xbf16>
    %106 = vector.shape_cast %105 : vector<2x1x1x448xbf16> to vector<2x448xbf16>
    %c4_185 = arith.constant 4 : index
    %c0_186 = arith.constant 0 : index
    %107 = vector.load %arg8[%c4_185, %c0_186] : memref<18x448xbf16, #tpu.memory_space<vmem>>, vector<2x448xbf16>
    tpu.vector_store %arg8[%c4_185, %c0_186], %106 {strides = array<i32>} : memref<18x448xbf16, #tpu.memory_space<vmem>>, vector<2x448xbf16>,
    %c0_187 = arith.constant 0 : index
    %c3_188 = arith.constant 3 : index
    %c0_189 = arith.constant 0 : index
    %c0_190 = arith.constant 0 : index
    %108 = vector.load %arg0[%c0_187, %c3_188, %c0_189, %c0_190] : memref<2x7x7x448xbf16, #tpu.memory_space<vmem>>, vector<2x1x1x448xbf16>
    %109 = vector.shape_cast %108 : vector<2x1x1x448xbf16> to vector<2x448xbf16>
    %c6_191 = arith.constant 6 : index
    %c0_192 = arith.constant 0 : index
    %110 = vector.load %arg8[%c6_191, %c0_192] : memref<18x448xbf16, #tpu.memory_space<vmem>>, vector<2x448xbf16>
    tpu.vector_store %arg8[%c6_191, %c0_192], %109 {strides = array<i32>} : memref<18x448xbf16, #tpu.memory_space<vmem>>, vector<2x448xbf16>,
    %c0_193 = arith.constant 0 : index
    %c3_194 = arith.constant 3 : index
    %c2_195 = arith.constant 2 : index
    %c0_196 = arith.constant 0 : index
    %111 = vector.load %arg0[%c0_193, %c3_194, %c2_195, %c0_196] : memref<2x7x7x448xbf16, #tpu.memory_space<vmem>>, vector<2x1x1x448xbf16>
    %112 = vector.shape_cast %111 : vector<2x1x1x448xbf16> to vector<2x448xbf16>
    %c8_197 = arith.constant 8 : index
    %c0_198 = arith.constant 0 : index
    %113 = vector.load %arg8[%c8_197, %c0_198] : memref<18x448xbf16, #tpu.memory_space<vmem>>, vector<2x448xbf16>
    tpu.vector_store %arg8[%c8_197, %c0_198], %112 {strides = array<i32>} : memref<18x448xbf16, #tpu.memory_space<vmem>>, vector<2x448xbf16>,
    %c0_199 = arith.constant 0 : index
    %c3_200 = arith.constant 3 : index
    %c4_201 = arith.constant 4 : index
    %c0_202 = arith.constant 0 : index
    %114 = vector.load %arg0[%c0_199, %c3_200, %c4_201, %c0_202] : memref<2x7x7x448xbf16, #tpu.memory_space<vmem>>, vector<2x1x1x448xbf16>
    %115 = vector.shape_cast %114 : vector<2x1x1x448xbf16> to vector<2x448xbf16>
    %c10_203 = arith.constant 10 : index
    %c0_204 = arith.constant 0 : index
    %116 = vector.load %arg8[%c10_203, %c0_204] : memref<18x448xbf16, #tpu.memory_space<vmem>>, vector<2x448xbf16>
    tpu.vector_store %arg8[%c10_203, %c0_204], %115 {strides = array<i32>} : memref<18x448xbf16, #tpu.memory_space<vmem>>, vector<2x448xbf16>,
    %c0_205 = arith.constant 0 : index
    %c5_206 = arith.constant 5 : index
    %c0_207 = arith.constant 0 : index
    %c0_208 = arith.constant 0 : index
    %117 = vector.load %arg0[%c0_205, %c5_206, %c0_207, %c0_208] : memref<2x7x7x448xbf16, #tpu.memory_space<vmem>>, vector<2x1x1x448xbf16>
    %118 = vector.shape_cast %117 : vector<2x1x1x448xbf16> to vector<2x448xbf16>
    %c12_209 = arith.constant 12 : index
    %c0_210 = arith.constant 0 : index
    %119 = vector.load %arg8[%c12_209, %c0_210] : memref<18x448xbf16, #tpu.memory_space<vmem>>, vector<2x448xbf16>
    tpu.vector_store %arg8[%c12_209, %c0_210], %118 {strides = array<i32>} : memref<18x448xbf16, #tpu.memory_space<vmem>>, vector<2x448xbf16>,
    %c0_211 = arith.constant 0 : index
    %c5_212 = arith.constant 5 : index
    %c2_213 = arith.constant 2 : index
    %c0_214 = arith.constant 0 : index
    %120 = vector.load %arg0[%c0_211, %c5_212, %c2_213, %c0_214] : memref<2x7x7x448xbf16, #tpu.memory_space<vmem>>, vector<2x1x1x448xbf16>
    %121 = vector.shape_cast %120 : vector<2x1x1x448xbf16> to vector<2x448xbf16>
    %c14_215 = arith.constant 14 : index
    %c0_216 = arith.constant 0 : index
    %122 = vector.load %arg8[%c14_215, %c0_216] : memref<18x448xbf16, #tpu.memory_space<vmem>>, vector<2x448xbf16>
    tpu.vector_store %arg8[%c14_215, %c0_216], %121 {strides = array<i32>} : memref<18x448xbf16, #tpu.memory_space<vmem>>, vector<2x448xbf16>,
    %c0_217 = arith.constant 0 : index
    %c5_218 = arith.constant 5 : index
    %c4_219 = arith.constant 4 : index
    %c0_220 = arith.constant 0 : index
    %123 = vector.load %arg0[%c0_217, %c5_218, %c4_219, %c0_220] : memref<2x7x7x448xbf16, #tpu.memory_space<vmem>>, vector<2x1x1x448xbf16>
    %124 = vector.shape_cast %123 : vector<2x1x1x448xbf16> to vector<2x448xbf16>
    %c16_221 = arith.constant 16 : index
    %c0_222 = arith.constant 0 : index
    %125 = vector.load %arg8[%c16_221, %c0_222] : memref<18x448xbf16, #tpu.memory_space<vmem>>, vector<2x448xbf16>
    tpu.vector_store %arg8[%c16_221, %c0_222], %124 {strides = array<i32>} : memref<18x448xbf16, #tpu.memory_space<vmem>>, vector<2x448xbf16>,
    %c0_223 = arith.constant 0 : index
    %c0_224 = arith.constant 0 : index
    %126 = vector.load %arg8[%c0_223, %c0_224] : memref<18x448xbf16, #tpu.memory_space<vmem>>, vector<18x448xbf16>
    %c3_225 = arith.constant 3 : index
    %c0_226 = arith.constant 0 : index
    %c0_227 = arith.constant 0 : index
    %127 = vector.load %arg1[%c3_225, %c0_226, %c0_227] : memref<9x448x128xbf16, #tpu.memory_space<vmem>>, vector<1x448x128xbf16>
    %128 = vector.shape_cast %127 : vector<1x448x128xbf16> to vector<448x128xbf16>
    %cst_228 = arith.constant dense<0.000000e+00> : vector<18x128xf32>
    %129 = tpu.matmul %126, %128, %cst_228 {dimension_numbers = #tpu.dot_dimension_numbers<[1], [0], [0], [1], [0, 0, 1, 1], [], []>} : vector<18x448xbf16>, vector<448x128xbf16>, vector<18x128xf32> -> vector<18x128xf32>
    %130 = arith.addf %98, %129 : vector<18x128xf32>
    %c0_229 = arith.constant 0 : index
    %c1_230 = arith.constant 1 : index
    %c1_231 = arith.constant 1 : index
    %c0_232 = arith.constant 0 : index
    %131 = vector.load %arg0[%c0_229, %c1_230, %c1_231, %c0_232] : memref<2x7x7x448xbf16, #tpu.memory_space<vmem>>, vector<2x1x1x448xbf16>
    %132 = vector.shape_cast %131 : vector<2x1x1x448xbf16> to vector<2x448xbf16>
    %c0_233 = arith.constant 0 : index
    %c0_234 = arith.constant 0 : index
    %133 = vector.load %arg8[%c0_233, %c0_234] : memref<18x448xbf16, #tpu.memory_space<vmem>>, vector<2x448xbf16>
    tpu.vector_store %arg8[%c0_233, %c0_234], %132 {strides = array<i32>} : memref<18x448xbf16, #tpu.memory_space<vmem>>, vector<2x448xbf16>,
    %c0_235 = arith.constant 0 : index
    %c1_236 = arith.constant 1 : index
    %c3_237 = arith.constant 3 : index
    %c0_238 = arith.constant 0 : index
    %134 = vector.load %arg0[%c0_235, %c1_236, %c3_237, %c0_238] : memref<2x7x7x448xbf16, #tpu.memory_space<vmem>>, vector<2x1x1x448xbf16>
    %135 = vector.shape_cast %134 : vector<2x1x1x448xbf16> to vector<2x448xbf16>
    %c2_239 = arith.constant 2 : index
    %c0_240 = arith.constant 0 : index
    %136 = vector.load %arg8[%c2_239, %c0_240] : memref<18x448xbf16, #tpu.memory_space<vmem>>, vector<2x448xbf16>
    tpu.vector_store %arg8[%c2_239, %c0_240], %135 {strides = array<i32>} : memref<18x448xbf16, #tpu.memory_space<vmem>>, vector<2x448xbf16>,
    %c0_241 = arith.constant 0 : index
    %c1_242 = arith.constant 1 : index
    %c5_243 = arith.constant 5 : index
    %c0_244 = arith.constant 0 : index
    %137 = vector.load %arg0[%c0_241, %c1_242, %c5_243, %c0_244] : memref<2x7x7x448xbf16, #tpu.memory_space<vmem>>, vector<2x1x1x448xbf16>
    %138 = vector.shape_cast %137 : vector<2x1x1x448xbf16> to vector<2x448xbf16>
    %c4_245 = arith.constant 4 : index
    %c0_246 = arith.constant 0 : index
    %139 = vector.load %arg8[%c4_245, %c0_246] : memref<18x448xbf16, #tpu.memory_space<vmem>>, vector<2x448xbf16>
    tpu.vector_store %arg8[%c4_245, %c0_246], %138 {strides = array<i32>} : memref<18x448xbf16, #tpu.memory_space<vmem>>, vector<2x448xbf16>,
    %c0_247 = arith.constant 0 : index
    %c3_248 = arith.constant 3 : index
    %c1_249 = arith.constant 1 : index
    %c0_250 = arith.constant 0 : index
    %140 = vector.load %arg0[%c0_247, %c3_248, %c1_249, %c0_250] : memref<2x7x7x448xbf16, #tpu.memory_space<vmem>>, vector<2x1x1x448xbf16>
    %141 = vector.shape_cast %140 : vector<2x1x1x448xbf16> to vector<2x448xbf16>
    %c6_251 = arith.constant 6 : index
    %c0_252 = arith.constant 0 : index
    %142 = vector.load %arg8[%c6_251, %c0_252] : memref<18x448xbf16, #tpu.memory_space<vmem>>, vector<2x448xbf16>
    tpu.vector_store %arg8[%c6_251, %c0_252], %141 {strides = array<i32>} : memref<18x448xbf16, #tpu.memory_space<vmem>>, vector<2x448xbf16>,
    %c0_253 = arith.constant 0 : index
    %c3_254 = arith.constant 3 : index
    %c3_255 = arith.constant 3 : index
    %c0_256 = arith.constant 0 : index
    %143 = vector.load %arg0[%c0_253, %c3_254, %c3_255, %c0_256] : memref<2x7x7x448xbf16, #tpu.memory_space<vmem>>, vector<2x1x1x448xbf16>
    %144 = vector.shape_cast %143 : vector<2x1x1x448xbf16> to vector<2x448xbf16>
    %c8_257 = arith.constant 8 : index
    %c0_258 = arith.constant 0 : index
    %145 = vector.load %arg8[%c8_257, %c0_258] : memref<18x448xbf16, #tpu.memory_space<vmem>>, vector<2x448xbf16>
    tpu.vector_store %arg8[%c8_257, %c0_258], %144 {strides = array<i32>} : memref<18x448xbf16, #tpu.memory_space<vmem>>, vector<2x448xbf16>,
    %c0_259 = arith.constant 0 : index
    %c3_260 = arith.constant 3 : index
    %c5_261 = arith.constant 5 : index
    %c0_262 = arith.constant 0 : index
    %146 = vector.load %arg0[%c0_259, %c3_260, %c5_261, %c0_262] : memref<2x7x7x448xbf16, #tpu.memory_space<vmem>>, vector<2x1x1x448xbf16>
    %147 = vector.shape_cast %146 : vector<2x1x1x448xbf16> to vector<2x448xbf16>
    %c10_263 = arith.constant 10 : index
    %c0_264 = arith.constant 0 : index
    %148 = vector.load %arg8[%c10_263, %c0_264] : memref<18x448xbf16, #tpu.memory_space<vmem>>, vector<2x448xbf16>
    tpu.vector_store %arg8[%c10_263, %c0_264], %147 {strides = array<i32>} : memref<18x448xbf16, #tpu.memory_space<vmem>>, vector<2x448xbf16>,
    %c0_265 = arith.constant 0 : index
    %c5_266 = arith.constant 5 : index
    %c1_267 = arith.constant 1 : index
    %c0_268 = arith.constant 0 : index
    %149 = vector.load %arg0[%c0_265, %c5_266, %c1_267, %c0_268] : memref<2x7x7x448xbf16, #tpu.memory_space<vmem>>, vector<2x1x1x448xbf16>
    %150 = vector.shape_cast %149 : vector<2x1x1x448xbf16> to vector<2x448xbf16>
    %c12_269 = arith.constant 12 : index
    %c0_270 = arith.constant 0 : index
    %151 = vector.load %arg8[%c12_269, %c0_270] : memref<18x448xbf16, #tpu.memory_space<vmem>>, vector<2x448xbf16>
    tpu.vector_store %arg8[%c12_269, %c0_270], %150 {strides = array<i32>} : memref<18x448xbf16, #tpu.memory_space<vmem>>, vector<2x448xbf16>,
    %c0_271 = arith.constant 0 : index
    %c5_272 = arith.constant 5 : index
    %c3_273 = arith.constant 3 : index
    %c0_274 = arith.constant 0 : index
    %152 = vector.load %arg0[%c0_271, %c5_272, %c3_273, %c0_274] : memref<2x7x7x448xbf16, #tpu.memory_space<vmem>>, vector<2x1x1x448xbf16>
    %153 = vector.shape_cast %152 : vector<2x1x1x448xbf16> to vector<2x448xbf16>
    %c14_275 = arith.constant 14 : index
    %c0_276 = arith.constant 0 : index
    %154 = vector.load %arg8[%c14_275, %c0_276] : memref<18x448xbf16, #tpu.memory_space<vmem>>, vector<2x448xbf16>
    tpu.vector_store %arg8[%c14_275, %c0_276], %153 {strides = array<i32>} : memref<18x448xbf16, #tpu.memory_space<vmem>>, vector<2x448xbf16>,
    %c0_277 = arith.constant 0 : index
    %c5_278 = arith.constant 5 : index
    %c5_279 = arith.constant 5 : index
    %c0_280 = arith.constant 0 : index
    %155 = vector.load %arg0[%c0_277, %c5_278, %c5_279, %c0_280] : memref<2x7x7x448xbf16, #tpu.memory_space<vmem>>, vector<2x1x1x448xbf16>
    %156 = vector.shape_cast %155 : vector<2x1x1x448xbf16> to vector<2x448xbf16>
    %c16_281 = arith.constant 16 : index
    %c0_282 = arith.constant 0 : index
    %157 = vector.load %arg8[%c16_281, %c0_282] : memref<18x448xbf16, #tpu.memory_space<vmem>>, vector<2x448xbf16>
    tpu.vector_store %arg8[%c16_281, %c0_282], %156 {strides = array<i32>} : memref<18x448xbf16, #tpu.memory_space<vmem>>, vector<2x448xbf16>,
    %c0_283 = arith.constant 0 : index
    %c0_284 = arith.constant 0 : index
    %158 = vector.load %arg8[%c0_283, %c0_284] : memref<18x448xbf16, #tpu.memory_space<vmem>>, vector<18x448xbf16>
    %c4_285 = arith.constant 4 : index
    %c0_286 = arith.constant 0 : index
    %c0_287 = arith.constant 0 : index
    %159 = vector.load %arg1[%c4_285, %c0_286, %c0_287] : memref<9x448x128xbf16, #tpu.memory_space<vmem>>, vector<1x448x128xbf16>
    %160 = vector.shape_cast %159 : vector<1x448x128xbf16> to vector<448x128xbf16>
    %cst_288 = arith.constant dense<0.000000e+00> : vector<18x128xf32>
    %161 = tpu.matmul %158, %160, %cst_288 {dimension_numbers = #tpu.dot_dimension_numbers<[1], [0], [0], [1], [0, 0, 1, 1], [], []>} : vector<18x448xbf16>, vector<448x128xbf16>, vector<18x128xf32> -> vector<18x128xf32>
    %162 = arith.addf %130, %161 : vector<18x128xf32>
    %c0_289 = arith.constant 0 : index
    %c1_290 = arith.constant 1 : index
    %c2_291 = arith.constant 2 : index
    %c0_292 = arith.constant 0 : index
    %163 = vector.load %arg0[%c0_289, %c1_290, %c2_291, %c0_292] : memref<2x7x7x448xbf16, #tpu.memory_space<vmem>>, vector<2x1x1x448xbf16>
    %164 = vector.shape_cast %163 : vector<2x1x1x448xbf16> to vector<2x448xbf16>
    %c0_293 = arith.constant 0 : index
    %c0_294 = arith.constant 0 : index
    %165 = vector.load %arg8[%c0_293, %c0_294] : memref<18x448xbf16, #tpu.memory_space<vmem>>, vector<2x448xbf16>
    tpu.vector_store %arg8[%c0_293, %c0_294], %164 {strides = array<i32>} : memref<18x448xbf16, #tpu.memory_space<vmem>>, vector<2x448xbf16>,
    %c0_295 = arith.constant 0 : index
    %c1_296 = arith.constant 1 : index
    %c4_297 = arith.constant 4 : index
    %c0_298 = arith.constant 0 : index
    %166 = vector.load %arg0[%c0_295, %c1_296, %c4_297, %c0_298] : memref<2x7x7x448xbf16, #tpu.memory_space<vmem>>, vector<2x1x1x448xbf16>
    %167 = vector.shape_cast %166 : vector<2x1x1x448xbf16> to vector<2x448xbf16>
    %c2_299 = arith.constant 2 : index
    %c0_300 = arith.constant 0 : index
    %168 = vector.load %arg8[%c2_299, %c0_300] : memref<18x448xbf16, #tpu.memory_space<vmem>>, vector<2x448xbf16>
    tpu.vector_store %arg8[%c2_299, %c0_300], %167 {strides = array<i32>} : memref<18x448xbf16, #tpu.memory_space<vmem>>, vector<2x448xbf16>,
    %c0_301 = arith.constant 0 : index
    %c1_302 = arith.constant 1 : index
    %c6_303 = arith.constant 6 : index
    %c0_304 = arith.constant 0 : index
    %169 = vector.load %arg0[%c0_301, %c1_302, %c6_303, %c0_304] : memref<2x7x7x448xbf16, #tpu.memory_space<vmem>>, vector<2x1x1x448xbf16>
    %170 = vector.shape_cast %169 : vector<2x1x1x448xbf16> to vector<2x448xbf16>
    %c4_305 = arith.constant 4 : index
    %c0_306 = arith.constant 0 : index
    %171 = vector.load %arg8[%c4_305, %c0_306] : memref<18x448xbf16, #tpu.memory_space<vmem>>, vector<2x448xbf16>
    tpu.vector_store %arg8[%c4_305, %c0_306], %170 {strides = array<i32>} : memref<18x448xbf16, #tpu.memory_space<vmem>>, vector<2x448xbf16>,
    %c0_307 = arith.constant 0 : index
    %c3_308 = arith.constant 3 : index
    %c2_309 = arith.constant 2 : index
    %c0_310 = arith.constant 0 : index
    %172 = vector.load %arg0[%c0_307, %c3_308, %c2_309, %c0_310] : memref<2x7x7x448xbf16, #tpu.memory_space<vmem>>, vector<2x1x1x448xbf16>
    %173 = vector.shape_cast %172 : vector<2x1x1x448xbf16> to vector<2x448xbf16>
    %c6_311 = arith.constant 6 : index
    %c0_312 = arith.constant 0 : index
    %174 = vector.load %arg8[%c6_311, %c0_312] : memref<18x448xbf16, #tpu.memory_space<vmem>>, vector<2x448xbf16>
    tpu.vector_store %arg8[%c6_311, %c0_312], %173 {strides = array<i32>} : memref<18x448xbf16, #tpu.memory_space<vmem>>, vector<2x448xbf16>,
    %c0_313 = arith.constant 0 : index
    %c3_314 = arith.constant 3 : index
    %c4_315 = arith.constant 4 : index
    %c0_316 = arith.constant 0 : index
    %175 = vector.load %arg0[%c0_313, %c3_314, %c4_315, %c0_316] : memref<2x7x7x448xbf16, #tpu.memory_space<vmem>>, vector<2x1x1x448xbf16>
    %176 = vector.shape_cast %175 : vector<2x1x1x448xbf16> to vector<2x448xbf16>
    %c8_317 = arith.constant 8 : index
    %c0_318 = arith.constant 0 : index
    %177 = vector.load %arg8[%c8_317, %c0_318] : memref<18x448xbf16, #tpu.memory_space<vmem>>, vector<2x448xbf16>
    tpu.vector_store %arg8[%c8_317, %c0_318], %176 {strides = array<i32>} : memref<18x448xbf16, #tpu.memory_space<vmem>>, vector<2x448xbf16>,
    %c0_319 = arith.constant 0 : index
    %c3_320 = arith.constant 3 : index
    %c6_321 = arith.constant 6 : index
    %c0_322 = arith.constant 0 : index
    %178 = vector.load %arg0[%c0_319, %c3_320, %c6_321, %c0_322] : memref<2x7x7x448xbf16, #tpu.memory_space<vmem>>, vector<2x1x1x448xbf16>
    %179 = vector.shape_cast %178 : vector<2x1x1x448xbf16> to vector<2x448xbf16>
    %c10_323 = arith.constant 10 : index
    %c0_324 = arith.constant 0 : index
    %180 = vector.load %arg8[%c10_323, %c0_324] : memref<18x448xbf16, #tpu.memory_space<vmem>>, vector<2x448xbf16>
    tpu.vector_store %arg8[%c10_323, %c0_324], %179 {strides = array<i32>} : memref<18x448xbf16, #tpu.memory_space<vmem>>, vector<2x448xbf16>,
    %c0_325 = arith.constant 0 : index
    %c5_326 = arith.constant 5 : index
    %c2_327 = arith.constant 2 : index
    %c0_328 = arith.constant 0 : index
    %181 = vector.load %arg0[%c0_325, %c5_326, %c2_327, %c0_328] : memref<2x7x7x448xbf16, #tpu.memory_space<vmem>>, vector<2x1x1x448xbf16>
    %182 = vector.shape_cast %181 : vector<2x1x1x448xbf16> to vector<2x448xbf16>
    %c12_329 = arith.constant 12 : index
    %c0_330 = arith.constant 0 : index
    %183 = vector.load %arg8[%c12_329, %c0_330] : memref<18x448xbf16, #tpu.memory_space<vmem>>, vector<2x448xbf16>
    tpu.vector_store %arg8[%c12_329, %c0_330], %182 {strides = array<i32>} : memref<18x448xbf16, #tpu.memory_space<vmem>>, vector<2x448xbf16>,
    %c0_331 = arith.constant 0 : index
    %c5_332 = arith.constant 5 : index
    %c4_333 = arith.constant 4 : index
    %c0_334 = arith.constant 0 : index
    %184 = vector.load %arg0[%c0_331, %c5_332, %c4_333, %c0_334] : memref<2x7x7x448xbf16, #tpu.memory_space<vmem>>, vector<2x1x1x448xbf16>
    %185 = vector.shape_cast %184 : vector<2x1x1x448xbf16> to vector<2x448xbf16>
    %c14_335 = arith.constant 14 : index
    %c0_336 = arith.constant 0 : index
    %186 = vector.load %arg8[%c14_335, %c0_336] : memref<18x448xbf16, #tpu.memory_space<vmem>>, vector<2x448xbf16>
    tpu.vector_store %arg8[%c14_335, %c0_336], %185 {strides = array<i32>} : memref<18x448xbf16, #tpu.memory_space<vmem>>, vector<2x448xbf16>,
    %c0_337 = arith.constant 0 : index
    %c5_338 = arith.constant 5 : index
    %c6_339 = arith.constant 6 : index
    %c0_340 = arith.constant 0 : index
    %187 = vector.load %arg0[%c0_337, %c5_338, %c6_339, %c0_340] : memref<2x7x7x448xbf16, #tpu.memory_space<vmem>>, vector<2x1x1x448xbf16>
    %188 = vector.shape_cast %187 : vector<2x1x1x448xbf16> to vector<2x448xbf16>
    %c16_341 = arith.constant 16 : index
    %c0_342 = arith.constant 0 : index
    %189 = vector.load %arg8[%c16_341, %c0_342] : memref<18x448xbf16, #tpu.memory_space<vmem>>, vector<2x448xbf16>
    tpu.vector_store %arg8[%c16_341, %c0_342], %188 {strides = array<i32>} : memref<18x448xbf16, #tpu.memory_space<vmem>>, vector<2x448xbf16>,
    %c0_343 = arith.constant 0 : index
    %c0_344 = arith.constant 0 : index
    %190 = vector.load %arg8[%c0_343, %c0_344] : memref<18x448xbf16, #tpu.memory_space<vmem>>, vector<18x448xbf16>
    %c5_345 = arith.constant 5 : index
    %c0_346 = arith.constant 0 : index
    %c0_347 = arith.constant 0 : index
    %191 = vector.load %arg1[%c5_345, %c0_346, %c0_347] : memref<9x448x128xbf16, #tpu.memory_space<vmem>>, vector<1x448x128xbf16>
    %192 = vector.shape_cast %191 : vector<1x448x128xbf16> to vector<448x128xbf16>
    %cst_348 = arith.constant dense<0.000000e+00> : vector<18x128xf32>
    %193 = tpu.matmul %190, %192, %cst_348 {dimension_numbers = #tpu.dot_dimension_numbers<[1], [0], [0], [1], [0, 0, 1, 1], [], []>} : vector<18x448xbf16>, vector<448x128xbf16>, vector<18x128xf32> -> vector<18x128xf32>
    %194 = arith.addf %162, %193 : vector<18x128xf32>
    %c0_349 = arith.constant 0 : index
    %c2_350 = arith.constant 2 : index
    %c0_351 = arith.constant 0 : index
    %c0_352 = arith.constant 0 : index
    %195 = vector.load %arg0[%c0_349, %c2_350, %c0_351, %c0_352] : memref<2x7x7x448xbf16, #tpu.memory_space<vmem>>, vector<2x1x1x448xbf16>
    %196 = vector.shape_cast %195 : vector<2x1x1x448xbf16> to vector<2x448xbf16>
    %c0_353 = arith.constant 0 : index
    %c0_354 = arith.constant 0 : index
    %197 = vector.load %arg8[%c0_353, %c0_354] : memref<18x448xbf16, #tpu.memory_space<vmem>>, vector<2x448xbf16>
    tpu.vector_store %arg8[%c0_353, %c0_354], %196 {strides = array<i32>} : memref<18x448xbf16, #tpu.memory_space<vmem>>, vector<2x448xbf16>,
    %c0_355 = arith.constant 0 : index
    %c2_356 = arith.constant 2 : index
    %c2_357 = arith.constant 2 : index
    %c0_358 = arith.constant 0 : index
    %198 = vector.load %arg0[%c0_355, %c2_356, %c2_357, %c0_358] : memref<2x7x7x448xbf16, #tpu.memory_space<vmem>>, vector<2x1x1x448xbf16>
    %199 = vector.shape_cast %198 : vector<2x1x1x448xbf16> to vector<2x448xbf16>
    %c2_359 = arith.constant 2 : index
    %c0_360 = arith.constant 0 : index
    %200 = vector.load %arg8[%c2_359, %c0_360] : memref<18x448xbf16, #tpu.memory_space<vmem>>, vector<2x448xbf16>
    tpu.vector_store %arg8[%c2_359, %c0_360], %199 {strides = array<i32>} : memref<18x448xbf16, #tpu.memory_space<vmem>>, vector<2x448xbf16>,
    %c0_361 = arith.constant 0 : index
    %c2_362 = arith.constant 2 : index
    %c4_363 = arith.constant 4 : index
    %c0_364 = arith.constant 0 : index
    %201 = vector.load %arg0[%c0_361, %c2_362, %c4_363, %c0_364] : memref<2x7x7x448xbf16, #tpu.memory_space<vmem>>, vector<2x1x1x448xbf16>
    %202 = vector.shape_cast %201 : vector<2x1x1x448xbf16> to vector<2x448xbf16>
    %c4_365 = arith.constant 4 : index
    %c0_366 = arith.constant 0 : index
    %203 = vector.load %arg8[%c4_365, %c0_366] : memref<18x448xbf16, #tpu.memory_space<vmem>>, vector<2x448xbf16>
    tpu.vector_store %arg8[%c4_365, %c0_366], %202 {strides = array<i32>} : memref<18x448xbf16, #tpu.memory_space<vmem>>, vector<2x448xbf16>,
    %c0_367 = arith.constant 0 : index
    %c4_368 = arith.constant 4 : index
    %c0_369 = arith.constant 0 : index
    %c0_370 = arith.constant 0 : index
    %204 = vector.load %arg0[%c0_367, %c4_368, %c0_369, %c0_370] : memref<2x7x7x448xbf16, #tpu.memory_space<vmem>>, vector<2x1x1x448xbf16>
    %205 = vector.shape_cast %204 : vector<2x1x1x448xbf16> to vector<2x448xbf16>
    %c6_371 = arith.constant 6 : index
    %c0_372 = arith.constant 0 : index
    %206 = vector.load %arg8[%c6_371, %c0_372] : memref<18x448xbf16, #tpu.memory_space<vmem>>, vector<2x448xbf16>
    tpu.vector_store %arg8[%c6_371, %c0_372], %205 {strides = array<i32>} : memref<18x448xbf16, #tpu.memory_space<vmem>>, vector<2x448xbf16>,
    %c0_373 = arith.constant 0 : index
    %c4_374 = arith.constant 4 : index
    %c2_375 = arith.constant 2 : index
    %c0_376 = arith.constant 0 : index
    %207 = vector.load %arg0[%c0_373, %c4_374, %c2_375, %c0_376] : memref<2x7x7x448xbf16, #tpu.memory_space<vmem>>, vector<2x1x1x448xbf16>
    %208 = vector.shape_cast %207 : vector<2x1x1x448xbf16> to vector<2x448xbf16>
    %c8_377 = arith.constant 8 : index
    %c0_378 = arith.constant 0 : index
    %209 = vector.load %arg8[%c8_377, %c0_378] : memref<18x448xbf16, #tpu.memory_space<vmem>>, vector<2x448xbf16>
    tpu.vector_store %arg8[%c8_377, %c0_378], %208 {strides = array<i32>} : memref<18x448xbf16, #tpu.memory_space<vmem>>, vector<2x448xbf16>,
    %c0_379 = arith.constant 0 : index
    %c4_380 = arith.constant 4 : index
    %c4_381 = arith.constant 4 : index
    %c0_382 = arith.constant 0 : index
    %210 = vector.load %arg0[%c0_379, %c4_380, %c4_381, %c0_382] : memref<2x7x7x448xbf16, #tpu.memory_space<vmem>>, vector<2x1x1x448xbf16>
    %211 = vector.shape_cast %210 : vector<2x1x1x448xbf16> to vector<2x448xbf16>
    %c10_383 = arith.constant 10 : index
    %c0_384 = arith.constant 0 : index
    %212 = vector.load %arg8[%c10_383, %c0_384] : memref<18x448xbf16, #tpu.memory_space<vmem>>, vector<2x448xbf16>
    tpu.vector_store %arg8[%c10_383, %c0_384], %211 {strides = array<i32>} : memref<18x448xbf16, #tpu.memory_space<vmem>>, vector<2x448xbf16>,
    %c0_385 = arith.constant 0 : index
    %c6_386 = arith.constant 6 : index
    %c0_387 = arith.constant 0 : index
    %c0_388 = arith.constant 0 : index
    %213 = vector.load %arg0[%c0_385, %c6_386, %c0_387, %c0_388] : memref<2x7x7x448xbf16, #tpu.memory_space<vmem>>, vector<2x1x1x448xbf16>
    %214 = vector.shape_cast %213 : vector<2x1x1x448xbf16> to vector<2x448xbf16>
    %c12_389 = arith.constant 12 : index
    %c0_390 = arith.constant 0 : index
    %215 = vector.load %arg8[%c12_389, %c0_390] : memref<18x448xbf16, #tpu.memory_space<vmem>>, vector<2x448xbf16>
    tpu.vector_store %arg8[%c12_389, %c0_390], %214 {strides = array<i32>} : memref<18x448xbf16, #tpu.memory_space<vmem>>, vector<2x448xbf16>,
    %c0_391 = arith.constant 0 : index
    %c6_392 = arith.constant 6 : index
    %c2_393 = arith.constant 2 : index
    %c0_394 = arith.constant 0 : index
    %216 = vector.load %arg0[%c0_391, %c6_392, %c2_393, %c0_394] : memref<2x7x7x448xbf16, #tpu.memory_space<vmem>>, vector<2x1x1x448xbf16>
    %217 = vector.shape_cast %216 : vector<2x1x1x448xbf16> to vector<2x448xbf16>
    %c14_395 = arith.constant 14 : index
    %c0_396 = arith.constant 0 : index
    %218 = vector.load %arg8[%c14_395, %c0_396] : memref<18x448xbf16, #tpu.memory_space<vmem>>, vector<2x448xbf16>
    tpu.vector_store %arg8[%c14_395, %c0_396], %217 {strides = array<i32>} : memref<18x448xbf16, #tpu.memory_space<vmem>>, vector<2x448xbf16>,
    %c0_397 = arith.constant 0 : index
    %c6_398 = arith.constant 6 : index
    %c4_399 = arith.constant 4 : index
    %c0_400 = arith.constant 0 : index
    %219 = vector.load %arg0[%c0_397, %c6_398, %c4_399, %c0_400] : memref<2x7x7x448xbf16, #tpu.memory_space<vmem>>, vector<2x1x1x448xbf16>
    %220 = vector.shape_cast %219 : vector<2x1x1x448xbf16> to vector<2x448xbf16>
    %c16_401 = arith.constant 16 : index
    %c0_402 = arith.constant 0 : index
    %221 = vector.load %arg8[%c16_401, %c0_402] : memref<18x448xbf16, #tpu.memory_space<vmem>>, vector<2x448xbf16>
    tpu.vector_store %arg8[%c16_401, %c0_402], %220 {strides = array<i32>} : memref<18x448xbf16, #tpu.memory_space<vmem>>, vector<2x448xbf16>,
    %c0_403 = arith.constant 0 : index
    %c0_404 = arith.constant 0 : index
    %222 = vector.load %arg8[%c0_403, %c0_404] : memref<18x448xbf16, #tpu.memory_space<vmem>>, vector<18x448xbf16>
    %c6_405 = arith.constant 6 : index
    %c0_406 = arith.constant 0 : index
    %c0_407 = arith.constant 0 : index
    %223 = vector.load %arg1[%c6_405, %c0_406, %c0_407] : memref<9x448x128xbf16, #tpu.memory_space<vmem>>, vector<1x448x128xbf16>
    %224 = vector.shape_cast %223 : vector<1x448x128xbf16> to vector<448x128xbf16>
    %cst_408 = arith.constant dense<0.000000e+00> : vector<18x128xf32>
    %225 = tpu.matmul %222, %224, %cst_408 {dimension_numbers = #tpu.dot_dimension_numbers<[1], [0], [0], [1], [0, 0, 1, 1], [], []>} : vector<18x448xbf16>, vector<448x128xbf16>, vector<18x128xf32> -> vector<18x128xf32>
    %226 = arith.addf %194, %225 : vector<18x128xf32>
    %c0_409 = arith.constant 0 : index
    %c2_410 = arith.constant 2 : index
    %c1_411 = arith.constant 1 : index
    %c0_412 = arith.constant 0 : index
    %227 = vector.load %arg0[%c0_409, %c2_410, %c1_411, %c0_412] : memref<2x7x7x448xbf16, #tpu.memory_space<vmem>>, vector<2x1x1x448xbf16>
    %228 = vector.shape_cast %227 : vector<2x1x1x448xbf16> to vector<2x448xbf16>
    %c0_413 = arith.constant 0 : index
    %c0_414 = arith.constant 0 : index
    %229 = vector.load %arg8[%c0_413, %c0_414] : memref<18x448xbf16, #tpu.memory_space<vmem>>, vector<2x448xbf16>
    tpu.vector_store %arg8[%c0_413, %c0_414], %228 {strides = array<i32>} : memref<18x448xbf16, #tpu.memory_space<vmem>>, vector<2x448xbf16>,
    %c0_415 = arith.constant 0 : index
    %c2_416 = arith.constant 2 : index
    %c3_417 = arith.constant 3 : index
    %c0_418 = arith.constant 0 : index
    %230 = vector.load %arg0[%c0_415, %c2_416, %c3_417, %c0_418] : memref<2x7x7x448xbf16, #tpu.memory_space<vmem>>, vector<2x1x1x448xbf16>
    %231 = vector.shape_cast %230 : vector<2x1x1x448xbf16> to vector<2x448xbf16>
    %c2_419 = arith.constant 2 : index
    %c0_420 = arith.constant 0 : index
    %232 = vector.load %arg8[%c2_419, %c0_420] : memref<18x448xbf16, #tpu.memory_space<vmem>>, vector<2x448xbf16>
    tpu.vector_store %arg8[%c2_419, %c0_420], %231 {strides = array<i32>} : memref<18x448xbf16, #tpu.memory_space<vmem>>, vector<2x448xbf16>,
    %c0_421 = arith.constant 0 : index
    %c2_422 = arith.constant 2 : index
    %c5_423 = arith.constant 5 : index
    %c0_424 = arith.constant 0 : index
    %233 = vector.load %arg0[%c0_421, %c2_422, %c5_423, %c0_424] : memref<2x7x7x448xbf16, #tpu.memory_space<vmem>>, vector<2x1x1x448xbf16>
    %234 = vector.shape_cast %233 : vector<2x1x1x448xbf16> to vector<2x448xbf16>
    %c4_425 = arith.constant 4 : index
    %c0_426 = arith.constant 0 : index
    %235 = vector.load %arg8[%c4_425, %c0_426] : memref<18x448xbf16, #tpu.memory_space<vmem>>, vector<2x448xbf16>
    tpu.vector_store %arg8[%c4_425, %c0_426], %234 {strides = array<i32>} : memref<18x448xbf16, #tpu.memory_space<vmem>>, vector<2x448xbf16>,
    %c0_427 = arith.constant 0 : index
    %c4_428 = arith.constant 4 : index
    %c1_429 = arith.constant 1 : index
    %c0_430 = arith.constant 0 : index
    %236 = vector.load %arg0[%c0_427, %c4_428, %c1_429, %c0_430] : memref<2x7x7x448xbf16, #tpu.memory_space<vmem>>, vector<2x1x1x448xbf16>
    %237 = vector.shape_cast %236 : vector<2x1x1x448xbf16> to vector<2x448xbf16>
    %c6_431 = arith.constant 6 : index
    %c0_432 = arith.constant 0 : index
    %238 = vector.load %arg8[%c6_431, %c0_432] : memref<18x448xbf16, #tpu.memory_space<vmem>>, vector<2x448xbf16>
    tpu.vector_store %arg8[%c6_431, %c0_432], %237 {strides = array<i32>} : memref<18x448xbf16, #tpu.memory_space<vmem>>, vector<2x448xbf16>,
    %c0_433 = arith.constant 0 : index
    %c4_434 = arith.constant 4 : index
    %c3_435 = arith.constant 3 : index
    %c0_436 = arith.constant 0 : index
    %239 = vector.load %arg0[%c0_433, %c4_434, %c3_435, %c0_436] : memref<2x7x7x448xbf16, #tpu.memory_space<vmem>>, vector<2x1x1x448xbf16>
    %240 = vector.shape_cast %239 : vector<2x1x1x448xbf16> to vector<2x448xbf16>
    %c8_437 = arith.constant 8 : index
    %c0_438 = arith.constant 0 : index
    %241 = vector.load %arg8[%c8_437, %c0_438] : memref<18x448xbf16, #tpu.memory_space<vmem>>, vector<2x448xbf16>
    tpu.vector_store %arg8[%c8_437, %c0_438], %240 {strides = array<i32>} : memref<18x448xbf16, #tpu.memory_space<vmem>>, vector<2x448xbf16>,
    %c0_439 = arith.constant 0 : index
    %c4_440 = arith.constant 4 : index
    %c5_441 = arith.constant 5 : index
    %c0_442 = arith.constant 0 : index
    %242 = vector.load %arg0[%c0_439, %c4_440, %c5_441, %c0_442] : memref<2x7x7x448xbf16, #tpu.memory_space<vmem>>, vector<2x1x1x448xbf16>
    %243 = vector.shape_cast %242 : vector<2x1x1x448xbf16> to vector<2x448xbf16>
    %c10_443 = arith.constant 10 : index
    %c0_444 = arith.constant 0 : index
    %244 = vector.load %arg8[%c10_443, %c0_444] : memref<18x448xbf16, #tpu.memory_space<vmem>>, vector<2x448xbf16>
    tpu.vector_store %arg8[%c10_443, %c0_444], %243 {strides = array<i32>} : memref<18x448xbf16, #tpu.memory_space<vmem>>, vector<2x448xbf16>,
    %c0_445 = arith.constant 0 : index
    %c6_446 = arith.constant 6 : index
    %c1_447 = arith.constant 1 : index
    %c0_448 = arith.constant 0 : index
    %245 = vector.load %arg0[%c0_445, %c6_446, %c1_447, %c0_448] : memref<2x7x7x448xbf16, #tpu.memory_space<vmem>>, vector<2x1x1x448xbf16>
    %246 = vector.shape_cast %245 : vector<2x1x1x448xbf16> to vector<2x448xbf16>
    %c12_449 = arith.constant 12 : index
    %c0_450 = arith.constant 0 : index
    %247 = vector.load %arg8[%c12_449, %c0_450] : memref<18x448xbf16, #tpu.memory_space<vmem>>, vector<2x448xbf16>
    tpu.vector_store %arg8[%c12_449, %c0_450], %246 {strides = array<i32>} : memref<18x448xbf16, #tpu.memory_space<vmem>>, vector<2x448xbf16>,
    %c0_451 = arith.constant 0 : index
    %c6_452 = arith.constant 6 : index
    %c3_453 = arith.constant 3 : index
    %c0_454 = arith.constant 0 : index
    %248 = vector.load %arg0[%c0_451, %c6_452, %c3_453, %c0_454] : memref<2x7x7x448xbf16, #tpu.memory_space<vmem>>, vector<2x1x1x448xbf16>
    %249 = vector.shape_cast %248 : vector<2x1x1x448xbf16> to vector<2x448xbf16>
    %c14_455 = arith.constant 14 : index
    %c0_456 = arith.constant 0 : index
    %250 = vector.load %arg8[%c14_455, %c0_456] : memref<18x448xbf16, #tpu.memory_space<vmem>>, vector<2x448xbf16>
    tpu.vector_store %arg8[%c14_455, %c0_456], %249 {strides = array<i32>} : memref<18x448xbf16, #tpu.memory_space<vmem>>, vector<2x448xbf16>,
    %c0_457 = arith.constant 0 : index
    %c6_458 = arith.constant 6 : index
    %c5_459 = arith.constant 5 : index
    %c0_460 = arith.constant 0 : index
    %251 = vector.load %arg0[%c0_457, %c6_458, %c5_459, %c0_460] : memref<2x7x7x448xbf16, #tpu.memory_space<vmem>>, vector<2x1x1x448xbf16>
    %252 = vector.shape_cast %251 : vector<2x1x1x448xbf16> to vector<2x448xbf16>
    %c16_461 = arith.constant 16 : index
    %c0_462 = arith.constant 0 : index
    %253 = vector.load %arg8[%c16_461, %c0_462] : memref<18x448xbf16, #tpu.memory_space<vmem>>, vector<2x448xbf16>
    tpu.vector_store %arg8[%c16_461, %c0_462], %252 {strides = array<i32>} : memref<18x448xbf16, #tpu.memory_space<vmem>>, vector<2x448xbf16>,
    %c0_463 = arith.constant 0 : index
    %c0_464 = arith.constant 0 : index
    %254 = vector.load %arg8[%c0_463, %c0_464] : memref<18x448xbf16, #tpu.memory_space<vmem>>, vector<18x448xbf16>
    %c7 = arith.constant 7 : index
    %c0_465 = arith.constant 0 : index
    %c0_466 = arith.constant 0 : index
    %255 = vector.load %arg1[%c7, %c0_465, %c0_466] : memref<9x448x128xbf16, #tpu.memory_space<vmem>>, vector<1x448x128xbf16>
    %256 = vector.shape_cast %255 : vector<1x448x128xbf16> to vector<448x128xbf16>
    %cst_467 = arith.constant dense<0.000000e+00> : vector<18x128xf32>
    %257 = tpu.matmul %254, %256, %cst_467 {dimension_numbers = #tpu.dot_dimension_numbers<[1], [0], [0], [1], [0, 0, 1, 1], [], []>} : vector<18x448xbf16>, vector<448x128xbf16>, vector<18x128xf32> -> vector<18x128xf32>
    %258 = arith.addf %226, %257 : vector<18x128xf32>
    %c0_468 = arith.constant 0 : index
    %c2_469 = arith.constant 2 : index
    %c2_470 = arith.constant 2 : index
    %c0_471 = arith.constant 0 : index
    %259 = vector.load %arg0[%c0_468, %c2_469, %c2_470, %c0_471] : memref<2x7x7x448xbf16, #tpu.memory_space<vmem>>, vector<2x1x1x448xbf16>
    %260 = vector.shape_cast %259 : vector<2x1x1x448xbf16> to vector<2x448xbf16>
    %c0_472 = arith.constant 0 : index
    %c0_473 = arith.constant 0 : index
    %261 = vector.load %arg8[%c0_472, %c0_473] : memref<18x448xbf16, #tpu.memory_space<vmem>>, vector<2x448xbf16>
    tpu.vector_store %arg8[%c0_472, %c0_473], %260 {strides = array<i32>} : memref<18x448xbf16, #tpu.memory_space<vmem>>, vector<2x448xbf16>,
    %c0_474 = arith.constant 0 : index
    %c2_475 = arith.constant 2 : index
    %c4_476 = arith.constant 4 : index
    %c0_477 = arith.constant 0 : index
    %262 = vector.load %arg0[%c0_474, %c2_475, %c4_476, %c0_477] : memref<2x7x7x448xbf16, #tpu.memory_space<vmem>>, vector<2x1x1x448xbf16>
    %263 = vector.shape_cast %262 : vector<2x1x1x448xbf16> to vector<2x448xbf16>
    %c2_478 = arith.constant 2 : index
    %c0_479 = arith.constant 0 : index
    %264 = vector.load %arg8[%c2_478, %c0_479] : memref<18x448xbf16, #tpu.memory_space<vmem>>, vector<2x448xbf16>
    tpu.vector_store %arg8[%c2_478, %c0_479], %263 {strides = array<i32>} : memref<18x448xbf16, #tpu.memory_space<vmem>>, vector<2x448xbf16>,
    %c0_480 = arith.constant 0 : index
    %c2_481 = arith.constant 2 : index
    %c6_482 = arith.constant 6 : index
    %c0_483 = arith.constant 0 : index
    %265 = vector.load %arg0[%c0_480, %c2_481, %c6_482, %c0_483] : memref<2x7x7x448xbf16, #tpu.memory_space<vmem>>, vector<2x1x1x448xbf16>
    %266 = vector.shape_cast %265 : vector<2x1x1x448xbf16> to vector<2x448xbf16>
    %c4_484 = arith.constant 4 : index
    %c0_485 = arith.constant 0 : index
    %267 = vector.load %arg8[%c4_484, %c0_485] : memref<18x448xbf16, #tpu.memory_space<vmem>>, vector<2x448xbf16>
    tpu.vector_store %arg8[%c4_484, %c0_485], %266 {strides = array<i32>} : memref<18x448xbf16, #tpu.memory_space<vmem>>, vector<2x448xbf16>,
    %c0_486 = arith.constant 0 : index
    %c4_487 = arith.constant 4 : index
    %c2_488 = arith.constant 2 : index
    %c0_489 = arith.constant 0 : index
    %268 = vector.load %arg0[%c0_486, %c4_487, %c2_488, %c0_489] : memref<2x7x7x448xbf16, #tpu.memory_space<vmem>>, vector<2x1x1x448xbf16>
    %269 = vector.shape_cast %268 : vector<2x1x1x448xbf16> to vector<2x448xbf16>
    %c6_490 = arith.constant 6 : index
    %c0_491 = arith.constant 0 : index
    %270 = vector.load %arg8[%c6_490, %c0_491] : memref<18x448xbf16, #tpu.memory_space<vmem>>, vector<2x448xbf16>
    tpu.vector_store %arg8[%c6_490, %c0_491], %269 {strides = array<i32>} : memref<18x448xbf16, #tpu.memory_space<vmem>>, vector<2x448xbf16>,
    %c0_492 = arith.constant 0 : index
    %c4_493 = arith.constant 4 : index
    %c4_494 = arith.constant 4 : index
    %c0_495 = arith.constant 0 : index
    %271 = vector.load %arg0[%c0_492, %c4_493, %c4_494, %c0_495] : memref<2x7x7x448xbf16, #tpu.memory_space<vmem>>, vector<2x1x1x448xbf16>
    %272 = vector.shape_cast %271 : vector<2x1x1x448xbf16> to vector<2x448xbf16>
    %c8_496 = arith.constant 8 : index
    %c0_497 = arith.constant 0 : index
    %273 = vector.load %arg8[%c8_496, %c0_497] : memref<18x448xbf16, #tpu.memory_space<vmem>>, vector<2x448xbf16>
    tpu.vector_store %arg8[%c8_496, %c0_497], %272 {strides = array<i32>} : memref<18x448xbf16, #tpu.memory_space<vmem>>, vector<2x448xbf16>,
    %c0_498 = arith.constant 0 : index
    %c4_499 = arith.constant 4 : index
    %c6_500 = arith.constant 6 : index
    %c0_501 = arith.constant 0 : index
    %274 = vector.load %arg0[%c0_498, %c4_499, %c6_500, %c0_501] : memref<2x7x7x448xbf16, #tpu.memory_space<vmem>>, vector<2x1x1x448xbf16>
    %275 = vector.shape_cast %274 : vector<2x1x1x448xbf16> to vector<2x448xbf16>
    %c10_502 = arith.constant 10 : index
    %c0_503 = arith.constant 0 : index
    %276 = vector.load %arg8[%c10_502, %c0_503] : memref<18x448xbf16, #tpu.memory_space<vmem>>, vector<2x448xbf16>
    tpu.vector_store %arg8[%c10_502, %c0_503], %275 {strides = array<i32>} : memref<18x448xbf16, #tpu.memory_space<vmem>>, vector<2x448xbf16>,
    %c0_504 = arith.constant 0 : index
    %c6_505 = arith.constant 6 : index
    %c2_506 = arith.constant 2 : index
    %c0_507 = arith.constant 0 : index
    %277 = vector.load %arg0[%c0_504, %c6_505, %c2_506, %c0_507] : memref<2x7x7x448xbf16, #tpu.memory_space<vmem>>, vector<2x1x1x448xbf16>
    %278 = vector.shape_cast %277 : vector<2x1x1x448xbf16> to vector<2x448xbf16>
    %c12_508 = arith.constant 12 : index
    %c0_509 = arith.constant 0 : index
    %279 = vector.load %arg8[%c12_508, %c0_509] : memref<18x448xbf16, #tpu.memory_space<vmem>>, vector<2x448xbf16>
    tpu.vector_store %arg8[%c12_508, %c0_509], %278 {strides = array<i32>} : memref<18x448xbf16, #tpu.memory_space<vmem>>, vector<2x448xbf16>,
    %c0_510 = arith.constant 0 : index
    %c6_511 = arith.constant 6 : index
    %c4_512 = arith.constant 4 : index
    %c0_513 = arith.constant 0 : index
    %280 = vector.load %arg0[%c0_510, %c6_511, %c4_512, %c0_513] : memref<2x7x7x448xbf16, #tpu.memory_space<vmem>>, vector<2x1x1x448xbf16>
    %281 = vector.shape_cast %280 : vector<2x1x1x448xbf16> to vector<2x448xbf16>
    %c14_514 = arith.constant 14 : index
    %c0_515 = arith.constant 0 : index
    %282 = vector.load %arg8[%c14_514, %c0_515] : memref<18x448xbf16, #tpu.memory_space<vmem>>, vector<2x448xbf16>
    tpu.vector_store %arg8[%c14_514, %c0_515], %281 {strides = array<i32>} : memref<18x448xbf16, #tpu.memory_space<vmem>>, vector<2x448xbf16>,
    %c0_516 = arith.constant 0 : index
    %c6_517 = arith.constant 6 : index
    %c6_518 = arith.constant 6 : index
    %c0_519 = arith.constant 0 : index
    %283 = vector.load %arg0[%c0_516, %c6_517, %c6_518, %c0_519] : memref<2x7x7x448xbf16, #tpu.memory_space<vmem>>, vector<2x1x1x448xbf16>
    %284 = vector.shape_cast %283 : vector<2x1x1x448xbf16> to vector<2x448xbf16>
    %c16_520 = arith.constant 16 : index
    %c0_521 = arith.constant 0 : index
    %285 = vector.load %arg8[%c16_520, %c0_521] : memref<18x448xbf16, #tpu.memory_space<vmem>>, vector<2x448xbf16>
    tpu.vector_store %arg8[%c16_520, %c0_521], %284 {strides = array<i32>} : memref<18x448xbf16, #tpu.memory_space<vmem>>, vector<2x448xbf16>,
    %c0_522 = arith.constant 0 : index
    %c0_523 = arith.constant 0 : index
    %286 = vector.load %arg8[%c0_522, %c0_523] : memref<18x448xbf16, #tpu.memory_space<vmem>>, vector<18x448xbf16>
    %c8_524 = arith.constant 8 : index
    %c0_525 = arith.constant 0 : index
    %c0_526 = arith.constant 0 : index
    %287 = vector.load %arg1[%c8_524, %c0_525, %c0_526] : memref<9x448x128xbf16, #tpu.memory_space<vmem>>, vector<1x448x128xbf16>
    %288 = vector.shape_cast %287 : vector<1x448x128xbf16> to vector<448x128xbf16>
    %cst_527 = arith.constant dense<0.000000e+00> : vector<18x128xf32>
    %289 = tpu.matmul %286, %288, %cst_527 {dimension_numbers = #tpu.dot_dimension_numbers<[1], [0], [0], [1], [0, 0, 1, 1], [], []>} : vector<18x448xbf16>, vector<448x128xbf16>, vector<18x128xf32> -> vector<18x128xf32>
    %290 = arith.addf %258, %289 : vector<18x128xf32>
    %cst_528 = arith.constant 0.000000e+00 : f32
    %291 = vector.broadcast %cst_528 : f32 to vector<18x128xf32>
    %292 = arith.maximumf %290, %291 : vector<18x128xf32>
    %293 = vector.extract_strided_slice %292 {offsets = [0, 0], sizes = [2, 128], strides = [1, 1]} : vector<18x128xf32> to vector<2x128xf32>
    %294 = vector.extract_strided_slice %292 {offsets = [2, 0], sizes = [2, 128], strides = [1, 1]} : vector<18x128xf32> to vector<2x128xf32>
    %295 = vector.extract_strided_slice %292 {offsets = [4, 0], sizes = [2, 128], strides = [1, 1]} : vector<18x128xf32> to vector<2x128xf32>
    %296 = vector.extract_strided_slice %292 {offsets = [6, 0], sizes = [2, 128], strides = [1, 1]} : vector<18x128xf32> to vector<2x128xf32>
    %297 = vector.extract_strided_slice %292 {offsets = [8, 0], sizes = [2, 128], strides = [1, 1]} : vector<18x128xf32> to vector<2x128xf32>
    %298 = vector.extract_strided_slice %292 {offsets = [10, 0], sizes = [2, 128], strides = [1, 1]} : vector<18x128xf32> to vector<2x128xf32>
    %299 = vector.extract_strided_slice %292 {offsets = [12, 0], sizes = [2, 128], strides = [1, 1]} : vector<18x128xf32> to vector<2x128xf32>
    %300 = vector.extract_strided_slice %292 {offsets = [14, 0], sizes = [2, 128], strides = [1, 1]} : vector<18x128xf32> to vector<2x128xf32>
    %301 = vector.extract_strided_slice %292 {offsets = [16, 0], sizes = [2, 128], strides = [1, 1]} : vector<18x128xf32> to vector<2x128xf32>
    %302 = tpu.concatenate %293, %294, %295, %296, %297, %298, %299, %300, %301 in 1 : vector<2x128xf32>, vector<2x128xf32>, vector<2x128xf32>, vector<2x128xf32>, vector<2x128xf32>, vector<2x128xf32>, vector<2x128xf32>, vector<2x128xf32>, vector<2x128xf32> -> vector<2x1152xf32>
    %303 = arith.truncf %302 : vector<2x1152xf32> to vector<2x1152xbf16>
    %c0_529 = arith.constant 0 : index
    %c0_530 = arith.constant 0 : index
    %304 = vector.load %arg3[%c0_529, %c0_530] : memref<1152x32xbf16, #tpu.memory_space<vmem>>, vector<1152x32xbf16>
    %cst_531 = arith.constant dense<0.000000e+00> : vector<2x32xf32>
    %305 = tpu.matmul %303, %304, %cst_531 {dimension_numbers = #tpu.dot_dimension_numbers<[1], [0], [0], [1], [0, 0, 1, 1], [], []>} : vector<2x1152xbf16>, vector<1152x32xbf16>, vector<2x32xf32> -> vector<2x32xf32>
    %c0_532 = arith.constant 0 : index
    %c0_533 = arith.constant 0 : index
    %306 = vector.load %arg4[%c0_532, %c0_533] : memref<1x32xf32, #tpu.memory_space<vmem>>, vector<1x32xf32>
    %307 = vector.broadcast %306 : vector<1x32xf32> to vector<2x32xf32>
    %308 = arith.addf %305, %307 : vector<2x32xf32>
    %cst_534 = arith.constant 0.000000e+00 : f32
    %309 = vector.broadcast %cst_534 : f32 to vector<2x32xf32>
    %310 = arith.maximumf %308, %309 : vector<2x32xf32>
    %c0_535 = arith.constant 0 : index
    %c0_536 = arith.constant 0 : index
    %311 = vector.load %arg5[%c0_535, %c0_536] : memref<1x32xf32, #tpu.memory_space<vmem>>, vector<1x32xf32>
    %312 = vector.broadcast %311 : vector<1x32xf32> to vector<2x32xf32>
    %313 = arith.mulf %310, %312 : vector<2x32xf32>
    %cst_537 = arith.constant dense<0.000000e+00> : vector<2xf32>
    %314 = vector.multi_reduction <add>, %313, %cst_537 [1] : vector<2x32xf32> to vector<2xf32>
    %315 = vector.shape_cast %314 : vector<2xf32> to vector<2x1xf32>
    %c0_538 = arith.constant 0 : index
    %c0_539 = arith.constant 0 : index
    %316 = vector.load %arg6[%c0_538, %c0_539] : memref<1x1xf32, #tpu.memory_space<vmem>>, vector<1x1xf32>
    %317 = vector.broadcast %316 : vector<1x1xf32> to vector<2x1xf32>
    %318 = arith.addf %315, %317 : vector<2x1xf32>
    %319 = arith.negf %318 : vector<2x1xf32>
    %320 = math.exp %319 : vector<2x1xf32>
    %cst_540 = arith.constant 1.000000e+00 : f32
    %321 = vector.broadcast %cst_540 : f32 to vector<2x1xf32>
    %322 = arith.addf %321, %320 : vector<2x1xf32>
    %323 = arith.divf %321, %322 : vector<2x1xf32>
    %c0_541 = arith.constant 0 : index
    %c0_542 = arith.constant 0 : index
    %324 = vector.load %arg7[%c0_541, %c0_542] : memref<2x1xf32, #tpu.memory_space<vmem>>, vector<2x1xf32>
    tpu.vector_store %arg7[%c0_541, %c0_542], %323 {strides = array<i32>} : memref<2x1xf32, #tpu.memory_space<vmem>>, vector<2x1xf32>,
    return
  }
}

</mosaic_0001>

<bundles_post_ra>
// kernel: tpu_custom_call.1
= control target key start
LH: loop header
LB: loop body
LE: loop exit
PB: predicated region body
PF: predicated region fallthrough
CT: control target
= control target key end

     0   :  { %s10597_s0 = inlined_call_operand.vmem [shape: bf16[2,7,7,448], index: 0, kind: input, shape index: {}]   ;;  %s10598_s1 = inlined_call_operand.hbm [shape: bf16[9,448,128], index: 1, kind: input, shape index: {}]   ;;  %s10599_s2 = inlined_call_operand.vmem [shape: f32[1,128], index: 2, kind: input, shape index: {}]   ;;  %s10600_s3 = inlined_call_operand.vmem [shape: bf16[1152,32], index: 3, kind: input, shape index: {}]   ;;  %s10601_s4 = inlined_call_operand.vmem [shape: f32[1,32], index: 4, kind: input, shape index: {}]   ;;  %s10602_s5 = inlined_call_operand.vmem [shape: f32[1,32], index: 5, kind: input, shape index: {}]   ;;  %s10603_s6 = inlined_call_operand.<no memory space> [shape: f32[1,1], index: 6, kind: input, shape index: {}]   ;;  %s10604_s7 = inlined_call_operand.vmem [shape: f32[2,1], index: 7, kind: output, shape index: {}]  }
   0x1   :  { %v12_v0 = vstv %s10603_s6 }
   0x2   :  { %13 = vst [vmem:[#allocation3] sm:$0x1] %v12_v0 }
   0x3   :  { %14 = vsyncpa [#allocation5], 0  ;;  %s8513_s26 = smov [#allocation4]   ;;  %s8489_s30 = scalar_lea.hbm %s10598_s1, 32256 }
   0x4   :  { %s22_s27 = sshll.u32 %s8513_s26, 4  ;;  %p8490_p0 = scmp.ne.s32.totalorder %s10598_s1, %s8489_s30  ;;  %s23_s27 = int_to_ptr.vmem [resolvable:$true] %s22_s27 }
   0x5   :  { %p8493_p1 = scmp.lt.u32.totalorder %s8489_s30, %s10598_s1 }
   0x7   :  { %p8495_p2 = pnand %p8493_p1, %p8490_p0 }
   0x9   :  { %8498 = shalt.err (!%p8495_p2)
}
   0xa   :  { %s8499_s6 = scalar_lea.vmem %s23_s27, 32256  ;;  %p8504_p4 = scmp.lt.s32.totalorder %s23_s27, %s23_s27 }
   0xb   :  { %p8500_p3 = scmp.ne.s32.totalorder %s23_s27, %s8499_s6  ;;  %p8505_p5 = scmp.lt.s32.totalorder %s8499_s6, %s8499_s6 }
   0xd   :  { %p8506_p6 = por %p8505_p5, %p8504_p4 }
   0xf   :  { %p8507_p7 = pnand %p8506_p6, %p8500_p3 }
  0x11   :  { %8510 = shalt.err (!%p8507_p7)
}
  0x12   :  { %s8514_s12 = smov 64   ;;  %s8515_s13 = smov 4  }
  0x13   :  { %28 = dma.hbm_to_vmem [thread:$0]  %s10598_s1, 32256, %s23_s27, [#allocation5], %s8514_s12, %s8514_s12, %s8515_s13  }
  0x14   :  { %8511 = dma.done.wait [#allocation5], 32256  }
  0x15   :  { %8512 = vsyncadd [#allocation5], 4294935040  ;;  %v8516_v1 = vmov 0   ;;  %v8083_v2 = vld [vmem:[#allocation4 + $0x40] sm:$0xff]   ;;  %v8086_v5 = vld [vmem:[#allocation4 + $0x48] sm:$0xff]   ;;  %vm67_vm0 = vcmask 1041409  }
  0x16   :  { %677 = vmatprep.subr.bf16.mxu1 %v8516_v1  ;;  %v8084_v3 = vld [vmem:[#allocation4 + $0x80] sm:$0xff]   ;;  %7614 = vmatprep.subr.bf16.mxu0 %v8083_v2  ;;  %v8087_v6 = vld [vmem:[#allocation4 + $0x88] sm:$0xff]   ;;  %v8089_v8 = vld [vmem:[#allocation4 + $0x50] sm:$0xff]   ;;  %vm101_vm1 = vcmask 1043459   ;;  %vm134_vm2 = vcmask 1045509   ;;  %vm170_vm3 = vcmask 1047559  }
  0x17   :  { %v8085_v4 = vld [vmem:[#allocation4] sm:$0xff]   ;;  %678 = vmatpush1.bf16.msra.mxu1 %v8084_v3  ;;  %v8088_v7 = vld [vmem:[#allocation4 + $0x8] sm:$0xff]   ;;  %v8090_v9 = vld [vmem:[#allocation4 + $0x90] sm:$0xff]   ;;  %vm80_vm4 = vcmask 1040384   ;;  %vm81_vm5 = vcmask 520196   ;;  %vm114_vm6 = vcmask 521221  }
  0x18   :  { %7615 = vmatpush3.bf16.msra.mxu0 %v8085_v4  ;;  %679 = vmatprep.subr.bf16.mxu1 %v8516_v1  ;;  %v8091_v10 = vld [vmem:[#allocation4 + $0x10] sm:$0xff]   ;;  %v8092_v11 = vld [vmem:[#allocation4 + $0x58] sm:$0xff]   ;;  %v8095_v14 = vld [vmem:[#allocation4 + $0x60] sm:$0xff]   ;;  %vm147_vm7 = vcmask 1042434   ;;  %vm148_vm8 = vcmask 522246   ;;  %vm186_vm9 = vcmask 523271  }
  0x19   :  { %7616 = vmatprep.subr.bf16.mxu0 %v8086_v5  ;;  %v8093_v12 = vld [vmem:[#allocation4 + $0x98] sm:$0xff]   ;;  %v8096_v15 = vld [vmem:[#allocation4 + $0xa0] sm:$0xff]   ;;  %v8098_v17 = vld [vmem:[#allocation4 + $0x68] sm:$0xff]   ;;  %vm622_vm14 = vcmask 523264   ;;  %vm8518_vm15 = vmmov 0  }
  0x1a   :  { %v8094_v13 = vld [vmem:[#allocation4 + $0x18] sm:$0xff]   ;;  %v8097_v16 = vld [vmem:[#allocation4 + $0x20] sm:$0xff]   ;;  %v8099_v18 = vld [vmem:[#allocation4 + $0xa8] sm:$0xff]  }
  0x1b   :  { %680 = vmatpush1.bf16.msra.mxu1 %v8087_v6  ;;  %v8100_v19 = vld [vmem:[#allocation4 + $0x28] sm:$0xff]   ;;  %v8101_v20 = vld [vmem:[#allocation4 + $0x70] sm:$0xff]   ;;  %v8104_v23 = vld [vmem:[#allocation4 + $0x78] sm:$0xff]  }
  0x1c   :  { %7617 = vmatpush3.bf16.msra.mxu0 %v8088_v7  ;;  %681 = vmatprep.subr.bf16.mxu1 %v8516_v1  ;;  %v8102_v21 = vld [vmem:[#allocation4 + $0xb0] sm:$0xff]   ;;  %v52_v25 = vld [vmem:[%s10597_s0 + $0x70] sm:$0x11]  ;;  %v86_v31 = vld [vmem:[%s10597_s0 + $0x70] sm:$0x22] }
  0x1d   :  { %7618 = vmatprep.subr.bf16.mxu0 %v8089_v8  ;;  %v8103_v22 = vld [vmem:[#allocation4 + $0x30] sm:$0xff]   ;;  %v62_v29 = vunpack.c.l.b16 %v52_v25  ;;  %v63_v30 = vunpack.c.h.b16 %v52_v25  ;;  %v119_v33 = vld [vmem:[%s10597_s0 + $0x70] sm:$0x44]  ;;  %v96_v36 = vunpack.c.l.b16 %v86_v31  ;;  %v97_v37 = vunpack.c.h.b16 %v86_v31  ;;  %v8105_v39 = vld [vmem:[#allocation4 + $0xb8] sm:$0xff]  }
  0x1e   :  { %v50_v24 = vld [vmem:[%s10597_s0] sm:$0x11]  ;;  %v84_v26 = vld [vmem:[%s10597_s0] sm:$0x22]  ;;  %v117_v32 = vld [vmem:[%s10597_s0] sm:$0x44]  ;;  %v129_v47 = vunpack.c.l.b16 %v119_v33  ;;  %v130_v48 = vunpack.c.h.b16 %v119_v33 }
  0x1f   :  { %682 = vmatpush1.bf16.msra.mxu1 %v8090_v9  ;;  %v58_v27 = vunpack.c.l.b16 %v50_v24  ;;  %v59_v28 = vunpack.c.h.b16 %v50_v24  ;;  %v92_v34 = vunpack.c.l.b16 %v84_v26  ;;  %v93_v35 = vunpack.c.h.b16 %v84_v26  ;;  %v6908_v38 = vld [vmem:[%s10597_s0 + $0x20] sm:$0x11]  ;;  %v8106_v44 = vld [vmem:[#allocation4 + $0x38] sm:$0xff]   ;;  %v6912_v54 = vld [vmem:[%s10597_s0 + $0x20] sm:$0x22] }
  0x20   :  { %7619 = vmatpush3.bf16.msra.mxu0 %v8091_v10  ;;  %683 = vmatprep.subr.bf16.mxu1 %v8516_v1  ;;  %v66_v40 = vrot.slane %v62_v29, 7  ;;  %v69_v41 = vrot.slane %v63_v30, 7  ;;  %v125_v42 = vunpack.c.l.b16 %v117_v32  ;;  %v126_v43 = vunpack.c.h.b16 %v117_v32  ;;  %v6910_v49 = vld [vmem:[%s10597_s0 + $0x90] sm:$0x11]  ;;  %v6914_v55 = vld [vmem:[%s10597_s0 + $0x90] sm:$0x22]  ;;  %vm8679_vm10 = vmor %vm81_vm5, %vm80_vm4 }
  0x21   :  { %7620 = vmatprep.subr.bf16.mxu0 %v8092_v11  ;;  %v100_v45 = vrot.slane %v96_v36, 7  ;;  %v103_v46 = vrot.slane %v97_v37, 7  ;;  %v160_v52 = vunpack.c.l.b16 %v6908_v38  ;;  %v161_v53 = vunpack.c.h.b16 %v6908_v38  ;;  %v6916_v60 = vld [vmem:[%s10597_s0 + $0x20] sm:$0x44]  ;;  %v8109_v61 = vld [vmem:[#allocation4 + $0xc0] sm:$0xff]   ;;  %v8113_v24 = vld [vmem:[#allocation4 + $0xc8] sm:$0xff]  }
  0x22   :  { %v68_v50 = vsel %vm67_vm0, %v66_v40, %v58_v27  ;;  %v70_v51 = vsel %vm67_vm0, %v69_v41, %v59_v28  ;;  %v133_v59 = vrot.slane %v129_v47, 7  ;;  %v136_v63 = vrot.slane %v130_v48, 7  ;;  %v8110_v3 = vld [vmem:[#allocation4 + $0x120] sm:$0xff]   ;;  %vm8695_vm11 = vmor %vm114_vm6, %vm67_vm0 }
  0x23   :  { %684 = vmatpush1.bf16.msra.mxu1 %v8093_v12  ;;  %v75_v56 = vpack.c.b16 %v70_v51, %v68_v50  ;;  %v102_v57 = vsel %vm101_vm1, %v100_v45, %v92_v34  ;;  %v104_v58 = vsel %vm101_vm1, %v103_v46, %v93_v35  ;;  %v164_v0 = vunpack.c.l.b16 %v6910_v49  ;;  %v6918_v8 = vld [vmem:[%s10597_s0 + $0x90] sm:$0x44]  ;;  %v6926_v33 = vld [vmem:[%s10597_s0 + $0xb0] sm:$0x22]  ;;  %vm8708_vm12 = vmor %vm148_vm8, %vm147_vm7 }
  0x24   :  { %7621 = vmatpush3.bf16.msra.mxu0 %v8094_v13  ;;  %685 = vmatprep.subr.bf16.mxu1 %v8516_v1  ;;  %v109_v62 = vpack.c.b16 %v104_v58, %v102_v57  ;;  %v165_v2 = vunpack.c.h.b16 %v6910_v49  ;;  %v135_v4 = vsel %vm134_vm2, %v133_v59, %v125_v42  ;;  %v168_v5 = vrot.slane %v160_v52, 2  ;;  %v6920_v13 = vld [vmem:[%s10597_s0 + $0x40] sm:$0x11]  ;;  %v51_v59 = vld [vmem:[%s10597_s0 + $0x8] sm:$0x11]  ;;  %vm8715_vm13 = vmor %vm186_vm9, %vm101_vm1 }
  0x25   :  { %7622 = vmatprep.subr.bf16.mxu0 %v8095_v14  ;;  %79 = vst [vmem:[#allocation2] sm:$0x11] %v75_v56  ;;  %v172_v6 = vrot.slane %v161_v53, 2  ;;  %v197_v7 = vunpack.c.l.b16 %v6912_v54  ;;  %v137_v9 = vsel %vm134_vm2, %v136_v63, %v126_v43  ;;  %v169_v10 = vrot.slane %v164_v0, 1  ;;  %v8116_v42 = vld [vmem:[#allocation4 + $0xd0] sm:$0xff]  }
  0x26   :  { %113 = vst [vmem:[#allocation2] sm:$0x22] %v109_v62  ;;  %v173_v11 = vrot.slane %v165_v2, 1  ;;  %v198_v12 = vunpack.c.h.b16 %v6912_v54  ;;  %v142_v14 = vpack.c.b16 %v137_v9, %v135_v4  ;;  %v232_v28 = vunpack.c.h.b16 %v6916_v60  ;;  %v85_v2 = vld [vmem:[%s10597_s0 + $0x8] sm:$0x22] }
  0x27   :  { %686 = vmatpush1.bf16.msra.mxu1 %v8096_v15  ;;  %v201_v15 = vunpack.c.l.b16 %v6914_v55  ;;  %v235_v29 = vunpack.c.l.b16 %v6918_v8  ;;  %v236_v30 = vunpack.c.h.b16 %v6918_v8  ;;  %v266_v32 = vunpack.c.l.b16 %v6920_v13  ;;  %v118_v8 = vld [vmem:[%s10597_s0 + $0x8] sm:$0x44]  ;;  %v120_v9 = vld [vmem:[%s10597_s0 + $0x78] sm:$0x44] }
  0x28   :  { %7623 = vmatpush3.bf16.msra.mxu0 %v8097_v16  ;;  %687 = vmatprep.subr.bf16.mxu1 %v8516_v1  ;;  %v202_v16 = vunpack.c.h.b16 %v6914_v55  ;;  %146 = vst [vmem:[#allocation2] sm:$0x44] %v142_v14  ;;  %v242_v36 = vrot.slane %v232_v28, 2  ;;  %v267_v37 = vunpack.c.h.b16 %v6920_v13  ;;  %v304_v53 = vunpack.c.l.b16 %v6926_v33  ;;  %v8119_v55 = vld [vmem:[#allocation4 + $0xd8] sm:$0xff]  }
  0x29   :  { %7624 = vmatprep.subr.bf16.mxu0 %v8098_v17  ;;  %v205_v17 = vrot.slane %v197_v7, 2  ;;  %v206_v26 = vrot.slane %v201_v15, 1  ;;  %v243_v40 = vrot.slane %v236_v30, 1  ;;  %v305_v54 = vunpack.c.h.b16 %v6926_v33 }
  0x2a   :  { %v209_v27 = vrot.slane %v202_v16, 1  ;;  %v277_v45 = vrot.slane %v267_v37, 4  ;;  %v309_v62 = vrot.slane %v304_v53, 3  ;;  %v60_v0 = vunpack.c.l.b16 %v51_v59 }
  0x2b   :  { %688 = vmatpush1.bf16.msra.mxu1 %v8099_v18  ;;  %v6922_v18 = vld [vmem:[%s10597_s0 + $0xb0] sm:$0x11]  ;;  %v207_v34 = vsel %vm67_vm0, %v206_v26, %v205_v17  ;;  %v244_v48 = vsel %vm101_vm1, %v243_v40, %v242_v36  ;;  %v312_v63 = vrot.slane %v305_v54, 3  ;;  %v95_v13 = vunpack.c.h.b16 %v85_v2 }
  0x2c   :  { %7625 = vmatpush3.bf16.msra.mxu0 %v8100_v19  ;;  %689 = vmatprep.subr.bf16.mxu1 %v8516_v1  ;;  %v171_v19 = vsel %vm170_vm3, %v169_v10, %v168_v5  ;;  %v270_v41 = vunpack.c.l.b16 %v6922_v18  ;;  %v271_v43 = vunpack.c.h.b16 %v6922_v18  ;;  %v61_v5 = vunpack.c.h.b16 %v51_v59  ;;  %v6909_v18 = vld [vmem:[%s10597_s0 + $0x28] sm:$0x11]  ;;  %v8398_v26 = vld [vmem:[#allocation4 + $0x7a0] sm:$0xff]  }
  0x2d   :  { %7626 = vmatprep.subr.bf16.mxu0 %v8101_v20  ;;  %v174_v20 = vsel %vm170_vm3, %v173_v11, %v172_v6  ;;  %v132_v28 = vunpack.c.h.b16 %v120_v9  ;;  %v162_v33 = vunpack.c.l.b16 %v6909_v18 }
  0x2e   :  { %v181_v25 = vpack.c.b16 %v174_v20, %v171_v19  ;;  %v275_v49 = vrot.slane %v270_v41, 3  ;;  %v278_v52 = vrot.slane %v271_v43, 3  ;;  %v127_v20 = vunpack.c.l.b16 %v118_v8  ;;  %v6919_v41 = vld [vmem:[%s10597_s0 + $0x98] sm:$0x44] }
  0x2f   :  { %690 = vmatpush1.bf16.msra.mxu1 %v8102_v21  ;;  %v208_v21 = vrot.slane %v198_v12, 2  ;;  %v94_v12 = vunpack.c.l.b16 %v85_v2 }
  0x30   :  { %7627 = vmatpush3.bf16.msra.mxu0 %v8103_v22  ;;  %691 = vmatprep.subr.bf16.mxu1 %v8516_v1  ;;  %v231_v22 = vunpack.c.l.b16 %v6916_v60  ;;  %185 = vst [vmem:[#allocation2] sm:$0x88] %v181_v25  ;;  %v53_v60 = vld [vmem:[%s10597_s0 + $0x78] sm:$0x11] }
  0x31   :  { %7628 = vmatprep.subr.bf16.mxu0 %v8104_v23  ;;  %v6924_v23 = vld [vmem:[%s10597_s0 + $0x40] sm:$0x22]  ;;  %v210_v35 = vsel %vm67_vm0, %v209_v27, %v208_v21  ;;  %v64_v6 = vunpack.c.l.b16 %v53_v60  ;;  %v65_v7 = vunpack.c.h.b16 %v53_v60  ;;  %v128_v21 = vunpack.c.h.b16 %v118_v8 }
  0x32   :  { %v239_v31 = vrot.slane %v231_v22, 2  ;;  %v217_v38 = vpack.c.b16 %v210_v35, %v207_v34  ;;  %v300_v46 = vunpack.c.l.b16 %v6924_v23  ;;  %v301_v50 = vunpack.c.h.b16 %v6924_v23  ;;  %v6911_v23 = vld [vmem:[%s10597_s0 + $0x98] sm:$0x11]  ;;  %v6915_v34 = vld [vmem:[%s10597_s0 + $0x98] sm:$0x22] }
  0x33   :  { %692 = vmatpush1.bf16.msra.mxu1 %v8105_v39  ;;  %v240_v39 = vrot.slane %v235_v29, 1  ;;  %v71_v15 = vrot.slane %v64_v6, 7  ;;  %v73_v16 = vrot.slane %v65_v7, 7  ;;  %v131_v22 = vunpack.c.l.b16 %v120_v9  ;;  %v6913_v29 = vld [vmem:[%s10597_s0 + $0x28] sm:$0x22]  ;;  %v8114_v6 = vld [vmem:[#allocation4 + $0x128] sm:$0xff]  }
  0x34   :  { %7629 = vmatpush3.bf16.msra.mxu0 %v8106_v44  ;;  %693 = vmatprep.subr.bf16.mxu1 %v8516_v1  ;;  %v274_v44 = vrot.slane %v266_v32, 4  ;;  %221 = vst [vmem:[#allocation2 + $0x10] sm:$0x11] %v217_v38  ;;  %v308_v57 = vrot.slane %v300_v46, 4  ;;  %v311_v58 = vrot.slane %v301_v50, 4  ;;  %v140_v38 = vrot.slane %v132_v28, 7 }
  0x35   :  { %7642 = vmatprep.subr.bf16.mxu0 %v8110_v3  ;;  %v241_v47 = vsel %vm101_vm1, %v240_v39, %v239_v31  ;;  %v87_v3 = vld [vmem:[%s10597_s0 + $0x78] sm:$0x22]  ;;  %v74_v25 = vsel %vm67_vm0, %v73_v16, %v61_v5  ;;  %v138_v32 = vrot.slane %v131_v22, 7  ;;  %v6917_v35 = vld [vmem:[%s10597_s0 + $0x28] sm:$0x44]  ;;  %v163_v39 = vunpack.c.h.b16 %v6909_v18 }
  0x36   :  { %v251_v51 = vpack.c.b16 %v244_v48, %v241_v47  ;;  %v276_v56 = vsel %vm134_vm2, %v275_v49, %v274_v44  ;;  %v310_v10 = vsel %vm170_vm3, %v309_v62, %v308_v57  ;;  %v313_v11 = vsel %vm170_vm3, %v312_v63, %v311_v58  ;;  %v6921_v57 = vld [vmem:[%s10597_s0 + $0x48] sm:$0x11]  ;;  %v6923_v62 = vld [vmem:[%s10597_s0 + $0xb8] sm:$0x11]  ;;  %v6928_v22 = vld [vmem:[%s10597_s0 + $0x40] sm:$0x44] }
  0x37   :  { %694 = vmatpush1.bf16.msra.mxu1 %v8109_v61  ;;  %v279_v61 = vsel %vm134_vm2, %v278_v52, %v277_v45  ;;  %v320_v14 = vpack.c.b16 %v313_v11, %v310_v10  ;;  %v98_v17 = vunpack.c.l.b16 %v87_v3  ;;  %v99_v19 = vunpack.c.h.b16 %v87_v3  ;;  %v8112_v52 = vld [vmem:[#allocation4 + $0xe0] sm:$0xff]   ;;  %v6925_v11 = vld [vmem:[%s10597_s0 + $0x48] sm:$0x22] }
  0x38   :  { %695 = vmatprep.subr.bf16.mxu1 %v8516_v1  ;;  %255 = vst [vmem:[#allocation2 + $0x10] sm:$0x22] %v251_v51  ;;  %v286_v4 = vpack.c.b16 %v279_v61, %v276_v56  ;;  %v166_v40 = vunpack.c.l.b16 %v6911_v23  ;;  %v139_v43 = vsel %vm134_vm2, %v138_v32, %v127_v20  ;;  %v167_v45 = vunpack.c.h.b16 %v6911_v23  ;;  %v8117_v23 = vld [vmem:[#allocation4 + $0x130] sm:$0xff]  }
  0x39   :  { %324 = vst [vmem:[#allocation2 + $0x10] sm:$0x88] %v320_v14  ;;  %v105_v27 = vrot.slane %v98_v17, 7  ;;  %v107_v31 = vrot.slane %v99_v19, 7  ;;  %v175_v46 = vrot.slane %v162_v33, 2  ;;  %v141_v48 = vsel %vm134_vm2, %v140_v38, %v128_v21  ;;  %v8396_v51 = vld [vmem:[#allocation4 + $0x790] sm:$0xff]  }
  0x3a   :  { %290 = vst [vmem:[#allocation2 + $0x10] sm:$0x44] %v286_v4  ;;  %v176_v49 = vrot.slane %v166_v40, 1  ;;  %v178_v50 = vrot.slane %v163_v39, 2  ;;  %v143_v53 = vpack.c.b16 %v141_v48, %v139_v43  ;;  %v179_v54 = vrot.slane %v167_v45, 1 }
  0x3b   :  { %696 = vmatpush1.bf16.msra.mxu1 %v8113_v24  ;;  %v72_v24 = vsel %vm67_vm0, %v71_v15, %v60_v0  ;;  %v106_v36 = vsel %vm101_vm1, %v105_v27, %v94_v12  ;;  %v200_v56 = vunpack.c.h.b16 %v6913_v29  ;;  %v203_v59 = vunpack.c.l.b16 %v6915_v34  ;;  %v8115_v12 = vld [vmem:[#allocation4 + $0xe8] sm:$0xff]   ;;  %v6930_v33 = vld [vmem:[%s10597_s0 + $0xb0] sm:$0x44] }
  0x3c   :  { %697 = vmatprep.subr.bf16.mxu1 %v8516_v1  ;;  %v76_v30 = vpack.c.b16 %v74_v25, %v72_v24  ;;  %v177_v58 = vsel %vm170_vm3, %v176_v49, %v175_v46  ;;  %v204_v60 = vunpack.c.h.b16 %v6915_v34  ;;  %v233_v61 = vunpack.c.l.b16 %v6917_v35  ;;  %150 = vst.msk [vmem:[#allocation2 + $0x8] sm:$0x44] %vm8708_vm12, %v143_v53  ;;  %v6927_v17 = vld [vmem:[%s10597_s0 + $0xb8] sm:$0x22]  ;;  %v8118_v34 = vld [vmem:[#allocation4 + $0xf0] sm:$0xff]   ;;  %v8120_v49 = vld [vmem:[#allocation4 + $0x138] sm:$0xff]  }
  0x3d   :  { %v180_v2 = vsel %vm170_vm3, %v179_v54, %v178_v50  ;;  %v234_v4 = vunpack.c.h.b16 %v6917_v35  ;;  %v237_v5 = vunpack.c.l.b16 %v6919_v41  ;;  %v212_v8 = vrot.slane %v203_v59, 1 }
  0x3e   :  { %83 = vst.msk [vmem:[#allocation2 + $0x8] sm:$0x11] %vm8679_vm10, %v76_v30  ;;  %v182_v7 = vpack.c.b16 %v180_v2, %v177_v58  ;;  %v214_v9 = vrot.slane %v200_v56, 2  ;;  %v215_v10 = vrot.slane %v204_v60, 1  ;;  %v245_v14 = vrot.slane %v233_v61, 2 }
  0x3f   :  { %698 = vmatpush1.bf16.msra.mxu1 %v8116_v42  ;;  %v108_v42 = vsel %vm101_vm1, %v107_v31, %v95_v13  ;;  %v238_v13 = vunpack.c.h.b16 %v6919_v41  ;;  %v246_v15 = vrot.slane %v237_v5, 1  ;;  %v248_v16 = vrot.slane %v234_v4, 2  ;;  %v730_v56 = vld [vmem:[%s10597_s0 + $0x70] sm:$0x11]  ;;  %v758_v61 = vld [vmem:[%s10597_s0] sm:$0x22] }
  0x40   :  { %699 = vmatprep.subr.bf16.mxu1 %v8516_v1  ;;  %v110_v47 = vpack.c.b16 %v108_v42, %v106_v36  ;;  %188 = vst.msk [vmem:[#allocation2 + $0x8] sm:$0x88] %vm8715_vm13, %v182_v7  ;;  %v216_v19 = vsel %vm67_vm0, %v215_v10, %v214_v9  ;;  %v268_v20 = vunpack.c.l.b16 %v6921_v57  ;;  %v269_v21 = vunpack.c.h.b16 %v6921_v57  ;;  %v8121_v4 = vld [vmem:[#allocation4 + $0xf8] sm:$0xff]   ;;  %v8125_v9 = vld [vmem:[#allocation4 + $0x140] sm:$0xff]  }
  0x41   :  { %v8107_v63 = vld [vmem:[#allocation2 + $0x4] ss:$16 sps:$4 sm:$0xff]   ;;  %v8111_v0 = vld [vmem:[#allocation2] ss:$16 sps:$4 sm:$0xff]   ;;  %v247_v25 = vsel %vm101_vm1, %v246_v15, %v245_v14  ;;  %v249_v27 = vrot.slane %v238_v13, 1  ;;  %v272_v28 = vunpack.c.l.b16 %v6923_v62  ;;  %v302_v32 = vunpack.c.l.b16 %v6925_v11 }
  0x42   :  { %116 = vst.msk [vmem:[#allocation2 + $0x8] sm:$0x22] %vm8695_vm11, %v110_v47  ;;  %661 = vmatprep.mubr.bf16.mxu0 %v8107_v63  ;;  %v280_v30 = vrot.slane %v268_v20, 4  ;;  %v283_v31 = vrot.slane %v269_v21, 4  ;;  %v303_v38 = vunpack.c.h.b16 %v6925_v11  ;;  %v306_v39 = vunpack.c.l.b16 %v6927_v17  ;;  %v788_v14 = vld [vmem:[%s10597_s0] sm:$0x44] }
  0x43   :  { %700 = vmatpush1.bf16.msra.mxu1 %v8119_v55  ;;  %v199_v55 = vunpack.c.l.b16 %v6913_v29  ;;  %662 = vmatmul.mubr.bf16.vlgmr.msra.gmra.mrb[0].mxu0 %v8111_v0  ;;  %v273_v29 = vunpack.c.h.b16 %v6923_v62  ;;  %v250_v35 = vsel %vm101_vm1, %v249_v27, %v248_v16  ;;  %v281_v36 = vrot.slane %v272_v28, 3  ;;  %v8127_v20 = vld [vmem:[#allocation4 + $0x100] sm:$0xff]   ;;  %v8128_v28 = vld [vmem:[#allocation4 + $0x148] sm:$0xff]  }
  0x44   :  { %1339 = vmatprep.subr.bf16.mxu1 %v8516_v1  ;;  %7643 = vmatpush3.bf16.msra.mxu0 %v8112_v52  ;;  %v252_v40 = vpack.c.b16 %v250_v35, %v247_v25  ;;  %v307_v42 = vunpack.c.h.b16 %v6927_v17  ;;  %v314_v43 = vrot.slane %v302_v32, 4  ;;  %v315_v46 = vrot.slane %v306_v39, 3  ;;  %v6970_v25 = vld [vmem:[%s10597_s0 + $0x20] sm:$0x11]  ;;  %v6972_v27 = vld [vmem:[%s10597_s0 + $0x90] sm:$0x11] }
  0x45   :  { %v211_v3 = vrot.slane %v199_v55, 2  ;;  %7644 = vmatprep.subr.bf16.mxu0 %v8114_v6  ;;  %v284_v41 = vrot.slane %v273_v29, 3  ;;  %v282_v45 = vsel %vm134_vm2, %v281_v36, %v280_v30  ;;  %v317_v47 = vrot.slane %v303_v38, 4  ;;  %v728_v55 = vld [vmem:[%s10597_s0] sm:$0x11] }
  0x46   :  { %v334_v48 = vunpack.c.l.b16 %v6928_v22  ;;  %256 = vst.msk [vmem:[#allocation2 + $0x18] sm:$0x22] %vm8695_vm11, %v252_v40  ;;  %v318_v52 = vrot.slane %v307_v42, 3  ;;  %v335_v53 = vunpack.c.h.b16 %v6928_v22  ;;  %v338_v54 = vunpack.c.l.b16 %v6930_v33  ;;  %v8130_v40 = vld [vmem:[#allocation4 + $0x108] sm:$0xff]  }
  0x47   :  { %v213_v18 = vsel %vm67_vm0, %v212_v8, %v211_v3  ;;  %v285_v50 = vsel %vm134_vm2, %v284_v41, %v283_v31  ;;  %v316_v58 = vsel %vm170_vm3, %v315_v46, %v314_v43  ;;  %v339_v59 = vunpack.c.h.b16 %v6930_v33  ;;  %v760_v3 = vld [vmem:[%s10597_s0 + $0x70] sm:$0x22]  ;;  %v6974_v33 = vld [vmem:[%s10597_s0 + $0x20] sm:$0x22]  ;;  %v6978_v46 = vld [vmem:[%s10597_s0 + $0x20] sm:$0x44] }
  0x48   :  { %v218_v24 = vpack.c.b16 %v216_v19, %v213_v18  ;;  %7645 = vmatpush3.bf16.msra.mxu0 %v8115_v12  ;;  %v287_v57 = vpack.c.b16 %v285_v50, %v282_v45  ;;  %v342_v60 = vrot.slane %v334_v48, 4  ;;  %v319_v62 = vsel %vm170_vm3, %v318_v52, %v317_v47  ;;  %v790_v19 = vld [vmem:[%s10597_s0 + $0x70] sm:$0x44] }
  0x49   :  { %7646 = vmatprep.subr.bf16.mxu0 %v8117_v23  ;;  %v343_v63 = vrot.slane %v338_v54, 3  ;;  %v345_v0 = vrot.slane %v335_v53, 4  ;;  %v736_v2 = vunpack.c.l.b16 %v728_v55  ;;  %v321_v5 = vpack.c.b16 %v319_v62, %v316_v58  ;;  %v8126_v47 = vld [vmem:[#allocation4 + $0x160] sm:$0xff]   ;;  %v8132_v54 = vld [vmem:[#allocation4 + $0x150] sm:$0xff]  }
  0x4a   :  { %222 = vst.msk [vmem:[#allocation2 + $0x18] sm:$0x11] %vm8679_vm10, %v218_v24  ;;  %v346_v6 = vrot.slane %v339_v59, 3  ;;  %v737_v7 = vunpack.c.h.b16 %v728_v55  ;;  %v740_v8 = vunpack.c.l.b16 %v730_v56  ;;  %v741_v11 = vunpack.c.h.b16 %v730_v56  ;;  %v6980_v53 = vld [vmem:[%s10597_s0 + $0x90] sm:$0x44] }
  0x4b   :  { %291 = vst.msk [vmem:[#allocation2 + $0x18] sm:$0x44] %vm8708_vm12, %v287_v57  ;;  %v344_v10 = vsel %vm67_vm0, %v343_v63, %v342_v60  ;;  %v744_v12 = vrot.slane %v736_v2, 1  ;;  %v766_v13 = vunpack.c.l.b16 %v758_v61  ;;  %v767_v17 = vunpack.c.h.b16 %v758_v61 }
  0x4c   :  { %7647 = vmatpush3.bf16.msra.mxu0 %v8118_v34  ;;  %325 = vst.msk [vmem:[#allocation2 + $0x18] sm:$0x88] %vm8715_vm13, %v321_v5  ;;  %v347_v15 = vsel %vm67_vm0, %v346_v6, %v345_v0  ;;  %v746_v16 = vrot.slane %v737_v7, 1  ;;  %v770_v18 = vunpack.c.l.b16 %v760_v3  ;;  %v771_v23 = vunpack.c.h.b16 %v760_v3  ;;  %v6976_v34 = vld [vmem:[%s10597_s0 + $0x90] sm:$0x22]  ;;  %v8129_v7 = vld [vmem:[#allocation4 + $0x168] sm:$0xff]  }
  0x4d   :  { %7648 = vmatprep.subr.bf16.mxu0 %v8120_v49  ;;  %v354_v21 = vpack.c.b16 %v347_v15, %v344_v10  ;;  %v745_v22 = vsel %vm67_vm0, %v740_v8, %v744_v12  ;;  %v774_v24 = vrot.slane %v766_v13, 1  ;;  %v776_v30 = vrot.slane %v767_v17, 1  ;;  %v6982_v6 = vld [vmem:[%s10597_s0 + $0x40] sm:$0x11]  ;;  %v6984_v13 = vld [vmem:[%s10597_s0 + $0xb0] sm:$0x11] }
  0x4e   :  { %v747_v29 = vsel %vm67_vm0, %v741_v11, %v746_v16  ;;  %v796_v31 = vunpack.c.l.b16 %v788_v14  ;;  %v797_v32 = vunpack.c.h.b16 %v788_v14  ;;  %v800_v38 = vunpack.c.l.b16 %v790_v19  ;;  %v8135_v8 = vld [vmem:[#allocation4 + $0x110] sm:$0xff]   ;;  %v8136_v15 = vld [vmem:[#allocation4 + $0x158] sm:$0xff]  }
  0x4f   :  { %358 = vst [vmem:[#allocation2 + $0x20] sm:$0x11] %v354_v21  ;;  %v752_v35 = vpack.c.b16 %v747_v29, %v745_v22  ;;  %v775_v36 = vsel %vm101_vm1, %v770_v18, %v774_v24  ;;  %v801_v39 = vunpack.c.h.b16 %v790_v19  ;;  %v777_v41 = vsel %vm101_vm1, %v771_v23, %v776_v30  ;;  %v6986_v29 = vld [vmem:[%s10597_s0 + $0x40] sm:$0x22] }
  0x50   :  { %7649 = vmatpush3.bf16.msra.mxu0 %v8121_v4  ;;  %v804_v42 = vrot.slane %v796_v31, 1  ;;  %v806_v43 = vrot.slane %v797_v32, 1  ;;  %v826_v45 = vunpack.c.l.b16 %v6970_v25  ;;  %v782_v48 = vpack.c.b16 %v777_v41, %v775_v36  ;;  %v8133_v30 = vld [vmem:[#allocation4 + $0x170] sm:$0xff]   ;;  %v8138_v41 = vld [vmem:[#allocation4 + $0x118] sm:$0xff]  }
  0x51   :  { %7650 = vmatprep.subr.bf16.mxu0 %v8125_v9  ;;  %756 = vst [vmem:[#allocation2] sm:$0x11] %v752_v35  ;;  %v827_v49 = vunpack.c.h.b16 %v6970_v25  ;;  %v830_v50 = vunpack.c.l.b16 %v6972_v27  ;;  %v831_v52 = vunpack.c.h.b16 %v6972_v27  ;;  %v860_v58 = vunpack.c.l.b16 %v6974_v33 }
  0x52   :  { %v805_v55 = vsel %vm134_vm2, %v800_v38, %v804_v42  ;;  %v807_v56 = vsel %vm134_vm2, %v801_v39, %v806_v43  ;;  %v834_v57 = vrot.slane %v826_v45, 3  ;;  %786 = vst [vmem:[#allocation2] sm:$0x22] %v782_v48  ;;  %v861_v63 = vunpack.c.h.b16 %v6974_v33 }
  0x53   :  { %v8122_v59 = vld [vmem:[#allocation2 + $0xc] ss:$16 sps:$4 sm:$0xff]   ;;  %v8124_v60 = vld [vmem:[#allocation2 + $0x8] ss:$16 sps:$4 sm:$0xff]   ;;  %v812_v61 = vpack.c.b16 %v807_v56, %v805_v55  ;;  %v835_v62 = vrot.slane %v830_v50, 2  ;;  %v864_v0 = vunpack.c.l.b16 %v6976_v34  ;;  %v837_v2 = vrot.slane %v827_v49, 3 }
  0x54   :  { %7651 = vmatpush3.bf16.msra.mxu0 %v8127_v20  ;;  %v838_v3 = vrot.slane %v831_v52, 2  ;;  %v865_v4 = vunpack.c.h.b16 %v6976_v34  ;;  %v868_v5 = vrot.slane %v860_v58, 3  ;;  %6968 = vmatprep.mubr.msk.bf16.mxu1 %vm622_vm14, %v8122_v59  ;;  %v871_v11 = vrot.slane %v861_v63, 3  ;;  %v8142_v52 = vld [vmem:[#allocation4 + $0x200] sm:$0xff]   ;;  %v8137_v59 = vld [vmem:[#allocation4 + $0x178] sm:$0xff]  }
  0x55   :  { %7652 = vmatprep.subr.bf16.mxu0 %v8128_v28  ;;  %816 = vst [vmem:[#allocation2] sm:$0x44] %v812_v61  ;;  %v836_v9 = vsel %vm170_vm3, %v835_v62, %v834_v57  ;;  %v869_v10 = vrot.slane %v864_v0, 2  ;;  %v894_v12 = vunpack.c.l.b16 %v6978_v46  ;;  %710 = vmatmul.mubr.bf16.vlgmr.msra.gmra.mrb[0].mxu1 %v8124_v60  ;;  %v895_v18 = vunpack.c.h.b16 %v6978_v46 }
  0x56   :  { %v364_v14 = vld [vmem:[#allocation2 + $0x20] sm:$0x11]  ;;  %v839_v16 = vsel %vm170_vm3, %v838_v3, %v837_v2  ;;  %v872_v17 = vrot.slane %v865_v4, 2  ;;  %v898_v19 = vunpack.c.l.b16 %v6980_v53  ;;  %1340 = vmatpush1.bf16.msra.mxu1 %v8126_v47  ;;  %v899_v23 = vunpack.c.h.b16 %v6980_v53  ;;  %v8141_v3 = vld [vmem:[#allocation4 + $0x180] sm:$0xff]   ;;  %v6929_v4 = vld [vmem:[%s10597_s0 + $0x48] sm:$0x44] }
  0x57   :  { %v6937_v20 = vcombine.high %v364_v14, %v364_v14  ;;  %v6936_v21 = vcombine.low %v364_v14, %v364_v14  ;;  %v846_v22 = vpack.c.b16 %v839_v16, %v836_v9  ;;  %1341 = vmatprep.subr.bf16.mxu1 %v8516_v1  ;;  %v870_v24 = vsel %vm67_vm0, %v869_v10, %v868_v5  ;;  %v6931_v5 = vld [vmem:[%s10597_s0 + $0xb8] sm:$0x44] }
  0x58   :  { %7653 = vmatpush3.bf16.msra.mxu0 %v8130_v40  ;;  %v873_v25 = vsel %vm67_vm0, %v872_v17, %v871_v11  ;;  %v902_v27 = vrot.slane %v894_v12, 3  ;;  %v903_v28 = vrot.slane %v898_v19, 2  ;;  %v905_v32 = vrot.slane %v895_v18, 3  ;;  %v6988_v40 = vld [vmem:[%s10597_s0 + $0xb0] sm:$0x22] }
  0x59   :  { %7654 = vmatprep.subr.bf16.mxu0 %v8132_v54  ;;  %669 = vmatprep.mubr.bf16.mxu0 %v6937_v20  ;;  %850 = vst [vmem:[#allocation2] sm:$0x88] %v846_v22  ;;  %v880_v31 = vpack.c.b16 %v873_v25, %v870_v24  ;;  %v906_v33 = vrot.slane %v899_v23, 2  ;;  %v928_v34 = vunpack.c.l.b16 %v6982_v6  ;;  %v929_v36 = vunpack.c.h.b16 %v6982_v6  ;;  %v6990_v6 = vld [vmem:[%s10597_s0 + $0x40] sm:$0x44] }
  0x5a   :  { %670 = vmatmul.mubr.bf16.gmra.mrb[4].mxu0 %v6936_v21  ;;  %v904_v35 = vsel %vm101_vm1, %v903_v28, %v902_v27  ;;  %v932_v38 = vunpack.c.l.b16 %v6984_v13  ;;  %v933_v39 = vunpack.c.h.b16 %v6984_v13  ;;  %1342 = vmatpush1.bf16.msra.mxu1 %v8129_v7  ;;  %v962_v45 = vunpack.c.l.b16 %v6986_v29  ;;  %v6992_v11 = vld [vmem:[%s10597_s0 + $0xb0] sm:$0x44]  ;;  %v7052_v12 = vld [vmem:[%s10597_s0 + $0x40] sm:$0x88]  ;;  %v8145_v13 = vld [vmem:[#allocation4 + $0x188] sm:$0xff]  }
  0x5b   :  { %884 = vst [vmem:[#allocation2 + $0x10] sm:$0x11] %v880_v31  ;;  %v907_v42 = vsel %vm101_vm1, %v906_v33, %v905_v32  ;;  %v936_v43 = vrot.slane %v928_v34, 5  ;;  %v963_v46 = vunpack.c.h.b16 %v6986_v29  ;;  %1343 = vmatprep.subr.bf16.mxu1 %v8516_v1  ;;  %v939_v49 = vrot.slane %v929_v36, 5  ;;  %v7054_v18 = vld [vmem:[%s10597_s0 + $0xb0] sm:$0x88] }
  0x5c   :  { %7655 = vmatpush3.bf16.msra.mxu0 %v8135_v8  ;;  %v914_v47 = vpack.c.b16 %v907_v42, %v904_v35  ;;  %v937_v48 = vrot.slane %v932_v38, 4  ;;  %v940_v50 = vrot.slane %v933_v39, 4  ;;  %v966_v53 = vunpack.c.l.b16 %v6988_v40  ;;  %v8144_v36 = vld [vmem:[#allocation4 + $0x1c0] sm:$0xff]   ;;  %v8148_v38 = vld [vmem:[#allocation4 + $0x190] sm:$0xff]  }
  0x5d   :  { %7656 = vmatprep.subr.bf16.mxu0 %v8136_v15  ;;  %v967_v54 = vunpack.c.h.b16 %v6988_v40  ;;  %v970_v55 = vrot.slane %v962_v45, 5  ;;  %v973_v56 = vrot.slane %v963_v46, 5  ;;  %v336_v7 = vunpack.c.l.b16 %v6929_v4 }
  0x5e   :  { %918 = vst [vmem:[#allocation2 + $0x10] sm:$0x22] %v914_v47  ;;  %v938_v57 = vsel %vm134_vm2, %v937_v48, %v936_v43  ;;  %v941_v58 = vsel %vm134_vm2, %v940_v50, %v939_v49  ;;  %1344 = vmatpush1.bf16.msra.mxu1 %v8133_v30  ;;  %v971_v61 = vrot.slane %v966_v53, 4  ;;  %v337_v8 = vunpack.c.h.b16 %v6929_v4  ;;  %v8146_v47 = vld [vmem:[#allocation4 + $0x208] sm:$0xff]   ;;  %v729_v50 = vld [vmem:[%s10597_s0 + $0x8] sm:$0x11] }
  0x5f   :  { %v948_v60 = vpack.c.b16 %v941_v58, %v938_v57  ;;  %v974_v62 = vrot.slane %v967_v54, 4  ;;  %1345 = vmatprep.subr.bf16.mxu1 %v8516_v1  ;;  %v340_v9 = vunpack.c.l.b16 %v6931_v5  ;;  %v341_v10 = vunpack.c.h.b16 %v6931_v5  ;;  %v759_v57 = vld [vmem:[%s10597_s0 + $0x8] sm:$0x22]  ;;  %v761_v58 = vld [vmem:[%s10597_s0 + $0x78] sm:$0x22]  ;;  %v8149_v4 = vld [vmem:[#allocation4 + $0x210] sm:$0xff]  }
  0x60   :  { %7657 = vmatpush3.bf16.msra.mxu0 %v8138_v41  ;;  %v972_v63 = vsel %vm170_vm3, %v971_v61, %v970_v55  ;;  %v996_v14 = vunpack.c.l.b16 %v6990_v6  ;;  %v997_v15 = vunpack.c.h.b16 %v6990_v6  ;;  %v1000_v16 = vunpack.c.l.b16 %v6992_v11  ;;  %v8151_v61 = vld [vmem:[#allocation4 + $0x198] sm:$0xff]  }
  0x61   :  { %7670 = vmatprep.subr.bf16.mxu0 %v8142_v52  ;;  %952 = vst [vmem:[#allocation2 + $0x10] sm:$0x44] %v948_v60  ;;  %v975_v0 = vsel %vm170_vm3, %v974_v62, %v973_v56  ;;  %v1001_v17 = vunpack.c.h.b16 %v6992_v11  ;;  %v348_v19 = vrot.slane %v336_v7, 4  ;;  %v349_v20 = vrot.slane %v340_v9, 3  ;;  %v731_v52 = vld [vmem:[%s10597_s0 + $0x78] sm:$0x11] }
  0x62   :  { %v982_v2 = vpack.c.b16 %v975_v0, %v972_v63  ;;  %1346 = vmatpush1.bf16.msra.mxu1 %v8137_v59  ;;  %v351_v21 = vrot.slane %v337_v8, 4  ;;  %v352_v22 = vrot.slane %v341_v10, 3  ;;  %v1004_v23 = vrot.slane %v996_v14, 5  ;;  %v789_v59 = vld [vmem:[%s10597_s0 + $0x8] sm:$0x44]  ;;  %v8147_v60 = vld [vmem:[#allocation4 + $0x1c8] sm:$0xff]  }
  0x63   :  { %1347 = vmatprep.subr.bf16.mxu1 %v8516_v1  ;;  %v1005_v24 = vrot.slane %v1000_v16, 4  ;;  %v1007_v25 = vrot.slane %v997_v15, 5  ;;  %v1008_v27 = vrot.slane %v1001_v17, 4  ;;  %v350_v28 = vsel %vm67_vm0, %v349_v20, %v348_v19  ;;  %v6971_v19 = vld [vmem:[%s10597_s0 + $0x28] sm:$0x11]  ;;  %v8154_v20 = vld [vmem:[#allocation4 + $0x1a0] sm:$0xff]  }
  0x64   :  { %986 = vst [vmem:[#allocation2 + $0x10] sm:$0x88] %v982_v2  ;;  %v353_v29 = vsel %vm67_vm0, %v352_v22, %v351_v21  ;;  %v1670_v30 = vunpack.c.l.b16 %v7052_v12  ;;  %v1671_v31 = vunpack.c.h.b16 %v7052_v12  ;;  %v1674_v35 = vunpack.c.l.b16 %v7054_v18 }
  0x65   :  { %v355_v32 = vpack.c.b16 %v353_v29, %v350_v28  ;;  %v1006_v33 = vsel %vm67_vm0, %v1005_v24, %v1004_v23  ;;  %v1009_v34 = vsel %vm67_vm0, %v1008_v27, %v1007_v25  ;;  %v1675_v40 = vunpack.c.h.b16 %v7054_v18  ;;  %v6973_v27 = vld [vmem:[%s10597_s0 + $0x98] sm:$0x11]  ;;  %v8152_v28 = vld [vmem:[#allocation4 + $0x218] sm:$0xff]  }
  0x66   :  { %1348 = vmatpush1.bf16.msra.mxu1 %v8141_v3  ;;  %v1016_v39 = vpack.c.b16 %v1009_v34, %v1006_v33  ;;  %v1678_v41 = vrot.slane %v1670_v30, 6  ;;  %v1681_v42 = vrot.slane %v1671_v31, 6  ;;  %v1679_v46 = vrot.slane %v1674_v35, 5  ;;  %v791_v3 = vld [vmem:[%s10597_s0 + $0x78] sm:$0x44] }
  0x67   :  { %1349 = vmatprep.subr.bf16.mxu1 %v8516_v1  ;;  %359 = vst.msk [vmem:[#allocation2 + $0x28] sm:$0x11] %vm8679_vm10, %v355_v32  ;;  %v1682_v48 = vrot.slane %v1675_v40, 5  ;;  %v738_v54 = vunpack.c.l.b16 %v729_v50  ;;  %v739_v55 = vunpack.c.h.b16 %v729_v50  ;;  %v742_v56 = vunpack.c.l.b16 %v731_v52  ;;  %v6975_v33 = vld [vmem:[%s10597_s0 + $0x28] sm:$0x22] }
  0x68   :  { %1020 = vst [vmem:[#allocation2 + $0x20] sm:$0x11] %v1016_v39  ;;  %v1680_v49 = vsel %vm67_vm0, %v1679_v46, %v1678_v41  ;;  %v743_v63 = vunpack.c.h.b16 %v731_v52  ;;  %v768_v0 = vunpack.c.l.b16 %v759_v57  ;;  %v769_v2 = vunpack.c.h.b16 %v759_v57  ;;  %v6977_v39 = vld [vmem:[%s10597_s0 + $0x98] sm:$0x22]  ;;  %v8153_v46 = vld [vmem:[#allocation4 + $0x1d8] sm:$0xff]  }
  0x69   :  { %v1683_v53 = vsel %vm67_vm0, %v1682_v48, %v1681_v42  ;;  %v748_v5 = vrot.slane %v738_v54, 1  ;;  %v750_v6 = vrot.slane %v739_v55, 1  ;;  %v772_v7 = vunpack.c.l.b16 %v761_v58 }
  0x6a   :  { %1350 = vmatpush1.bf16.msra.mxu1 %v8145_v13  ;;  %v1690_v62 = vpack.c.b16 %v1683_v53, %v1680_v49  ;;  %v773_v8 = vunpack.c.h.b16 %v761_v58  ;;  %v778_v9 = vrot.slane %v768_v0, 1  ;;  %v780_v10 = vrot.slane %v769_v2, 1  ;;  %v8150_v13 = vld [vmem:[#allocation4 + $0x1d0] sm:$0xff]   ;;  %v8155_v53 = vld [vmem:[#allocation4 + $0x220] sm:$0xff]   ;;  %v6981_v58 = vld [vmem:[%s10597_s0 + $0x98] sm:$0x44] }
  0x6b   :  { %v8139_v43 = vld [vmem:[#allocation2 + $0x4] ss:$16 sps:$4 sm:$0xff]   ;;  %v8143_v45 = vld [vmem:[#allocation2] ss:$16 sps:$4 sm:$0xff]   ;;  %1351 = vmatprep.subr.bf16.mxu1 %v8516_v1  ;;  %v798_v11 = vunpack.c.l.b16 %v789_v59  ;;  %v799_v12 = vunpack.c.h.b16 %v789_v59  ;;  %v749_v15 = vsel %vm67_vm0, %v742_v56, %v748_v5  ;;  %v751_v16 = vsel %vm67_vm0, %v743_v63, %v750_v6  ;;  %v6983_v63 = vld [vmem:[%s10597_s0 + $0x48] sm:$0x11] }
  0x6c   :  { %1323 = vmatprep.mubr.bf16.mxu0 %v8139_v43  ;;  %v802_v17 = vunpack.c.l.b16 %v791_v3  ;;  %v803_v18 = vunpack.c.h.b16 %v791_v3  ;;  %v753_v24 = vpack.c.b16 %v751_v16, %v749_v15  ;;  %v779_v31 = vsel %vm101_vm1, %v772_v7, %v778_v9  ;;  %v8156_v0 = vld [vmem:[#allocation4 + $0x1e0] sm:$0xff]   ;;  %v8158_v2 = vld [vmem:[#allocation4 + $0x228] sm:$0xff]  }
  0x6d   :  { %1324 = vmatmul.mubr.bf16.vlgmr.msra.gmra.mrb[8].mxu0 %v8143_v45  ;;  %v808_v25 = vrot.slane %v798_v11, 1  ;;  %v810_v32 = vrot.slane %v799_v12, 1  ;;  %v781_v34 = vsel %vm101_vm1, %v773_v8, %v780_v10  ;;  %v832_v42 = vunpack.c.l.b16 %v6973_v27  ;;  %v6979_v45 = vld [vmem:[%s10597_s0 + $0x28] sm:$0x44]  ;;  %v6985_v7 = vld [vmem:[%s10597_s0 + $0xb8] sm:$0x11] }
  0x6e   :  { %7671 = vmatpush3.bf16.msra.mxu0 %v8144_v36  ;;  %1352 = vmatpush1.bf16.msra.mxu1 %v8148_v38  ;;  %v365_v14 = vld [vmem:[#allocation2 + $0x28] sm:$0x11]  ;;  %757 = vst.msk [vmem:[#allocation2 + $0x8] sm:$0x11] %vm8679_vm10, %v753_v24  ;;  %v828_v36 = vunpack.c.l.b16 %v6971_v19  ;;  %v829_v38 = vunpack.c.h.b16 %v6971_v19  ;;  %v783_v40 = vpack.c.b16 %v781_v34, %v779_v31  ;;  %v833_v43 = vunpack.c.h.b16 %v6973_v27  ;;  %v1390_v19 = vld [vmem:[%s10597_s0] sm:$0x22] }
  0x6f   :  { %7672 = vmatprep.subr.bf16.mxu0 %v8146_v47  ;;  %1353 = vmatprep.subr.bf16.mxu1 %v8516_v1  ;;  %v6939_v21 = vcombine.high %v365_v14, %v365_v14  ;;  %v6938_v22 = vcombine.low %v365_v14, %v365_v14  ;;  %v1026_v23 = vld [vmem:[#allocation2 + $0x20] sm:$0x11]  ;;  %v809_v35 = vsel %vm134_vm2, %v802_v17, %v808_v25  ;;  %v862_v52 = vunpack.c.l.b16 %v6975_v33  ;;  %v1392_v31 = vld [vmem:[%s10597_s0 + $0x70] sm:$0x22] }
  0x70   :  { %v6999_v29 = vcombine.high %v1026_v23, %v1026_v23  ;;  %1694 = vst [vmem:[#allocation2 + $0x20] sm:$0x11] %v1690_v62  ;;  %v6998_v30 = vcombine.low %v1026_v23, %v1026_v23  ;;  %v811_v41 = vsel %vm134_vm2, %v803_v18, %v810_v32  ;;  %v8157_v47 = vld [vmem:[#allocation4 + $0x1a8] sm:$0xff]   ;;  %v840_v49 = vrot.slane %v828_v36, 3  ;;  %787 = vst.msk [vmem:[#allocation2 + $0x8] sm:$0x22] %vm8695_vm11, %v783_v40 }
  0x71   :  { %6969 = vmatprep.mubr.msk.bf16.mxu1 %vm622_vm14, %v6939_v21  ;;  %v813_v48 = vpack.c.b16 %v811_v41, %v809_v35  ;;  %v843_v50 = vrot.slane %v829_v38, 3  ;;  %v841_v54 = vrot.slane %v832_v42, 2  ;;  %v844_v55 = vrot.slane %v833_v43, 2  ;;  %v8163_v8 = vld [vmem:[#allocation4 + $0x1b0] sm:$0xff]   ;;  %v6989_v18 = vld [vmem:[%s10597_s0 + $0xb8] sm:$0x22] }
  0x72   :  { %7673 = vmatpush3.bf16.msra.mxu0 %v8147_v60  ;;  %1354 = vmatpush1.bf16.msra.mxu1 %v8151_v61  ;;  %v863_v56 = vunpack.c.h.b16 %v6975_v33  ;;  %v866_v57 = vunpack.c.l.b16 %v6977_v39  ;;  %v867_v59 = vunpack.c.h.b16 %v6977_v39  ;;  %v874_v60 = vrot.slane %v862_v52, 3  ;;  %v8164_v25 = vld [vmem:[#allocation4 + $0x230] sm:$0xff]   ;;  %v8166_v32 = vld [vmem:[#allocation4 + $0x1b8] sm:$0xff]  }
  0x73   :  { %7674 = vmatprep.subr.bf16.mxu0 %v8149_v4  ;;  %1355 = vmatprep.subr.bf16.mxu1 %v8516_v1  ;;  %817 = vst.msk [vmem:[#allocation2 + $0x8] sm:$0x44] %vm8708_vm12, %v813_v48  ;;  %v896_v61 = vunpack.c.l.b16 %v6979_v45  ;;  %v897_v62 = vunpack.c.h.b16 %v6979_v45  ;;  %v842_v3 = vsel %vm170_vm3, %v841_v54, %v840_v49  ;;  %v845_v4 = vsel %vm170_vm3, %v844_v55, %v843_v50  ;;  %v1424_v38 = vld [vmem:[%s10597_s0] sm:$0x44]  ;;  %v1426_v48 = vld [vmem:[%s10597_s0 + $0x70] sm:$0x44] }
  0x74   :  { %718 = vmatmul.mubr.bf16.gmra.mrb[4].mxu1 %v6938_v22  ;;  %1331 = vmatprep.mubr.bf16.mxu0 %v6999_v29  ;;  %v875_v5 = vrot.slane %v866_v57, 2  ;;  %v877_v6 = vrot.slane %v863_v56, 3  ;;  %v847_v9 = vpack.c.b16 %v845_v4, %v842_v3  ;;  %v878_v10 = vrot.slane %v867_v59, 2  ;;  %v8165_v49 = vld [vmem:[#allocation4 + $0x1f0] sm:$0xff]   ;;  %v8168_v3 = vld [vmem:[#allocation4 + $0x1f8] sm:$0xff]  }
  0x75   :  { %1332 = vmatmul.mubr.bf16.gmra.mrb[12].mxu0 %v6998_v30  ;;  %v900_v11 = vunpack.c.l.b16 %v6981_v58  ;;  %v901_v12 = vunpack.c.h.b16 %v6981_v58  ;;  %v908_v15 = vrot.slane %v896_v61, 3  ;;  %v911_v16 = vrot.slane %v897_v62, 3  ;;  %v1458_v55 = vld [vmem:[%s10597_s0] sm:$0x88] }
  0x76   :  { %7675 = vmatpush3.bf16.msra.mxu0 %v8150_v13  ;;  %1356 = vmatpush1.bf16.msra.mxu1 %v8154_v20  ;;  %v6987_v13 = vld [vmem:[%s10597_s0 + $0x48] sm:$0x22]  ;;  %v876_v14 = vsel %vm67_vm0, %v875_v5, %v874_v60  ;;  %v930_v17 = vunpack.c.l.b16 %v6983_v63  ;;  %v8159_v20 = vld [vmem:[#allocation4 + $0x1e8] sm:$0xff]   ;;  %851 = vst.msk [vmem:[#allocation2 + $0x8] sm:$0x88] %vm8715_vm13, %v847_v9  ;;  %v879_v21 = vsel %vm67_vm0, %v878_v10, %v877_v6  ;;  %v931_v24 = vunpack.c.h.b16 %v6983_v63 }
  0x77   :  { %7676 = vmatprep.subr.bf16.mxu0 %v8152_v28  ;;  %1357 = vmatprep.subr.bf16.mxu1 %v8516_v1  ;;  %v909_v22 = vrot.slane %v900_v11, 2  ;;  %v912_v23 = vrot.slane %v901_v12, 2  ;;  %v881_v27 = vpack.c.b16 %v879_v21, %v876_v14  ;;  %v934_v28 = vunpack.c.l.b16 %v6985_v7  ;;  %v8167_v60 = vld [vmem:[#allocation4 + $0x238] sm:$0xff]  }
  0x78   :  { %v935_v29 = vunpack.c.h.b16 %v6985_v7  ;;  %v942_v30 = vrot.slane %v930_v17, 5  ;;  %v945_v35 = vrot.slane %v931_v24, 5  ;;  %v964_v36 = vunpack.c.l.b16 %v6987_v13 }
  0x79   :  { %v910_v33 = vsel %vm101_vm1, %v909_v22, %v908_v15  ;;  %v913_v34 = vsel %vm101_vm1, %v912_v23, %v911_v16  ;;  %885 = vst.msk [vmem:[#allocation2 + $0x18] sm:$0x11] %vm8679_vm10, %v881_v27  ;;  %v943_v40 = vrot.slane %v934_v28, 4  ;;  %v965_v42 = vunpack.c.h.b16 %v6987_v13  ;;  %v8175_v13 = vld [vmem:[#allocation4 + $0x2e0] sm:$0xff]   ;;  %v7036_v23 = vld [vmem:[%s10597_s0 + $0x20] sm:$0x44] }
  0x7a   :  { %7677 = vmatpush3.bf16.msra.mxu0 %v8153_v46  ;;  %1358 = vmatpush1.bf16.msra.mxu1 %v8157_v47  ;;  %v915_v39 = vpack.c.b16 %v913_v34, %v910_v33  ;;  %v946_v41 = vrot.slane %v935_v29, 4  ;;  %v968_v43 = vunpack.c.l.b16 %v6989_v18  ;;  %v969_v45 = vunpack.c.h.b16 %v6989_v18  ;;  %v7034_v18 = vld [vmem:[%s10597_s0 + $0x90] sm:$0x22]  ;;  %v7038_v29 = vld [vmem:[%s10597_s0 + $0x90] sm:$0x44] }
  0x7b   :  { %7678 = vmatprep.subr.bf16.mxu0 %v8155_v53  ;;  %1359 = vmatprep.subr.bf16.mxu1 %v8516_v1  ;;  %v976_v46 = vrot.slane %v964_v36, 5  ;;  %v1398_v47 = vunpack.c.l.b16 %v1390_v19  ;;  %v944_v50 = vsel %vm134_vm2, %v943_v40, %v942_v30  ;;  %v979_v53 = vrot.slane %v965_v42, 5  ;;  %v7040_v34 = vld [vmem:[%s10597_s0 + $0x20] sm:$0x88] }
  0x7c   :  { %919 = vst.msk [vmem:[#allocation2 + $0x18] sm:$0x22] %vm8695_vm11, %v915_v39  ;;  %v947_v52 = vsel %vm134_vm2, %v946_v41, %v945_v35  ;;  %v1399_v54 = vunpack.c.h.b16 %v1390_v19  ;;  %v977_v57 = vrot.slane %v968_v43, 4  ;;  %v980_v58 = vrot.slane %v969_v45, 4  ;;  %v7042_v45 = vld [vmem:[%s10597_s0 + $0x90] sm:$0x88] }
  0x7d   :  { %v949_v56 = vpack.c.b16 %v947_v52, %v944_v50  ;;  %v1402_v59 = vunpack.c.l.b16 %v1392_v31  ;;  %v1403_v61 = vunpack.c.h.b16 %v1392_v31  ;;  %v1406_v62 = vrot.slane %v1398_v47, 2  ;;  %v8174_v50 = vld [vmem:[#allocation4 + $0x240] sm:$0xff]  }
  0x7e   :  { %7679 = vmatpush3.bf16.msra.mxu0 %v8156_v0  ;;  %1360 = vmatpush1.bf16.msra.mxu1 %v8163_v8  ;;  %v1409_v63 = vrot.slane %v1399_v54, 2  ;;  %v1432_v0 = vunpack.c.l.b16 %v1424_v38  ;;  %v978_v4 = vsel %vm170_vm3, %v977_v57, %v976_v46  ;;  %v981_v5 = vsel %vm170_vm3, %v980_v58, %v979_v53  ;;  %v7032_v8 = vld [vmem:[%s10597_s0 + $0x20] sm:$0x22] }
  0x7f   :  { %7680 = vmatprep.subr.bf16.mxu0 %v8158_v2  ;;  %1361 = vmatprep.subr.bf16.mxu1 %v8516_v1  ;;  %v1460_v2 = vld [vmem:[%s10597_s0 + $0x70] sm:$0x88]  ;;  %953 = vst.msk [vmem:[#allocation2 + $0x18] sm:$0x44] %vm8708_vm12, %v949_v56  ;;  %v1407_v6 = vrot.slane %v1402_v59, 1  ;;  %v1433_v7 = vunpack.c.h.b16 %v1424_v38  ;;  %v983_v9 = vpack.c.b16 %v981_v5, %v978_v4  ;;  %v1410_v10 = vrot.slane %v1403_v61, 1 }
  0x80   :  { %v1436_v11 = vunpack.c.l.b16 %v1426_v48  ;;  %v1437_v12 = vunpack.c.h.b16 %v1426_v48  ;;  %v1440_v15 = vrot.slane %v1432_v0, 2  ;;  %v1466_v17 = vunpack.c.l.b16 %v1458_v55  ;;  %v7044_v56 = vld [vmem:[%s10597_s0 + $0x40] sm:$0x22]  ;;  %v7046_v4 = vld [vmem:[%s10597_s0 + $0xb0] sm:$0x22] }
  0x81   :  { %v1408_v14 = vsel %vm67_vm0, %v1407_v6, %v1406_v62  ;;  %v1443_v16 = vrot.slane %v1433_v7, 2  ;;  %987 = vst.msk [vmem:[#allocation2 + $0x18] sm:$0x88] %vm8715_vm13, %v983_v9  ;;  %v1411_v19 = vsel %vm67_vm0, %v1410_v10, %v1409_v63  ;;  %v1467_v22 = vunpack.c.h.b16 %v1458_v55  ;;  %v7048_v9 = vld [vmem:[%s10597_s0 + $0x40] sm:$0x44]  ;;  %v8178_v10 = vld [vmem:[#allocation4 + $0x248] sm:$0xff]  }
  0x82   :  { %7681 = vmatpush3.bf16.msra.mxu0 %v8159_v20  ;;  %1362 = vmatpush1.bf16.msra.mxu1 %v8166_v32  ;;  %v1441_v20 = vrot.slane %v1436_v11, 1  ;;  %v1444_v21 = vrot.slane %v1437_v12, 1  ;;  %v1418_v24 = vpack.c.b16 %v1411_v19, %v1408_v14  ;;  %v1471_v27 = vunpack.c.h.b16 %v1460_v2 }
  0x83   :  { %7682 = vmatprep.subr.bf16.mxu0 %v8164_v25  ;;  %2013 = vmatprep.subr.bf16.mxu1 %v8516_v1  ;;  %v1470_v25 = vunpack.c.l.b16 %v1460_v2  ;;  %v1474_v28 = vrot.slane %v1466_v17, 2  ;;  %v1477_v32 = vrot.slane %v1467_v22, 2  ;;  %v1500_v33 = vunpack.c.l.b16 %v7032_v8 }
  0x84   :  { %v1442_v30 = vsel %vm101_vm1, %v1441_v20, %v1440_v15  ;;  %v1445_v31 = vsel %vm101_vm1, %v1444_v21, %v1443_v16  ;;  %1422 = vst [vmem:[#allocation2] sm:$0x11] %v1418_v24  ;;  %v1478_v38 = vrot.slane %v1471_v27, 1  ;;  %v1501_v39 = vunpack.c.h.b16 %v7032_v8  ;;  %v7050_v15 = vld [vmem:[%s10597_s0 + $0xb0] sm:$0x44] }
  0x85   :  { %v1452_v35 = vpack.c.b16 %v1445_v31, %v1442_v30  ;;  %v1475_v36 = vrot.slane %v1470_v25, 1  ;;  %v1504_v40 = vunpack.c.l.b16 %v7034_v18  ;;  %v1505_v41 = vunpack.c.h.b16 %v7034_v18  ;;  %v9005_v16 = vld [vmem:[#allocation2 + $0x20] sm:$0x11]  ;;  %v7126_v21 = vld [vmem:[%s10597_s0 + $0x50] sm:$0x44] }
  0x86   :  { %7683 = vmatpush3.bf16.msra.mxu0 %v8165_v49  ;;  %v1508_v42 = vrot.slane %v1500_v33, 4  ;;  %v1534_v43 = vunpack.c.l.b16 %v7036_v23  ;;  %v1479_v47 = vsel %vm134_vm2, %v1478_v38, %v1477_v32  ;;  %v1511_v48 = vrot.slane %v1501_v39, 4 }
  0x87   :  { %7684 = vmatprep.subr.bf16.mxu0 %v8167_v60  ;;  %1456 = vst [vmem:[#allocation2] sm:$0x22] %v1452_v35  ;;  %v1476_v46 = vsel %vm134_vm2, %v1475_v36, %v1474_v28  ;;  %v1535_v49 = vunpack.c.h.b16 %v7036_v23  ;;  %v1509_v53 = vrot.slane %v1504_v40, 3  ;;  %v1512_v54 = vrot.slane %v1505_v41, 3  ;;  %v7128_v35 = vld [vmem:[%s10597_s0 + $0xc0] sm:$0x44] }
  0x88   :  { %v1486_v52 = vpack.c.b16 %v1479_v47, %v1476_v46  ;;  %v1538_v55 = vunpack.c.l.b16 %v7038_v29  ;;  %v8169_v57 = vld [vmem:[#allocation2 + $0xc] ss:$16 sps:$4 sm:$0xff]   ;;  %v8171_v58 = vld [vmem:[#allocation2 + $0x8] ss:$16 sps:$4 sm:$0xff]   ;;  %v1539_v59 = vunpack.c.h.b16 %v7038_v29  ;;  %v1542_v60 = vrot.slane %v1534_v43, 4 }
  0x89   :  { %v1568_v61 = vunpack.c.l.b16 %v7040_v34  ;;  %v1569_v62 = vunpack.c.h.b16 %v7040_v34  ;;  %v1510_v63 = vsel %vm170_vm3, %v1509_v53, %v1508_v42  ;;  %v1513_v0 = vsel %vm170_vm3, %v1512_v54, %v1511_v48  ;;  %7030 = vmatprep.mubr.msk.bf16.mxu1 %vm622_vm14, %v8169_v57  ;;  %v8181_v40 = vld [vmem:[#allocation4 + $0x250] sm:$0xff]  }
  0x8a   :  { %7685 = vmatpush3.bf16.msra.mxu0 %v8168_v3  ;;  %1490 = vst [vmem:[#allocation2] sm:$0x44] %v1486_v52  ;;  %v1543_v2 = vrot.slane %v1538_v55, 3  ;;  %v1545_v3 = vrot.slane %v1535_v49, 4  ;;  %v1520_v5 = vpack.c.b16 %v1513_v0, %v1510_v63  ;;  %v1546_v6 = vrot.slane %v1539_v59, 3  ;;  %1372 = vmatmul.mubr.bf16.vlgmr.msra.gmra.mrb[0].mxu1 %v8171_v58 }
  0x8b   :  { %7698 = vmatprep.subr.bf16.mxu0 %v8175_v13  ;;  %v1572_v7 = vunpack.c.l.b16 %v7042_v45  ;;  %v1573_v8 = vunpack.c.h.b16 %v7042_v45  ;;  %v1576_v12 = vrot.slane %v1568_v61, 4  ;;  %v1579_v13 = vrot.slane %v1569_v62, 4  ;;  %2014 = vmatpush1.bf16.msra.mxu1 %v8174_v50  ;;  %v7094_v52 = vld [vmem:[%s10597_s0 + $0x10] sm:$0x11]  ;;  %v7096_v57 = vld [vmem:[%s10597_s0 + $0x80] sm:$0x11] }
  0x8c   :  { %v1544_v11 = vsel %vm67_vm0, %v1543_v2, %v1542_v60  ;;  %v1602_v14 = vunpack.c.l.b16 %v7044_v56  ;;  %1524 = vst [vmem:[#allocation2] sm:$0x88] %v1520_v5  ;;  %v1547_v17 = vsel %vm67_vm0, %v1546_v6, %v1545_v3  ;;  %v1603_v20 = vunpack.c.h.b16 %v7044_v56  ;;  %2015 = vmatprep.subr.bf16.mxu1 %v8516_v1  ;;  %v7098_v58 = vld [vmem:[%s10597_s0 + $0x10] sm:$0x22]  ;;  %v8184_v61 = vld [vmem:[#allocation4 + $0x258] sm:$0xff]  }
  0x8d   :  { %v1577_v18 = vrot.slane %v1572_v7, 3  ;;  %v1580_v19 = vrot.slane %v1573_v8, 3  ;;  %v1554_v22 = vpack.c.b16 %v1547_v17, %v1544_v11  ;;  %v1606_v23 = vunpack.c.l.b16 %v7046_v4  ;;  %v7100_v0 = vld [vmem:[%s10597_s0 + $0x80] sm:$0x22]  ;;  %v7102_v6 = vld [vmem:[%s10597_s0 + $0x10] sm:$0x44] }
  0x8e   :  { %v1607_v24 = vunpack.c.h.b16 %v7046_v4  ;;  %v1610_v25 = vrot.slane %v1602_v14, 6  ;;  %v1613_v29 = vrot.slane %v1603_v20, 6  ;;  %v1636_v30 = vunpack.c.l.b16 %v7048_v9  ;;  %v7104_v11 = vld [vmem:[%s10597_s0 + $0x80] sm:$0x44] }
  0x8f   :  { %v1578_v27 = vsel %vm101_vm1, %v1577_v18, %v1576_v12  ;;  %v1581_v28 = vsel %vm101_vm1, %v1580_v19, %v1579_v13  ;;  %1558 = vst [vmem:[#allocation2 + $0x10] sm:$0x11] %v1554_v22  ;;  %v1611_v32 = vrot.slane %v1606_v23, 5  ;;  %v1637_v34 = vunpack.c.h.b16 %v7048_v9  ;;  %2016 = vmatpush1.bf16.msra.mxu1 %v8178_v10  ;;  %v8187_v12 = vld [vmem:[#allocation4 + $0x260] sm:$0xff]   ;;  %v7108_v23 = vld [vmem:[%s10597_s0 + $0xa0] sm:$0x11] }
  0x90   :  { %v1588_v31 = vpack.c.b16 %v1581_v28, %v1578_v27  ;;  %v1614_v33 = vrot.slane %v1607_v24, 5  ;;  %v1640_v36 = vunpack.c.l.b16 %v7050_v15  ;;  %v1641_v38 = vunpack.c.h.b16 %v7050_v15  ;;  %2017 = vmatprep.subr.bf16.mxu1 %v8516_v1  ;;  %v7106_v18 = vld [vmem:[%s10597_s0 + $0x30] sm:$0x11]  ;;  %v7110_v24 = vld [vmem:[%s10597_s0 + $0x30] sm:$0x22] }
  0x91   :  { %v1644_v39 = vrot.slane %v1636_v30, 6  ;;  %v7061_v41 = vcombine.high %v9005_v16, %v9005_v16  ;;  %v1612_v42 = vsel %vm134_vm2, %v1611_v32, %v1610_v25  ;;  %v1647_v45 = vrot.slane %v1637_v34, 6  ;;  %v7112_v30 = vld [vmem:[%s10597_s0 + $0xa0] sm:$0x22] }
  0x92   :  { %1592 = vst [vmem:[#allocation2 + $0x10] sm:$0x22] %v1588_v31  ;;  %v1615_v43 = vsel %vm134_vm2, %v1614_v33, %v1613_v29  ;;  %v2335_v46 = vunpack.c.l.b16 %v7126_v21  ;;  %v1645_v48 = vrot.slane %v1640_v36, 5  ;;  %v1648_v49 = vrot.slane %v1641_v38, 5 }
  0x93   :  { %v1622_v47 = vpack.c.b16 %v1615_v43, %v1612_v42  ;;  %v2336_v50 = vunpack.c.h.b16 %v7126_v21  ;;  %v2339_v53 = vunpack.c.l.b16 %v7128_v35  ;;  %v2340_v54 = vunpack.c.h.b16 %v7128_v35  ;;  %2018 = vmatpush1.bf16.msra.mxu1 %v8181_v40  ;;  %v8177_v40 = vld [vmem:[#allocation4 + $0x2a0] sm:$0xff]   ;;  %v8190_v42 = vld [vmem:[#allocation4 + $0x268] sm:$0xff]  }
  0x94   :  { %v2343_v55 = vrot.slane %v2335_v46, 4  ;;  %v7060_v56 = vcombine.low %v9005_v16, %v9005_v16  ;;  %v1646_v59 = vsel %vm170_vm3, %v1645_v48, %v1644_v39  ;;  %v1649_v60 = vsel %vm170_vm3, %v1648_v49, %v1647_v45  ;;  %2019 = vmatprep.subr.bf16.mxu1 %v8516_v1  ;;  %v8179_v48 = vld [vmem:[#allocation4 + $0x2e8] sm:$0xff]  }
  0x95   :  { %1626 = vst [vmem:[#allocation2 + $0x10] sm:$0x44] %v1622_v47  ;;  %v2346_v62 = vrot.slane %v2336_v50, 4  ;;  %v2073_v63 = vunpack.c.l.b16 %v7094_v52  ;;  %v1656_v2 = vpack.c.b16 %v1649_v60, %v1646_v59  ;;  %v2344_v3 = vrot.slane %v2339_v53, 3  ;;  %v7055_v16 = vld [vmem:[%s10597_s0 + $0xb8] sm:$0x88] }
  0x96   :  { %v2347_v4 = vrot.slane %v2340_v54, 3  ;;  %v2074_v5 = vunpack.c.h.b16 %v7094_v52  ;;  %v2077_v7 = vunpack.c.l.b16 %v7096_v57  ;;  %v2078_v8 = vunpack.c.h.b16 %v7096_v57  ;;  %v7114_v54 = vld [vmem:[%s10597_s0 + $0x30] sm:$0x44] }
  0x97   :  { %v2103_v9 = vunpack.c.l.b16 %v7098_v58  ;;  %v2104_v10 = vunpack.c.h.b16 %v7098_v58  ;;  %1660 = vst [vmem:[#allocation2 + $0x10] sm:$0x88] %v1656_v2  ;;  %v2345_v13 = vsel %vm67_vm0, %v2344_v3, %v2343_v55  ;;  %v2107_v15 = vunpack.c.l.b16 %v7100_v0  ;;  %2020 = vmatpush1.bf16.msra.mxu1 %v8184_v61  ;;  %v7116_v3 = vld [vmem:[%s10597_s0 + $0xa0] sm:$0x44] }
  0x98   :  { %v2348_v14 = vsel %vm67_vm0, %v2347_v4, %v2346_v62  ;;  %v2108_v17 = vunpack.c.h.b16 %v7100_v0  ;;  %v2081_v20 = vrot.slane %v2077_v7, 7  ;;  %v2083_v21 = vrot.slane %v2078_v8, 7  ;;  %2021 = vmatprep.subr.bf16.mxu1 %v8516_v1  ;;  %v7118_v4 = vld [vmem:[%s10597_s0 + $0x50] sm:$0x11] }
  0x99   :  { %v2355_v19 = vpack.c.b16 %v2348_v14, %v2345_v13  ;;  %v2133_v22 = vunpack.c.l.b16 %v7102_v6  ;;  %v2111_v25 = vrot.slane %v2107_v15, 7  ;;  %v2134_v28 = vunpack.c.h.b16 %v7102_v6  ;;  %v8194_v6 = vld [vmem:[#allocation4 + $0x270] sm:$0xff]  }
  0x9a   :  { %v2113_v27 = vrot.slane %v2108_v17, 7  ;;  %v2137_v29 = vunpack.c.l.b16 %v7104_v11  ;;  %v2082_v31 = vsel %vm67_vm0, %v2081_v20, %v2073_v63  ;;  %v2084_v32 = vsel %vm67_vm0, %v2083_v21, %v2074_v5  ;;  %v8180_v5 = vld [vmem:[#allocation4 + $0x2a8] sm:$0xff]   ;;  %v8182_v13 = vld [vmem:[#allocation4 + $0x2f0] sm:$0xff]  }
  0x9b   :  { %2359 = vst [vmem:[#allocation2 + $0x20] sm:$0x11] %v2355_v19  ;;  %v2138_v33 = vunpack.c.h.b16 %v7104_v11  ;;  %v2164_v34 = vunpack.c.l.b16 %v7106_v18  ;;  %v2089_v35 = vpack.c.b16 %v2084_v32, %v2082_v31  ;;  %v2112_v36 = vsel %vm101_vm1, %v2111_v25, %v2103_v9  ;;  %2022 = vmatpush1.bf16.msra.mxu1 %v8187_v12  ;;  %v7120_v11 = vld [vmem:[%s10597_s0 + $0xc0] sm:$0x11]  ;;  %v7122_v12 = vld [vmem:[%s10597_s0 + $0x50] sm:$0x22] }
  0x9c   :  { %v2114_v38 = vsel %vm101_vm1, %v2113_v27, %v2104_v10  ;;  %v2141_v39 = vrot.slane %v2137_v29, 7  ;;  %v2165_v46 = vunpack.c.h.b16 %v7106_v18  ;;  %v2168_v47 = vunpack.c.l.b16 %v7108_v23  ;;  %2023 = vmatprep.subr.bf16.mxu1 %v8516_v1  ;;  %v8197_v19 = vld [vmem:[#allocation4 + $0x278] sm:$0xff]  }
  0x9d   :  { %v2119_v43 = vpack.c.b16 %v2114_v38, %v2112_v36  ;;  %v2143_v45 = vrot.slane %v2138_v33, 7  ;;  %v2169_v50 = vunpack.c.h.b16 %v7108_v23  ;;  %v2172_v52 = vrot.slane %v2164_v34, 2 }
  0x9e   :  { %v2142_v49 = vsel %vm134_vm2, %v2141_v39, %v2133_v22  ;;  %v2198_v53 = vunpack.c.l.b16 %v7110_v24  ;;  %v8172_v55 = vld [vmem:[#allocation2 + $0x4] ss:$16 sps:$4 sm:$0xff]   ;;  %v8176_v57 = vld [vmem:[#allocation2] ss:$16 sps:$4 sm:$0xff]   ;;  %v2173_v59 = vrot.slane %v2168_v47, 1  ;;  %v2199_v60 = vunpack.c.h.b16 %v7110_v24 }
  0x9f   :  { %v2144_v58 = vsel %vm134_vm2, %v2143_v45, %v2134_v28  ;;  %v2202_v61 = vunpack.c.l.b16 %v7112_v30  ;;  %2093 = vst [vmem:[#allocation2] sm:$0x11] %v2089_v35  ;;  %2123 = vst [vmem:[#allocation2] sm:$0x22] %v2119_v43  ;;  %v2175_v63 = vrot.slane %v2165_v46, 2  ;;  %v2176_v0 = vrot.slane %v2169_v50, 1  ;;  %1997 = vmatprep.mubr.bf16.mxu0 %v8172_v55  ;;  %2024 = vmatpush1.bf16.msra.mxu1 %v8190_v42 }
  0xa0   :  { %v2149_v62 = vpack.c.b16 %v2144_v58, %v2142_v49  ;;  %v2203_v2 = vunpack.c.h.b16 %v7112_v30  ;;  %v2174_v7 = vsel %vm170_vm3, %v2173_v59, %v2172_v52  ;;  %v2206_v8 = vrot.slane %v2198_v53, 2  ;;  %1998 = vmatmul.mubr.bf16.vlgmr.msra.gmra.mrb[16].mxu0 %v8176_v57  ;;  %2025 = vmatprep.subr.bf16.mxu1 %v8516_v1  ;;  %v7124_v24 = vld [vmem:[%s10597_s0 + $0xc0] sm:$0x22]  ;;  %v8185_v46 = vld [vmem:[#allocation4 + $0x2f8] sm:$0xff]   ;;  %v6993_v52 = vld [vmem:[%s10597_s0 + $0xb8] sm:$0x44] }
  0xa1   :  { %v2207_v9 = vrot.slane %v2202_v61, 1  ;;  %v2209_v10 = vrot.slane %v2199_v60, 2  ;;  %v2177_v14 = vsel %vm170_vm3, %v2176_v0, %v2175_v63  ;;  %v2232_v17 = vunpack.c.l.b16 %v7114_v54  ;;  %7699 = vmatpush3.bf16.msra.mxu0 %v8177_v40  ;;  %2005 = vmatprep.mubr.bf16.mxu0 %v7061_v41  ;;  %v6991_v41 = vld [vmem:[%s10597_s0 + $0x48] sm:$0x44]  ;;  %v8183_v39 = vld [vmem:[#allocation4 + $0x2b0] sm:$0xff]   ;;  %v8200_v53 = vld [vmem:[#allocation4 + $0x280] sm:$0xff]  }
  0xa2   :  { %2153 = vst [vmem:[#allocation2] sm:$0x44] %v2149_v62  ;;  %v2210_v15 = vrot.slane %v2203_v2, 1  ;;  %v2233_v18 = vunpack.c.h.b16 %v7114_v54  ;;  %v2184_v20 = vpack.c.b16 %v2177_v14, %v2174_v7  ;;  %v2236_v22 = vunpack.c.l.b16 %v7116_v3  ;;  %7700 = vmatprep.subr.bf16.mxu0 %v8179_v48  ;;  %v7053_v59 = vld [vmem:[%s10597_s0 + $0x48] sm:$0x88] }
  0xa3   :  { %v2208_v21 = vsel %vm67_vm0, %v2207_v9, %v2206_v8  ;;  %v2237_v23 = vunpack.c.h.b16 %v7116_v3  ;;  %v2240_v27 = vrot.slane %v2232_v17, 2  ;;  %v2267_v29 = vunpack.c.l.b16 %v7118_v4  ;;  %2026 = vmatpush1.bf16.msra.mxu1 %v8194_v6  ;;  %v8186_v0 = vld [vmem:[#allocation4 + $0x2b8] sm:$0xff]  }
  0xa4   :  { %v2211_v25 = vsel %vm67_vm0, %v2210_v15, %v2209_v10  ;;  %v2243_v28 = vrot.slane %v2233_v18, 2  ;;  %2188 = vst [vmem:[#allocation2] sm:$0x88] %v2184_v20  ;;  %v2241_v31 = vrot.slane %v2236_v22, 1  ;;  %v2268_v33 = vunpack.c.h.b16 %v7118_v4  ;;  %2027 = vmatprep.subr.bf16.mxu1 %v8516_v1  ;;  %v1391_v10 = vld [vmem:[%s10597_s0 + $0x8] sm:$0x22] }
  0xa5   :  { %v2218_v30 = vpack.c.b16 %v2211_v25, %v2208_v21  ;;  %v2244_v32 = vrot.slane %v2237_v23, 1  ;;  %v2271_v34 = vunpack.c.l.b16 %v7120_v11  ;;  %v2272_v35 = vunpack.c.h.b16 %v7120_v11  ;;  %7701 = vmatpush3.bf16.msra.mxu0 %v8180_v5  ;;  %v1393_v21 = vld [vmem:[%s10597_s0 + $0x78] sm:$0x22]  ;;  %v1425_v22 = vld [vmem:[%s10597_s0 + $0x8] sm:$0x44]  ;;  %v8189_v23 = vld [vmem:[#allocation4 + $0x2c0] sm:$0xff]  }
  0xa6   :  { %v2275_v36 = vrot.slane %v2267_v29, 4  ;;  %v2301_v38 = vunpack.c.l.b16 %v7122_v12  ;;  %v2242_v40 = vsel %vm101_vm1, %v2241_v31, %v2240_v27  ;;  %v2278_v43 = vrot.slane %v2268_v33, 4  ;;  %7702 = vmatprep.subr.bf16.mxu0 %v8182_v13 }
  0xa7   :  { %2222 = vst [vmem:[#allocation2 + $0x10] sm:$0x11] %v2218_v30  ;;  %v2245_v42 = vsel %vm101_vm1, %v2244_v32, %v2243_v28  ;;  %v2302_v45 = vunpack.c.h.b16 %v7122_v12  ;;  %v2276_v48 = vrot.slane %v2271_v34, 3  ;;  %v2279_v49 = vrot.slane %v2272_v35, 3  ;;  %2028 = vmatpush1.bf16.msra.mxu1 %v8197_v19  ;;  %v8206_v12 = vld [vmem:[#allocation4 + $0x288] sm:$0xff]  }
  0xa8   :  { %v2252_v47 = vpack.c.b16 %v2245_v42, %v2242_v40  ;;  %v2305_v50 = vunpack.c.l.b16 %v7124_v24  ;;  %v2306_v54 = vunpack.c.h.b16 %v7124_v24  ;;  %v2309_v55 = vrot.slane %v2301_v38, 4  ;;  %2006 = vmatmul.mubr.bf16.gmra.mrb[20].mxu0 %v7060_v56  ;;  %2029 = vmatprep.subr.bf16.mxu1 %v8516_v1  ;;  %v8188_v56 = vld [vmem:[#allocation4 + $0x300] sm:$0xff]   ;;  %v8191_v24 = vld [vmem:[#allocation4 + $0x308] sm:$0xff]   ;;  %v1459_v34 = vld [vmem:[%s10597_s0 + $0x8] sm:$0x88] }
  0xa9   :  { %v2312_v57 = vrot.slane %v2302_v45, 4  ;;  %v998_v58 = vunpack.c.l.b16 %v6991_v41  ;;  %v2277_v60 = vsel %vm134_vm2, %v2276_v48, %v2275_v36  ;;  %v2280_v61 = vsel %vm134_vm2, %v2279_v49, %v2278_v43  ;;  %7703 = vmatpush3.bf16.msra.mxu0 %v8183_v39  ;;  %v8192_v35 = vld [vmem:[#allocation4 + $0x2c8] sm:$0xff]   ;;  %v8210_v36 = vld [vmem:[#allocation4 + $0x290] sm:$0xff]  }
  0xaa   :  { %2256 = vst [vmem:[#allocation2 + $0x10] sm:$0x22] %v2252_v47  ;;  %v2310_v62 = vrot.slane %v2305_v50, 3  ;;  %v999_v63 = vunpack.c.h.b16 %v6991_v41  ;;  %v2287_v2 = vpack.c.b16 %v2280_v61, %v2277_v60  ;;  %v2313_v3 = vrot.slane %v2306_v54, 3  ;;  %7704 = vmatprep.subr.bf16.mxu0 %v8185_v46  ;;  %v1427_v41 = vld [vmem:[%s10597_s0 + $0x78] sm:$0x44] }
  0xab   :  { %v1002_v4 = vunpack.c.l.b16 %v6993_v52  ;;  %v1003_v5 = vunpack.c.h.b16 %v6993_v52  ;;  %v1010_v7 = vrot.slane %v998_v58, 5  ;;  %v1672_v9 = vunpack.c.l.b16 %v7053_v59  ;;  %2030 = vmatpush1.bf16.msra.mxu1 %v8200_v53  ;;  %v1461_v43 = vld [vmem:[%s10597_s0 + $0x78] sm:$0x88]  ;;  %v8195_v45 = vld [vmem:[#allocation4 + $0x310] sm:$0xff]   ;;  %v7033_v50 = vld [vmem:[%s10597_s0 + $0x28] sm:$0x22] }
  0xac   :  { %v2311_v6 = vsel %vm170_vm3, %v2310_v62, %v2309_v55  ;;  %v1013_v8 = vrot.slane %v999_v63, 5  ;;  %2291 = vst [vmem:[#allocation2 + $0x10] sm:$0x44] %v2287_v2  ;;  %v2314_v11 = vsel %vm170_vm3, %v2313_v3, %v2312_v57  ;;  %v1673_v15 = vunpack.c.h.b16 %v7053_v59  ;;  %2031 = vmatprep.subr.bf16.mxu1 %v8516_v1  ;;  %v8213_v61 = vld [vmem:[#allocation4 + $0x298] sm:$0xff]   ;;  %v8196_v3 = vld [vmem:[#allocation4 + $0x2d0] sm:$0xff]  }
  0xad   :  { %v1011_v13 = vrot.slane %v1002_v4, 4  ;;  %v1014_v14 = vrot.slane %v1003_v5, 4  ;;  %v2321_v17 = vpack.c.b16 %v2314_v11, %v2311_v6  ;;  %v1676_v18 = vunpack.c.l.b16 %v7055_v16  ;;  %7705 = vmatpush3.bf16.msra.mxu0 %v8186_v0  ;;  %v7035_v6 = vld [vmem:[%s10597_s0 + $0x98] sm:$0x22] }
  0xae   :  { %v1677_v19 = vunpack.c.h.b16 %v7055_v16  ;;  %v1684_v20 = vrot.slane %v1672_v9, 6  ;;  %v1687_v28 = vrot.slane %v1673_v15, 6  ;;  %v1400_v29 = vunpack.c.l.b16 %v1391_v10  ;;  %7706 = vmatprep.subr.bf16.mxu0 %v8188_v56 }
  0xaf   :  { %v1012_v25 = vsel %vm67_vm0, %v1011_v13, %v1010_v7  ;;  %v1015_v27 = vsel %vm67_vm0, %v1014_v14, %v1013_v8  ;;  %2325 = vst [vmem:[#allocation2 + $0x10] sm:$0x88] %v2321_v17  ;;  %v1685_v31 = vrot.slane %v1676_v18, 5  ;;  %v1401_v33 = vunpack.c.h.b16 %v1391_v10  ;;  %2032 = vmatpush1.bf16.msra.mxu1 %v8206_v12  ;;  %v7037_v12 = vld [vmem:[%s10597_s0 + $0x28] sm:$0x44] }
  0xb0   :  { %v1017_v30 = vpack.c.b16 %v1015_v27, %v1012_v25  ;;  %v1688_v32 = vrot.slane %v1677_v19, 5  ;;  %v1404_v38 = vunpack.c.l.b16 %v1393_v21  ;;  %v1405_v39 = vunpack.c.h.b16 %v1393_v21  ;;  %2033 = vmatprep.subr.bf16.mxu1 %v8516_v1  ;;  %v8198_v13 = vld [vmem:[#allocation4 + $0x318] sm:$0xff]   ;;  %v7039_v19 = vld [vmem:[%s10597_s0 + $0x98] sm:$0x44] }
  0xb1   :  { %v1412_v40 = vrot.slane %v1400_v29, 2  ;;  %v1434_v42 = vunpack.c.l.b16 %v1425_v22  ;;  %v1686_v46 = vsel %vm67_vm0, %v1685_v31, %v1684_v20  ;;  %v1415_v48 = vrot.slane %v1401_v33, 2  ;;  %7707 = vmatpush3.bf16.msra.mxu0 %v8189_v23  ;;  %v8199_v20 = vld [vmem:[#allocation4 + $0x2d8] sm:$0xff]   ;;  %v7043_v31 = vld [vmem:[%s10597_s0 + $0x98] sm:$0x88] }
  0xb2   :  { %1021 = vst.msk [vmem:[#allocation2 + $0x28] sm:$0x11] %vm8679_vm10, %v1017_v30  ;;  %v1689_v47 = vsel %vm67_vm0, %v1688_v32, %v1687_v28  ;;  %v1435_v49 = vunpack.c.h.b16 %v1425_v22  ;;  %v1413_v53 = vrot.slane %v1404_v38, 1  ;;  %v1416_v54 = vrot.slane %v1405_v39, 1  ;;  %7708 = vmatprep.subr.bf16.mxu0 %v8191_v24  ;;  %v7041_v27 = vld [vmem:[%s10597_s0 + $0x28] sm:$0x88] }
  0xb3   :  { %v1691_v52 = vpack.c.b16 %v1689_v47, %v1686_v46  ;;  %v1438_v55 = vunpack.c.l.b16 %v1427_v41  ;;  %v1439_v57 = vunpack.c.h.b16 %v1427_v41  ;;  %v1446_v58 = vrot.slane %v1434_v42, 2  ;;  %2034 = vmatpush1.bf16.msra.mxu1 %v8210_v36  ;;  %v8203_v32 = vld [vmem:[#allocation4 + $0x3c0] sm:$0xff]   ;;  %v7045_v38 = vld [vmem:[%s10597_s0 + $0x48] sm:$0x22]  ;;  %v7047_v46 = vld [vmem:[%s10597_s0 + $0xb8] sm:$0x22] }
  0xb4   :  { %v1449_v59 = vrot.slane %v1435_v49, 2  ;;  %v1468_v60 = vunpack.c.l.b16 %v1459_v34  ;;  %v1414_v62 = vsel %vm67_vm0, %v1413_v53, %v1412_v40  ;;  %v1417_v63 = vsel %vm67_vm0, %v1416_v54, %v1415_v48  ;;  %2035 = vmatprep.subr.bf16.mxu1 %v8516_v1 }
  0xb5   :  { %v1447_v0 = vrot.slane %v1438_v55, 1  ;;  %v1469_v2 = vunpack.c.h.b16 %v1459_v34  ;;  %v1419_v4 = vpack.c.b16 %v1417_v63, %v1414_v62  ;;  %v1450_v5 = vrot.slane %v1439_v57, 1  ;;  %7709 = vmatpush3.bf16.msra.mxu0 %v8192_v35  ;;  %v8207_v62 = vld [vmem:[#allocation4 + $0x3c8] sm:$0xff]  }
  0xb6   :  { %v1472_v16 = vunpack.c.l.b16 %v1461_v43  ;;  %v1473_v56 = vunpack.c.h.b16 %v1461_v43  ;;  %v8201_v7 = vld [vmem:[#allocation2 + $0x4] ss:$16 sps:$4 sm:$0xff]   ;;  %v1480_v9 = vrot.slane %v1468_v60, 2  ;;  %v1502_v10 = vunpack.c.l.b16 %v7033_v50  ;;  %7710 = vmatprep.subr.bf16.mxu0 %v8195_v45  ;;  %v8204_v39 = vld [vmem:[#allocation2] ss:$16 sps:$4 sm:$0xff]  }
  0xb7   :  { %v1448_v8 = vsel %vm101_vm1, %v1447_v0, %v1446_v58  ;;  %v1503_v11 = vunpack.c.h.b16 %v7033_v50  ;;  %1423 = vst.msk [vmem:[#allocation2 + $0x8] sm:$0x11] %vm8679_vm10, %v1419_v4  ;;  %v1451_v14 = vsel %vm101_vm1, %v1450_v5, %v1449_v59  ;;  %v1483_v17 = vrot.slane %v1469_v2, 2  ;;  %2662 = vmatprep.mubr.bf16.mxu0 %v8201_v7  ;;  %2036 = vmatpush1.bf16.msra.mxu1 %v8213_v61  ;;  %v7049_v4 = vld [vmem:[%s10597_s0 + $0x48] sm:$0x44] }
  0xb8   :  { %v1481_v15 = vrot.slane %v1472_v16, 1  ;;  %v1484_v18 = vrot.slane %v1473_v56, 1  ;;  %v1453_v22 = vpack.c.b16 %v1451_v14, %v1448_v8  ;;  %v1506_v23 = vunpack.c.l.b16 %v7035_v6  ;;  %2678 = vmatprep.subr.bf16.mxu1 %v8516_v1  ;;  %v7051_v7 = vld [vmem:[%s10597_s0 + $0xb8] sm:$0x44] }
  0xb9   :  { %v1027_v21 = vld [vmem:[#allocation2 + $0x28] sm:$0x11]  ;;  %v1507_v24 = vunpack.c.h.b16 %v7035_v6  ;;  %v1514_v25 = vrot.slane %v1502_v10, 4  ;;  %7711 = vmatpush3.bf16.msra.mxu0 %v8196_v3  ;;  %v1517_v35 = vrot.slane %v1503_v11, 4  ;;  %v1536_v40 = vunpack.c.l.b16 %v7037_v12 }
  0xba   :  { %v7001_v28 = vcombine.high %v1027_v21, %v1027_v21  ;;  %1695 = vst.msk [vmem:[#allocation2 + $0x28] sm:$0x11] %vm8679_vm10, %v1691_v52  ;;  %v7000_v29 = vcombine.low %v1027_v21, %v1027_v21  ;;  %v1482_v41 = vsel %vm134_vm2, %v1481_v15, %v1480_v9  ;;  %v1485_v30 = vsel %vm134_vm2, %v1484_v18, %v1483_v17  ;;  %v8205_v52 = vld [vmem:[#allocation4 + $0x380] sm:$0xff]  }
  0xbb   :  { %1457 = vst.msk [vmem:[#allocation2 + $0x8] sm:$0x22] %vm8695_vm11, %v1453_v22  ;;  %v1487_v33 = vpack.c.b16 %v1485_v30, %v1482_v41  ;;  %v1515_v34 = vrot.slane %v1506_v23, 3  ;;  %v1518_v36 = vrot.slane %v1507_v24, 3  ;;  %7712 = vmatprep.subr.bf16.mxu0 %v8198_v13  ;;  %v1537_v42 = vunpack.c.h.b16 %v7037_v12  ;;  %v2365_v12 = vld [vmem:[#allocation2 + $0x20] sm:$0x11] }
  0xbc   :  { %7031 = vmatprep.mubr.msk.bf16.mxu1 %vm622_vm14, %v7001_v28  ;;  %v1540_v43 = vunpack.c.l.b16 %v7039_v19  ;;  %v1541_v45 = vunpack.c.h.b16 %v7039_v19  ;;  %v1570_v49 = vunpack.c.l.b16 %v7041_v27  ;;  %v1571_v50 = vunpack.c.h.b16 %v7041_v27  ;;  %v8208_v13 = vld [vmem:[#allocation4 + $0x388] sm:$0xff]   ;;  %v7200_v19 = vld [vmem:[%s10597_s0 + $0x50] sm:$0x44]  ;;  %v8212_v30 = vld [vmem:[#allocation4 + $0x390] sm:$0xff]  }
  0xbd   :  { %1380 = vmatmul.mubr.bf16.gmra.mrb[4].mxu1 %v7000_v29  ;;  %1491 = vst.msk [vmem:[#allocation2 + $0x8] sm:$0x44] %vm8708_vm12, %v1487_v33  ;;  %v1516_v47 = vsel %vm170_vm3, %v1515_v34, %v1514_v25  ;;  %v1519_v48 = vsel %vm170_vm3, %v1518_v36, %v1517_v35  ;;  %v1548_v54 = vrot.slane %v1536_v40, 4  ;;  %v1551_v57 = vrot.slane %v1537_v42, 4  ;;  %7713 = vmatpush3.bf16.msra.mxu0 %v8199_v20  ;;  %v8211_v20 = vld [vmem:[#allocation4 + $0x3d0] sm:$0xff]  }
  0xbe   :  { %v1521_v53 = vpack.c.b16 %v1519_v48, %v1516_v47  ;;  %v1549_v55 = vrot.slane %v1540_v43, 3  ;;  %v1552_v58 = vrot.slane %v1541_v45, 3  ;;  %v1574_v59 = vunpack.c.l.b16 %v7043_v31  ;;  %7726 = vmatprep.subr.bf16.mxu0 %v8203_v32  ;;  %v7202_v25 = vld [vmem:[%s10597_s0 + $0xc0] sm:$0x44]  ;;  %v7168_v35 = vld [vmem:[%s10597_s0 + $0x10] sm:$0x11] }
  0xbf   :  { %v1575_v60 = vunpack.c.h.b16 %v7043_v31  ;;  %v1582_v61 = vrot.slane %v1570_v49, 4  ;;  %v1585_v0 = vrot.slane %v1571_v50, 4  ;;  %v1604_v2 = vunpack.c.l.b16 %v7045_v38  ;;  %v7170_v42 = vld [vmem:[%s10597_s0 + $0x80] sm:$0x11]  ;;  %v7172_v43 = vld [vmem:[%s10597_s0 + $0x10] sm:$0x22] }
  0xc0   :  { %1525 = vst.msk [vmem:[#allocation2 + $0x8] sm:$0x88] %vm8715_vm13, %v1521_v53  ;;  %v1550_v63 = vsel %vm67_vm0, %v1549_v55, %v1548_v54  ;;  %v1605_v3 = vunpack.c.h.b16 %v7045_v38  ;;  %v1553_v5 = vsel %vm67_vm0, %v1552_v58, %v1551_v57  ;;  %v1583_v16 = vrot.slane %v1574_v59, 3  ;;  %2663 = vmatmul.mubr.bf16.vlgmr.msra.gmra.mrb[24].mxu0 %v8204_v39  ;;  %v8214_v45 = vld [vmem:[#allocation4 + $0x3d8] sm:$0xff]   ;;  %v7174_v50 = vld [vmem:[%s10597_s0 + $0x80] sm:$0x22] }
  0xc1   :  { %v1586_v56 = vrot.slane %v1575_v60, 3  ;;  %v1608_v6 = vunpack.c.l.b16 %v7047_v46  ;;  %v1555_v8 = vpack.c.b16 %v1553_v5, %v1550_v63  ;;  %v1609_v9 = vunpack.c.h.b16 %v7047_v46  ;;  %7727 = vmatpush3.bf16.msra.mxu0 %v8205_v52  ;;  %v7176_v57 = vld [vmem:[%s10597_s0 + $0x10] sm:$0x44]  ;;  %v8215_v63 = vld [vmem:[#allocation4 + $0x398] sm:$0xff]  }
  0xc2   :  { %v1616_v10 = vrot.slane %v1604_v2, 6  ;;  %v1619_v11 = vrot.slane %v1605_v3, 6  ;;  %v1584_v14 = vsel %vm101_vm1, %v1583_v16, %v1582_v61  ;;  %v1638_v18 = vunpack.c.l.b16 %v7049_v4  ;;  %7728 = vmatprep.subr.bf16.mxu0 %v8207_v62  ;;  %v7178_v62 = vld [vmem:[%s10597_s0 + $0x80] sm:$0x44]  ;;  %v7180_v5 = vld [vmem:[%s10597_s0 + $0x30] sm:$0x11] }
  0xc3   :  { %v1587_v15 = vsel %vm101_vm1, %v1586_v56, %v1585_v0  ;;  %v1617_v17 = vrot.slane %v1608_v6, 5  ;;  %1559 = vst.msk [vmem:[#allocation2 + $0x18] sm:$0x11] %vm8679_vm10, %v1555_v8  ;;  %v1620_v22 = vrot.slane %v1609_v9, 5  ;;  %v1639_v23 = vunpack.c.h.b16 %v7049_v4  ;;  %v8220_v16 = vld [vmem:[#allocation4 + $0x3e0] sm:$0xff]  }
  0xc4   :  { %v1589_v21 = vpack.c.b16 %v1587_v15, %v1584_v14  ;;  %v1642_v24 = vunpack.c.l.b16 %v7051_v7  ;;  %v1643_v28 = vunpack.c.h.b16 %v7051_v7  ;;  %v1650_v29 = vrot.slane %v1638_v18, 6  ;;  %v7182_v9 = vld [vmem:[%s10597_s0 + $0xa0] sm:$0x11]  ;;  %v7184_v15 = vld [vmem:[%s10597_s0 + $0x30] sm:$0x22] }
  0xc5   :  { %v1618_v27 = vsel %vm134_vm2, %v1617_v17, %v1616_v10  ;;  %v7135_v41 = vcombine.high %v2365_v12, %v2365_v12  ;;  %v1621_v31 = vsel %vm134_vm2, %v1620_v22, %v1619_v11  ;;  %v1653_v33 = vrot.slane %v1639_v23, 6  ;;  %7729 = vmatpush3.bf16.msra.mxu0 %v8208_v13  ;;  %v8221_v10 = vld [vmem:[#allocation4 + $0x3a0] sm:$0xff]   ;;  %v8223_v17 = vld [vmem:[#allocation4 + $0x3e8] sm:$0xff]   ;;  %v7186_v22 = vld [vmem:[%s10597_s0 + $0xa0] sm:$0x22] }
  0xc6   :  { %1593 = vst.msk [vmem:[#allocation2 + $0x18] sm:$0x22] %vm8695_vm11, %v1589_v21  ;;  %v1651_v32 = vrot.slane %v1642_v24, 5  ;;  %v2997_v34 = vunpack.c.l.b16 %v7200_v19  ;;  %v1623_v36 = vpack.c.b16 %v1621_v31, %v1618_v27  ;;  %v1654_v38 = vrot.slane %v1643_v28, 5  ;;  %7730 = vmatprep.subr.bf16.mxu0 %v8211_v20  ;;  %v7188_v31 = vld [vmem:[%s10597_s0 + $0x30] sm:$0x44] }
  0xc7   :  { %2670 = vmatprep.mubr.bf16.mxu0 %v7135_v41  ;;  %v2998_v39 = vunpack.c.h.b16 %v7200_v19  ;;  %v3001_v40 = vunpack.c.l.b16 %v7202_v25  ;;  %v3002_v47 = vunpack.c.h.b16 %v7202_v25  ;;  %v7134_v49 = vcombine.low %v2365_v12, %v2365_v12 }
  0xc8   :  { %v1652_v46 = vsel %vm170_vm3, %v1651_v32, %v1650_v29  ;;  %v3005_v48 = vrot.slane %v2997_v34, 5  ;;  %1627 = vst.msk [vmem:[#allocation2 + $0x18] sm:$0x44] %vm8708_vm12, %v1623_v36  ;;  %v1655_v52 = vsel %vm170_vm3, %v1654_v38, %v1653_v33  ;;  %v2737_v55 = vunpack.c.l.b16 %v7168_v35  ;;  %v8219_v32 = vld [vmem:[#allocation4 + $0x320] sm:$0xff]   ;;  %v7190_v38 = vld [vmem:[%s10597_s0 + $0xa0] sm:$0x44] }
  0xc9   :  { %v3006_v53 = vrot.slane %v3001_v40, 4  ;;  %v3008_v54 = vrot.slane %v2998_v39, 5  ;;  %v1657_v58 = vpack.c.b16 %v1655_v52, %v1652_v46  ;;  %v3009_v59 = vrot.slane %v3002_v47, 4  ;;  %2671 = vmatmul.mubr.bf16.gmra.mrb[28].mxu0 %v7134_v49  ;;  %v8224_v39 = vld [vmem:[#allocation4 + $0x3a8] sm:$0xff]  }
  0xca   :  { %v2738_v60 = vunpack.c.h.b16 %v7168_v35  ;;  %v2741_v61 = vunpack.c.l.b16 %v7170_v42  ;;  %7731 = vmatpush3.bf16.msra.mxu0 %v8212_v30  ;;  %v2742_v2 = vunpack.c.h.b16 %v7170_v42  ;;  %v2745_v3 = vrot.slane %v2737_v55, 1 }
  0xcb   :  { %v3007_v0 = vsel %vm67_vm0, %v3006_v53, %v3005_v48  ;;  %v2767_v4 = vunpack.c.l.b16 %v7172_v43  ;;  %7732 = vmatprep.subr.bf16.mxu0 %v8214_v45  ;;  %1661 = vst.msk [vmem:[#allocation2 + $0x18] sm:$0x88] %vm8715_vm13, %v1657_v58  ;;  %v3010_v56 = vsel %vm67_vm0, %v3009_v59, %v3008_v54  ;;  %v2768_v7 = vunpack.c.h.b16 %v7172_v43  ;;  %v7192_v53 = vld [vmem:[%s10597_s0 + $0x50] sm:$0x11]  ;;  %v8227_v54 = vld [vmem:[#allocation4 + $0x3f0] sm:$0xff]  }
  0xcc   :  { %v2747_v6 = vrot.slane %v2738_v60, 1  ;;  %v2771_v8 = vunpack.c.l.b16 %v7174_v50  ;;  %v3017_v11 = vpack.c.b16 %v3010_v56, %v3007_v0  ;;  %v2746_v12 = vsel %vm67_vm0, %v2741_v61, %v2745_v3  ;;  %v7194_v60 = vld [vmem:[%s10597_s0 + $0xc0] sm:$0x11]  ;;  %v7196_v3 = vld [vmem:[%s10597_s0 + $0x50] sm:$0x22] }
  0xcd   :  { %v2772_v13 = vunpack.c.h.b16 %v7174_v50  ;;  %v2775_v14 = vrot.slane %v2767_v4, 1  ;;  %v2777_v19 = vrot.slane %v2768_v7, 1  ;;  %v2797_v20 = vunpack.c.l.b16 %v7176_v57  ;;  %v8222_v61 = vld [vmem:[#allocation4 + $0x328] sm:$0xff]   ;;  %v8228_v4 = vld [vmem:[#allocation4 + $0x3b0] sm:$0xff]   ;;  %v8230_v7 = vld [vmem:[#allocation4 + $0x3f8] sm:$0xff]  }
  0xce   :  { %v2748_v18 = vsel %vm67_vm0, %v2742_v2, %v2747_v6  ;;  %v2798_v21 = vunpack.c.h.b16 %v7176_v57  ;;  %7733 = vmatpush3.bf16.msra.mxu0 %v8215_v63  ;;  %3021 = vst [vmem:[#allocation2 + $0x20] sm:$0x11] %v3017_v11  ;;  %v2801_v25 = vunpack.c.l.b16 %v7178_v62  ;;  %v2802_v27 = vunpack.c.h.b16 %v7178_v62 }
  0xcf   :  { %v2753_v23 = vpack.c.b16 %v2748_v18, %v2746_v12  ;;  %v2776_v24 = vsel %vm101_vm1, %v2771_v8, %v2775_v14  ;;  %7734 = vmatprep.subr.bf16.mxu0 %v8220_v16  ;;  %v2778_v28 = vsel %vm101_vm1, %v2772_v13, %v2777_v19  ;;  %v2805_v29 = vrot.slane %v2797_v20, 1 }
  0xd0   :  { %v2807_v41 = vrot.slane %v2798_v21, 1  ;;  %v2827_v30 = vunpack.c.l.b16 %v7180_v5  ;;  %v2783_v33 = vpack.c.b16 %v2778_v28, %v2776_v24  ;;  %v2828_v34 = vunpack.c.h.b16 %v7180_v5  ;;  %v8226_v28 = vld [vmem:[#allocation4 + $0x330] sm:$0xff]  }
  0xd1   :  { %2757 = vst [vmem:[#allocation2] sm:$0x11] %v2753_v23  ;;  %v2831_v35 = vunpack.c.l.b16 %v7182_v9  ;;  %v2832_v36 = vunpack.c.h.b16 %v7182_v9  ;;  %v2806_v40 = vsel %vm134_vm2, %v2801_v25, %v2805_v29  ;;  %v2861_v45 = vunpack.c.l.b16 %v7184_v15  ;;  %v8231_v29 = vld [vmem:[#allocation4 + $0x3b8] sm:$0xff]  }
  0xd2   :  { %v2808_v42 = vsel %vm134_vm2, %v2802_v27, %v2807_v41  ;;  %v2835_v43 = vrot.slane %v2827_v30, 3  ;;  %v8216_v46 = vld [vmem:[#allocation2 + $0xc] ss:$16 sps:$4 sm:$0xff]   ;;  %v8218_v47 = vld [vmem:[#allocation2 + $0x8] ss:$16 sps:$4 sm:$0xff]   ;;  %7735 = vmatpush3.bf16.msra.mxu0 %v8221_v10  ;;  %v2862_v50 = vunpack.c.h.b16 %v7184_v15  ;;  %v2865_v52 = vunpack.c.l.b16 %v7186_v22 }
  0xd3   :  { %2787 = vst [vmem:[#allocation2] sm:$0x22] %v2783_v33  ;;  %v2813_v48 = vpack.c.b16 %v2808_v42, %v2806_v40  ;;  %v2836_v49 = vrot.slane %v2831_v35, 2  ;;  %7736 = vmatprep.subr.bf16.mxu0 %v8223_v17  ;;  %v2838_v55 = vrot.slane %v2828_v34, 3  ;;  %v2839_v57 = vrot.slane %v2832_v36, 2  ;;  %7092 = vmatprep.mubr.msk.bf16.mxu1 %vm622_vm14, %v8216_v46  ;;  %v8229_v42 = vld [vmem:[#allocation4 + $0x338] sm:$0xff]  }
  0xd4   :  { %v2866_v58 = vunpack.c.h.b16 %v7186_v22  ;;  %v2869_v59 = vrot.slane %v2861_v45, 3  ;;  %v2870_v63 = vrot.slane %v2865_v52, 2  ;;  %v2872_v0 = vrot.slane %v2862_v50, 3  ;;  %2046 = vmatmul.mubr.bf16.vlgmr.msra.gmra.mrb[0].mxu1 %v8218_v47  ;;  %v7198_v17 = vld [vmem:[%s10597_s0 + $0xc0] sm:$0x22] }
  0xd5   :  { %2817 = vst [vmem:[#allocation2] sm:$0x44] %v2813_v48  ;;  %v2837_v62 = vsel %vm170_vm3, %v2836_v49, %v2835_v43  ;;  %v2895_v2 = vunpack.c.l.b16 %v7188_v31  ;;  %v2840_v5 = vsel %vm170_vm3, %v2839_v57, %v2838_v55  ;;  %v2896_v56 = vunpack.c.h.b16 %v7188_v31  ;;  %2679 = vmatpush1.bf16.msra.mxu1 %v8219_v32  ;;  %v9278_v27 = vld [vmem:[#allocation2 + $0x28] sm:$0x11]  ;;  %v7127_v33 = vld [vmem:[%s10597_s0 + $0x58] sm:$0x44] }
  0xd6   :  { %v2873_v16 = vrot.slane %v2866_v58, 2  ;;  %v2899_v6 = vunpack.c.l.b16 %v7190_v38  ;;  %7737 = vmatpush3.bf16.msra.mxu0 %v8224_v39  ;;  %v2847_v8 = vpack.c.b16 %v2840_v5, %v2837_v62  ;;  %v2871_v9 = vsel %vm67_vm0, %v2870_v63, %v2869_v59  ;;  %2680 = vmatprep.subr.bf16.mxu1 %v8516_v1  ;;  %v8235_v39 = vld [vmem:[#allocation4 + $0x4a0] sm:$0xff]   ;;  %v7129_v40 = vld [vmem:[%s10597_s0 + $0xc8] sm:$0x44]  ;;  %v7276_v49 = vld [vmem:[%s10597_s0 + $0xc0] sm:$0x88] }
  0xd7   :  { %v2900_v10 = vunpack.c.h.b16 %v7190_v38  ;;  %v2903_v11 = vrot.slane %v2895_v2, 3  ;;  %7738 = vmatprep.subr.bf16.mxu0 %v8227_v54  ;;  %v2906_v14 = vrot.slane %v2896_v56, 3  ;;  %v2929_v15 = vunpack.c.l.b16 %v7192_v53  ;;  %v7274_v48 = vld [vmem:[%s10597_s0 + $0x50] sm:$0x88]  ;;  %v9301_v63 = vld [vmem:[#allocation2 + $0x20] sm:$0x11] }
  0xd8   :  { %v2874_v12 = vsel %vm67_vm0, %v2873_v16, %v2872_v0  ;;  %v2904_v13 = vrot.slane %v2899_v6, 2  ;;  %2851 = vst [vmem:[#allocation2] sm:$0x88] %v2847_v8  ;;  %v2930_v20 = vunpack.c.h.b16 %v7192_v53  ;;  %v2933_v21 = vunpack.c.l.b16 %v7194_v60 }
  0xd9   :  { %v2881_v18 = vpack.c.b16 %v2874_v12, %v2871_v9  ;;  %v2907_v19 = vrot.slane %v2900_v10, 2  ;;  %v2934_v23 = vunpack.c.h.b16 %v7194_v60  ;;  %v2937_v24 = vrot.slane %v2929_v15, 5  ;;  %2681 = vmatpush1.bf16.msra.mxu1 %v8222_v61 }
  0xda   :  { %v2905_v22 = vsel %vm101_vm1, %v2904_v13, %v2903_v11  ;;  %v2963_v25 = vunpack.c.l.b16 %v7196_v3  ;;  %7739 = vmatpush3.bf16.msra.mxu0 %v8228_v4  ;;  %v2938_v30 = vrot.slane %v2933_v21, 4  ;;  %v2940_v31 = vrot.slane %v2930_v20, 5  ;;  %2682 = vmatprep.subr.bf16.mxu1 %v8516_v1  ;;  %v7097_v20 = vld [vmem:[%s10597_s0 + $0x88] sm:$0x11] }
  0xdb   :  { %2885 = vst [vmem:[#allocation2 + $0x10] sm:$0x11] %v2881_v18  ;;  %v2908_v41 = vsel %vm101_vm1, %v2907_v19, %v2906_v14  ;;  %v2964_v32 = vunpack.c.h.b16 %v7196_v3  ;;  %7740 = vmatprep.subr.bf16.mxu0 %v8230_v7  ;;  %v2941_v35 = vrot.slane %v2934_v23, 4  ;;  %v2967_v36 = vunpack.c.l.b16 %v7198_v17  ;;  %v8232_v7 = vld [vmem:[#allocation4 + $0x340] sm:$0xff]   ;;  %v7099_v23 = vld [vmem:[%s10597_s0 + $0x18] sm:$0x22] }
  0xdc   :  { %v2915_v34 = vpack.c.b16 %v2908_v41, %v2905_v22  ;;  %v2968_v38 = vunpack.c.h.b16 %v7198_v17  ;;  %v2939_v43 = vsel %vm134_vm2, %v2938_v30, %v2937_v24  ;;  %v2971_v45 = vrot.slane %v2963_v25, 5  ;;  %v7095_v17 = vld [vmem:[%s10597_s0 + $0x18] sm:$0x11]  ;;  %v7103_v41 = vld [vmem:[%s10597_s0 + $0x18] sm:$0x44] }
  0xdd   :  { %v2974_v46 = vrot.slane %v2964_v32, 5  ;;  %v7063_v47 = vcombine.high %v9278_v27, %v9278_v27  ;;  %v2942_v50 = vsel %vm134_vm2, %v2941_v35, %v2940_v31  ;;  %v2972_v52 = vrot.slane %v2967_v36, 4  ;;  %2683 = vmatpush1.bf16.msra.mxu1 %v8226_v28  ;;  %v7101_v28 = vld [vmem:[%s10597_s0 + $0x88] sm:$0x22]  ;;  %v7105_v30 = vld [vmem:[%s10597_s0 + $0x88] sm:$0x44] }
  0xde   :  { %2919 = vst [vmem:[#allocation2 + $0x10] sm:$0x22] %v2915_v34  ;;  %v2975_v53 = vrot.slane %v2968_v38, 4  ;;  %v2337_v54 = vunpack.c.l.b16 %v7127_v33  ;;  %7741 = vmatpush3.bf16.msra.mxu0 %v8231_v29  ;;  %v2949_v55 = vpack.c.b16 %v2942_v50, %v2939_v43  ;;  %v2338_v57 = vunpack.c.h.b16 %v7127_v33  ;;  %2684 = vmatprep.subr.bf16.mxu1 %v8516_v1  ;;  %v8238_v31 = vld [vmem:[#allocation4 + $0x348] sm:$0xff]   ;;  %v8237_v38 = vld [vmem:[#allocation4 + $0x460] sm:$0xff]  }
  0xdf   :  { %v2341_v58 = vunpack.c.l.b16 %v7129_v40  ;;  %v2342_v59 = vunpack.c.h.b16 %v7129_v40  ;;  %v2973_v60 = vsel %vm170_vm3, %v2972_v52, %v2971_v45  ;;  %7754 = vmatprep.subr.bf16.mxu0 %v8235_v39  ;;  %7093 = vmatprep.mubr.msk.bf16.mxu1 %vm622_vm14, %v7063_v47  ;;  %v3671_v5 = vunpack.c.l.b16 %v7274_v48  ;;  %v7107_v36 = vld [vmem:[%s10597_s0 + $0x38] sm:$0x11]  ;;  %v7111_v50 = vld [vmem:[%s10597_s0 + $0x38] sm:$0x22] }
  0xe0   :  { %v2976_v61 = vsel %vm170_vm3, %v2975_v53, %v2974_v46  ;;  %v2349_v62 = vrot.slane %v2337_v54, 4  ;;  %2953 = vst [vmem:[#allocation2 + $0x10] sm:$0x44] %v2949_v55  ;;  %v2352_v3 = vrot.slane %v2338_v57, 4  ;;  %v3672_v16 = vunpack.c.h.b16 %v7274_v48 }
  0xe1   :  { %v2983_v0 = vpack.c.b16 %v2976_v61, %v2973_v60  ;;  %v2350_v2 = vrot.slane %v2341_v58, 3  ;;  %v2353_v4 = vrot.slane %v2342_v59, 3  ;;  %v3675_v56 = vunpack.c.l.b16 %v7276_v49  ;;  %2685 = vmatpush1.bf16.msra.mxu1 %v8229_v42  ;;  %v8239_v59 = vld [vmem:[#allocation4 + $0x4a8] sm:$0xff]   ;;  %v8241_v60 = vld [vmem:[#allocation4 + $0x350] sm:$0xff]  }
  0xe2   :  { %v3676_v6 = vunpack.c.h.b16 %v7276_v49  ;;  %v7209_v10 = vcombine.high %v9301_v63, %v9301_v63  ;;  %v7062_v11 = vcombine.low %v9278_v27, %v9278_v27  ;;  %2686 = vmatprep.subr.bf16.mxu1 %v8516_v1  ;;  %v3679_v13 = vrot.slane %v3671_v5, 6  ;;  %v7109_v49 = vld [vmem:[%s10597_s0 + $0xa8] sm:$0x11] }
  0xe3   :  { %2987 = vst [vmem:[#allocation2 + $0x10] sm:$0x88] %v2983_v0  ;;  %v2351_v8 = vsel %vm67_vm0, %v2350_v2, %v2349_v62  ;;  %v2354_v9 = vsel %vm67_vm0, %v2353_v4, %v2352_v3  ;;  %v3680_v14 = vrot.slane %v3675_v56, 5  ;;  %v3682_v15 = vrot.slane %v3672_v16, 6  ;;  %v7113_v56 = vld [vmem:[%s10597_s0 + $0xa8] sm:$0x22] }
  0xe4   :  { %v2356_v12 = vpack.c.b16 %v2354_v9, %v2351_v8  ;;  %v3683_v18 = vrot.slane %v3676_v6, 5  ;;  %2054 = vmatmul.mubr.bf16.gmra.mrb[4].mxu1 %v7062_v11  ;;  %v7208_v19 = vcombine.low %v9301_v63, %v9301_v63  ;;  %v2075_v21 = vunpack.c.l.b16 %v7095_v17  ;;  %v7115_v11 = vld [vmem:[%s10597_s0 + $0x38] sm:$0x44] }
  0xe5   :  { %v2076_v22 = vunpack.c.h.b16 %v7095_v17  ;;  %v3681_v24 = vsel %vm67_vm0, %v3680_v14, %v3679_v13  ;;  %v2079_v25 = vunpack.c.l.b16 %v7097_v20  ;;  %v2080_v27 = vunpack.c.h.b16 %v7097_v20  ;;  %2687 = vmatpush1.bf16.msra.mxu1 %v8232_v7  ;;  %v8244_v20 = vld [vmem:[#allocation4 + $0x358] sm:$0xff]  }
  0xe6   :  { %2360 = vst.msk [vmem:[#allocation2 + $0x28] sm:$0x11] %vm8679_vm10, %v2356_v12  ;;  %v2105_v29 = vunpack.c.l.b16 %v7099_v23  ;;  %v3684_v32 = vsel %vm67_vm0, %v3683_v18, %v3682_v15  ;;  %v2106_v33 = vunpack.c.h.b16 %v7099_v23  ;;  %v2109_v34 = vunpack.c.l.b16 %v7101_v28  ;;  %2688 = vmatprep.subr.bf16.mxu1 %v8516_v1  ;;  %v8240_v12 = vld [vmem:[#allocation4 + $0x468] sm:$0xff]   ;;  %v8242_v18 = vld [vmem:[#allocation4 + $0x4b0] sm:$0xff]  }
  0xe7   :  { %v2110_v35 = vunpack.c.h.b16 %v7101_v28  ;;  %v3691_v39 = vpack.c.b16 %v3684_v32, %v3681_v24  ;;  %v2085_v40 = vrot.slane %v2079_v25, 7  ;;  %v2087_v42 = vrot.slane %v2080_v27, 7 }
  0xe8   :  { %v2135_v43 = vunpack.c.l.b16 %v7103_v41  ;;  %v2115_v45 = vrot.slane %v2109_v34, 7  ;;  %v2136_v47 = vunpack.c.h.b16 %v7103_v41  ;;  %v2139_v48 = vunpack.c.l.b16 %v7105_v30  ;;  %v7119_v41 = vld [vmem:[%s10597_s0 + $0x58] sm:$0x11]  ;;  %v8243_v34 = vld [vmem:[#allocation4 + $0x470] sm:$0xff]  }
  0xe9   :  { %v2117_v46 = vrot.slane %v2110_v35, 7  ;;  %3695 = vst [vmem:[#allocation2 + $0x20] sm:$0x11] %v3691_v39  ;;  %v2086_v54 = vsel %vm67_vm0, %v2085_v40, %v2075_v21  ;;  %v2088_v55 = vsel %vm67_vm0, %v2087_v42, %v2076_v22  ;;  %v2140_v57 = vunpack.c.h.b16 %v7105_v30  ;;  %2689 = vmatpush1.bf16.msra.mxu1 %v8238_v31  ;;  %v7121_v40 = vld [vmem:[%s10597_s0 + $0xc8] sm:$0x11] }
  0xea   :  { %v8233_v52 = vld [vmem:[#allocation2 + $0x4] ss:$16 sps:$4 sm:$0xff]   ;;  %v8236_v53 = vld [vmem:[#allocation2] ss:$16 sps:$4 sm:$0xff]   ;;  %v2166_v58 = vunpack.c.l.b16 %v7107_v36  ;;  %v2090_v61 = vpack.c.b16 %v2088_v55, %v2086_v54  ;;  %v2116_v62 = vsel %vm101_vm1, %v2115_v45, %v2105_v29  ;;  %v2145_v2 = vrot.slane %v2139_v48, 7  ;;  %2690 = vmatprep.subr.bf16.mxu1 %v8516_v1 }
  0xeb   :  { %v2118_v0 = vsel %vm101_vm1, %v2117_v46, %v2106_v33  ;;  %3324 = vmatprep.mubr.bf16.mxu0 %v8233_v52  ;;  %v2147_v4 = vrot.slane %v2140_v57, 7  ;;  %v2167_v5 = vunpack.c.h.b16 %v7107_v36  ;;  %v2170_v16 = vunpack.c.l.b16 %v7109_v49  ;;  %v7123_v42 = vld [vmem:[%s10597_s0 + $0x58] sm:$0x22]  ;;  %v8247_v45 = vld [vmem:[#allocation4 + $0x360] sm:$0xff]   ;;  %v8246_v52 = vld [vmem:[#allocation4 + $0x478] sm:$0xff]  }
  0xec   :  { %v2120_v3 = vpack.c.b16 %v2118_v0, %v2116_v62  ;;  %3325 = vmatmul.mubr.bf16.vlgmr.msra.gmra.mrb[32].mxu0 %v8236_v53  ;;  %2094 = vst.msk [vmem:[#allocation2 + $0x8] sm:$0x11] %vm8679_vm10, %v2090_v61  ;;  %v2146_v6 = vsel %vm134_vm2, %v2145_v2, %v2135_v43  ;;  %v2171_v7 = vunpack.c.h.b16 %v7109_v49  ;;  %v2178_v8 = vrot.slane %v2166_v58, 2  ;;  %v8245_v43 = vld [vmem:[#allocation4 + $0x4b8] sm:$0xff]   ;;  %v7242_v58 = vld [vmem:[%s10597_s0 + $0x10] sm:$0x22] }
  0xed   :  { %v2200_v9 = vunpack.c.l.b16 %v7111_v50  ;;  %7755 = vmatpush3.bf16.msra.mxu0 %v8237_v38  ;;  %3332 = vmatprep.mubr.bf16.mxu0 %v7209_v10  ;;  %v2148_v13 = vsel %vm134_vm2, %v2147_v4, %v2136_v47  ;;  %v2179_v14 = vrot.slane %v2170_v16, 1  ;;  %v2181_v15 = vrot.slane %v2167_v5, 2  ;;  %v7117_v10 = vld [vmem:[%s10597_s0 + $0xa8] sm:$0x44]  ;;  %v7244_v2 = vld [vmem:[%s10597_s0 + $0x80] sm:$0x22] }
  0xee   :  { %2124 = vst.msk [vmem:[#allocation2 + $0x8] sm:$0x22] %vm8695_vm11, %v2120_v3  ;;  %v2201_v17 = vunpack.c.h.b16 %v7111_v50  ;;  %7756 = vmatprep.subr.bf16.mxu0 %v8239_v59  ;;  %2691 = vmatpush1.bf16.msra.mxu1 %v8241_v60  ;;  %v2150_v21 = vpack.c.b16 %v2148_v13, %v2146_v6  ;;  %v2182_v22 = vrot.slane %v2171_v7, 1  ;;  %v2204_v23 = vunpack.c.l.b16 %v7113_v56  ;;  %v7125_v50 = vld [vmem:[%s10597_s0 + $0xc8] sm:$0x22]  ;;  %v8248_v59 = vld [vmem:[#allocation4 + $0x4c0] sm:$0xff]  }
  0xef   :  { %v2205_v24 = vunpack.c.h.b16 %v7113_v56  ;;  %2692 = vmatprep.subr.bf16.mxu1 %v8516_v1  ;;  %v2180_v25 = vsel %vm170_vm3, %v2179_v14, %v2178_v8  ;;  %v2212_v27 = vrot.slane %v2200_v9, 2  ;;  %v2234_v29 = vunpack.c.l.b16 %v7115_v11  ;;  %v8250_v3 = vld [vmem:[#allocation4 + $0x368] sm:$0xff]   ;;  %v7248_v14 = vld [vmem:[%s10597_s0 + $0x80] sm:$0x44] }
  0xf0   :  { %v2215_v28 = vrot.slane %v2201_v17, 2  ;;  %2154 = vst.msk [vmem:[#allocation2 + $0x8] sm:$0x44] %vm8708_vm12, %v2150_v21  ;;  %v2183_v30 = vsel %vm170_vm3, %v2182_v22, %v2181_v15  ;;  %v2213_v31 = vrot.slane %v2204_v23, 1  ;;  %v2235_v33 = vunpack.c.h.b16 %v7115_v11  ;;  %v8249_v15 = vld [vmem:[#allocation4 + $0x480] sm:$0xff]   ;;  %v8251_v23 = vld [vmem:[#allocation4 + $0x4c8] sm:$0xff]  }
  0xf1   :  { %v2216_v32 = vrot.slane %v2205_v24, 1  ;;  %7757 = vmatpush3.bf16.msra.mxu0 %v8240_v12  ;;  %v2185_v35 = vpack.c.b16 %v2183_v30, %v2180_v25  ;;  %v2238_v36 = vunpack.c.l.b16 %v7117_v10  ;;  %v2239_v38 = vunpack.c.h.b16 %v7117_v10  ;;  %v7250_v22 = vld [vmem:[%s10597_s0 + $0x10] sm:$0x88] }
  0xf2   :  { %v2246_v39 = vrot.slane %v2234_v29, 2  ;;  %7758 = vmatprep.subr.bf16.mxu0 %v8242_v18  ;;  %2693 = vmatpush1.bf16.msra.mxu1 %v8244_v20  ;;  %v2214_v46 = vsel %vm67_vm0, %v2213_v31, %v2212_v27  ;;  %v2249_v48 = vrot.slane %v2235_v33, 2  ;;  %v2269_v49 = vunpack.c.l.b16 %v7119_v41  ;;  %v7254_v33 = vld [vmem:[%s10597_s0 + $0x30] sm:$0x22] }
  0xf3   :  { %v2217_v47 = vsel %vm67_vm0, %v2216_v32, %v2215_v28  ;;  %2694 = vmatprep.subr.bf16.mxu1 %v8516_v1  ;;  %2189 = vst.msk [vmem:[#allocation2 + $0x8] sm:$0x88] %vm8715_vm13, %v2185_v35  ;;  %v2247_v54 = vrot.slane %v2238_v36, 1  ;;  %v2250_v55 = vrot.slane %v2239_v38, 1  ;;  %v2270_v57 = vunpack.c.h.b16 %v7119_v41  ;;  %v8255_v28 = vld [vmem:[#allocation4 + $0x370] sm:$0xff]  }
  0xf4   :  { %v2219_v53 = vpack.c.b16 %v2217_v47, %v2214_v46  ;;  %3333 = vmatmul.mubr.bf16.gmra.mrb[36].mxu0 %v7208_v19  ;;  %v2273_v60 = vunpack.c.l.b16 %v7121_v40  ;;  %v2274_v61 = vunpack.c.h.b16 %v7121_v40  ;;  %v2281_v62 = vrot.slane %v2269_v49, 4  ;;  %v7246_v19 = vld [vmem:[%s10597_s0 + $0x10] sm:$0x44]  ;;  %v7252_v32 = vld [vmem:[%s10597_s0 + $0x80] sm:$0x88]  ;;  %v8258_v47 = vld [vmem:[#allocation4 + $0x378] sm:$0xff]  }
  0xf5   :  { %v2303_v0 = vunpack.c.l.b16 %v7123_v42  ;;  %7759 = vmatpush3.bf16.msra.mxu0 %v8243_v34  ;;  %v2248_v4 = vsel %vm101_vm1, %v2247_v54, %v2246_v39  ;;  %v2251_v5 = vsel %vm101_vm1, %v2250_v55, %v2249_v48  ;;  %v2284_v16 = vrot.slane %v2270_v57, 4  ;;  %v8252_v39 = vld [vmem:[#allocation4 + $0x488] sm:$0xff]   ;;  %v8256_v46 = vld [vmem:[#allocation4 + $0x4d0] sm:$0xff]  }
  0xf6   :  { %2223 = vst.msk [vmem:[#allocation2 + $0x18] sm:$0x11] %vm8679_vm10, %v2219_v53  ;;  %v2304_v63 = vunpack.c.h.b16 %v7123_v42  ;;  %7760 = vmatprep.subr.bf16.mxu0 %v8245_v43  ;;  %2695 = vmatpush1.bf16.msra.mxu1 %v8247_v45  ;;  %v2253_v56 = vpack.c.b16 %v2251_v5, %v2248_v4  ;;  %v2282_v6 = vrot.slane %v2273_v60, 3  ;;  %v2285_v7 = vrot.slane %v2274_v61, 3  ;;  %v7256_v53 = vld [vmem:[%s10597_s0 + $0xa0] sm:$0x22] }
  0xf7   :  { %v2307_v8 = vunpack.c.l.b16 %v7125_v50  ;;  %2696 = vmatprep.subr.bf16.mxu1 %v8516_v1  ;;  %v2308_v9 = vunpack.c.h.b16 %v7125_v50  ;;  %v2315_v11 = vrot.slane %v2303_v0, 4  ;;  %v3399_v13 = vunpack.c.l.b16 %v7242_v58  ;;  %v8257_v60 = vld [vmem:[#allocation4 + $0x490] sm:$0xff]   ;;  %v8259_v4 = vld [vmem:[#allocation4 + $0x4d8] sm:$0xff]  }
  0xf8   :  { %v2318_v12 = vrot.slane %v2304_v63, 4  ;;  %2257 = vst.msk [vmem:[#allocation2 + $0x18] sm:$0x22] %vm8695_vm11, %v2253_v56  ;;  %v2283_v17 = vsel %vm134_vm2, %v2282_v6, %v2281_v62  ;;  %v2286_v18 = vsel %vm134_vm2, %v2285_v7, %v2284_v16  ;;  %v3400_v21 = vunpack.c.h.b16 %v7242_v58  ;;  %v7262_v56 = vld [vmem:[%s10597_s0 + $0x30] sm:$0x88] }
  0xf9   :  { %v2316_v20 = vrot.slane %v2307_v8, 3  ;;  %7761 = vmatpush3.bf16.msra.mxu0 %v8246_v52  ;;  %v2288_v24 = vpack.c.b16 %v2286_v18, %v2283_v17  ;;  %v2319_v10 = vrot.slane %v2308_v9, 3  ;;  %v3403_v25 = vunpack.c.l.b16 %v7244_v2  ;;  %v8260_v17 = vld [vmem:[#allocation4 + $0x498] sm:$0xff]  }
  0xfa   :  { %v3404_v27 = vunpack.c.h.b16 %v7244_v2  ;;  %7762 = vmatprep.subr.bf16.mxu0 %v8248_v59  ;;  %2697 = vmatpush1.bf16.msra.mxu1 %v8250_v3  ;;  %v3407_v41 = vrot.slane %v3399_v13, 2  ;;  %v3410_v30 = vrot.slane %v3400_v21, 2  ;;  %v3433_v31 = vunpack.c.l.b16 %v7246_v19  ;;  %v7258_v59 = vld [vmem:[%s10597_s0 + $0x30] sm:$0x44]  ;;  %v7260_v3 = vld [vmem:[%s10597_s0 + $0xa0] sm:$0x44] }
  0xfb   :  { %v2317_v29 = vsel %vm170_vm3, %v2316_v20, %v2315_v11  ;;  %2698 = vmatprep.subr.bf16.mxu1 %v8516_v1  ;;  %2292 = vst.msk [vmem:[#allocation2 + $0x18] sm:$0x44] %vm8708_vm12, %v2288_v24  ;;  %v2320_v34 = vsel %vm170_vm3, %v2319_v10, %v2318_v12  ;;  %v3408_v35 = vrot.slane %v3403_v25, 1  ;;  %v3434_v38 = vunpack.c.h.b16 %v7246_v19 }
  0xfc   :  { %v3411_v36 = vrot.slane %v3404_v27, 1  ;;  %v2322_v40 = vpack.c.b16 %v2320_v34, %v2317_v29  ;;  %v3437_v42 = vunpack.c.l.b16 %v7248_v14  ;;  %v3438_v43 = vunpack.c.h.b16 %v7248_v14  ;;  %v7270_v34 = vld [vmem:[%s10597_s0 + $0x50] sm:$0x44] }
  0xfd   :  { %v3441_v45 = vrot.slane %v3433_v31, 2  ;;  %7763 = vmatpush3.bf16.msra.mxu0 %v8249_v15  ;;  %v3409_v48 = vsel %vm67_vm0, %v3408_v35, %v3407_v41  ;;  %v3444_v50 = vrot.slane %v3434_v38, 2  ;;  %v3467_v52 = vunpack.c.l.b16 %v7250_v22  ;;  %v7264_v15 = vld [vmem:[%s10597_s0 + $0xa0] sm:$0x88]  ;;  %v8268_v35 = vld [vmem:[#allocation4 + $0x580] sm:$0xff]  }
  0xfe   :  { %v3412_v49 = vsel %vm67_vm0, %v3411_v36, %v3410_v30  ;;  %7764 = vmatprep.subr.bf16.mxu0 %v8251_v23  ;;  %2699 = vmatpush1.bf16.msra.mxu1 %v8255_v28  ;;  %2326 = vst.msk [vmem:[#allocation2 + $0x18] sm:$0x88] %vm8715_vm13, %v2322_v40  ;;  %v3442_v55 = vrot.slane %v3437_v42, 1  ;;  %v3445_v57 = vrot.slane %v3438_v43, 1  ;;  %v3468_v58 = vunpack.c.h.b16 %v7250_v22  ;;  %v7266_v23 = vld [vmem:[%s10597_s0 + $0x50] sm:$0x22] }
  0xff   :  { %v3419_v54 = vpack.c.b16 %v3412_v49, %v3409_v48  ;;  %2700 = vmatprep.subr.bf16.mxu1 %v8516_v1  ;;  %v3471_v61 = vunpack.c.l.b16 %v7252_v32  ;;  %v3472_v62 = vunpack.c.h.b16 %v7252_v32  ;;  %v3475_v0 = vrot.slane %v3467_v52, 2  ;;  %v8266_v28 = vld [vmem:[#allocation4 + $0x400] sm:$0xff]   ;;  %v7272_v48 = vld [vmem:[%s10597_s0 + $0xc0] sm:$0x44] }
 0x100   :  { %v3501_v2 = vunpack.c.l.b16 %v7254_v33  ;;  %v3443_v5 = vsel %vm101_vm1, %v3442_v55, %v3441_v45  ;;  %v3446_v16 = vsel %vm101_vm1, %v3445_v57, %v3444_v50  ;;  %v3478_v63 = vrot.slane %v3468_v58, 2  ;;  %v9470_v55 = vld [vmem:[#allocation2 + $0x20] sm:$0x11] }
 0x101   :  { %3423 = vst [vmem:[#allocation2] sm:$0x11] %v3419_v54  ;;  %v3502_v19 = vunpack.c.h.b16 %v7254_v33  ;;  %7765 = vmatpush3.bf16.msra.mxu0 %v8252_v39  ;;  %v3453_v6 = vpack.c.b16 %v3446_v16, %v3443_v5  ;;  %v3476_v7 = vrot.slane %v3471_v61, 1  ;;  %v3479_v8 = vrot.slane %v3472_v62, 1  ;;  %v7268_v33 = vld [vmem:[%s10597_s0 + $0xc0] sm:$0x22] }
 0x102   :  { %v3505_v9 = vunpack.c.l.b16 %v7256_v53  ;;  %7766 = vmatprep.subr.bf16.mxu0 %v8256_v46  ;;  %2701 = vmatpush1.bf16.msra.mxu1 %v8258_v47  ;;  %v3506_v11 = vunpack.c.h.b16 %v7256_v53  ;;  %v3509_v12 = vrot.slane %v3501_v2, 4  ;;  %v3535_v14 = vunpack.c.l.b16 %v7258_v59  ;;  %v8270_v54 = vld [vmem:[#allocation4 + $0x408] sm:$0xff]   ;;  %v7348_v61 = vld [vmem:[%s10597_s0 + $0x60] sm:$0x44] }
 0x103   :  { %v3512_v13 = vrot.slane %v3502_v19, 4  ;;  %3340 = vmatprep.subr.bf16.mxu1 %v8516_v1  ;;  %3457 = vst [vmem:[#allocation2] sm:$0x22] %v3453_v6  ;;  %v3477_v18 = vsel %vm134_vm2, %v3476_v7, %v3475_v0  ;;  %v3480_v20 = vsel %vm134_vm2, %v3479_v8, %v3478_v63  ;;  %v3536_v22 = vunpack.c.h.b16 %v7258_v59 }
 0x104   :  { %v3510_v21 = vrot.slane %v3505_v9, 3  ;;  %v3487_v24 = vpack.c.b16 %v3480_v20, %v3477_v18  ;;  %v3513_v10 = vrot.slane %v3506_v11, 3  ;;  %v3539_v25 = vunpack.c.l.b16 %v7260_v3 }
 0x105   :  { %v3540_v27 = vunpack.c.h.b16 %v7260_v3  ;;  %7767 = vmatpush3.bf16.msra.mxu0 %v8257_v60  ;;  %v8261_v29 = vld [vmem:[#allocation2 + $0xc] ss:$16 sps:$4 sm:$0xff]   ;;  %v3543_v30 = vrot.slane %v3535_v14, 4  ;;  %v3546_v31 = vrot.slane %v3536_v22, 4  ;;  %v3569_v32 = vunpack.c.l.b16 %v7262_v56  ;;  %v8265_v42 = vld [vmem:[#allocation2 + $0x8] ss:$16 sps:$4 sm:$0xff]  }
 0x106   :  { %v3511_v41 = vsel %vm170_vm3, %v3510_v21, %v3509_v12  ;;  %7768 = vmatprep.subr.bf16.mxu0 %v8259_v4  ;;  %3491 = vst [vmem:[#allocation2] sm:$0x44] %v3487_v24  ;;  %v3514_v36 = vsel %vm170_vm3, %v3513_v10, %v3512_v13  ;;  %v3544_v38 = vrot.slane %v3539_v25, 3  ;;  %v3570_v40 = vunpack.c.h.b16 %v7262_v56  ;;  %7166 = vmatprep.mubr.msk.bf16.mxu1 %vm622_vm14, %v8261_v29  ;;  %v7350_v4 = vld [vmem:[%s10597_s0 + $0xd0] sm:$0x44]  ;;  %v8273_v56 = vld [vmem:[#allocation4 + $0x410] sm:$0xff]  }
 0x107   :  { %v3547_v39 = vrot.slane %v3540_v27, 3  ;;  %v3521_v43 = vpack.c.b16 %v3514_v36, %v3511_v41  ;;  %v3573_v45 = vunpack.c.l.b16 %v7264_v15  ;;  %v3574_v46 = vunpack.c.h.b16 %v7264_v15  ;;  %2711 = vmatmul.mubr.bf16.vlgmr.msra.gmra.mrb[0].mxu1 %v8265_v42  ;;  %v7316_v10 = vld [vmem:[%s10597_s0 + $0x20] sm:$0x11]  ;;  %v7318_v25 = vld [vmem:[%s10597_s0 + $0x90] sm:$0x11] }
 0x108   :  { %v3577_v47 = vrot.slane %v3569_v32, 4  ;;  %v3545_v49 = vsel %vm67_vm0, %v3544_v38, %v3543_v30  ;;  %v3580_v52 = vrot.slane %v3570_v40, 4  ;;  %v3603_v53 = vunpack.c.l.b16 %v7266_v23  ;;  %3341 = vmatpush1.bf16.msra.mxu1 %v8266_v28  ;;  %v7320_v30 = vld [vmem:[%s10597_s0 + $0x20] sm:$0x22]  ;;  %v7322_v36 = vld [vmem:[%s10597_s0 + $0x90] sm:$0x22] }
 0x109   :  { %v3548_v50 = vsel %vm67_vm0, %v3547_v39, %v3546_v31  ;;  %7769 = vmatpush3.bf16.msra.mxu0 %v8260_v17  ;;  %3525 = vst [vmem:[#allocation2] sm:$0x88] %v3521_v43  ;;  %v3578_v58 = vrot.slane %v3573_v45, 3  ;;  %v3581_v59 = vrot.slane %v3574_v46, 3  ;;  %v3604_v60 = vunpack.c.h.b16 %v7266_v23  ;;  %3342 = vmatprep.subr.bf16.mxu1 %v8516_v1  ;;  %v7324_v43 = vld [vmem:[%s10597_s0 + $0x20] sm:$0x44] }
 0x10a   :  { %v3555_v57 = vpack.c.b16 %v3548_v50, %v3545_v49  ;;  %v3607_v62 = vunpack.c.l.b16 %v7268_v33  ;;  %v3608_v0 = vunpack.c.h.b16 %v7268_v33  ;;  %v3611_v2 = vrot.slane %v3603_v53, 6  ;;  %7782 = vmatprep.subr.bf16.mxu0 %v8268_v35  ;;  %v7326_v49 = vld [vmem:[%s10597_s0 + $0x90] sm:$0x44] }
 0x10b   :  { %v3637_v3 = vunpack.c.l.b16 %v7270_v34  ;;  %v3579_v5 = vsel %vm101_vm1, %v3578_v58, %v3577_v47  ;;  %v3582_v16 = vsel %vm101_vm1, %v3581_v59, %v3580_v52  ;;  %v3614_v63 = vrot.slane %v3604_v60, 6  ;;  %v8280_v59 = vld [vmem:[#allocation4 + $0x420] sm:$0xff]  }
 0x10c   :  { %3559 = vst [vmem:[#allocation2 + $0x10] sm:$0x11] %v3555_v57  ;;  %v3638_v19 = vunpack.c.h.b16 %v7270_v34  ;;  %v3589_v6 = vpack.c.b16 %v3582_v16, %v3579_v5  ;;  %v3612_v7 = vrot.slane %v3607_v62, 5  ;;  %v3615_v8 = vrot.slane %v3608_v0, 5  ;;  %3343 = vmatpush1.bf16.msra.mxu1 %v8270_v54  ;;  %v8277_v34 = vld [vmem:[#allocation4 + $0x418] sm:$0xff]  }
 0x10d   :  { %v3641_v9 = vunpack.c.l.b16 %v7272_v48  ;;  %v3642_v11 = vunpack.c.h.b16 %v7272_v48  ;;  %v3645_v12 = vrot.slane %v3637_v3, 6  ;;  %v7283_v14 = vcombine.high %v9470_v55, %v9470_v55  ;;  %3344 = vmatprep.subr.bf16.mxu1 %v8516_v1  ;;  %v7328_v57 = vld [vmem:[%s10597_s0 + $0x40] sm:$0x11]  ;;  %v7330_v0 = vld [vmem:[%s10597_s0 + $0xb0] sm:$0x11] }
 0x10e   :  { %v3648_v13 = vrot.slane %v3638_v19, 6  ;;  %3593 = vst [vmem:[#allocation2 + $0x10] sm:$0x22] %v3589_v6  ;;  %v3613_v15 = vsel %vm134_vm2, %v3612_v7, %v3611_v2  ;;  %v3616_v17 = vsel %vm134_vm2, %v3615_v8, %v3614_v63  ;;  %v4334_v20 = vunpack.c.l.b16 %v7348_v61  ;;  %v7332_v2 = vld [vmem:[%s10597_s0 + $0x40] sm:$0x22] }
 0x10f   :  { %v3646_v18 = vrot.slane %v3641_v9, 5  ;;  %v3623_v21 = vpack.c.b16 %v3616_v17, %v3613_v15  ;;  %v3649_v22 = vrot.slane %v3642_v11, 5  ;;  %v4335_v23 = vunpack.c.h.b16 %v7348_v61  ;;  %v7334_v63 = vld [vmem:[%s10597_s0 + $0xb0] sm:$0x22]  ;;  %v8283_v17 = vld [vmem:[#allocation4 + $0x428] sm:$0xff]  }
 0x110   :  { %v4338_v24 = vunpack.c.l.b16 %v7350_v4  ;;  %v4339_v28 = vunpack.c.h.b16 %v7350_v4  ;;  %v4342_v29 = vrot.slane %v4334_v20, 4  ;;  %v7282_v41 = vcombine.low %v9470_v55, %v9470_v55  ;;  %3345 = vmatpush1.bf16.msra.mxu1 %v8273_v56  ;;  %v8269_v15 = vld [vmem:[#allocation4 + $0x540] sm:$0xff]   ;;  %v7422_v55 = vld [vmem:[%s10597_s0 + $0x60] sm:$0x44] }
 0x111   :  { %v3647_v27 = vsel %vm170_vm3, %v3646_v18, %v3645_v12  ;;  %3627 = vst [vmem:[#allocation2 + $0x10] sm:$0x44] %v3623_v21  ;;  %v3650_v31 = vsel %vm170_vm3, %v3649_v22, %v3648_v13  ;;  %v4345_v33 = vrot.slane %v4335_v23, 4  ;;  %v4073_v35 = vunpack.c.l.b16 %v7316_v10  ;;  %3346 = vmatprep.subr.bf16.mxu1 %v8516_v1  ;;  %v7336_v13 = vld [vmem:[%s10597_s0 + $0x40] sm:$0x44] }
 0x112   :  { %v4343_v32 = vrot.slane %v4338_v24, 3  ;;  %v3657_v38 = vpack.c.b16 %v3650_v31, %v3647_v27  ;;  %v4346_v39 = vrot.slane %v4339_v28, 3  ;;  %v4074_v40 = vunpack.c.h.b16 %v7316_v10  ;;  %v7338_v23 = vld [vmem:[%s10597_s0 + $0xb0] sm:$0x44]  ;;  %v8271_v24 = vld [vmem:[#allocation4 + $0x588] sm:$0xff]  }
 0x113   :  { %v4077_v42 = vunpack.c.l.b16 %v7318_v25  ;;  %v4078_v46 = vunpack.c.h.b16 %v7318_v25  ;;  %v4103_v47 = vunpack.c.l.b16 %v7320_v30  ;;  %v4104_v48 = vunpack.c.h.b16 %v7320_v30 }
 0x114   :  { %v4344_v45 = vsel %vm67_vm0, %v4343_v32, %v4342_v29  ;;  %3661 = vst [vmem:[#allocation2 + $0x10] sm:$0x88] %v3657_v38  ;;  %v4347_v50 = vsel %vm67_vm0, %v4346_v39, %v4345_v33  ;;  %v4107_v53 = vunpack.c.l.b16 %v7322_v36  ;;  %v4108_v54 = vunpack.c.h.b16 %v7322_v36  ;;  %3347 = vmatpush1.bf16.msra.mxu1 %v8277_v34 }
 0x115   :  { %v4081_v52 = vrot.slane %v4077_v42, 7  ;;  %v4354_v58 = vpack.c.b16 %v4347_v50, %v4344_v45  ;;  %v4083_v60 = vrot.slane %v4078_v46, 7  ;;  %v4133_v61 = vunpack.c.l.b16 %v7324_v43  ;;  %3348 = vmatprep.subr.bf16.mxu1 %v8516_v1 }
 0x116   :  { %v4134_v62 = vunpack.c.h.b16 %v7324_v43  ;;  %v4111_v4 = vrot.slane %v4107_v53, 7  ;;  %v4113_v5 = vrot.slane %v4108_v54, 7  ;;  %v4137_v16 = vunpack.c.l.b16 %v7326_v49  ;;  %v7342_v54 = vld [vmem:[%s10597_s0 + $0xd0] sm:$0x11] }
 0x117   :  { %v4082_v3 = vsel %vm67_vm0, %v4081_v52, %v4073_v35  ;;  %4358 = vst [vmem:[#allocation2 + $0x20] sm:$0x11] %v4354_v58  ;;  %v4084_v19 = vsel %vm67_vm0, %v4083_v60, %v4074_v40  ;;  %v4138_v56 = vunpack.c.h.b16 %v7326_v49  ;;  %v4163_v6 = vunpack.c.l.b16 %v7328_v57  ;;  %v8286_v40 = vld [vmem:[#allocation4 + $0x430] sm:$0xff]  }
 0x118   :  { %v4164_v7 = vunpack.c.h.b16 %v7328_v57  ;;  %v4089_v8 = vpack.c.b16 %v4084_v19, %v4082_v3  ;;  %v4112_v9 = vsel %vm101_vm1, %v4111_v4, %v4103_v47  ;;  %v4114_v11 = vsel %vm101_vm1, %v4113_v5, %v4104_v48  ;;  %3349 = vmatpush1.bf16.msra.mxu1 %v8280_v59  ;;  %v7340_v47 = vld [vmem:[%s10597_s0 + $0x60] sm:$0x11] }
 0x119   :  { %v4141_v12 = vrot.slane %v4137_v16, 7  ;;  %v4119_v18 = vpack.c.b16 %v4114_v11, %v4112_v9  ;;  %v4143_v20 = vrot.slane %v4138_v56, 7  ;;  %v4167_v21 = vunpack.c.l.b16 %v7330_v0  ;;  %3350 = vmatprep.subr.bf16.mxu1 %v8516_v1  ;;  %v8272_v48 = vld [vmem:[#allocation4 + $0x548] sm:$0xff]   ;;  %v8274_v57 = vld [vmem:[#allocation4 + $0x590] sm:$0xff]   ;;  %v8278_v9 = vld [vmem:[#allocation4 + $0x598] sm:$0xff]  }
 0x11a   :  { %v4168_v22 = vunpack.c.h.b16 %v7330_v0  ;;  %v4171_v25 = vrot.slane %v4163_v6, 2  ;;  %v4174_v27 = vrot.slane %v4164_v7, 2  ;;  %v4197_v28 = vunpack.c.l.b16 %v7332_v2  ;;  %v7346_v0 = vld [vmem:[%s10597_s0 + $0xd0] sm:$0x22]  ;;  %v8275_v16 = vld [vmem:[#allocation4 + $0x550] sm:$0xff]  }
 0x11b   :  { %v4142_v10 = vsel %vm134_vm2, %v4141_v12, %v4133_v61  ;;  %v8263_v29 = vld [vmem:[#allocation2 + $0x4] ss:$16 sps:$4 sm:$0xff]   ;;  %v8267_v30 = vld [vmem:[#allocation2] ss:$16 sps:$4 sm:$0xff]   ;;  %v4144_v31 = vsel %vm134_vm2, %v4143_v20, %v4134_v62  ;;  %v4172_v32 = vrot.slane %v4167_v21, 1  ;;  %v4198_v33 = vunpack.c.h.b16 %v7332_v2 }
 0x11c   :  { %v4201_v34 = vunpack.c.l.b16 %v7334_v63  ;;  %4093 = vst [vmem:[#allocation2] sm:$0x11] %v4089_v8  ;;  %4123 = vst [vmem:[#allocation2] sm:$0x22] %v4119_v18  ;;  %v4149_v35 = vpack.c.b16 %v4144_v31, %v4142_v10  ;;  %v4175_v36 = vrot.slane %v4168_v22, 1  ;;  %v4202_v38 = vunpack.c.h.b16 %v7334_v63  ;;  %3998 = vmatprep.mubr.bf16.mxu0 %v8263_v29  ;;  %3351 = vmatpush1.bf16.msra.mxu1 %v8283_v17  ;;  %v8289_v63 = vld [vmem:[#allocation4 + $0x438] sm:$0xff]  }
 0x11d   :  { %v4205_v39 = vrot.slane %v4197_v28, 2  ;;  %v4173_v42 = vsel %vm170_vm3, %v4172_v32, %v4171_v25  ;;  %v4208_v45 = vrot.slane %v4198_v33, 2  ;;  %v4231_v46 = vunpack.c.l.b16 %v7336_v13  ;;  %3999 = vmatmul.mubr.bf16.vlgmr.msra.gmra.mrb[40].mxu0 %v8267_v30  ;;  %3352 = vmatprep.subr.bf16.mxu1 %v8516_v1  ;;  %v7344_v62 = vld [vmem:[%s10597_s0 + $0x60] sm:$0x22]  ;;  %v7201_v8 = vld [vmem:[%s10597_s0 + $0x58] sm:$0x44] }
 0x11e   :  { %v4206_v43 = vrot.slane %v4201_v34, 1  ;;  %4153 = vst [vmem:[#allocation2] sm:$0x44] %v4149_v35  ;;  %v4176_v49 = vsel %vm170_vm3, %v4175_v36, %v4174_v27  ;;  %v4209_v50 = vrot.slane %v4202_v38, 1  ;;  %v4232_v52 = vunpack.c.h.b16 %v7336_v13  ;;  %7783 = vmatpush3.bf16.msra.mxu0 %v8269_v15  ;;  %4006 = vmatprep.mubr.bf16.mxu0 %v7283_v14  ;;  %v9557_v14 = vld [vmem:[#allocation2 + $0x28] sm:$0x11] }
 0x11f   :  { %v4235_v53 = vunpack.c.l.b16 %v7338_v23  ;;  %v4183_v58 = vpack.c.b16 %v4176_v49, %v4173_v42  ;;  %v4236_v60 = vunpack.c.h.b16 %v7338_v23  ;;  %v4239_v61 = vrot.slane %v4231_v46, 2  ;;  %7784 = vmatprep.subr.bf16.mxu0 %v8271_v24  ;;  %v7203_v17 = vld [vmem:[%s10597_s0 + $0xc8] sm:$0x44]  ;;  %v9568_v23 = vld [vmem:[#allocation2 + $0x20] sm:$0x11]  ;;  %v8294_v28 = vld [vmem:[#allocation4 + $0x440] sm:$0xff]  }
 0x120   :  { %v4207_v59 = vsel %vm67_vm0, %v4206_v43, %v4205_v39  ;;  %v4210_v2 = vsel %vm67_vm0, %v4209_v50, %v4208_v45  ;;  %v4242_v4 = vrot.slane %v4232_v52, 2  ;;  %v4266_v5 = vunpack.c.l.b16 %v7340_v47  ;;  %3353 = vmatpush1.bf16.msra.mxu1 %v8286_v40  ;;  %v8279_v38 = vld [vmem:[#allocation4 + $0x558] sm:$0xff]   ;;  %v8281_v45 = vld [vmem:[#allocation4 + $0x5a0] sm:$0xff]   ;;  %v8298_v52 = vld [vmem:[#allocation4 + $0x448] sm:$0xff]  }
 0x121   :  { %v4240_v3 = vrot.slane %v4235_v53, 1  ;;  %4187 = vst [vmem:[#allocation2] sm:$0x88] %v4183_v58  ;;  %v4217_v19 = vpack.c.b16 %v4210_v2, %v4207_v59  ;;  %v4243_v56 = vrot.slane %v4236_v60, 1  ;;  %v4267_v6 = vunpack.c.h.b16 %v7340_v47  ;;  %3354 = vmatprep.subr.bf16.mxu1 %v8516_v1  ;;  %v8282_v2 = vld [vmem:[#allocation4 + $0x560] sm:$0xff]  }
 0x122   :  { %v4270_v7 = vunpack.c.l.b16 %v7342_v54  ;;  %v4271_v12 = vunpack.c.h.b16 %v7342_v54  ;;  %v4274_v13 = vrot.slane %v4266_v5, 4  ;;  %v4300_v15 = vunpack.c.l.b16 %v7344_v62  ;;  %7785 = vmatpush3.bf16.msra.mxu0 %v8272_v48 }
 0x123   :  { %v4241_v11 = vsel %vm101_vm1, %v4240_v3, %v4239_v61  ;;  %4221 = vst [vmem:[#allocation2 + $0x10] sm:$0x11] %v4217_v19  ;;  %v4244_v18 = vsel %vm101_vm1, %v4243_v56, %v4242_v4  ;;  %v4277_v21 = vrot.slane %v4267_v6, 4  ;;  %v4301_v22 = vunpack.c.h.b16 %v7344_v62  ;;  %7786 = vmatprep.subr.bf16.mxu0 %v8274_v57  ;;  %v7169_v62 = vld [vmem:[%s10597_s0 + $0x18] sm:$0x11] }
 0x124   :  { %v4275_v20 = vrot.slane %v4270_v7, 3  ;;  %v4251_v24 = vpack.c.b16 %v4244_v18, %v4241_v11  ;;  %v4278_v10 = vrot.slane %v4271_v12, 3  ;;  %v4304_v25 = vunpack.c.l.b16 %v7346_v0  ;;  %3355 = vmatpush1.bf16.msra.mxu1 %v8289_v63  ;;  %v7173_v63 = vld [vmem:[%s10597_s0 + $0x18] sm:$0x22]  ;;  %v7175_v19 = vld [vmem:[%s10597_s0 + $0x88] sm:$0x22] }
 0x125   :  { %v4305_v27 = vunpack.c.h.b16 %v7346_v0  ;;  %v4308_v30 = vrot.slane %v4300_v15, 4  ;;  %v4311_v31 = vrot.slane %v4301_v22, 4  ;;  %v7137_v32 = vcombine.high %v9557_v14, %v9557_v14  ;;  %4007 = vmatmul.mubr.bf16.gmra.mrb[44].mxu0 %v7282_v41  ;;  %3356 = vmatprep.subr.bf16.mxu1 %v8516_v1  ;;  %v7424_v41 = vld [vmem:[%s10597_s0 + $0xd0] sm:$0x44]  ;;  %v7171_v0 = vld [vmem:[%s10597_s0 + $0x88] sm:$0x11] }
 0x126   :  { %v4276_v29 = vsel %vm134_vm2, %v4275_v20, %v4274_v13  ;;  %4255 = vst [vmem:[#allocation2 + $0x10] sm:$0x22] %v4251_v24  ;;  %v4279_v33 = vsel %vm134_vm2, %v4278_v10, %v4277_v21  ;;  %v4309_v34 = vrot.slane %v4304_v25, 3  ;;  %v2999_v36 = vunpack.c.l.b16 %v7201_v8  ;;  %7787 = vmatpush3.bf16.msra.mxu0 %v8275_v16  ;;  %v8284_v56 = vld [vmem:[#allocation4 + $0x5a8] sm:$0xff]   ;;  %v8303_v13 = vld [vmem:[#allocation4 + $0x450] sm:$0xff]  }
 0x127   :  { %v4312_v35 = vrot.slane %v4305_v27, 3  ;;  %v4286_v39 = vpack.c.b16 %v4279_v33, %v4276_v29  ;;  %7167 = vmatprep.mubr.msk.bf16.mxu1 %vm622_vm14, %v7137_v32  ;;  %v3000_v40 = vunpack.c.h.b16 %v7201_v8  ;;  %v3003_v42 = vunpack.c.l.b16 %v7203_v17  ;;  %7788 = vmatprep.subr.bf16.mxu0 %v8278_v9  ;;  %v8285_v11 = vld [vmem:[#allocation4 + $0x568] sm:$0xff]   ;;  %v7179_v20 = vld [vmem:[%s10597_s0 + $0x88] sm:$0x44]  ;;  %v8287_v21 = vld [vmem:[#allocation4 + $0x5b0] sm:$0xff]  }
 0x128   :  { %v3004_v43 = vunpack.c.h.b16 %v7203_v17  ;;  %v4310_v46 = vsel %vm170_vm3, %v4309_v34, %v4308_v30  ;;  %v3011_v48 = vrot.slane %v2999_v36, 5  ;;  %v7357_v49 = vcombine.high %v9568_v23, %v9568_v23  ;;  %3357 = vmatpush1.bf16.msra.mxu1 %v8294_v28  ;;  %v8306_v28 = vld [vmem:[#allocation4 + $0x458] sm:$0xff]   ;;  %v7181_v32 = vld [vmem:[%s10597_s0 + $0x38] sm:$0x11] }
 0x129   :  { %v4313_v47 = vsel %vm170_vm3, %v4312_v35, %v4311_v31  ;;  %4290 = vst [vmem:[#allocation2 + $0x10] sm:$0x44] %v4286_v39  ;;  %v3012_v53 = vrot.slane %v3003_v42, 4  ;;  %v3014_v54 = vrot.slane %v3000_v40, 5  ;;  %3358 = vmatprep.subr.bf16.mxu1 %v8516_v1  ;;  %v4996_v58 = vunpack.c.l.b16 %v7422_v55  ;;  %v7183_v33 = vld [vmem:[%s10597_s0 + $0xa8] sm:$0x11] }
 0x12a   :  { %v4320_v50 = vpack.c.b16 %v4313_v47, %v4310_v46  ;;  %v3015_v57 = vrot.slane %v3004_v43, 4  ;;  %v4997_v59 = vunpack.c.h.b16 %v7422_v55  ;;  %v5000_v60 = vunpack.c.l.b16 %v7424_v41  ;;  %7789 = vmatpush3.bf16.msra.mxu0 %v8279_v38  ;;  %v8288_v39 = vld [vmem:[#allocation4 + $0x570] sm:$0xff]  }
 0x12b   :  { %v5001_v61 = vunpack.c.h.b16 %v7424_v41  ;;  %v3013_v3 = vsel %vm67_vm0, %v3012_v53, %v3011_v48  ;;  %v7136_v5 = vcombine.low %v9557_v14, %v9557_v14  ;;  %v7356_v16 = vcombine.low %v9568_v23, %v9568_v23  ;;  %7790 = vmatprep.subr.bf16.mxu0 %v8281_v45  ;;  %v7177_v14 = vld [vmem:[%s10597_s0 + $0x18] sm:$0x44]  ;;  %v7185_v41 = vld [vmem:[%s10597_s0 + $0x38] sm:$0x22]  ;;  %v8290_v45 = vld [vmem:[#allocation4 + $0x5b8] sm:$0xff]  }
 0x12c   :  { %4324 = vst [vmem:[#allocation2 + $0x10] sm:$0x88] %v4320_v50  ;;  %v3016_v4 = vsel %vm67_vm0, %v3015_v57, %v3014_v54  ;;  %v5004_v7 = vrot.slane %v4996_v58, 5  ;;  %v5005_v8 = vrot.slane %v5000_v60, 4  ;;  %v5007_v9 = vrot.slane %v4997_v59, 5  ;;  %3359 = vmatpush1.bf16.msra.mxu1 %v8298_v52 }
 0x12d   :  { %v3018_v6 = vpack.c.b16 %v3016_v4, %v3013_v3  ;;  %v5008_v12 = vrot.slane %v5001_v61, 4  ;;  %v2739_v15 = vunpack.c.l.b16 %v7169_v62  ;;  %v2740_v17 = vunpack.c.h.b16 %v7169_v62  ;;  %3360 = vmatprep.subr.bf16.mxu1 %v8516_v1  ;;  %2719 = vmatmul.mubr.bf16.gmra.mrb[4].mxu1 %v7136_v5  ;;  %v7187_v53 = vld [vmem:[%s10597_s0 + $0xa8] sm:$0x22]  ;;  %v7189_v60 = vld [vmem:[%s10597_s0 + $0x38] sm:$0x44] }
 0x12e   :  { %v2743_v18 = vunpack.c.l.b16 %v7171_v0  ;;  %v5006_v22 = vsel %vm67_vm0, %v5005_v8, %v5004_v7  ;;  %v2744_v24 = vunpack.c.h.b16 %v7171_v0  ;;  %v2769_v10 = vunpack.c.l.b16 %v7173_v63  ;;  %7791 = vmatpush3.bf16.msra.mxu0 %v8282_v2 }
 0x12f   :  { %3022 = vst.msk [vmem:[#allocation2 + $0x28] sm:$0x11] %vm8679_vm10, %v3018_v6  ;;  %v2770_v25 = vunpack.c.h.b16 %v7173_v63  ;;  %v5009_v27 = vsel %vm67_vm0, %v5008_v12, %v5007_v9  ;;  %v2749_v29 = vrot.slane %v2739_v15, 1  ;;  %v2751_v30 = vrot.slane %v2740_v17, 1  ;;  %7792 = vmatprep.subr.bf16.mxu0 %v8284_v56  ;;  %v8291_v56 = vld [vmem:[#allocation4 + $0x578] sm:$0xff]  }
 0x130   :  { %v2773_v31 = vunpack.c.l.b16 %v7175_v19  ;;  %v5016_v34 = vpack.c.b16 %v5009_v27, %v5006_v22  ;;  %v2774_v35 = vunpack.c.h.b16 %v7175_v19  ;;  %v2779_v36 = vrot.slane %v2769_v10, 1  ;;  %3361 = vmatpush1.bf16.msra.mxu1 %v8303_v13  ;;  %v7191_v19 = vld [vmem:[%s10597_s0 + $0xa8] sm:$0x44]  ;;  %v7195_v17 = vld [vmem:[%s10597_s0 + $0xc8] sm:$0x11] }
 0x131   :  { %v2781_v38 = vrot.slane %v2770_v25, 1  ;;  %v2750_v40 = vsel %vm67_vm0, %v2743_v18, %v2749_v29  ;;  %v2752_v42 = vsel %vm67_vm0, %v2744_v24, %v2751_v30  ;;  %v2799_v43 = vunpack.c.l.b16 %v7177_v14  ;;  %3362 = vmatprep.subr.bf16.mxu1 %v8516_v1  ;;  %v7197_v25 = vld [vmem:[%s10597_s0 + $0x58] sm:$0x22] }
 0x132   :  { %v2800_v55 = vunpack.c.h.b16 %v7177_v14  ;;  %5020 = vst [vmem:[#allocation2 + $0x20] sm:$0x11] %v5016_v34  ;;  %v2754_v47 = vpack.c.b16 %v2752_v42, %v2750_v40  ;;  %v2780_v48 = vsel %vm101_vm1, %v2773_v31, %v2779_v36  ;;  %v2803_v52 = vunpack.c.l.b16 %v7179_v20  ;;  %7793 = vmatpush3.bf16.msra.mxu0 %v8285_v11  ;;  %v7193_v14 = vld [vmem:[%s10597_s0 + $0x58] sm:$0x11] }
 0x133   :  { %v8292_v46 = vld [vmem:[#allocation2 + $0x4] ss:$16 sps:$4 sm:$0xff]   ;;  %v2782_v50 = vsel %vm101_vm1, %v2774_v35, %v2781_v38  ;;  %v2804_v57 = vunpack.c.h.b16 %v7179_v20  ;;  %v2809_v58 = vrot.slane %v2799_v43, 1  ;;  %7794 = vmatprep.subr.bf16.mxu0 %v8287_v21  ;;  %v2829_v61 = vunpack.c.l.b16 %v7181_v32  ;;  %v8295_v18 = vld [vmem:[#allocation2] ss:$16 sps:$4 sm:$0xff]  }
 0x134   :  { %v2784_v54 = vpack.c.b16 %v2782_v50, %v2780_v48  ;;  %v2811_v59 = vrot.slane %v2800_v55, 1  ;;  %4661 = vmatprep.mubr.bf16.mxu0 %v8292_v46  ;;  %2758 = vst.msk [vmem:[#allocation2 + $0x8] sm:$0x11] %vm8679_vm10, %v2754_v47  ;;  %v2830_v62 = vunpack.c.h.b16 %v7181_v32  ;;  %v2833_v0 = vunpack.c.l.b16 %v7183_v33  ;;  %3363 = vmatpush1.bf16.msra.mxu1 %v8306_v28  ;;  %v8296_v20 = vld [vmem:[#allocation4 + $0x660] sm:$0xff]   ;;  %v8299_v42 = vld [vmem:[#allocation4 + $0x668] sm:$0xff]  }
 0x135   :  { %v2834_v2 = vunpack.c.h.b16 %v7183_v33  ;;  %v2810_v3 = vsel %vm134_vm2, %v2803_v52, %v2809_v58  ;;  %v2863_v5 = vunpack.c.l.b16 %v7185_v41  ;;  %v2864_v63 = vunpack.c.h.b16 %v7185_v41  ;;  %4014 = vmatprep.subr.bf16.mxu1 %v8516_v1  ;;  %v8297_v35 = vld [vmem:[#allocation4 + $0x620] sm:$0xff]   ;;  %v7199_v46 = vld [vmem:[%s10597_s0 + $0xc8] sm:$0x22] }
 0x136   :  { %2788 = vst.msk [vmem:[#allocation2 + $0x8] sm:$0x22] %vm8695_vm11, %v2784_v54  ;;  %v2812_v4 = vsel %vm134_vm2, %v2804_v57, %v2811_v59  ;;  %v2841_v7 = vrot.slane %v2829_v61, 3  ;;  %v2842_v8 = vrot.slane %v2833_v0, 2  ;;  %v2844_v9 = vrot.slane %v2830_v62, 3  ;;  %7795 = vmatpush3.bf16.msra.mxu0 %v8288_v39 }
 0x137   :  { %v2814_v6 = vpack.c.b16 %v2812_v4, %v2810_v3  ;;  %v2845_v11 = vrot.slane %v2834_v2, 2  ;;  %v2867_v12 = vunpack.c.l.b16 %v7187_v53  ;;  %v2868_v13 = vunpack.c.h.b16 %v7187_v53  ;;  %7796 = vmatprep.subr.bf16.mxu0 %v8290_v45  ;;  %v7390_v53 = vld [vmem:[%s10597_s0 + $0x20] sm:$0x11]  ;;  %v7392_v3 = vld [vmem:[%s10597_s0 + $0x90] sm:$0x11] }
 0x138   :  { %v2875_v15 = vrot.slane %v2863_v5, 3  ;;  %v2843_v21 = vsel %vm170_vm3, %v2842_v8, %v2841_v7  ;;  %v2878_v22 = vrot.slane %v2864_v63, 3  ;;  %v2897_v24 = vunpack.c.l.b16 %v7189_v60  ;;  %v8304_v4 = vld [vmem:[#allocation4 + $0x670] sm:$0xff]  }
 0x139   :  { %2818 = vst.msk [vmem:[#allocation2 + $0x8] sm:$0x44] %vm8708_vm12, %v2814_v6  ;;  %v2898_v10 = vunpack.c.h.b16 %v7189_v60  ;;  %v2846_v27 = vsel %vm170_vm3, %v2845_v11, %v2844_v9  ;;  %v2876_v28 = vrot.slane %v2867_v12, 2  ;;  %v2879_v29 = vrot.slane %v2868_v13, 2  ;;  %v8300_v60 = vld [vmem:[#allocation4 + $0x628] sm:$0xff]   ;;  %v8307_v13 = vld [vmem:[#allocation4 + $0x678] sm:$0xff]  }
 0x13a   :  { %v2901_v30 = vunpack.c.l.b16 %v7191_v19  ;;  %v2848_v31 = vpack.c.b16 %v2846_v27, %v2843_v21  ;;  %v2902_v32 = vunpack.c.h.b16 %v7191_v19  ;;  %v2909_v33 = vrot.slane %v2897_v24, 3  ;;  %7797 = vmatpush3.bf16.msra.mxu0 %v8291_v56  ;;  %v7394_v6 = vld [vmem:[%s10597_s0 + $0x20] sm:$0x22]  ;;  %v7396_v11 = vld [vmem:[%s10597_s0 + $0x90] sm:$0x22] }
 0x13b   :  { %v2912_v34 = vrot.slane %v2898_v10, 3  ;;  %v2877_v36 = vsel %vm67_vm0, %v2876_v28, %v2875_v15  ;;  %v2880_v38 = vsel %vm67_vm0, %v2879_v29, %v2878_v22  ;;  %v2931_v40 = vunpack.c.l.b16 %v7193_v14  ;;  %7810 = vmatprep.subr.bf16.mxu0 %v8296_v20  ;;  %v7398_v12 = vld [vmem:[%s10597_s0 + $0x20] sm:$0x44]  ;;  %v7400_v21 = vld [vmem:[%s10597_s0 + $0x90] sm:$0x44] }
 0x13c   :  { %v2910_v39 = vrot.slane %v2901_v30, 2  ;;  %2852 = vst.msk [vmem:[#allocation2 + $0x8] sm:$0x88] %vm8715_vm13, %v2848_v31  ;;  %v2882_v43 = vpack.c.b16 %v2880_v38, %v2877_v36  ;;  %v2913_v55 = vrot.slane %v2902_v32, 2  ;;  %v2932_v41 = vunpack.c.h.b16 %v7193_v14  ;;  %v7402_v22 = vld [vmem:[%s10597_s0 + $0x40] sm:$0x11] }
 0x13d   :  { %v2935_v45 = vunpack.c.l.b16 %v7195_v17  ;;  %v2936_v48 = vunpack.c.h.b16 %v7195_v17  ;;  %v2943_v50 = vrot.slane %v2931_v40, 5  ;;  %v2965_v52 = vunpack.c.l.b16 %v7197_v25  ;;  %4662 = vmatmul.mubr.bf16.vlgmr.msra.gmra.mrb[48].mxu0 %v8295_v18  ;;  %v7404_v28 = vld [vmem:[%s10597_s0 + $0xb0] sm:$0x11]  ;;  %v7406_v38 = vld [vmem:[%s10597_s0 + $0x40] sm:$0x22] }
 0x13e   :  { %v2911_v47 = vsel %vm101_vm1, %v2910_v39, %v2909_v33  ;;  %2886 = vst.msk [vmem:[#allocation2 + $0x18] sm:$0x11] %vm8679_vm10, %v2882_v43  ;;  %v2914_v54 = vsel %vm101_vm1, %v2913_v55, %v2912_v34  ;;  %v2946_v58 = vrot.slane %v2932_v41, 5  ;;  %v2966_v59 = vunpack.c.h.b16 %v7197_v25  ;;  %7811 = vmatpush3.bf16.msra.mxu0 %v8297_v35  ;;  %4669 = vmatprep.mubr.bf16.mxu0 %v7357_v49  ;;  %v8305_v49 = vld [vmem:[#allocation4 + $0x630] sm:$0xff]   ;;  %v8308_v55 = vld [vmem:[#allocation4 + $0x638] sm:$0xff]  }
 0x13f   :  { %v2944_v57 = vrot.slane %v2935_v45, 4  ;;  %v2916_v61 = vpack.c.b16 %v2914_v54, %v2911_v47  ;;  %v2947_v62 = vrot.slane %v2936_v48, 4  ;;  %v2969_v0 = vunpack.c.l.b16 %v7199_v46  ;;  %7812 = vmatprep.subr.bf16.mxu0 %v8299_v42  ;;  %v8313_v48 = vld [vmem:[#allocation4 + $0x680] sm:$0xff]  }
 0x140   :  { %v2970_v2 = vunpack.c.h.b16 %v7199_v46  ;;  %v2977_v63 = vrot.slane %v2965_v52, 5  ;;  %v2980_v19 = vrot.slane %v2966_v59, 5  ;;  %v4736_v56 = vunpack.c.l.b16 %v7390_v53 }
 0x141   :  { %v2945_v5 = vsel %vm134_vm2, %v2944_v57, %v2943_v50  ;;  %2920 = vst.msk [vmem:[#allocation2 + $0x18] sm:$0x22] %vm8695_vm11, %v2916_v61  ;;  %v2948_v7 = vsel %vm134_vm2, %v2947_v62, %v2946_v58  ;;  %v2978_v8 = vrot.slane %v2969_v0, 4  ;;  %v4737_v14 = vunpack.c.h.b16 %v7390_v53  ;;  %v7408_v53 = vld [vmem:[%s10597_s0 + $0xb0] sm:$0x22] }
 0x142   :  { %v2981_v9 = vrot.slane %v2970_v2, 4  ;;  %v2950_v15 = vpack.c.b16 %v2948_v7, %v2945_v5  ;;  %v4740_v17 = vunpack.c.l.b16 %v7392_v3  ;;  %v4741_v18 = vunpack.c.h.b16 %v7392_v3  ;;  %7813 = vmatpush3.bf16.msra.mxu0 %v8300_v60  ;;  %v7410_v60 = vld [vmem:[%s10597_s0 + $0x40] sm:$0x44]  ;;  %v7412_v61 = vld [vmem:[%s10597_s0 + $0xb0] sm:$0x44]  ;;  %v8316_v7 = vld [vmem:[#allocation4 + $0x688] sm:$0xff]  }
 0x143   :  { %v4744_v20 = vrot.slane %v4736_v56, 1  ;;  %v2979_v24 = vsel %vm170_vm3, %v2978_v8, %v2977_v63  ;;  %v4746_v25 = vrot.slane %v4737_v14, 1  ;;  %v4766_v27 = vunpack.c.l.b16 %v7394_v6  ;;  %7814 = vmatprep.subr.bf16.mxu0 %v8304_v4  ;;  %v8312_v4 = vld [vmem:[#allocation4 + $0x4e0] sm:$0xff]  }
 0x144   :  { %v2982_v10 = vsel %vm170_vm3, %v2981_v9, %v2980_v19  ;;  %2954 = vst.msk [vmem:[#allocation2 + $0x18] sm:$0x44] %vm8708_vm12, %v2950_v15  ;;  %v4767_v31 = vunpack.c.h.b16 %v7394_v6  ;;  %v4770_v32 = vunpack.c.l.b16 %v7396_v11  ;;  %v4771_v34 = vunpack.c.h.b16 %v7396_v11  ;;  %v8314_v5 = vld [vmem:[#allocation4 + $0x640] sm:$0xff]  }
 0x145   :  { %v2984_v29 = vpack.c.b16 %v2982_v10, %v2979_v24  ;;  %v4745_v30 = vsel %vm67_vm0, %v4740_v17, %v4744_v20  ;;  %v4747_v33 = vsel %vm67_vm0, %v4741_v18, %v4746_v25  ;;  %v4774_v35 = vrot.slane %v4766_v27, 1  ;;  %4670 = vmatmul.mubr.bf16.gmra.mrb[52].mxu0 %v7356_v16 }
 0x146   :  { %v4796_v36 = vunpack.c.l.b16 %v7398_v12  ;;  %v4752_v39 = vpack.c.b16 %v4747_v33, %v4745_v30  ;;  %v4776_v40 = vrot.slane %v4767_v31, 1  ;;  %v4797_v42 = vunpack.c.h.b16 %v7398_v12  ;;  %7815 = vmatpush3.bf16.msra.mxu0 %v8305_v49  ;;  %v7414_v49 = vld [vmem:[%s10597_s0 + $0x60] sm:$0x11]  ;;  %v7416_v12 = vld [vmem:[%s10597_s0 + $0xd0] sm:$0x11] }
 0x147   :  { %2988 = vst.msk [vmem:[#allocation2 + $0x18] sm:$0x88] %vm8715_vm13, %v2984_v29  ;;  %v4800_v43 = vunpack.c.l.b16 %v7400_v21  ;;  %v4775_v41 = vsel %vm101_vm1, %v4770_v32, %v4774_v35  ;;  %v4801_v45 = vunpack.c.h.b16 %v7400_v21  ;;  %v4826_v47 = vunpack.c.l.b16 %v7402_v22  ;;  %7816 = vmatprep.subr.bf16.mxu0 %v8307_v13  ;;  %v8317_v29 = vld [vmem:[#allocation4 + $0x648] sm:$0xff]   ;;  %v8319_v35 = vld [vmem:[#allocation4 + $0x690] sm:$0xff]  }
 0x148   :  { %v4804_v46 = vrot.slane %v4796_v36, 1  ;;  %4756 = vst [vmem:[#allocation2] sm:$0x11] %v4752_v39  ;;  %v4777_v23 = vsel %vm101_vm1, %v4771_v34, %v4776_v40  ;;  %v4806_v16 = vrot.slane %v4797_v42, 1  ;;  %v4827_v50 = vunpack.c.h.b16 %v7402_v22  ;;  %v7418_v22 = vld [vmem:[%s10597_s0 + $0x60] sm:$0x22] }
 0x149   :  { %v4830_v52 = vunpack.c.l.b16 %v7404_v28  ;;  %v4782_v54 = vpack.c.b16 %v4777_v23, %v4775_v41  ;;  %v4831_v58 = vunpack.c.h.b16 %v7404_v28  ;;  %v4834_v59 = vrot.slane %v4826_v47, 3  ;;  %v8315_v28 = vld [vmem:[#allocation4 + $0x4e8] sm:$0xff]   ;;  %v7420_v34 = vld [vmem:[%s10597_s0 + $0xd0] sm:$0x22]  ;;  %v7496_v42 = vld [vmem:[%s10597_s0 + $0x60] sm:$0x88] }
 0x14a   :  { %v4805_v57 = vsel %vm134_vm2, %v4800_v43, %v4804_v46  ;;  %v4807_v62 = vsel %vm134_vm2, %v4801_v45, %v4806_v16  ;;  %v4837_v2 = vrot.slane %v4827_v50, 3  ;;  %v4860_v3 = vunpack.c.l.b16 %v7406_v38  ;;  %7817 = vmatpush3.bf16.msra.mxu0 %v8308_v55  ;;  %v8320_v43 = vld [vmem:[#allocation4 + $0x650] sm:$0xff]  }
 0x14b   :  { %v4835_v0 = vrot.slane %v4830_v52, 2  ;;  %4786 = vst [vmem:[#allocation2] sm:$0x22] %v4782_v54  ;;  %v4812_v63 = vpack.c.b16 %v4807_v62, %v4805_v57  ;;  %v4838_v19 = vrot.slane %v4831_v58, 2  ;;  %v4861_v56 = vunpack.c.h.b16 %v7406_v38  ;;  %7818 = vmatprep.subr.bf16.mxu0 %v8313_v48  ;;  %v7498_v57 = vld [vmem:[%s10597_s0 + $0xd0] sm:$0x88] }
 0x14c   :  { %v4864_v6 = vunpack.c.l.b16 %v7408_v53  ;;  %v4865_v9 = vunpack.c.h.b16 %v7408_v53  ;;  %v4868_v14 = vrot.slane %v4860_v3, 3  ;;  %v4894_v11 = vunpack.c.l.b16 %v7410_v60  ;;  %v8322_v58 = vld [vmem:[#allocation4 + $0x698] sm:$0xff]   ;;  %v8318_v62 = vld [vmem:[#allocation4 + $0x4f0] sm:$0xff]  }
 0x14d   :  { %v4836_v8 = vsel %vm170_vm3, %v4835_v0, %v4834_v59  ;;  %4816 = vst [vmem:[#allocation2] sm:$0x44] %v4812_v63  ;;  %v4839_v17 = vsel %vm170_vm3, %v4838_v19, %v4837_v2  ;;  %v4895_v20 = vunpack.c.h.b16 %v7410_v60  ;;  %v4898_v21 = vunpack.c.l.b16 %v7412_v61 }
 0x14e   :  { %v8309_v13 = vld [vmem:[#allocation2 + $0xc] ss:$16 sps:$4 sm:$0xff]   ;;  %v8311_v15 = vld [vmem:[#allocation2 + $0x8] ss:$16 sps:$4 sm:$0xff]   ;;  %v4869_v18 = vrot.slane %v4864_v6, 2  ;;  %v4846_v24 = vpack.c.b16 %v4839_v17, %v4836_v8  ;;  %v4871_v10 = vrot.slane %v4861_v56, 3  ;;  %v4899_v27 = vunpack.c.h.b16 %v7412_v61  ;;  %7819 = vmatpush3.bf16.msra.mxu0 %v8314_v5 }
 0x14f   :  { %v4872_v25 = vrot.slane %v4865_v9, 2  ;;  %7240 = vmatprep.mubr.msk.bf16.mxu1 %vm622_vm14, %v8309_v13  ;;  %v4902_v31 = vrot.slane %v4894_v11, 3  ;;  %v4903_v32 = vrot.slane %v4898_v21, 2  ;;  %v4905_v33 = vrot.slane %v4895_v20, 3  ;;  %7820 = vmatprep.subr.bf16.mxu0 %v8316_v7  ;;  %v8321_v6 = vld [vmem:[#allocation4 + $0x4f8] sm:$0xff]   ;;  %v8328_v13 = vld [vmem:[#allocation4 + $0x740] sm:$0xff]  }
 0x150   :  { %v4870_v30 = vsel %vm67_vm0, %v4869_v18, %v4868_v14  ;;  %3373 = vmatmul.mubr.bf16.vlgmr.msra.gmra.mrb[0].mxu1 %v8311_v15  ;;  %4850 = vst [vmem:[#allocation2] sm:$0x88] %v4846_v24  ;;  %v4906_v38 = vrot.slane %v4899_v27, 2  ;;  %v4928_v39 = vunpack.c.l.b16 %v7414_v49  ;;  %v4929_v40 = vunpack.c.h.b16 %v7414_v49  ;;  %v8323_v49 = vld [vmem:[#allocation4 + $0x658] sm:$0xff]   ;;  %v7630_v14 = vpop.f32.mrb[0].mxu0 }
 0x151   :  { %v4873_v36 = vsel %vm67_vm0, %v4872_v25, %v4871_v10  ;;  %4015 = vmatpush1.bf16.msra.mxu1 %v8312_v4  ;;  %v4904_v41 = vsel %vm101_vm1, %v4903_v32, %v4902_v31  ;;  %v4932_v45 = vunpack.c.l.b16 %v7416_v12  ;;  %v4933_v46 = vunpack.c.h.b16 %v7416_v12  ;;  %v3028_v17 = vld [vmem:[#allocation2 + $0x28] sm:$0x11]  ;;  %v7275_v18 = vld [vmem:[%s10597_s0 + $0x58] sm:$0x88]  ;;  %v7277_v10 = vld [vmem:[%s10597_s0 + $0xc8] sm:$0x88] }
 0x152   :  { %v4880_v55 = vpack.c.b16 %v4873_v36, %v4870_v30  ;;  %4016 = vmatprep.subr.bf16.mxu1 %v8516_v1  ;;  %v4907_v47 = vsel %vm101_vm1, %v4906_v38, %v4905_v33  ;;  %v4936_v48 = vrot.slane %v4928_v39, 5  ;;  %v4939_v23 = vrot.slane %v4929_v40, 5  ;;  %7821 = vmatpush3.bf16.msra.mxu0 %v8317_v29  ;;  %v9769_v25 = vld [vmem:[#allocation2 + $0x20] sm:$0x11]  ;;  %v8326_v40 = vld [vmem:[#allocation4 + $0x500] sm:$0xff]  }
 0x153   :  { %v4962_v16 = vunpack.c.l.b16 %v7418_v22  ;;  %v4914_v50 = vpack.c.b16 %v4907_v47, %v4904_v41  ;;  %v4937_v52 = vrot.slane %v4932_v45, 4  ;;  %v4940_v53 = vrot.slane %v4933_v46, 4  ;;  %7822 = vmatprep.subr.bf16.mxu0 %v8319_v35 }
 0x154   :  { %4884 = vst [vmem:[#allocation2 + $0x10] sm:$0x11] %v4880_v55  ;;  %v4963_v54 = vunpack.c.h.b16 %v7418_v22  ;;  %v4966_v59 = vunpack.c.l.b16 %v7420_v34  ;;  %v4967_v60 = vunpack.c.h.b16 %v7420_v34  ;;  %v5670_v4 = vunpack.c.l.b16 %v7496_v42  ;;  %v7631_v34 = vpop.f32.mrb[1].mxu0 }
 0x155   :  { %v4970_v61 = vrot.slane %v4962_v16, 5  ;;  %4017 = vmatpush1.bf16.msra.mxu1 %v8315_v28  ;;  %4918 = vst [vmem:[#allocation2 + $0x10] sm:$0x22] %v4914_v50  ;;  %v4938_v0 = vsel %vm134_vm2, %v4937_v52, %v4936_v48  ;;  %v4941_v2 = vsel %vm134_vm2, %v4940_v53, %v4939_v23  ;;  %v5671_v56 = vunpack.c.h.b16 %v7496_v42  ;;  %v7633_v41 = vpop.f32.mrb[2].mxu0  ;;  %v7243_v48 = vld [vmem:[%s10597_s0 + $0x18] sm:$0x22] }
 0x156   :  { %v4973_v3 = vrot.slane %v4963_v54, 5  ;;  %4018 = vmatprep.subr.bf16.mxu1 %v8516_v1  ;;  %v4948_v5 = vpack.c.b16 %v4941_v2, %v4938_v0  ;;  %v4971_v63 = vrot.slane %v4966_v59, 4  ;;  %v4974_v19 = vrot.slane %v4967_v60, 4  ;;  %7823 = vmatpush3.bf16.msra.mxu0 %v8320_v43  ;;  %v7634_v23 = vpop.f32.mrb[3].mxu0  ;;  %v8329_v16 = vld [vmem:[#allocation4 + $0x700] sm:$0xff]   ;;  %v8330_v60 = vld [vmem:[#allocation4 + $0x508] sm:$0xff]  }
 0x157   :  { %v5674_v7 = vunpack.c.l.b16 %v7498_v57  ;;  %v5675_v8 = vunpack.c.h.b16 %v7498_v57  ;;  %v5678_v9 = vrot.slane %v5670_v4, 6  ;;  %7824 = vmatprep.subr.bf16.mxu0 %v8322_v58  ;;  %v5681_v15 = vrot.slane %v5671_v56, 6  ;;  %v7245_v52 = vld [vmem:[%s10597_s0 + $0x88] sm:$0x22]  ;;  %v7247_v57 = vld [vmem:[%s10597_s0 + $0x18] sm:$0x44] }
 0x158   :  { %4952 = vst [vmem:[#allocation2 + $0x10] sm:$0x44] %v4948_v5  ;;  %v4972_v11 = vsel %vm170_vm3, %v4971_v63, %v4970_v61  ;;  %v4975_v12 = vsel %vm170_vm3, %v4974_v19, %v4973_v3  ;;  %v7211_v24 = vcombine.high %v3028_v17, %v3028_v17  ;;  %v3673_v27 = vunpack.c.l.b16 %v7275_v18  ;;  %v7249_v58 = vld [vmem:[%s10597_s0 + $0x88] sm:$0x44]  ;;  %v7251_v3 = vld [vmem:[%s10597_s0 + $0x18] sm:$0x88] }
 0x159   :  { %4019 = vmatpush1.bf16.msra.mxu1 %v8318_v62  ;;  %v4982_v20 = vpack.c.b16 %v4975_v12, %v4972_v11  ;;  %v5679_v21 = vrot.slane %v5674_v7, 5  ;;  %v5682_v22 = vrot.slane %v5675_v8, 5  ;;  %v3674_v28 = vunpack.c.h.b16 %v7275_v18  ;;  %v7253_v4 = vld [vmem:[%s10597_s0 + $0x88] sm:$0x88]  ;;  %v8331_v7 = vld [vmem:[#allocation4 + $0x748] sm:$0xff]   ;;  %v8334_v18 = vld [vmem:[#allocation4 + $0x510] sm:$0xff]  }
 0x15a   :  { %4020 = vmatprep.subr.bf16.mxu1 %v8516_v1  ;;  %v3677_v29 = vunpack.c.l.b16 %v7277_v10  ;;  %v3678_v30 = vunpack.c.h.b16 %v7277_v10  ;;  %7825 = vmatpush3.bf16.msra.mxu0 %v8323_v49  ;;  %v7210_v33 = vcombine.low %v3028_v17, %v3028_v17  ;;  %v3685_v36 = vrot.slane %v3673_v27, 6  ;;  %v7255_v10 = vld [vmem:[%s10597_s0 + $0x38] sm:$0x22]  ;;  %v7257_v27 = vld [vmem:[%s10597_s0 + $0xa8] sm:$0x22] }
 0x15b   :  { %4986 = vst [vmem:[#allocation2 + $0x10] sm:$0x88] %v4982_v20  ;;  %v5680_v31 = vsel %vm67_vm0, %v5679_v21, %v5678_v9  ;;  %v5683_v32 = vsel %vm67_vm0, %v5682_v22, %v5681_v15  ;;  %7241 = vmatprep.mubr.msk.bf16.mxu1 %vm622_vm14, %v7211_v24  ;;  %7838 = vmatprep.subr.bf16.mxu0 %v8328_v13  ;;  %v3688_v39 = vrot.slane %v3674_v28, 6  ;;  %v3401_v53 = vunpack.c.l.b16 %v7243_v48  ;;  %v8332_v28 = vld [vmem:[#allocation4 + $0x708] sm:$0xff]  }
 0x15c   :  { %v5690_v35 = vpack.c.b16 %v5683_v32, %v5680_v31  ;;  %v3686_v38 = vrot.slane %v3677_v29, 5  ;;  %v3689_v42 = vrot.slane %v3678_v30, 5  ;;  %v9774_v43 = vadd.f32 %v7631_v34, %v7630_v14  ;;  %3381 = vmatmul.mubr.bf16.gmra.mrb[4].mxu1 %v7210_v33  ;;  %v7259_v33 = vld [vmem:[%s10597_s0 + $0x38] sm:$0x44]  ;;  %v8335_v34 = vld [vmem:[#allocation4 + $0x750] sm:$0xff]  }
 0x15d   :  { %4021 = vmatpush1.bf16.msra.mxu1 %v8321_v6  ;;  %v7431_v45 = vcombine.high %v9769_v25, %v9769_v25  ;;  %v7430_v46 = vcombine.low %v9769_v25, %v9769_v25  ;;  %v3402_v54 = vunpack.c.h.b16 %v7243_v48  ;;  %v9795_v59 = vadd.f32 %v7634_v23, %v7633_v41  ;;  %v8337_v48 = vld [vmem:[#allocation4 + $0x518] sm:$0xff]  }
 0x15e   :  { %4022 = vmatprep.subr.bf16.mxu1 %v8516_v1  ;;  %5694 = vst [vmem:[#allocation2 + $0x20] sm:$0x11] %v5690_v35  ;;  %v3687_v55 = vsel %vm67_vm0, %v3686_v38, %v3685_v36  ;;  %v3690_v47 = vsel %vm67_vm0, %v3689_v42, %v3688_v39  ;;  %v3405_v61 = vunpack.c.l.b16 %v7245_v52  ;;  %v3406_v62 = vunpack.c.h.b16 %v7245_v52  ;;  %v7263_v52 = vld [vmem:[%s10597_s0 + $0x38] sm:$0x88] }
 0x15f   :  { %v3692_v50 = vpack.c.b16 %v3690_v47, %v3687_v55  ;;  %v3435_v0 = vunpack.c.l.b16 %v7247_v57  ;;  %v3436_v2 = vunpack.c.h.b16 %v7247_v57  ;;  %v3413_v19 = vrot.slane %v3401_v53, 2  ;;  %v7261_v47 = vld [vmem:[%s10597_s0 + $0xa8] sm:$0x44]  ;;  %v8336_v53 = vld [vmem:[#allocation4 + $0x710] sm:$0xff]  }
 0x160   :  { %v3439_v56 = vunpack.c.l.b16 %v7249_v58  ;;  %v3440_v6 = vunpack.c.h.b16 %v7249_v58  ;;  %v3469_v49 = vunpack.c.l.b16 %v7251_v3  ;;  %v3414_v8 = vrot.slane %v3405_v61, 1  ;;  %v7265_v61 = vld [vmem:[%s10597_s0 + $0xa8] sm:$0x88] }
 0x161   :  { %4023 = vmatpush1.bf16.msra.mxu1 %v8326_v40  ;;  %3696 = vst.msk [vmem:[#allocation2 + $0x28] sm:$0x11] %vm8679_vm10, %v3692_v50  ;;  %v3416_v9 = vrot.slane %v3402_v54, 2  ;;  %v3417_v14 = vrot.slane %v3406_v62, 1  ;;  %v3447_v11 = vrot.slane %v3435_v0, 2  ;;  %v3450_v13 = vrot.slane %v3436_v2, 2 }
 0x162   :  { %v8324_v5 = vld [vmem:[#allocation2 + $0x4] ss:$16 sps:$4 sm:$0xff]   ;;  %v8327_v63 = vld [vmem:[#allocation2] ss:$16 sps:$4 sm:$0xff]   ;;  %4024 = vmatprep.subr.bf16.mxu1 %v8516_v1  ;;  %v3448_v12 = vrot.slane %v3439_v56, 1  ;;  %v3451_v15 = vrot.slane %v3440_v6, 1  ;;  %v3470_v17 = vunpack.c.h.b16 %v7251_v3  ;;  %v3415_v20 = vsel %vm67_vm0, %v3414_v8, %v3413_v19 }
 0x163   :  { %5323 = vmatprep.mubr.bf16.mxu0 %v8324_v5  ;;  %v3418_v21 = vsel %vm67_vm0, %v3417_v14, %v3416_v9  ;;  %v3473_v22 = vunpack.c.l.b16 %v7253_v4  ;;  %v3474_v24 = vunpack.c.h.b16 %v7253_v4  ;;  %v3481_v32 = vrot.slane %v3469_v49, 2  ;;  %v8338_v62 = vld [vmem:[#allocation4 + $0x758] sm:$0xff]   ;;  %v7267_v6 = vld [vmem:[%s10597_s0 + $0x58] sm:$0x22]  ;;  %v8340_v49 = vld [vmem:[#allocation4 + $0x520] sm:$0xff]  }
 0x164   :  { %5324 = vmatmul.mubr.bf16.vlgmr.msra.gmra.mrb[56].mxu0 %v8327_v63  ;;  %v3420_v29 = vpack.c.b16 %v3418_v21, %v3415_v20  ;;  %v3449_v30 = vsel %vm101_vm1, %v3448_v12, %v3447_v11  ;;  %v3452_v31 = vsel %vm101_vm1, %v3451_v15, %v3450_v13  ;;  %v3484_v38 = vrot.slane %v3470_v17, 2  ;;  %v7269_v11 = vld [vmem:[%s10597_s0 + $0xc8] sm:$0x22] }
 0x165   :  { %4025 = vmatpush1.bf16.msra.mxu1 %v8330_v60  ;;  %7839 = vmatpush3.bf16.msra.mxu0 %v8329_v16  ;;  %v3454_v35 = vpack.c.b16 %v3452_v31, %v3449_v30  ;;  %v3482_v36 = vrot.slane %v3473_v22, 1  ;;  %v3485_v39 = vrot.slane %v3474_v24, 1  ;;  %v3503_v40 = vunpack.c.l.b16 %v7255_v10  ;;  %v8339_v12 = vld [vmem:[#allocation4 + $0x718] sm:$0xff]  }
 0x166   :  { %4026 = vmatprep.subr.bf16.mxu1 %v8516_v1  ;;  %7840 = vmatprep.subr.bf16.mxu0 %v8331_v7  ;;  %3424 = vst.msk [vmem:[#allocation2 + $0x8] sm:$0x11] %vm8679_vm10, %v3420_v29  ;;  %v3504_v42 = vunpack.c.h.b16 %v7255_v10  ;;  %v3507_v55 = vunpack.c.l.b16 %v7257_v27  ;;  %v3508_v41 = vunpack.c.h.b16 %v7257_v27  ;;  %v3537_v16 = vunpack.c.l.b16 %v7259_v33  ;;  %v7273_v10 = vld [vmem:[%s10597_s0 + $0xc8] sm:$0x44]  ;;  %v7464_v27 = vld [vmem:[%s10597_s0 + $0x20] sm:$0x22] }
 0x167   :  { %5331 = vmatprep.mubr.bf16.mxu0 %v7431_v45  ;;  %3458 = vst.msk [vmem:[#allocation2 + $0x8] sm:$0x22] %vm8695_vm11, %v3454_v35  ;;  %v3483_v45 = vsel %vm134_vm2, %v3482_v36, %v3481_v32  ;;  %v3486_v23 = vsel %vm134_vm2, %v3485_v39, %v3484_v38  ;;  %v3538_v50 = vunpack.c.h.b16 %v7259_v33  ;;  %v3515_v57 = vrot.slane %v3503_v40, 4  ;;  %v8343_v29 = vld [vmem:[#allocation4 + $0x528] sm:$0xff]   ;;  %v7466_v40 = vld [vmem:[%s10597_s0 + $0x90] sm:$0x22] }
 0x168   :  { %v3488_v54 = vpack.c.b16 %v3486_v23, %v3483_v45  ;;  %v3516_v58 = vrot.slane %v3507_v55, 3  ;;  %v3518_v60 = vrot.slane %v3504_v42, 4  ;;  %v3519_v0 = vrot.slane %v3508_v41, 3  ;;  %v8347_v45 = vld [vmem:[#allocation4 + $0x530] sm:$0xff]  }
 0x169   :  { %4027 = vmatpush1.bf16.msra.mxu1 %v8334_v18  ;;  %7841 = vmatpush3.bf16.msra.mxu0 %v8332_v28  ;;  %v3541_v2 = vunpack.c.l.b16 %v7261_v47  ;;  %v3542_v3 = vunpack.c.h.b16 %v7261_v47  ;;  %v3549_v4 = vrot.slane %v3537_v16, 4  ;;  %v3552_v63 = vrot.slane %v3538_v50, 4  ;;  %v8341_v18 = vld [vmem:[#allocation4 + $0x760] sm:$0xff]  }
 0x16a   :  { %4028 = vmatprep.subr.bf16.mxu1 %v8516_v1  ;;  %7842 = vmatprep.subr.bf16.mxu0 %v8335_v34  ;;  %3492 = vst.msk [vmem:[#allocation2 + $0x8] sm:$0x44] %vm8708_vm12, %v3488_v54  ;;  %v3517_v5 = vsel %vm170_vm3, %v3516_v58, %v3515_v57  ;;  %v3571_v19 = vunpack.c.l.b16 %v7263_v52  ;;  %v3572_v56 = vunpack.c.h.b16 %v7263_v52  ;;  %v3520_v7 = vsel %vm170_vm3, %v3519_v0, %v3518_v60  ;;  %v8342_v28 = vld [vmem:[#allocation4 + $0x720] sm:$0xff]   ;;  %v8344_v34 = vld [vmem:[#allocation4 + $0x768] sm:$0xff]  }
 0x16b   :  { %v3550_v8 = vrot.slane %v3541_v2, 3  ;;  %v3553_v9 = vrot.slane %v3542_v3, 3  ;;  %v3575_v14 = vunpack.c.l.b16 %v7265_v61  ;;  %v3522_v13 = vpack.c.b16 %v3520_v7, %v3517_v5  ;;  %v8348_v5 = vld [vmem:[#allocation4 + $0x770] sm:$0xff]  }
 0x16c   :  { %5332 = vmatmul.mubr.bf16.gmra.mrb[60].mxu0 %v7430_v46  ;;  %v3576_v15 = vunpack.c.h.b16 %v7265_v61  ;;  %v3583_v17 = vrot.slane %v3571_v19, 4  ;;  %v3586_v25 = vrot.slane %v3572_v56, 4  ;;  %v7271_v46 = vld [vmem:[%s10597_s0 + $0x58] sm:$0x44]  ;;  %v3605_v24 = vunpack.c.l.b16 %v7267_v6  ;;  %v7470_v61 = vld [vmem:[%s10597_s0 + $0x90] sm:$0x44] }
 0x16d   :  { %4029 = vmatpush1.bf16.msra.mxu1 %v8337_v48  ;;  %7843 = vmatpush3.bf16.msra.mxu0 %v8336_v53  ;;  %v3551_v20 = vsel %vm67_vm0, %v3550_v8, %v3549_v4  ;;  %v3554_v21 = vsel %vm67_vm0, %v3553_v9, %v3552_v63  ;;  %v3584_v22 = vrot.slane %v3575_v14, 3  ;;  %3526 = vst.msk [vmem:[#allocation2 + $0x8] sm:$0x88] %vm8715_vm13, %v3522_v13  ;;  %v3606_v32 = vunpack.c.h.b16 %v7267_v6  ;;  %v7468_v48 = vld [vmem:[%s10597_s0 + $0x20] sm:$0x44]  ;;  %v8345_v53 = vld [vmem:[#allocation4 + $0x728] sm:$0xff]  }
 0x16e   :  { %4030 = vmatprep.subr.bf16.mxu1 %v8516_v1  ;;  %7844 = vmatprep.subr.bf16.mxu0 %v8338_v62  ;;  %v3556_v30 = vpack.c.b16 %v3554_v21, %v3551_v20  ;;  %v3587_v31 = vrot.slane %v3576_v15, 3  ;;  %v3609_v33 = vunpack.c.l.b16 %v7269_v11  ;;  %v3610_v36 = vunpack.c.h.b16 %v7269_v11  ;;  %v7472_v62 = vld [vmem:[%s10597_s0 + $0x20] sm:$0x88]  ;;  %v7476_v11 = vld [vmem:[%s10597_s0 + $0x40] sm:$0x22] }
 0x16f   :  { %v3585_v35 = vsel %vm101_vm1, %v3584_v22, %v3583_v17  ;;  %v3617_v38 = vrot.slane %v3605_v24, 6  ;;  %v3639_v39 = vunpack.c.l.b16 %v7271_v46  ;;  %v3620_v41 = vrot.slane %v3606_v32, 6  ;;  %v8349_v22 = vld [vmem:[#allocation4 + $0x730] sm:$0xff]   ;;  %v8351_v24 = vld [vmem:[#allocation4 + $0x778] sm:$0xff]  }
 0x170   :  { %3560 = vst.msk [vmem:[#allocation2 + $0x18] sm:$0x11] %vm8679_vm10, %v3556_v30  ;;  %v3588_v42 = vsel %vm101_vm1, %v3587_v31, %v3586_v25  ;;  %v3618_v55 = vrot.slane %v3609_v33, 5  ;;  %v3640_v47 = vunpack.c.h.b16 %v7271_v46  ;;  %v3621_v16 = vrot.slane %v3610_v36, 5  ;;  %v8350_v25 = vld [vmem:[#allocation4 + $0x538] sm:$0xff]  }
 0x171   :  { %4031 = vmatpush1.bf16.msra.mxu1 %v8340_v49  ;;  %7845 = vmatpush3.bf16.msra.mxu0 %v8339_v12  ;;  %v3590_v23 = vpack.c.b16 %v3588_v42, %v3585_v35  ;;  %v3643_v50 = vunpack.c.l.b16 %v7273_v10  ;;  %v3644_v52 = vunpack.c.h.b16 %v7273_v10  ;;  %v3651_v57 = vrot.slane %v3639_v39, 6  ;;  %v7474_v49 = vld [vmem:[%s10597_s0 + $0x90] sm:$0x88]  ;;  %v7480_v35 = vld [vmem:[%s10597_s0 + $0x40] sm:$0x44] }
 0x172   :  { %4032 = vmatprep.subr.bf16.mxu1 %v8516_v1  ;;  %7846 = vmatprep.subr.bf16.mxu0 %v8341_v18  ;;  %v3619_v54 = vsel %vm134_vm2, %v3618_v55, %v3617_v38  ;;  %v3654_v58 = vrot.slane %v3640_v47, 6  ;;  %v5398_v60 = vunpack.c.l.b16 %v7464_v27  ;;  %v3622_v0 = vsel %vm134_vm2, %v3621_v16, %v3620_v41 }
 0x173   :  { %3594 = vst.msk [vmem:[#allocation2 + $0x18] sm:$0x22] %vm8695_vm11, %v3590_v23  ;;  %v3652_v2 = vrot.slane %v3643_v50, 5  ;;  %v3655_v3 = vrot.slane %v3644_v52, 5  ;;  %v5399_v4 = vunpack.c.h.b16 %v7464_v27  ;;  %v3624_v63 = vpack.c.b16 %v3622_v0, %v3619_v54  ;;  %v7482_v52 = vld [vmem:[%s10597_s0 + $0xb0] sm:$0x44] }
 0x174   :  { %v5402_v19 = vunpack.c.l.b16 %v7466_v40  ;;  %v5403_v56 = vunpack.c.h.b16 %v7466_v40  ;;  %v5406_v6 = vrot.slane %v5398_v60, 2  ;;  %v5432_v14 = vunpack.c.l.b16 %v7468_v48  ;;  %v7484_v60 = vld [vmem:[%s10597_s0 + $0x40] sm:$0x88] }
 0x175   :  { %4033 = vmatpush1.bf16.msra.mxu1 %v8343_v29  ;;  %7847 = vmatpush3.bf16.msra.mxu0 %v8342_v28  ;;  %v3653_v7 = vsel %vm170_vm3, %v3652_v2, %v3651_v57  ;;  %v3656_v8 = vsel %vm170_vm3, %v3655_v3, %v3654_v58  ;;  %v5409_v9 = vrot.slane %v5399_v4, 2  ;;  %3628 = vst.msk [vmem:[#allocation2 + $0x18] sm:$0x44] %vm8708_vm12, %v3624_v63  ;;  %v5433_v17 = vunpack.c.h.b16 %v7468_v48  ;;  %v8352_v48 = vld [vmem:[#allocation4 + $0x738] sm:$0xff]   ;;  %v7486_v4 = vld [vmem:[%s10597_s0 + $0xb0] sm:$0x88] }
 0x176   :  { %4034 = vmatprep.subr.bf16.mxu1 %v8516_v1  ;;  %7848 = vmatprep.subr.bf16.mxu0 %v8344_v34  ;;  %v3658_v12 = vpack.c.b16 %v3656_v8, %v3653_v7  ;;  %v5407_v13 = vrot.slane %v5402_v19, 1  ;;  %v5410_v15 = vrot.slane %v5403_v56, 1  ;;  %v5436_v46 = vunpack.c.l.b16 %v7470_v61  ;;  %v7478_v34 = vld [vmem:[%s10597_s0 + $0xb0] sm:$0x22] }
 0x177   :  { %v5437_v18 = vunpack.c.h.b16 %v7470_v61  ;;  %v5440_v20 = vrot.slane %v5432_v14, 2  ;;  %v5466_v21 = vunpack.c.l.b16 %v7472_v62  ;;  %v5443_v28 = vrot.slane %v5433_v17, 2  ;;  %v8359_v61 = vld [vmem:[#allocation4 + $0x5c0] sm:$0xff]  }
 0x178   :  { %3662 = vst.msk [vmem:[#allocation2 + $0x18] sm:$0x88] %vm8715_vm13, %v3658_v12  ;;  %v5408_v10 = vsel %vm67_vm0, %v5407_v13, %v5406_v6  ;;  %v5411_v27 = vsel %vm67_vm0, %v5410_v15, %v5409_v9  ;;  %v5467_v29 = vunpack.c.h.b16 %v7472_v62  ;;  %v5441_v31 = vrot.slane %v5436_v46, 1 }
 0x179   :  { %4035 = vmatpush1.bf16.msra.mxu1 %v8347_v45  ;;  %7849 = vmatpush3.bf16.msra.mxu0 %v8345_v53  ;;  %v5418_v30 = vpack.c.b16 %v5411_v27, %v5408_v10  ;;  %v5444_v32 = vrot.slane %v5437_v18, 1  ;;  %v5470_v33 = vunpack.c.l.b16 %v7474_v49  ;;  %v5471_v36 = vunpack.c.h.b16 %v7474_v49 }
 0x17a   :  { %4036 = vmatprep.subr.bf16.mxu1 %v8516_v1  ;;  %7850 = vmatprep.subr.bf16.mxu0 %v8348_v5  ;;  %v5474_v38 = vrot.slane %v5466_v21, 2  ;;  %v5477_v39 = vrot.slane %v5467_v29, 2  ;;  %v5500_v40 = vunpack.c.l.b16 %v7476_v11  ;;  %v5442_v42 = vsel %vm101_vm1, %v5441_v31, %v5440_v20  ;;  %v7488_v5 = vld [vmem:[%s10597_s0 + $0x60] sm:$0x22]  ;;  %v8360_v29 = vld [vmem:[#allocation4 + $0x5c8] sm:$0xff]  }
 0x17b   :  { %5422 = vst [vmem:[#allocation2] sm:$0x11] %v5418_v30  ;;  %v5445_v55 = vsel %vm101_vm1, %v5444_v32, %v5443_v28  ;;  %v5475_v41 = vrot.slane %v5470_v33, 1  ;;  %v5501_v47 = vunpack.c.h.b16 %v7476_v11  ;;  %v5478_v23 = vrot.slane %v5471_v36, 1 }
 0x17c   :  { %v5452_v45 = vpack.c.b16 %v5445_v55, %v5442_v42  ;;  %v5504_v16 = vunpack.c.l.b16 %v7478_v34  ;;  %v5505_v50 = vunpack.c.h.b16 %v7478_v34  ;;  %v5508_v54 = vrot.slane %v5500_v40, 4  ;;  %v7494_v34 = vld [vmem:[%s10597_s0 + $0xd0] sm:$0x44]  ;;  %v3702_v42 = vld [vmem:[#allocation2 + $0x28] sm:$0x11] }
 0x17d   :  { %4037 = vmatpush1.bf16.msra.mxu1 %v8350_v25  ;;  %7851 = vmatpush3.bf16.msra.mxu0 %v8349_v22  ;;  %v5476_v53 = vsel %vm134_vm2, %v5475_v41, %v5474_v38  ;;  %v5511_v57 = vrot.slane %v5501_v47, 4  ;;  %v5534_v58 = vunpack.c.l.b16 %v7480_v35  ;;  %v5479_v62 = vsel %vm134_vm2, %v5478_v23, %v5477_v39  ;;  %v7490_v25 = vld [vmem:[%s10597_s0 + $0xd0] sm:$0x22]  ;;  %v7492_v22 = vld [vmem:[%s10597_s0 + $0x60] sm:$0x44] }
 0x17e   :  { %4677 = vmatprep.subr.bf16.mxu1 %v8516_v1  ;;  %7852 = vmatprep.subr.bf16.mxu0 %v8351_v24  ;;  %5456 = vst [vmem:[#allocation2] sm:$0x22] %v5452_v45  ;;  %v5509_v0 = vrot.slane %v5504_v16, 3  ;;  %v5512_v2 = vrot.slane %v5505_v50, 3  ;;  %v5535_v3 = vunpack.c.h.b16 %v7480_v35  ;;  %v5486_v19 = vpack.c.b16 %v5479_v62, %v5476_v53  ;;  %v9938_v35 = vld [vmem:[#allocation2 + $0x20] sm:$0x11] }
 0x17f   :  { %v8353_v63 = vld [vmem:[#allocation2 + $0xc] ss:$16 sps:$4 sm:$0xff]   ;;  %v5538_v56 = vunpack.c.l.b16 %v7482_v52  ;;  %v5539_v6 = vunpack.c.h.b16 %v7482_v52  ;;  %v5542_v49 = vrot.slane %v5534_v58, 4  ;;  %v8358_v7 = vld [vmem:[#allocation2 + $0x8] ss:$16 sps:$4 sm:$0xff]   ;;  %v5568_v11 = vunpack.c.l.b16 %v7484_v60 }
 0x180   :  { %v5510_v8 = vsel %vm170_vm3, %v5509_v0, %v5508_v54  ;;  %v5513_v9 = vsel %vm170_vm3, %v5512_v2, %v5511_v57  ;;  %v5545_v14 = vrot.slane %v5535_v3, 4  ;;  %7314 = vmatprep.mubr.msk.bf16.mxu1 %vm622_vm14, %v8353_v63  ;;  %5490 = vst [vmem:[#allocation2] sm:$0x44] %v5486_v19  ;;  %v5569_v17 = vunpack.c.h.b16 %v7484_v60  ;;  %v7349_v55 = vld [vmem:[%s10597_s0 + $0x68] sm:$0x44]  ;;  %v8362_v23 = vld [vmem:[#allocation4 + $0x5d0] sm:$0xff]  }
 0x181   :  { %7853 = vmatpush3.bf16.msra.mxu0 %v8352_v48  ;;  %v5520_v12 = vpack.c.b16 %v5513_v9, %v5510_v8  ;;  %v5543_v13 = vrot.slane %v5538_v56, 3  ;;  %v5546_v15 = vrot.slane %v5539_v6, 3  ;;  %v5572_v46 = vunpack.c.l.b16 %v7486_v4  ;;  %4047 = vmatmul.mubr.bf16.vlgmr.msra.gmra.mrb[0].mxu1 %v8358_v7  ;;  %v7351_v16 = vld [vmem:[%s10597_s0 + $0xd8] sm:$0x44]  ;;  %v9948_v57 = vpop.f32.mrb[4].mxu0  ;;  %v8364_v63 = vld [vmem:[#allocation4 + $0x5d8] sm:$0xff]  }
 0x182   :  { %v5573_v18 = vunpack.c.h.b16 %v7486_v4  ;;  %v5576_v20 = vrot.slane %v5568_v11, 4  ;;  %v5602_v21 = vunpack.c.l.b16 %v7488_v5  ;;  %v5579_v27 = vrot.slane %v5569_v17, 4  ;;  %4678 = vmatpush1.bf16.msra.mxu1 %v8359_v61  ;;  %v9957_v0 = vld [vmem:[%s10597_s0 + $0x28] sm:$0x11]  ;;  %v7319_v19 = vld [vmem:[%s10597_s0 + $0x98] sm:$0x11] }
 0x183   :  { %5524 = vst [vmem:[#allocation2] sm:$0x88] %v5520_v12  ;;  %v5544_v24 = vsel %vm67_vm0, %v5543_v13, %v5542_v49  ;;  %v5547_v10 = vsel %vm67_vm0, %v5546_v15, %v5545_v14  ;;  %v5603_v28 = vunpack.c.h.b16 %v7488_v5  ;;  %v5577_v31 = vrot.slane %v5572_v46, 3  ;;  %4679 = vmatprep.subr.bf16.mxu1 %v8516_v1  ;;  %v9968_v56 = vld [vmem:[%s10597_s0 + $0x28] sm:$0x22]  ;;  %v9973_v14 = vpop.f32.mrb[5].mxu0 }
 0x184   :  { %v5554_v30 = vpack.c.b16 %v5547_v10, %v5544_v24  ;;  %v5580_v32 = vrot.slane %v5573_v18, 3  ;;  %v5606_v33 = vunpack.c.l.b16 %v7490_v25  ;;  %v5607_v36 = vunpack.c.h.b16 %v7490_v25  ;;  %v7323_v9 = vld [vmem:[%s10597_s0 + $0x98] sm:$0x22]  ;;  %v9980_v17 = vld [vmem:[%s10597_s0 + $0x28] sm:$0x44] }
 0x185   :  { %v5610_v38 = vrot.slane %v5602_v21, 6  ;;  %v5613_v39 = vrot.slane %v5603_v28, 6  ;;  %v5636_v40 = vunpack.c.l.b16 %v7492_v22  ;;  %v5578_v41 = vsel %vm101_vm1, %v5577_v31, %v5576_v20  ;;  %v7327_v21 = vld [vmem:[%s10597_s0 + $0x98] sm:$0x44] }
 0x186   :  { %5558 = vst [vmem:[#allocation2 + $0x10] sm:$0x11] %v5554_v30  ;;  %v5581_v47 = vsel %vm101_vm1, %v5580_v32, %v5579_v27  ;;  %v5611_v48 = vrot.slane %v5606_v33, 5  ;;  %v5637_v45 = vunpack.c.h.b16 %v7492_v22  ;;  %v5614_v52 = vrot.slane %v5607_v36, 5  ;;  %4680 = vmatpush1.bf16.msra.mxu1 %v8360_v29  ;;  %v7639_v22 = vpop.f32.mrb[6].mxu0 }
 0x187   :  { %v5588_v50 = vpack.c.b16 %v5581_v47, %v5578_v41  ;;  %v5640_v53 = vunpack.c.l.b16 %v7494_v34  ;;  %v5641_v54 = vunpack.c.h.b16 %v7494_v34  ;;  %v5644_v60 = vrot.slane %v5636_v40, 6  ;;  %4681 = vmatprep.subr.bf16.mxu1 %v8516_v1  ;;  %v7329_v29 = vld [vmem:[%s10597_s0 + $0x48] sm:$0x11]  ;;  %v7640_v30 = vpop.f32.mrb[7].mxu0  ;;  %v7331_v41 = vld [vmem:[%s10597_s0 + $0xb8] sm:$0x11] }
 0x188   :  { %v5612_v58 = vsel %vm134_vm2, %v5611_v48, %v5610_v38  ;;  %v5647_v61 = vrot.slane %v5637_v45, 6  ;;  %v7505_v62 = vcombine.high %v9938_v35, %v9938_v35  ;;  %v5615_v2 = vsel %vm134_vm2, %v5614_v52, %v5613_v39  ;;  %v9994_v36 = vpop.f32.mrb[8].mxu0  ;;  %v8365_v38 = vld [vmem:[#allocation4 + $0x5e0] sm:$0xff]  }
 0x189   :  { %5592 = vst [vmem:[#allocation2 + $0x10] sm:$0x22] %v5588_v50  ;;  %v5645_v3 = vrot.slane %v5640_v53, 5  ;;  %v5648_v4 = vrot.slane %v5641_v54, 5  ;;  %v7504_v5 = vcombine.low %v9938_v35, %v9938_v35  ;;  %v5622_v6 = vpack.c.b16 %v5615_v2, %v5612_v58  ;;  %v10001_v47 = vpop.f32.mrb[9].mxu0 }
 0x18a   :  { %v7285_v49 = vcombine.high %v3702_v42, %v3702_v42  ;;  %v4336_v7 = vunpack.c.l.b16 %v7349_v55  ;;  %v4337_v8 = vunpack.c.h.b16 %v7349_v55  ;;  %4682 = vmatpush1.bf16.msra.mxu1 %v8362_v23  ;;  %v4340_v13 = vunpack.c.l.b16 %v7351_v16  ;;  %v7333_v50 = vld [vmem:[%s10597_s0 + $0x48] sm:$0x22]  ;;  %v10008_v52 = vpop.f32.mrb[10].mxu0 }
 0x18b   :  { %v5646_v11 = vsel %vm170_vm3, %v5645_v3, %v5644_v60  ;;  %v5649_v12 = vsel %vm170_vm3, %v5648_v4, %v5647_v61  ;;  %v4341_v15 = vunpack.c.h.b16 %v7351_v16  ;;  %5626 = vst [vmem:[#allocation2 + $0x10] sm:$0x44] %v5622_v6  ;;  %4683 = vmatprep.subr.bf16.mxu1 %v8516_v1  ;;  %v7284_v20 = vcombine.low %v3702_v42, %v3702_v42  ;;  %v10011_v61 = vpop.f32.mrb[11].mxu0 }
 0x18c   :  { %v5656_v25 = vpack.c.b16 %v5649_v12, %v5646_v11  ;;  %7315 = vmatprep.mubr.msk.bf16.mxu1 %vm622_vm14, %v7285_v49  ;;  %v4348_v46 = vrot.slane %v4336_v7, 4  ;;  %v4351_v18 = vrot.slane %v4337_v8, 4  ;;  %v4349_v24 = vrot.slane %v4340_v13, 3 }
 0x18d   :  { %v4352_v10 = vrot.slane %v4341_v15, 3  ;;  %v4075_v27 = vunpack.c.l.b16 %v9957_v0  ;;  %v4076_v28 = vunpack.c.h.b16 %v9957_v0  ;;  %4055 = vmatmul.mubr.bf16.gmra.mrb[4].mxu1 %v7284_v20  ;;  %v4079_v31 = vunpack.c.l.b16 %v7319_v19  ;;  %v7335_v15 = vld [vmem:[%s10597_s0 + $0xb8] sm:$0x22] }
 0x18e   :  { %5660 = vst [vmem:[#allocation2 + $0x10] sm:$0x88] %v5656_v25  ;;  %v4080_v32 = vunpack.c.h.b16 %v7319_v19  ;;  %v4105_v33 = vunpack.c.l.b16 %v9968_v56  ;;  %v4106_v34 = vunpack.c.h.b16 %v9968_v56  ;;  %4684 = vmatpush1.bf16.msra.mxu1 %v8364_v63  ;;  %v4350_v39 = vsel %vm67_vm0, %v4349_v24, %v4348_v46  ;;  %v10017_v63 = vpop.f32.mrb[12].mxu0  ;;  %v8366_v19 = vld [vmem:[#allocation4 + $0x5e8] sm:$0xff]  }
 0x18f   :  { %v4353_v40 = vsel %vm67_vm0, %v4352_v10, %v4351_v18  ;;  %v4109_v42 = vunpack.c.l.b16 %v7323_v9  ;;  %v4110_v55 = vunpack.c.h.b16 %v7323_v9  ;;  %4685 = vmatprep.subr.bf16.mxu1 %v8516_v1  ;;  %v4085_v45 = vrot.slane %v4079_v31, 7  ;;  %v10021_v8 = vpop.f32.mrb[13].mxu0  ;;  %v8367_v31 = vld [vmem:[#allocation4 + $0x5f0] sm:$0xff]  }
 0x190   :  { %v4355_v48 = vpack.c.b16 %v4353_v40, %v4350_v39  ;;  %v4087_v23 = vrot.slane %v4080_v32, 7  ;;  %v4135_v16 = vunpack.c.l.b16 %v9980_v17  ;;  %v4136_v58 = vunpack.c.h.b16 %v9980_v17  ;;  %v7337_v17 = vld [vmem:[%s10597_s0 + $0x48] sm:$0x44]  ;;  %v7667_v25 = vpop.f32.mrb[14].mxu0  ;;  %v7339_v39 = vld [vmem:[%s10597_s0 + $0xb8] sm:$0x44] }
 0x191   :  { %v4115_v53 = vrot.slane %v4109_v42, 7  ;;  %v4117_v54 = vrot.slane %v4110_v55, 7  ;;  %v4139_v60 = vunpack.c.l.b16 %v7327_v21  ;;  %v4086_v0 = vsel %vm67_vm0, %v4085_v45, %v4075_v27  ;;  %v7668_v30 = vpop.f32.mrb[15].mxu0  ;;  %v7341_v45 = vld [vmem:[%s10597_s0 + $0x68] sm:$0x11] }
 0x192   :  { %4359 = vst.msk [vmem:[#allocation2 + $0x28] sm:$0x11] %vm8679_vm10, %v4355_v48  ;;  %v4088_v2 = vsel %vm67_vm0, %v4087_v23, %v4076_v28  ;;  %v4140_v3 = vunpack.c.h.b16 %v7327_v21  ;;  %v4165_v4 = vunpack.c.l.b16 %v7329_v29  ;;  %4686 = vmatpush1.bf16.msra.mxu1 %v8365_v38  ;;  %v4166_v12 = vunpack.c.h.b16 %v7329_v29  ;;  %v10039_v40 = vpop.f32.mrb[16].mxu0  ;;  %v7347_v25 = vld [vmem:[%s10597_s0 + $0xd8] sm:$0x22] }
 0x193   :  { %v4090_v56 = vpack.c.b16 %v4088_v2, %v4086_v0  ;;  %v4116_v6 = vsel %vm101_vm1, %v4115_v53, %v4105_v33  ;;  %v4118_v49 = vsel %vm101_vm1, %v4117_v54, %v4106_v34  ;;  %v4145_v7 = vrot.slane %v4139_v60, 7  ;;  %4687 = vmatprep.subr.bf16.mxu1 %v8516_v1  ;;  %v10046_v23 = vpop.f32.mrb[17].mxu0 }
 0x194   :  { %v4120_v9 = vpack.c.b16 %v4118_v49, %v4116_v6  ;;  %v4147_v11 = vrot.slane %v4140_v3, 7  ;;  %v4169_v13 = vunpack.c.l.b16 %v7331_v41  ;;  %v4170_v21 = vunpack.c.h.b16 %v7331_v41 }
 0x195   :  { %v8355_v46 = vld [vmem:[#allocation2] ss:$16 sps:$4 sm:$0xff]   ;;  %v8357_v18 = vld [vmem:[#allocation2 + $0x4] ss:$16 sps:$4 sm:$0xff]   ;;  %4094 = vst.msk [vmem:[#allocation2 + $0x8] sm:$0x11] %vm8679_vm10, %v4090_v56  ;;  %v4146_v20 = vsel %vm134_vm2, %v4145_v7, %v4135_v16  ;;  %v4199_v24 = vunpack.c.l.b16 %v7333_v50  ;;  %v4200_v29 = vunpack.c.h.b16 %v7333_v50  ;;  %v4203_v34 = vunpack.c.l.b16 %v7335_v15 }
 0x196   :  { %v4177_v22 = vrot.slane %v4165_v4, 2  ;;  %4124 = vst.msk [vmem:[#allocation2 + $0x8] sm:$0x22] %vm8695_vm11, %v4120_v9  ;;  %v4148_v10 = vsel %vm134_vm2, %v4147_v11, %v4136_v58  ;;  %v4178_v27 = vrot.slane %v4169_v13, 1  ;;  %v4180_v28 = vrot.slane %v4166_v12, 2  ;;  %5997 = vmatprep.mubr.bf16.mxu0 %v8357_v18  ;;  %4688 = vmatpush1.bf16.msra.mxu1 %v8366_v19  ;;  %v10054_v58 = vpop.f32.mrb[18].mxu0 }
 0x197   :  { %v4150_v32 = vpack.c.b16 %v4148_v10, %v4146_v20  ;;  %v4181_v33 = vrot.slane %v4170_v21, 1  ;;  %v4204_v38 = vunpack.c.h.b16 %v7335_v15  ;;  %5998 = vmatmul.mubr.bf16.vlgmr.msra.gmra.mrb[64].mxu0 %v8355_v46  ;;  %4689 = vmatprep.subr.bf16.mxu1 %v8516_v1  ;;  %v4211_v55 = vrot.slane %v4199_v24, 2  ;;  %v7343_v4 = vld [vmem:[%s10597_s0 + $0xd8] sm:$0x11]  ;;  %v10062_v19 = vpop.f32.mrb[19].mxu0  ;;  %v8368_v56 = vld [vmem:[#allocation4 + $0x5f8] sm:$0xff]  }
 0x198   :  { %v4179_v42 = vsel %vm170_vm3, %v4178_v27, %v4177_v22  ;;  %v4214_v41 = vrot.slane %v4200_v29, 2  ;;  %v4233_v48 = vunpack.c.l.b16 %v7337_v17  ;;  %6005 = vmatprep.mubr.bf16.mxu0 %v7505_v62  ;;  %v4212_v50 = vrot.slane %v4203_v34, 1  ;;  %v7345_v62 = vld [vmem:[%s10597_s0 + $0x68] sm:$0x22]  ;;  %v10066_v11 = vpop.f32.mrb[20].mxu0 }
 0x199   :  { %4154 = vst.msk [vmem:[#allocation2 + $0x8] sm:$0x44] %vm8708_vm12, %v4150_v32  ;;  %v4182_v16 = vsel %vm170_vm3, %v4181_v33, %v4180_v28  ;;  %v4215_v53 = vrot.slane %v4204_v38, 1  ;;  %v4234_v54 = vunpack.c.h.b16 %v7337_v17  ;;  %v4237_v0 = vunpack.c.l.b16 %v7339_v39  ;;  %v7693_v46 = vpop.f32.mrb[21].mxu0  ;;  %v6907_v24 = vld [vmem:[%s10599_s2] ss:$0 sm:$0xff] }
 0x19a   :  { %v4184_v60 = vpack.c.b16 %v4182_v16, %v4179_v42  ;;  %v4238_v2 = vunpack.c.h.b16 %v7339_v39  ;;  %v4245_v3 = vrot.slane %v4233_v48, 2  ;;  %4690 = vmatpush1.bf16.msra.mxu1 %v8367_v31  ;;  %v4213_v6 = vsel %vm67_vm0, %v4212_v50, %v4211_v55  ;;  %v7695_v10 = vpop.f32.mrb[22].mxu0  ;;  %v8369_v32 = vld [vmem:[#allocation4 + $0x600] sm:$0xff]   ;;  %v10086_v16 = vld [vmem:[#allocation2 + $0x28] sm:$0x11] }
 0x19b   :  { %v4216_v49 = vsel %vm67_vm0, %v4215_v53, %v4214_v41  ;;  %v4248_v7 = vrot.slane %v4234_v54, 2  ;;  %v4268_v9 = vunpack.c.l.b16 %v7341_v45  ;;  %4691 = vmatprep.subr.bf16.mxu1 %v8516_v1  ;;  %v4246_v13 = vrot.slane %v4237_v0, 1  ;;  %v7696_v31 = vpop.f32.mrb[23].mxu0  ;;  %v8370_v53 = vld [vmem:[#allocation4 + $0x608] sm:$0xff]  }
 0x19c   :  { %4188 = vst.msk [vmem:[#allocation2 + $0x8] sm:$0x88] %vm8715_vm13, %v4184_v60  ;;  %v4218_v12 = vpack.c.b16 %v4216_v49, %v4213_v6  ;;  %v4249_v15 = vrot.slane %v4238_v2, 1  ;;  %v4269_v17 = vunpack.c.h.b16 %v7341_v45  ;;  %v4272_v18 = vunpack.c.l.b16 %v7343_v4  ;;  %v7714_v42 = vpop.f32.mrb[24].mxu0 }
 0x19d   :  { %v4273_v20 = vunpack.c.h.b16 %v7343_v4  ;;  %v4280_v21 = vrot.slane %v4268_v9, 4  ;;  %v4302_v22 = vunpack.c.l.b16 %v7345_v62  ;;  %v4247_v27 = vsel %vm101_vm1, %v4246_v13, %v4245_v3  ;;  %v7715_v50 = vpop.f32.mrb[25].mxu0  ;;  %v7397_v13 = vld [vmem:[%s10597_s0 + $0x98] sm:$0x22] }
 0x19e   :  { %4222 = vst.msk [vmem:[#allocation2 + $0x18] sm:$0x11] %vm8679_vm10, %v4218_v12  ;;  %v4250_v28 = vsel %vm101_vm1, %v4249_v15, %v4248_v7  ;;  %v4283_v29 = vrot.slane %v4269_v17, 4  ;;  %v4303_v30 = vunpack.c.h.b16 %v7345_v62  ;;  %4692 = vmatpush1.bf16.msra.mxu1 %v8368_v56  ;;  %v4281_v34 = vrot.slane %v4272_v18, 3  ;;  %v7717_v0 = vpop.f32.mrb[26].mxu0  ;;  %v8372_v15 = vld [vmem:[#allocation4 + $0x610] sm:$0xff]  }
 0x19f   :  { %v4252_v33 = vpack.c.b16 %v4250_v28, %v4247_v27  ;;  %v4284_v38 = vrot.slane %v4273_v20, 3  ;;  %v4306_v39 = vunpack.c.l.b16 %v7347_v25  ;;  %6006 = vmatmul.mubr.bf16.gmra.mrb[68].mxu0 %v7504_v5  ;;  %4693 = vmatprep.subr.bf16.mxu1 %v8516_v1  ;;  %v4307_v55 = vunpack.c.h.b16 %v7347_v25  ;;  %v7718_v62 = vpop.f32.mrb[27].mxu0  ;;  %v7391_v56 = vld [vmem:[%s10597_s0 + $0x28] sm:$0x11] }
 0x1a0   :  { %v4314_v41 = vrot.slane %v4302_v22, 4  ;;  %v4317_v48 = vrot.slane %v4303_v30, 4  ;;  %v7983_v45 = vadd.f32 %v9774_v43, %v6907_v24  ;;  %v4282_v54 = vsel %vm134_vm2, %v4281_v34, %v4280_v21  ;;  %v7401_v34 = vld [vmem:[%s10597_s0 + $0x98] sm:$0x44] }
 0x1a1   :  { %4256 = vst.msk [vmem:[#allocation2 + $0x18] sm:$0x22] %vm8695_vm11, %v4252_v33  ;;  %v4285_v60 = vsel %vm134_vm2, %v4284_v38, %v4283_v29  ;;  %v4315_v35 = vrot.slane %v4306_v39, 3  ;;  %v7993_v5 = vadd.f32 %v9795_v59, %v6907_v24  ;;  %v4318_v3 = vrot.slane %v4307_v55, 3 }
 0x1a2   :  { %v4287_v2 = vpack.c.b16 %v4285_v60, %v4282_v54  ;;  %v7638_v43 = vadd.f32 %v9973_v14, %v9948_v57  ;;  %v7660_v4 = vadd.f32 %v10001_v47, %v9994_v36  ;;  %4694 = vmatpush1.bf16.msra.mxu1 %v8369_v32  ;;  %v7663_v59 = vadd.f32 %v10011_v61, %v10008_v52  ;;  %v10107_v14 = vpop.f32.mrb[28].mxu0  ;;  %v7393_v36 = vld [vmem:[%s10597_s0 + $0x98] sm:$0x11] }
 0x1a3   :  { %v4316_v6 = vsel %vm170_vm3, %v4315_v35, %v4314_v41  ;;  %v7666_v49 = vadd.f32 %v10021_v8, %v10017_v63  ;;  %v7688_v57 = vadd.f32 %v10046_v23, %v10039_v40  ;;  %4695 = vmatprep.subr.bf16.mxu1 %v8516_v1  ;;  %v4319_v47 = vsel %vm170_vm3, %v4318_v3, %v4317_v48  ;;  %v7395_v8 = vld [vmem:[%s10597_s0 + $0x28] sm:$0x22]  ;;  %v10121_v40 = vpop.f32.mrb[29].mxu0  ;;  %v7403_v41 = vld [vmem:[%s10597_s0 + $0x48] sm:$0x11] }
 0x1a4   :  { %4291 = vst.msk [vmem:[#allocation2 + $0x18] sm:$0x44] %vm8708_vm12, %v4287_v2  ;;  %v8003_v52 = vadd.f32 %v7638_v43, %v6907_v24  ;;  %v7984_v61 = vadd.f32 %v7983_v45, %v7660_v4  ;;  %v7691_v63 = vadd.f32 %v10062_v19, %v10054_v58  ;;  %v4321_v23 = vpack.c.b16 %v4319_v47, %v4316_v6  ;;  %v7399_v58 = vld [vmem:[%s10597_s0 + $0x28] sm:$0x44]  ;;  %v7723_v19 = vpop.f32.mrb[30].mxu0 }
 0x1a5   :  { %v7994_v7 = vadd.f32 %v7993_v5, %v7663_v59  ;;  %v7359_v9 = vcombine.high %v10086_v16, %v10086_v16  ;;  %v7694_v12 = vadd.f32 %v7693_v46, %v10066_v11  ;;  %v7358_v18 = vcombine.low %v10086_v16, %v10086_v16  ;;  %v7724_v21 = vpop.f32.mrb[31].mxu0  ;;  %v8373_v48 = vld [vmem:[#allocation4 + $0x618] sm:$0xff]   ;;  %v7405_v60 = vld [vmem:[%s10597_s0 + $0xb8] sm:$0x11]  ;;  %v7409_v6 = vld [vmem:[%s10597_s0 + $0xb8] sm:$0x22] }
 0x1a6   :  { %v8004_v17 = vadd.f32 %v8003_v52, %v7666_v49  ;;  %v7985_v25 = vadd.f32 %v7984_v61, %v7688_v57  ;;  %v7716_v20 = vadd.f32 %v7715_v50, %v7714_v42  ;;  %4696 = vmatpush1.bf16.msra.mxu1 %v8370_v53  ;;  %4325 = vst.msk [vmem:[#allocation2 + $0x18] sm:$0x88] %vm8715_vm13, %v4321_v23  ;;  %v4738_v22 = vunpack.c.l.b16 %v7391_v56  ;;  %v8377_v61 = vld [vmem:[#allocation4 + $0x6a0] sm:$0xff]   ;;  %v7467_v16 = vld [vmem:[%s10597_s0 + $0x98] sm:$0x22] }
 0x1a7   :  { %v7995_v11 = vadd.f32 %v7994_v7, %v7691_v63  ;;  %v7719_v46 = vadd.f32 %v7718_v62, %v7717_v0  ;;  %v4739_v24 = vunpack.c.h.b16 %v7391_v56  ;;  %4697 = vmatprep.subr.bf16.mxu1 %v8516_v1  ;;  %v4742_v28 = vunpack.c.l.b16 %v7393_v36  ;;  %v7407_v56 = vld [vmem:[%s10597_s0 + $0x48] sm:$0x22] }
 0x1a8   :  { %v10137_v10 = vadd.f32 %v8004_v17, %v7694_v12  ;;  %v10139_v27 = vadd.f32 %v7985_v25, %v7716_v20  ;;  %v4743_v29 = vunpack.c.h.b16 %v7393_v36  ;;  %v4748_v31 = vrot.slane %v4738_v22, 1  ;;  %v7411_v12 = vld [vmem:[%s10597_s0 + $0x48] sm:$0x44] }
 0x1a9   :  { %v10141_v30 = vadd.f32 %v7995_v11, %v7719_v46  ;;  %v4750_v32 = vrot.slane %v4739_v24, 1  ;;  %v4768_v33 = vunpack.c.l.b16 %v7395_v8  ;;  %v4769_v38 = vunpack.c.h.b16 %v7395_v8  ;;  %v7413_v11 = vld [vmem:[%s10597_s0 + $0xb8] sm:$0x44] }
 0x1aa   :  { %v4772_v39 = vunpack.c.l.b16 %v7397_v13  ;;  %v4773_v42 = vunpack.c.h.b16 %v7397_v13  ;;  %v4798_v55 = vunpack.c.l.b16 %v7399_v58  ;;  %4698 = vmatpush1.bf16.msra.mxu1 %v8372_v15  ;;  %v4749_v45 = vsel %vm67_vm0, %v4742_v28, %v4748_v31  ;;  %v8378_v31 = vld [vmem:[#allocation4 + $0x6a8] sm:$0xff]  }
 0x1ab   :  { %v4751_v50 = vsel %vm67_vm0, %v4743_v29, %v4750_v32  ;;  %v4778_v53 = vrot.slane %v4768_v33, 1  ;;  %v4799_v54 = vunpack.c.h.b16 %v7399_v58  ;;  %4699 = vmatprep.subr.bf16.mxu1 %v8516_v1  ;;  %v4780_v5 = vrot.slane %v4769_v38, 1  ;;  %v7415_v29 = vld [vmem:[%s10597_s0 + $0x68] sm:$0x11] }
 0x1ac   :  { %v4753_v35 = vpack.c.b16 %v4751_v50, %v4749_v45  ;;  %v4802_v0 = vunpack.c.l.b16 %v7401_v34  ;;  %v4803_v2 = vunpack.c.h.b16 %v7401_v34  ;;  %v4808_v43 = vrot.slane %v4798_v55, 1  ;;  %v7419_v45 = vld [vmem:[%s10597_s0 + $0x68] sm:$0x22]  ;;  %v8379_v50 = vld [vmem:[#allocation4 + $0x6b0] sm:$0xff]  }
 0x1ad   :  { %v4779_v3 = vsel %vm101_vm1, %v4772_v39, %v4778_v53  ;;  %v4810_v4 = vrot.slane %v4799_v54, 1  ;;  %v4828_v62 = vunpack.c.l.b16 %v7403_v41  ;;  %v8374_v59 = vld [vmem:[#allocation2 + $0xc] ss:$16 sps:$4 sm:$0xff]   ;;  %v8376_v49 = vld [vmem:[#allocation2 + $0x8] ss:$16 sps:$4 sm:$0xff]   ;;  %v4781_v57 = vsel %vm101_vm1, %v4773_v42, %v4780_v5 }
 0x1ae   :  { %v4829_v36 = vunpack.c.h.b16 %v7403_v41  ;;  %v4832_v47 = vunpack.c.l.b16 %v7405_v60  ;;  %v4833_v52 = vunpack.c.h.b16 %v7405_v60  ;;  %4700 = vmatpush1.bf16.msra.mxu1 %v8373_v48  ;;  %4757 = vst.msk [vmem:[#allocation2 + $0x8] sm:$0x11] %vm8679_vm10, %v4753_v35  ;;  %v4783_v63 = vpack.c.b16 %v4781_v57, %v4779_v3  ;;  %7388 = vmatprep.mubr.msk.bf16.mxu1 %vm622_vm14, %v8374_v59  ;;  %v7417_v39 = vld [vmem:[%s10597_s0 + $0xd8] sm:$0x11]  ;;  %v7421_v35 = vld [vmem:[%s10597_s0 + $0xd8] sm:$0x22] }
 0x1af   :  { %v4809_v8 = vsel %vm134_vm2, %v4802_v0, %v4808_v43  ;;  %v4811_v23 = vsel %vm134_vm2, %v4803_v2, %v4810_v4  ;;  %v4840_v7 = vrot.slane %v4828_v62, 3  ;;  %5339 = vmatprep.subr.bf16.mxu1 %v8516_v1  ;;  %v4862_v17 = vunpack.c.l.b16 %v7407_v56  ;;  %v7423_v43 = vld [vmem:[%s10597_s0 + $0x68] sm:$0x44] }
 0x1b0   :  { %v4813_v13 = vpack.c.b16 %v4811_v23, %v4809_v8  ;;  %v4841_v58 = vrot.slane %v4832_v47, 2  ;;  %v4843_v19 = vrot.slane %v4829_v36, 3  ;;  %v4844_v15 = vrot.slane %v4833_v52, 2  ;;  %4787 = vst.msk [vmem:[#allocation2 + $0x8] sm:$0x22] %vm8695_vm11, %v4783_v63 }
 0x1b1   :  { %v4863_v25 = vunpack.c.h.b16 %v7407_v56  ;;  %v4866_v20 = vunpack.c.l.b16 %v7409_v6  ;;  %v4867_v21 = vunpack.c.h.b16 %v7409_v6  ;;  %4710 = vmatmul.mubr.bf16.vlgmr.msra.gmra.mrb[0].mxu1 %v8376_v49  ;;  %v4896_v24 = vunpack.c.l.b16 %v7411_v12  ;;  %v7425_v47 = vld [vmem:[%s10597_s0 + $0xd8] sm:$0x44]  ;;  %v7465_v23 = vld [vmem:[%s10597_s0 + $0x28] sm:$0x22] }
 0x1b2   :  { %4817 = vst.msk [vmem:[#allocation2 + $0x8] sm:$0x44] %vm8708_vm12, %v4813_v13  ;;  %v4842_v46 = vsel %vm170_vm3, %v4841_v58, %v4840_v7  ;;  %v4845_v22 = vsel %vm170_vm3, %v4844_v15, %v4843_v19  ;;  %v4897_v28 = vunpack.c.h.b16 %v7411_v12  ;;  %5340 = vmatpush1.bf16.msra.mxu1 %v8377_v61  ;;  %7389 = vmatprep.mubr.msk.bf16.mxu1 %vm622_vm14, %v7359_v9  ;;  %v4874_v33 = vrot.slane %v4862_v17, 3  ;;  %v8380_v7 = vld [vmem:[#allocation4 + $0x6b8] sm:$0xff]  }
 0x1b3   :  { %v4847_v32 = vpack.c.b16 %v4845_v22, %v4842_v46  ;;  %v4875_v34 = vrot.slane %v4866_v20, 2  ;;  %v4877_v38 = vrot.slane %v4863_v25, 3  ;;  %5341 = vmatprep.subr.bf16.mxu1 %v8516_v1  ;;  %v4878_v42 = vrot.slane %v4867_v21, 2 }
 0x1b4   :  { %v4900_v55 = vunpack.c.l.b16 %v7413_v11  ;;  %v4901_v41 = vunpack.c.h.b16 %v7413_v11  ;;  %v4908_v48 = vrot.slane %v4896_v24, 3  ;;  %v4911_v53 = vrot.slane %v4897_v28, 3 }
 0x1b5   :  { %4851 = vst.msk [vmem:[#allocation2 + $0x8] sm:$0x88] %vm8715_vm13, %v4847_v32  ;;  %v4876_v9 = vsel %vm67_vm0, %v4875_v34, %v4874_v33  ;;  %v4930_v54 = vunpack.c.l.b16 %v7415_v29  ;;  %v4931_v60 = vunpack.c.h.b16 %v7415_v29  ;;  %v4879_v5 = vsel %vm67_vm0, %v4878_v42, %v4877_v38  ;;  %v7469_v29 = vld [vmem:[%s10597_s0 + $0x28] sm:$0x44]  ;;  %v7471_v38 = vld [vmem:[%s10597_s0 + $0x98] sm:$0x44] }
 0x1b6   :  { %v4909_v0 = vrot.slane %v4900_v55, 2  ;;  %v4912_v2 = vrot.slane %v4901_v41, 2  ;;  %v4934_v3 = vunpack.c.l.b16 %v7417_v39  ;;  %5342 = vmatpush1.bf16.msra.mxu1 %v8378_v31  ;;  %v4881_v4 = vpack.c.b16 %v4879_v5, %v4876_v9  ;;  %v8382_v5 = vld [vmem:[#allocation4 + $0x6c8] sm:$0xff]  }
 0x1b7   :  { %v4935_v62 = vunpack.c.h.b16 %v7417_v39  ;;  %v4942_v56 = vrot.slane %v4930_v54, 5  ;;  %v4945_v6 = vrot.slane %v4931_v60, 5  ;;  %5343 = vmatprep.subr.bf16.mxu1 %v8516_v1  ;;  %v4964_v36 = vunpack.c.l.b16 %v7419_v45  ;;  %v8381_v39 = vld [vmem:[#allocation4 + $0x6c0] sm:$0xff]  }
 0x1b8   :  { %v4910_v59 = vsel %vm101_vm1, %v4909_v0, %v4908_v48  ;;  %v4913_v49 = vsel %vm101_vm1, %v4912_v2, %v4911_v53  ;;  %v4943_v57 = vrot.slane %v4934_v3, 4  ;;  %4885 = vst.msk [vmem:[#allocation2 + $0x18] sm:$0x11] %vm8679_vm10, %v4881_v4  ;;  %v4965_v63 = vunpack.c.h.b16 %v7419_v45  ;;  %v7475_v4 = vld [vmem:[%s10597_s0 + $0x98] sm:$0x88] }
 0x1b9   :  { %v4915_v52 = vpack.c.b16 %v4913_v49, %v4910_v59  ;;  %v4946_v61 = vrot.slane %v4935_v62, 4  ;;  %v4968_v8 = vunpack.c.l.b16 %v7421_v35  ;;  %4718 = vmatmul.mubr.bf16.gmra.mrb[4].mxu1 %v7358_v18  ;;  %v4969_v13 = vunpack.c.h.b16 %v7421_v35  ;;  %v7477_v49 = vld [vmem:[%s10597_s0 + $0x48] sm:$0x22] }
 0x1ba   :  { %v4944_v12 = vsel %vm134_vm2, %v4943_v57, %v4942_v56  ;;  %v4976_v58 = vrot.slane %v4964_v36, 5  ;;  %v7722_v19 = vadd.f32 %v10121_v40, %v10107_v14  ;;  %5344 = vmatpush1.bf16.msra.mxu1 %v8379_v50  ;;  %v4979_v25 = vrot.slane %v4965_v63, 5  ;;  %v7473_v50 = vld [vmem:[%s10597_s0 + $0x28] sm:$0x88] }
 0x1bb   :  { %4919 = vst.msk [vmem:[#allocation2 + $0x18] sm:$0x22] %vm8695_vm11, %v4915_v52  ;;  %v4947_v15 = vsel %vm134_vm2, %v4946_v61, %v4945_v6  ;;  %v4977_v17 = vrot.slane %v4968_v8, 4  ;;  %v4998_v20 = vunpack.c.l.b16 %v7423_v43  ;;  %5345 = vmatprep.subr.bf16.mxu1 %v8516_v1  ;;  %v4980_v21 = vrot.slane %v4969_v13, 4  ;;  %v7479_v52 = vld [vmem:[%s10597_s0 + $0xb8] sm:$0x22] }
 0x1bc   :  { %v4949_v18 = vpack.c.b16 %v4947_v15, %v4944_v12  ;;  %v10230_v11 = vadd.f32 %v10137_v10, %v7722_v19  ;;  %v4999_v14 = vunpack.c.h.b16 %v7423_v43  ;;  %v5002_v22 = vunpack.c.l.b16 %v7425_v47 }
 0x1bd   :  { %v4978_v40 = vsel %vm170_vm3, %v4977_v17, %v4976_v58  ;;  %v5003_v24 = vunpack.c.h.b16 %v7425_v47  ;;  %v5010_v28 = vrot.slane %v4998_v20, 5  ;;  %v4981_v31 = vsel %vm170_vm3, %v4980_v21, %v4979_v25 }
 0x1be   :  { %4953 = vst.msk [vmem:[#allocation2 + $0x18] sm:$0x44] %vm8708_vm12, %v4949_v18  ;;  %v5013_v33 = vrot.slane %v4999_v14, 5  ;;  %v5400_v10 = vunpack.c.l.b16 %v7465_v23  ;;  %v5401_v34 = vunpack.c.h.b16 %v7465_v23  ;;  %5346 = vmatpush1.bf16.msra.mxu1 %v8380_v7  ;;  %v4983_v42 = vpack.c.b16 %v4981_v31, %v4978_v40  ;;  %v8383_v18 = vld [vmem:[#allocation4 + $0x6d0] sm:$0xff]  }
 0x1bf   :  { %v7742_v46 = vpop.f32.mrb[32].mxu0  ;;  %v5011_v48 = vrot.slane %v5002_v22, 4  ;;  %v5014_v45 = vrot.slane %v5003_v24, 4  ;;  %5347 = vmatprep.subr.bf16.mxu1 %v8516_v1  ;;  %v5404_v53 = vunpack.c.l.b16 %v7467_v16  ;;  %v5405_v54 = vunpack.c.h.b16 %v7467_v16  ;;  %v7481_v16 = vld [vmem:[%s10597_s0 + $0x48] sm:$0x44] }
 0x1c0   :  { %v7743_v32 = vpop.f32.mrb[33].mxu0  ;;  %v5412_v60 = vrot.slane %v5400_v10, 2  ;;  %v5415_v35 = vrot.slane %v5401_v34, 2  ;;  %4987 = vst.msk [vmem:[#allocation2 + $0x18] sm:$0x88] %vm8715_vm13, %v4983_v42  ;;  %v5434_v59 = vunpack.c.l.b16 %v7469_v29  ;;  %v5435_v57 = vunpack.c.h.b16 %v7469_v29  ;;  %v8384_v34 = vld [vmem:[#allocation4 + $0x6d8] sm:$0xff]  }
 0x1c1   :  { %v7744_v55 = vadd.f32 %v7743_v32, %v7742_v46  ;;  %v7745_v41 = vpop.f32.mrb[34].mxu0  ;;  %v5012_v3 = vsel %vm67_vm0, %v5011_v48, %v5010_v28  ;;  %v5015_v43 = vsel %vm67_vm0, %v5014_v45, %v5013_v33  ;;  %v5413_v56 = vrot.slane %v5404_v53, 1  ;;  %v7483_v10 = vld [vmem:[%s10597_s0 + $0xb8] sm:$0x44] }
 0x1c2   :  { %v7746_v9 = vpop.f32.mrb[35].mxu0  ;;  %v5017_v62 = vpack.c.b16 %v5015_v43, %v5012_v3  ;;  %v5416_v6 = vrot.slane %v5405_v54, 1  ;;  %5348 = vmatpush1.bf16.msra.mxu1 %v8381_v39  ;;  %v5438_v36 = vunpack.c.l.b16 %v7471_v38  ;;  %v5439_v47 = vunpack.c.h.b16 %v7471_v38 }
 0x1c3   :  { %v10249_v0 = vadd.f32 %v10139_v27, %v7744_v55  ;;  %v7747_v2 = vadd.f32 %v7746_v9, %v7745_v41  ;;  %5349 = vmatprep.subr.bf16.mxu1 %v8516_v1  ;;  %v5414_v61 = vsel %vm67_vm0, %v5413_v56, %v5412_v60  ;;  %v5446_v8 = vrot.slane %v5434_v59, 2  ;;  %v7485_v41 = vld [vmem:[%s10597_s0 + $0x48] sm:$0x88]  ;;  %v7487_v9 = vld [vmem:[%s10597_s0 + $0xb8] sm:$0x88]  ;;  %v8385_v59 = vld [vmem:[#allocation4 + $0x6e0] sm:$0xff]  }
 0x1c4   :  { %5021 = vst.msk [vmem:[#allocation2 + $0x28] sm:$0x11] %vm8679_vm10, %v5017_v62  ;;  %v5417_v63 = vsel %vm67_vm0, %v5416_v6, %v5415_v35  ;;  %v5468_v23 = vunpack.c.l.b16 %v7473_v50  ;;  %v5447_v12 = vrot.slane %v5438_v36, 1  ;;  %v5449_v13 = vrot.slane %v5435_v57, 2  ;;  %v7491_v6 = vld [vmem:[%s10597_s0 + $0xd8] sm:$0x22] }
 0x1c5   :  { %v10260_v27 = vadd.f32 %v10141_v30, %v7747_v2  ;;  %v5419_v7 = vpack.c.b16 %v5417_v63, %v5414_v61  ;;  %v5450_v58 = vrot.slane %v5439_v47, 1  ;;  %v5469_v15 = vunpack.c.h.b16 %v7473_v50 }
 0x1c6   :  { %v5472_v17 = vunpack.c.l.b16 %v7475_v4  ;;  %v5473_v25 = vunpack.c.h.b16 %v7475_v4  ;;  %v5480_v20 = vrot.slane %v5468_v23, 2  ;;  %5350 = vmatpush1.bf16.msra.mxu1 %v8382_v5  ;;  %v5448_v40 = vsel %vm101_vm1, %v5447_v12, %v5446_v8  ;;  %v7489_v5 = vld [vmem:[%s10597_s0 + $0x68] sm:$0x22] }
 0x1c7   :  { %v7748_v30 = vpop.f32.mrb[36].mxu0  ;;  %v5451_v46 = vsel %vm101_vm1, %v5450_v58, %v5449_v13  ;;  %v5502_v22 = vunpack.c.l.b16 %v7477_v49  ;;  %5351 = vmatprep.subr.bf16.mxu1 %v8516_v1  ;;  %v8391_v24 = vld [vmem:[#allocation2 + $0xc] ss:$16 sps:$4 sm:$0xff]   ;;  %v5503_v31 = vunpack.c.h.b16 %v7477_v49  ;;  %v5506_v32 = vunpack.c.l.b16 %v7479_v52 }
 0x1c8   :  { %v7749_v19 = vpop.f32.mrb[37].mxu0  ;;  %v5453_v29 = vpack.c.b16 %v5451_v46, %v5448_v40  ;;  %v5507_v33 = vunpack.c.h.b16 %v7479_v52  ;;  %5423 = vst.msk [vmem:[#allocation2 + $0x8] sm:$0x11] %vm8679_vm10, %v5419_v7  ;;  %v5481_v39 = vrot.slane %v5472_v17, 1  ;;  %v5483_v42 = vrot.slane %v5469_v15, 2  ;;  %7462 = vmatprep.mubr.msk.bf16.mxu1 %vm622_vm14, %v8391_v24  ;;  %v8386_v46 = vld [vmem:[#allocation4 + $0x6e8] sm:$0xff]  }
 0x1c9   :  { %v7750_v21 = vadd.f32 %v7749_v19, %v7748_v30  ;;  %v7751_v14 = vpop.f32.mrb[38].mxu0  ;;  %v5484_v55 = vrot.slane %v5473_v25, 1  ;;  %v5514_v48 = vrot.slane %v5502_v22, 4  ;;  %v5515_v45 = vrot.slane %v5506_v32, 3  ;;  %v7493_v52 = vld [vmem:[%s10597_s0 + $0x68] sm:$0x44] }
 0x1ca   :  { %v7752_v28 = vpop.f32.mrb[39].mxu0  ;;  %5457 = vst.msk [vmem:[#allocation2 + $0x8] sm:$0x22] %vm8695_vm11, %v5453_v29  ;;  %v5517_v50 = vrot.slane %v5503_v31, 4  ;;  %5352 = vmatpush1.bf16.msra.mxu1 %v8383_v18  ;;  %v5482_v53 = vsel %vm134_vm2, %v5481_v39, %v5480_v20  ;;  %v5536_v60 = vunpack.c.l.b16 %v7481_v16  ;;  %v5537_v35 = vunpack.c.h.b16 %v7481_v16  ;;  %v7495_v58 = vld [vmem:[%s10597_s0 + $0xd8] sm:$0x44] }
 0x1cb   :  { %v10280_v38 = vadd.f32 %v10230_v11, %v7750_v21  ;;  %v5518_v11 = vrot.slane %v5507_v33, 3  ;;  %v5485_v54 = vsel %vm134_vm2, %v5484_v55, %v5483_v42  ;;  %5353 = vmatprep.subr.bf16.mxu1 %v8516_v1  ;;  %v5516_v3 = vsel %vm170_vm3, %v5515_v45, %v5514_v48  ;;  %v7497_v19 = vld [vmem:[%s10597_s0 + $0x68] sm:$0x88]  ;;  %v7499_v40 = vld [vmem:[%s10597_s0 + $0xd8] sm:$0x88] }
 0x1cc   :  { %v5487_v2 = vpack.c.b16 %v5485_v54, %v5482_v53  ;;  %v5540_v4 = vunpack.c.l.b16 %v7483_v10  ;;  %v5541_v62 = vunpack.c.h.b16 %v7483_v10  ;;  %v5548_v56 = vrot.slane %v5536_v60, 4 }
 0x1cd   :  { %v5519_v43 = vsel %vm170_vm3, %v5518_v11, %v5517_v50  ;;  %v5551_v57 = vrot.slane %v5537_v35, 4  ;;  %v5570_v36 = vunpack.c.l.b16 %v7485_v41  ;;  %v5571_v47 = vunpack.c.h.b16 %v7485_v41  ;;  %v8389_v11 = vld [vmem:[#allocation4 + $0x6f0] sm:$0xff]  }
 0x1ce   :  { %5491 = vst.msk [vmem:[#allocation2 + $0x8] sm:$0x44] %vm8708_vm12, %v5487_v2  ;;  %v5521_v49 = vpack.c.b16 %v5519_v43, %v5516_v3  ;;  %5354 = vmatpush1.bf16.msra.mxu1 %v8384_v34  ;;  %v5549_v61 = vrot.slane %v5540_v4, 3  ;;  %v5552_v63 = vrot.slane %v5541_v62, 3  ;;  %v5574_v8 = vunpack.c.l.b16 %v7487_v9  ;;  %v8390_v4 = vld [vmem:[#allocation4 + $0x6f8] sm:$0xff]  }
 0x1cf   :  { %v5575_v23 = vunpack.c.h.b16 %v7487_v9  ;;  %5355 = vmatprep.subr.bf16.mxu1 %v8516_v1  ;;  %v5582_v30 = vrot.slane %v5570_v36, 4  ;;  %v5585_v7 = vrot.slane %v5571_v47, 4  ;;  %v5604_v12 = vunpack.c.l.b16 %v7489_v5  ;;  %v5027_v62 = vld [vmem:[#allocation2 + $0x28] sm:$0x11] }
 0x1d0   :  { %5525 = vst.msk [vmem:[#allocation2 + $0x8] sm:$0x88] %vm8715_vm13, %v5521_v49  ;;  %v5605_v13 = vunpack.c.h.b16 %v7489_v5  ;;  %v5550_v15 = vsel %vm67_vm0, %v5549_v61, %v5548_v56  ;;  %v5553_v17 = vsel %vm67_vm0, %v5552_v63, %v5551_v57  ;;  %v5583_v25 = vrot.slane %v5574_v8, 3  ;;  %v8394_v57 = vld [vmem:[#allocation4 + $0x780] sm:$0xff]   ;;  %v8397_v8 = vld [vmem:[#allocation4 + $0x798] sm:$0xff]  }
 0x1d1   :  { %v5586_v20 = vrot.slane %v5575_v23, 3  ;;  %v5555_v16 = vpack.c.b16 %v5553_v17, %v5550_v15  ;;  %v5608_v18 = vunpack.c.l.b16 %v7491_v6  ;;  %v5609_v21 = vunpack.c.h.b16 %v7491_v6 }
 0x1d2   :  { %v5616_v14 = vrot.slane %v5604_v12, 6  ;;  %5356 = vmatpush1.bf16.msra.mxu1 %v8385_v59  ;;  %v5584_v22 = vsel %vm101_vm1, %v5583_v25, %v5582_v30  ;;  %v5619_v28 = vrot.slane %v5605_v13, 6  ;;  %v5638_v29 = vunpack.c.l.b16 %v7493_v52  ;;  %v8399_v13 = vld [vmem:[#allocation4 + $0x7a8] sm:$0xff]  }
 0x1d3   :  { %v5587_v24 = vsel %vm101_vm1, %v5586_v20, %v5585_v7  ;;  %5357 = vmatprep.subr.bf16.mxu1 %v8516_v1  ;;  %5559 = vst.msk [vmem:[#allocation2 + $0x18] sm:$0x11] %vm8679_vm10, %v5555_v16  ;;  %v5617_v32 = vrot.slane %v5608_v18, 5  ;;  %v5620_v33 = vrot.slane %v5609_v21, 5  ;;  %v5639_v10 = vunpack.c.h.b16 %v7493_v52  ;;  %v8395_v52 = vld [vmem:[#allocation4 + $0x788] sm:$0xff]   ;;  %v8415_v16 = vld [vmem:[%s10600_s3 + $0x48] sm:$0xff]  }
 0x1d4   :  { %v5589_v31 = vpack.c.b16 %v5587_v24, %v5584_v22  ;;  %v5642_v34 = vunpack.c.l.b16 %v7495_v58  ;;  %v5643_v39 = vunpack.c.h.b16 %v7495_v58  ;;  %v5650_v42 = vrot.slane %v5638_v29, 6  ;;  %v8413_v25 = vld [vmem:[%s10600_s3 + $0x40] sm:$0xff]   ;;  %v8401_v24 = vld [vmem:[#allocation4 + $0x7b8] sm:$0xff]  }
 0x1d5   :  { %v5672_v55 = vunpack.c.l.b16 %v7497_v19  ;;  %v5618_v41 = vsel %vm134_vm2, %v5617_v32, %v5616_v14  ;;  %v5621_v48 = vsel %vm134_vm2, %v5620_v33, %v5619_v28  ;;  %v5653_v45 = vrot.slane %v5639_v10, 6  ;;  %v8414_v20 = vld [vmem:[%s10600_s3] sm:$0xff]   ;;  %7866 = vmatprep.subr.bf16.mxu0 %v8413_v25  ;;  %v8418_v29 = vld [vmem:[%s10600_s3 + $0x10] sm:$0xff]  }
 0x1d6   :  { %5593 = vst.msk [vmem:[#allocation2 + $0x18] sm:$0x22] %vm8695_vm11, %v5589_v31  ;;  %v5673_v50 = vunpack.c.h.b16 %v7497_v19  ;;  %5358 = vmatpush1.bf16.msra.mxu1 %v8386_v46  ;;  %v5623_v9 = vpack.c.b16 %v5621_v48, %v5618_v41  ;;  %v5651_v53 = vrot.slane %v5642_v34, 5  ;;  %v5654_v54 = vrot.slane %v5643_v39, 5  ;;  %v8400_v18 = vld [vmem:[#allocation4 + $0x7b0] sm:$0xff]   ;;  %7867 = vmatpush3.bf16.msra.mxu0 %v8414_v20  ;;  %v8417_v46 = vld [vmem:[%s10600_s3 + $0x50] sm:$0xff]  }
 0x1d7   :  { %v5676_v60 = vunpack.c.l.b16 %v7499_v40  ;;  %5359 = vmatprep.subr.bf16.mxu1 %v8516_v1  ;;  %v5677_v35 = vunpack.c.h.b16 %v7499_v40  ;;  %v5684_v5 = vrot.slane %v5672_v55, 6  ;;  %v7433_v47 = vcombine.high %v5027_v62, %v5027_v62  ;;  %7868 = vmatprep.subr.bf16.mxu0 %v8415_v16  ;;  %v8419_v31 = vld [vmem:[%s10600_s3 + $0x58] sm:$0xff]   ;;  %v8421_v33 = vld [vmem:[%s10600_s3 + $0x60] sm:$0xff]   ;;  %v8423_v39 = vld [vmem:[%s10600_s3 + $0x68] sm:$0xff]  }
 0x1d8   :  { %v5687_v2 = vrot.slane %v5673_v50, 6  ;;  %5627 = vst.msk [vmem:[#allocation2 + $0x18] sm:$0x44] %vm8708_vm12, %v5623_v9  ;;  %v5652_v37 = vsel %vm170_vm3, %v5651_v53, %v5650_v42  ;;  %v5655_v3 = vsel %vm170_vm3, %v5654_v54, %v5653_v45  ;;  %v7432_v61 = vcombine.low %v5027_v62, %v5027_v62  ;;  %v8402_v32 = vld [vmem:[#allocation4 + $0x7c0] sm:$0xff]   ;;  %v8403_v10 = vld [vmem:[#allocation4 + $0x7c8] sm:$0xff]   ;;  %v8406_v42 = vld [vmem:[#allocation4 + $0x7d0] sm:$0xff]  }
 0x1d9   :  { %v5685_v43 = vrot.slane %v5676_v60, 5  ;;  %v5657_v56 = vpack.c.b16 %v5655_v3, %v5652_v37  ;;  %v5688_v6 = vrot.slane %v5677_v35, 5  ;;  %v8422_v34 = vld [vmem:[%s10600_s3 + $0x20] sm:$0xff]   ;;  %v8424_v55 = vld [vmem:[%s10600_s3 + $0x28] sm:$0xff]   ;;  %vm6900_vm1 = vcmask 1024  }
 0x1da   :  { %5360 = vmatpush1.bf16.msra.mxu1 %v8389_v11  ;;  %v8407_v41 = vld [vmem:[#allocation4 + $0x7d8] sm:$0xff]  }
 0x1db   :  { %v5686_v59 = vsel %vm67_vm0, %v5685_v43, %v5684_v5  ;;  %5361 = vmatprep.subr.bf16.mxu1 %v8516_v1  ;;  %v5689_v44 = vsel %vm67_vm0, %v5688_v6, %v5687_v2  ;;  %vm6882_vm0 = vcmask 254976  }
 0x1dc   :  { %v5691_v36 = vpack.c.b16 %v5689_v44, %v5686_v59 }
 0x1de   :  { %5362 = vmatpush1.bf16.msra.mxu1 %v8390_v4  ;;  %5695 = vst.msk [vmem:[#allocation2 + $0x28] sm:$0x11] %vm8679_vm10, %v5691_v36 }
 0x1df   :  { %v8393_v49 = vld [vmem:[#allocation2 + $0x8] ss:$16 sps:$4 sm:$0xff]   ;;  %6013 = vmatprep.subr.bf16.mxu1 %v8516_v1 }
 0x1e0   :  { %5661 = vst.msk [vmem:[#allocation2 + $0x18] sm:$0x88] %vm8715_vm13, %v5657_v56 }
 0x1e1   :  { %5372 = vmatmul.mubr.bf16.vlgmr.msra.gmra.mrb[0].mxu1 %v8393_v49 }
 0x1e2   :  { %6014 = vmatpush1.bf16.msra.mxu1 %v8394_v57  ;;  %7463 = vmatprep.mubr.msk.bf16.mxu1 %vm622_vm14, %v7433_v47 }
 0x1e3   :  { %6015 = vmatprep.subr.bf16.mxu1 %v8516_v1 }
 0x1e5   :  { %v5701_v48 = vld [vmem:[#allocation2 + $0x28] sm:$0x11] }
 0x1e6   :  { %6016 = vmatpush1.bf16.msra.mxu1 %v8395_v52  ;;  %v7507_v11 = vcombine.high %v5701_v48, %v5701_v48  ;;  %v7506_v37 = vcombine.low %v5701_v48, %v5701_v48  ;;  %v8431_v48 = vld [vmem:[%s10600_s3 + $0xc8] sm:$0xff]  }
 0x1e7   :  { %v8410_v63 = vld [vmem:[#allocation2 + $0xc] ss:$16 sps:$4 sm:$0xff]   ;;  %6017 = vmatprep.subr.bf16.mxu1 %v8516_v1  ;;  %v8408_v45 = vld [vmem:[#allocation2 + $0x8] ss:$16 sps:$4 sm:$0xff]  }
 0x1e9   :  { %5380 = vmatmul.mubr.bf16.gmra.mrb[4].mxu1 %v7432_v61 }
 0x1ea   :  { %6018 = vmatpush1.bf16.msra.mxu1 %v8396_v51  ;;  %7536 = vmatprep.mubr.msk.bf16.mxu1 %vm622_vm14, %v8410_v63 }
 0x1eb   :  { %6019 = vmatprep.subr.bf16.mxu1 %v8516_v1 }
 0x1ee   :  { %6020 = vmatpush1.bf16.msra.mxu1 %v8397_v8 }
 0x1ef   :  { %6021 = vmatprep.subr.bf16.mxu1 %v8516_v1 }
 0x1f0   :  { %v7770_v23 = vpop.f32.mrb[40].mxu0 }
 0x1f1   :  { %v7771_v30 = vpop.f32.mrb[41].mxu0 }
 0x1f2   :  { %v7772_v7 = vadd.f32 %v7771_v30, %v7770_v23  ;;  %v7773_v12 = vpop.f32.mrb[42].mxu0  ;;  %6022 = vmatpush1.bf16.msra.mxu1 %v8398_v26  ;;  %v8425_v30 = vld [vmem:[%s10600_s3 + $0x70] sm:$0xff]  }
 0x1f3   :  { %v7774_v58 = vpop.f32.mrb[43].mxu0  ;;  %6023 = vmatprep.subr.bf16.mxu1 %v8516_v1 }
 0x1f4   :  { %v7988_v19 = vadd.f32 %v10249_v0, %v7772_v7  ;;  %v7775_v15 = vadd.f32 %v7774_v58, %v7773_v12  ;;  %v8426_v7 = vld [vmem:[%s10600_s3 + $0x30] sm:$0xff]   ;;  %v8427_v12 = vld [vmem:[%s10600_s3 + $0x78] sm:$0xff]  }
 0x1f6   :  { %v7998_v17 = vadd.f32 %v10260_v27, %v7775_v15  ;;  %6024 = vmatpush1.bf16.msra.mxu1 %v8399_v13  ;;  %v8416_v27 = vld [vmem:[%s10600_s3 + $0x8] sm:$0xff]  }
 0x1f7   :  { %6025 = vmatprep.subr.bf16.mxu1 %v8516_v1  ;;  %7869 = vmatpush3.bf16.msra.mxu0 %v8416_v27 }
 0x1f8   :  { %v7776_v0 = vpop.f32.mrb[44].mxu0  ;;  %7870 = vmatprep.subr.bf16.mxu0 %v8417_v46 }
 0x1f9   :  { %v7777_v21 = vpop.f32.mrb[45].mxu0 }
 0x1fa   :  { %v7778_v14 = vadd.f32 %v7777_v21, %v7776_v0  ;;  %v7779_v40 = vpop.f32.mrb[46].mxu0  ;;  %6026 = vmatpush1.bf16.msra.mxu1 %v8400_v18  ;;  %v8429_v0 = vld [vmem:[%s10600_s3 + $0xc0] sm:$0xff]  }
 0x1fb   :  { %v7780_v22 = vpop.f32.mrb[47].mxu0  ;;  %6027 = vmatprep.subr.bf16.mxu1 %v8516_v1  ;;  %7871 = vmatpush3.bf16.msra.mxu0 %v8418_v29 }
 0x1fc   :  { %v8008_v28 = vadd.f32 %v10280_v38, %v7778_v14  ;;  %v8420_v38 = vld [vmem:[%s10600_s3 + $0x18] sm:$0xff]   ;;  %7872 = vmatprep.subr.bf16.mxu0 %v8419_v31 }
 0x1fe   :  { %6028 = vmatpush1.bf16.msra.mxu1 %v8401_v24 }
 0x1ff   :  { %6029 = vmatprep.subr.bf16.mxu1 %v8516_v1  ;;  %7873 = vmatpush3.bf16.msra.mxu0 %v8420_v38 }
 0x200   :  { %7874 = vmatprep.subr.bf16.mxu0 %v8421_v33 }
 0x202   :  { %6030 = vmatpush1.bf16.msra.mxu1 %v8402_v32 }
 0x203   :  { %6031 = vmatprep.subr.bf16.mxu1 %v8516_v1  ;;  %7875 = vmatpush3.bf16.msra.mxu0 %v8422_v34 }
 0x204   :  { %7876 = vmatprep.subr.bf16.mxu0 %v8423_v39 }
 0x206   :  { %6032 = vmatpush1.bf16.msra.mxu1 %v8403_v10 }
 0x207   :  { %6033 = vmatprep.subr.bf16.mxu1 %v8516_v1  ;;  %7877 = vmatpush3.bf16.msra.mxu0 %v8424_v55 }
 0x208   :  { %7878 = vmatprep.subr.bf16.mxu0 %v8425_v30  ;;  %v8453_v30 = vld [vmem:[%s10600_s3 + $0x160] sm:$0xff]  }
 0x20a   :  { %6034 = vmatpush1.bf16.msra.mxu1 %v8406_v42  ;;  %v8430_v42 = vld [vmem:[%s10600_s3 + $0x80] sm:$0xff]  }
 0x20b   :  { %6035 = vmatprep.subr.bf16.mxu1 %v8516_v1  ;;  %7879 = vmatpush3.bf16.msra.mxu0 %v8426_v7  ;;  %v8454_v7 = vld [vmem:[%s10600_s3 + $0x120] sm:$0xff]  }
 0x20c   :  { %7880 = vmatprep.subr.bf16.mxu0 %v8427_v12  ;;  %v8455_v12 = vld [vmem:[%s10600_s3 + $0x168] sm:$0xff]  }
 0x20e   :  { %6036 = vmatpush1.bf16.msra.mxu1 %v8407_v41 }
 0x210   :  { %v7798_v50 = vpop.f32.mrb[48].mxu0 }
 0x211   :  { %v7799_v9 = vpop.f32.mrb[49].mxu0  ;;  %6046 = vmatmul.mubr.bf16.vlgmr.msra.gmra.mrb[0].mxu1 %v8408_v45 }
 0x212   :  { %v7800_v53 = vadd.f32 %v7799_v9, %v7798_v50  ;;  %v7801_v54 = vpop.f32.mrb[50].mxu0  ;;  %7537 = vmatprep.mubr.msk.bf16.mxu1 %vm622_vm14, %v7507_v11 }
 0x213   :  { %v7802_v60 = vpop.f32.mrb[51].mxu0 }
 0x214   :  { %v7989_v35 = vadd.f32 %v7988_v19, %v7800_v53  ;;  %v7803_v5 = vadd.f32 %v7802_v60, %v7801_v54  ;;  %v8432_v54 = vld [vmem:[%s10600_s3 + $0x88] sm:$0xff]   ;;  %v8433_v60 = vld [vmem:[%s10600_s3 + $0xd0] sm:$0xff]  }
 0x216   :  { %v7999_v2 = vadd.f32 %v7998_v17, %v7803_v5  ;;  %v8428_v17 = vld [vmem:[%s10600_s3 + $0x38] sm:$0xff]  }
 0x217   :  { %7881 = vmatpush3.bf16.msra.mxu0 %v8428_v17  ;;  %v8435_v5 = vld [vmem:[%s10600_s3 + $0xd8] sm:$0xff]  }
 0x218   :  { %v7804_v3 = vpop.f32.mrb[52].mxu0  ;;  %7888 = vmatprep.subr.bf16.mxu0 %v8429_v0  ;;  %v8460_v17 = vld [vmem:[%s10600_s3 + $0x138] sm:$0xff]   ;;  %v8463_v0 = vld [vmem:[%s10600_s3 + $0x1c8] sm:$0xff]  }
 0x219   :  { %v7805_v43 = vpop.f32.mrb[53].mxu0  ;;  %6054 = vmatmul.mubr.bf16.gmra.mrb[4].mxu1 %v7506_v37  ;;  %v8437_v37 = vld [vmem:[%s10600_s3 + $0xe0] sm:$0xff]  }
 0x21a   :  { %v7806_v1 = vadd.f32 %v7805_v43, %v7804_v3  ;;  %v7807_v4 = vpop.f32.mrb[54].mxu0  ;;  %v8438_v3 = vld [vmem:[%s10600_s3 + $0xa0] sm:$0xff]   ;;  %v8439_v43 = vld [vmem:[%s10600_s3 + $0xe8] sm:$0xff]  }
 0x21b   :  { %v7808_v62 = vpop.f32.mrb[55].mxu0  ;;  %v8441_v4 = vld [vmem:[%s10600_s3 + $0xf0] sm:$0xff]  }
 0x21c   :  { %v8009_v56 = vadd.f32 %v8008_v28, %v7806_v1  ;;  %v8440_v1 = vld [vmem:[%s10600_s3 + $0xa8] sm:$0xff]   ;;  %v8442_v62 = vld [vmem:[%s10600_s3 + $0xb0] sm:$0xff]  }
 0x237   :  { %v7826_v6 = vpop.f32.mrb[56].mxu0 }
 0x238   :  { %v7827_v59 = vpop.f32.mrb[57].mxu0 }
 0x239   :  { %v7828_v49 = vadd.f32 %v7827_v59, %v7826_v6  ;;  %v7829_v44 = vpop.f32.mrb[58].mxu0  ;;  %v8444_v59 = vld [vmem:[%s10600_s3 + $0xb8] sm:$0xff]  }
 0x23a   :  { %v7830_v57 = vpop.f32.mrb[59].mxu0 }
 0x23b   :  { %v7990_v36 = vadd.f32 %v7989_v35, %v7828_v49  ;;  %v7831_v47 = vadd.f32 %v7830_v57, %v7829_v44  ;;  %v8434_v35 = vld [vmem:[%s10600_s3 + $0x90] sm:$0xff]   ;;  %v8445_v44 = vld [vmem:[%s10600_s3 + $0x140] sm:$0xff]  }
 0x23d   :  { %v8000_v52 = vadd.f32 %v7999_v2, %v7831_v47  ;;  %v8436_v2 = vld [vmem:[%s10600_s3 + $0x98] sm:$0xff]  }
 0x23f   :  { %v7832_v51 = vpop.f32.mrb[60].mxu0 }
 0x240   :  { %v7833_v61 = vpop.f32.mrb[61].mxu0 }
 0x241   :  { %v7834_v63 = vadd.f32 %v7833_v61, %v7832_v51  ;;  %v7835_v8 = vpop.f32.mrb[62].mxu0  ;;  %v8448_v61 = vld [vmem:[%s10600_s3 + $0x108] sm:$0xff]  }
 0x242   :  { %v7836_v26 = vpop.f32.mrb[63].mxu0  ;;  %v8450_v8 = vld [vmem:[%s10600_s3 + $0x110] sm:$0xff]  }
 0x243   :  { %v8010_v23 = vadd.f32 %v8009_v56, %v7834_v63  ;;  %v8443_v56 = vld [vmem:[%s10600_s3 + $0xf8] sm:$0xff]   ;;  %v8449_v63 = vld [vmem:[%s10600_s3 + $0x150] sm:$0xff]  }
 0x244   :  { %v8451_v26 = vld [vmem:[%s10600_s3 + $0x158] sm:$0xff]  }
 0x26a   :  { %v7854_v13 = vpop.f32.mrb[64].mxu0 }
 0x26b   :  { %v7855_v58 = vpop.f32.mrb[65].mxu0 }
 0x26c   :  { %v7856_v19 = vadd.f32 %v7855_v58, %v7854_v13  ;;  %v7857_v15 = vpop.f32.mrb[66].mxu0  ;;  %v8456_v13 = vld [vmem:[%s10600_s3 + $0x128] sm:$0xff]   ;;  %v8457_v58 = vld [vmem:[%s10600_s3 + $0x170] sm:$0xff]  }
 0x26d   :  { %v7858_v25 = vpop.f32.mrb[67].mxu0 }
 0x26e   :  { %v7859_v20 = vadd.f32 %v7858_v25, %v7857_v15  ;;  %v7991_v16 = vadd.f32 %v7990_v36, %v7856_v19  ;;  %v8446_v36 = vld [vmem:[%s10600_s3 + $0x100] sm:$0xff]   ;;  %v8458_v19 = vld [vmem:[%s10600_s3 + $0x130] sm:$0xff]   ;;  %v8459_v15 = vld [vmem:[%s10600_s3 + $0x178] sm:$0xff]  }
 0x26f   :  { %v8461_v25 = vld [vmem:[%s10600_s3 + $0x1c0] sm:$0xff]  }
 0x270   :  { %v8001_v18 = vadd.f32 %v8000_v52, %v7859_v20  ;;  %v8447_v52 = vld [vmem:[%s10600_s3 + $0x148] sm:$0xff]  }
 0x272   :  { %v7860_v21 = vpop.f32.mrb[68].mxu0 }
 0x273   :  { %v7861_v27 = vpop.f32.mrb[69].mxu0 }
 0x274   :  { %v7862_v14 = vadd.f32 %v7861_v27, %v7860_v21  ;;  %v7863_v40 = vpop.f32.mrb[70].mxu0  ;;  %v8464_v27 = vld [vmem:[%s10600_s3 + $0x188] sm:$0xff]  }
 0x275   :  { %v7864_v46 = vpop.f32.mrb[71].mxu0  ;;  %v8466_v40 = vld [vmem:[%s10600_s3 + $0x190] sm:$0xff]  }
 0x276   :  { %v8011_v22 = vadd.f32 %v8010_v23, %v7862_v14  ;;  %v8452_v23 = vld [vmem:[%s10600_s3 + $0x118] sm:$0xff]   ;;  %v8465_v14 = vld [vmem:[%s10600_s3 + $0x1d0] sm:$0xff]  }
 0x277   :  { %v8467_v46 = vld [vmem:[%s10600_s3 + $0x1d8] sm:$0xff]  }
 0x2e4   :  { %v6047_v24 = vpop.f32.mrb[0].mxu1 }
 0x2e5   :  { %v7992_v28 = vadd.f32 %v7991_v16, %v6047_v24  ;;  %v6049_v29 = vpop.f32.mrb[1].mxu1  ;;  %v8462_v16 = vld [vmem:[%s10600_s3 + $0x180] sm:$0xff]  }
 0x2e6   :  { %v6050_v31 = vpop.f32.mrb[2].mxu1  ;;  %v8469_v24 = vld [vmem:[%s10600_s3 + $0x1e0] sm:$0xff]   ;;  %v8471_v29 = vld [vmem:[%s10600_s3 + $0x1e8] sm:$0xff]  }
 0x2e7   :  { %v6064_v32 = vmax.f32 %v7992_v28, 0.0  ;;  %v8002_v38 = vadd.f32 %v8001_v18, %v6050_v31  ;;  %v6052_v33 = vpop.f32.mrb[3].mxu1  ;;  %v8470_v28 = vld [vmem:[%s10600_s3 + $0x1a0] sm:$0xff]   ;;  %v8472_v31 = vld [vmem:[%s10600_s3 + $0x1a8] sm:$0xff]  }
 0x2e8   :  { %v8475_v33 = vld [vmem:[%s10600_s3 + $0x1f8] sm:$0xff]  }
 0x2e9   :  { %v6068_v10 = vrot.slane %v6064_v32, 2  ;;  %v6072_v34 = vrot.slane %v6064_v32, 6  ;;  %v6081_v55 = vpack.c.bf16 %v6064_v32, %v6064_v32  ;;  %v10457_v6 = vmax.f32 %v8002_v38, 0.0  ;;  %v8474_v38 = vld [vmem:[%s10600_s3 + $0x1b0] sm:$0xff]  }
 0x2ea   :  { %v6070_v49 = vrot.slane %v6064_v32, 4  ;;  %v8473_v32 = vld [vmem:[%s10600_s3 + $0x1f0] sm:$0xff]  }
 0x2eb   :  { %v6082_v39 = vpack.c.bf16 %v6068_v10, %v6068_v10  ;;  %v6084_v11 = vpack.c.bf16 %v6072_v34, %v6072_v34  ;;  %v6075_v57 = vrot.slane %v10457_v6, 2  ;;  %v6079_v20 = vrot.slane %v10457_v6, 6  ;;  %v8476_v10 = vld [vmem:[%s10600_s3 + $0x1b8] sm:$0xff]  }
 0x2ec   :  { %v6055_v41 = vpop.f32.mrb[4].mxu1  ;;  %v6083_v47 = vpack.c.bf16 %v6070_v49, %v6070_v49  ;;  %v6085_v18 = vpack.c.bf16 %v10457_v6, %v10457_v6  ;;  %v6077_v34 = vrot.slane %v10457_v6, 4 }
 0x2ed   :  { %v10419_v45 = vadd.f32 %v8011_v22, %v6055_v41  ;;  %v6057_v50 = vpop.f32.mrb[5].mxu1  ;;  %6705 = vmatprep.mubr.bf16.mxu0 %v6082_v39  ;;  %v6086_v51 = vpack.c.bf16 %v6075_v57, %v6075_v57  ;;  %v6088_v21 = vpack.c.bf16 %v6079_v20, %v6079_v20  ;;  %v8468_v22 = vld [vmem:[%s10600_s3 + $0x198] sm:$0xff]   ;;  %v8477_v39 = vld [vmem:[%s10600_s3 + $0x200] sm:$0xff]   ;;  %v8478_v41 = vld [vmem:[%s10600_s3 + $0x208] sm:$0xff]  }
 0x2ee   :  { %v6058_v9 = vpop.f32.mrb[6].mxu1  ;;  %6706 = vmatmul.mubr.bf16.vlgmr.msra.gmra.mrb[72].mxu0 %v6081_v55  ;;  %v8517_v55 = vmov 0.0   ;;  %v8480_v50 = vld [vmem:[%s10600_s3 + $0x218] sm:$0xff]  }
 0x2ef   :  { %7889 = vmatpush3.bf16.msra.mxu0 %v8430_v42  ;;  %v6059_v53 = vpop.f32.mrb[7].mxu1  ;;  %6745 = vmatprep.mubr.bf16.mxu0 %v6084_v11  ;;  %v6087_v42 = vpack.c.bf16 %v6077_v34, %v6077_v34  ;;  %v8481_v11 = vld [vmem:[%s10600_s3 + $0x220] sm:$0xff]   ;;  %v8482_v9 = vld [vmem:[%s10600_s3 + $0x228] sm:$0xff]  }
 0x2f0   :  { %7890 = vmatprep.subr.bf16.mxu0 %v8431_v48  ;;  %v8479_v48 = vld [vmem:[%s10600_s3 + $0x210] sm:$0xff]  }
 0x2f1   :  { %v8483_v53 = vld [vmem:[%s10600_s3 + $0x230] sm:$0xff]  }
 0x2f3   :  { %7891 = vmatpush3.bf16.msra.mxu0 %v8432_v54  ;;  %v8484_v54 = vld [vmem:[%s10600_s3 + $0x238] sm:$0xff]  }
 0x2f4   :  { %7892 = vmatprep.subr.bf16.mxu0 %v8433_v60  ;;  %v6066_v60 = vmax.f32 %v10419_v45, 0.0 }
 0x2f7   :  { %7893 = vmatpush3.bf16.msra.mxu0 %v8434_v35  ;;  %v6089_v35 = vpack.c.bf16 %v6066_v60, %v6066_v60 }
 0x2f8   :  { %7894 = vmatprep.subr.bf16.mxu0 %v8435_v5 }
 0x2fb   :  { %7895 = vmatpush3.bf16.msra.mxu0 %v8436_v2 }
 0x2fc   :  { %7896 = vmatprep.subr.bf16.mxu0 %v8437_v37 }
 0x2ff   :  { %7897 = vmatpush3.bf16.msra.mxu0 %v8438_v3 }
 0x300   :  { %7898 = vmatprep.subr.bf16.mxu0 %v8439_v43 }
 0x303   :  { %7899 = vmatpush3.bf16.msra.mxu0 %v8440_v1  ;;  %v7538_v1 = vld [vmem:[%s10601_s4] ss:$0 sm:$0xff] }
 0x304   :  { %7900 = vmatprep.subr.bf16.mxu0 %v8441_v4 }
 0x307   :  { %7901 = vmatpush3.bf16.msra.mxu0 %v8442_v62 }
 0x308   :  { %7902 = vmatprep.subr.bf16.mxu0 %v8443_v56 }
 0x30b   :  { %7903 = vmatpush3.bf16.msra.mxu0 %v8444_v59 }
 0x30c   :  { %7910 = vmatprep.subr.bf16.mxu0 %v8445_v44 }
 0x30e   :  { %6746 = vmatmul.mubr.bf16.vlgmr.msra.gmra.mrb[76].mxu0 %v6083_v47 }
 0x30f   :  { %7911 = vmatpush3.bf16.msra.mxu0 %v8446_v36  ;;  %6785 = vmatprep.mubr.bf16.mxu0 %v6086_v51 }
 0x310   :  { %7912 = vmatprep.subr.bf16.mxu0 %v8447_v52 }
 0x313   :  { %7913 = vmatpush3.bf16.msra.mxu0 %v8448_v61 }
 0x314   :  { %7914 = vmatprep.subr.bf16.mxu0 %v8449_v63 }
 0x317   :  { %7915 = vmatpush3.bf16.msra.mxu0 %v8450_v8 }
 0x318   :  { %7916 = vmatprep.subr.bf16.mxu0 %v8451_v26 }
 0x31b   :  { %7917 = vmatpush3.bf16.msra.mxu0 %v8452_v23 }
 0x31c   :  { %7918 = vmatprep.subr.bf16.mxu0 %v8453_v30 }
 0x31f   :  { %7919 = vmatpush3.bf16.msra.mxu0 %v8454_v7 }
 0x320   :  { %7920 = vmatprep.subr.bf16.mxu0 %v8455_v12 }
 0x323   :  { %7921 = vmatpush3.bf16.msra.mxu0 %v8456_v13 }
 0x324   :  { %7922 = vmatprep.subr.bf16.mxu0 %v8457_v58 }
 0x327   :  { %7923 = vmatpush3.bf16.msra.mxu0 %v8458_v19  ;;  %v7611_v19 = vld [vmem:[%s10602_s5] ss:$0 sm:$0xff] }
 0x328   :  { %7924 = vmatprep.subr.bf16.mxu0 %v8459_v15 }
 0x32b   :  { %7925 = vmatpush3.bf16.msra.mxu0 %v8460_v17 }
 0x32c   :  { %7932 = vmatprep.subr.bf16.mxu0 %v8461_v25 }
 0x32e   :  { %6786 = vmatmul.mubr.bf16.vlgmr.msra.gmra.mrb[80].mxu0 %v6085_v18 }
 0x32f   :  { %7933 = vmatpush3.bf16.msra.mxu0 %v8462_v16  ;;  %6825 = vmatprep.mubr.bf16.mxu0 %v6088_v21  ;;  %v7612_v16 = vld [vmem:[#allocation3] ss:$0 sm:$0xff] }
 0x330   :  { %7934 = vmatprep.subr.bf16.mxu0 %v8463_v0 }
 0x333   :  { %7935 = vmatpush3.bf16.msra.mxu0 %v8464_v27 }
 0x334   :  { %7936 = vmatprep.subr.bf16.mxu0 %v8465_v14 }
 0x337   :  { %7937 = vmatpush3.bf16.msra.mxu0 %v8466_v40 }
 0x338   :  { %7938 = vmatprep.subr.bf16.mxu0 %v8467_v46 }
 0x33b   :  { %7939 = vmatpush3.bf16.msra.mxu0 %v8468_v22 }
 0x33c   :  { %7940 = vmatprep.subr.bf16.mxu0 %v8469_v24 }
 0x33f   :  { %7941 = vmatpush3.bf16.msra.mxu0 %v8470_v28 }
 0x340   :  { %7942 = vmatprep.subr.bf16.mxu0 %v8471_v29 }
 0x343   :  { %7943 = vmatpush3.bf16.msra.mxu0 %v8472_v31 }
 0x344   :  { %7944 = vmatprep.subr.bf16.mxu0 %v8473_v32 }
 0x347   :  { %7945 = vmatpush3.bf16.msra.mxu0 %v8474_v38 }
 0x348   :  { %7946 = vmatprep.subr.bf16.mxu0 %v8475_v33 }
 0x34b   :  { %7947 = vmatpush3.bf16.msra.mxu0 %v8476_v10 }
 0x34c   :  { %7963 = vmatprep.subr.bf16.mxu0 %v8517_v55 }
 0x34e   :  { %6826 = vmatmul.mubr.bf16.vlgmr.msra.gmra.mrb[84].mxu0 %v6087_v42 }
 0x34f   :  { %7964 = vmatpush3.bf16.msra.mxu0 %v8477_v39  ;;  %7979 = vmatprep.mubr.msk.bf16.mxu0 %vm8518_vm15, %v8517_v55 }
 0x350   :  { %7965 = vmatprep.subr.bf16.mxu0 %v8517_v55 }
 0x353   :  { %7966 = vmatpush3.bf16.msra.mxu0 %v8478_v41 }
 0x354   :  { %7967 = vmatprep.subr.bf16.mxu0 %v8517_v55 }
 0x357   :  { %7968 = vmatpush3.bf16.msra.mxu0 %v8479_v48 }
 0x358   :  { %7969 = vmatprep.subr.bf16.mxu0 %v8517_v55 }
 0x35b   :  { %7970 = vmatpush3.bf16.msra.mxu0 %v8480_v50 }
 0x35c   :  { %7971 = vmatprep.subr.bf16.mxu0 %v8517_v55 }
 0x35f   :  { %7972 = vmatpush3.bf16.msra.mxu0 %v8481_v11 }
 0x360   :  { %7973 = vmatprep.subr.bf16.mxu0 %v8517_v55 }
 0x363   :  { %7974 = vmatpush3.bf16.msra.mxu0 %v8482_v9 }
 0x364   :  { %7975 = vmatprep.subr.bf16.mxu0 %v8517_v55 }
 0x367   :  { %7976 = vmatpush3.bf16.msra.mxu0 %v8483_v53 }
 0x368   :  { %7977 = vmatprep.subr.bf16.mxu0 %v8517_v55 }
 0x36b   :  { %7978 = vmatpush3.bf16.msra.mxu0 %v8484_v54 }
 0x36e   :  { %7980 = vmatmul.mubr.bf16.vlgmr.msra.gmra.mrb[88].mxu0 %v6089_v35 }
 0x3c1   :  { %v7882_v5 = vpop.f32.mrb[72].mxu0 }
 0x3c2   :  { %v7883_v2 = vpop.f32.mrb[73].mxu0 }
 0x3c3   :  { %v7884_v37 = vadd.f32 %v7883_v2, %v7882_v5  ;;  %v7885_v3 = vpop.f32.mrb[74].mxu0 }
 0x3c4   :  { %v7886_v43 = vpop.f32.mrb[75].mxu0 }
 0x3c5   :  { %v6708_v56 = vadd.f32 %v7884_v37, %v7538_v1 }
 0x3e1   :  { %v7904_v4 = vpop.f32.mrb[76].mxu0 }
 0x3e2   :  { %v7905_v62 = vpop.f32.mrb[77].mxu0 }
 0x3e3   :  { %v7906_v6 = vadd.f32 %v7905_v62, %v7904_v4  ;;  %v7907_v59 = vpop.f32.mrb[78].mxu0 }
 0x3e4   :  { %v7908_v49 = vpop.f32.mrb[79].mxu0 }
 0x3e5   :  { %v6748_v45 = vadd.f32 %v7906_v6, %v6708_v56 }
 0x401   :  { %v7926_v44 = vpop.f32.mrb[80].mxu0 }
 0x402   :  { %v7927_v57 = vpop.f32.mrb[81].mxu0 }
 0x403   :  { %v7928_v36 = vadd.f32 %v7927_v57, %v7926_v44  ;;  %v7929_v47 = vpop.f32.mrb[82].mxu0 }
 0x404   :  { %v7930_v52 = vpop.f32.mrb[83].mxu0 }
 0x405   :  { %v6788_v51 = vadd.f32 %v7928_v36, %v6748_v45 }
 0x421   :  { %v7948_v61 = vpop.f32.mrb[84].mxu0 }
 0x422   :  { %v7949_v63 = vpop.f32.mrb[85].mxu0 }
 0x423   :  { %v7950_v8 = vadd.f32 %v7949_v63, %v7948_v61  ;;  %v7951_v26 = vpop.f32.mrb[86].mxu0 }
 0x424   :  { %v7952_v23 = vpop.f32.mrb[87].mxu0 }
 0x425   :  { %v6828_v30 = vadd.f32 %v7950_v8, %v6788_v51 }
 0x441   :  { %v6867_v7 = vpop.f32.mrb[88].mxu0 }
 0x442   :  { %v6868_v12 = vadd.f32 %v6867_v7, %v6828_v30  ;;  %v7981_v13 = vpop.f32.mrb[89].mxu0 }
 0x443   :  { %v6870_v58 = vpop.f32.mrb[90].mxu0 }
 0x444   :  { %v6873_v15 = vmax.f32 %v6868_v12, 0.0  ;;  %v7982_v17 = vpop.f32.mrb[91].mxu0 }
 0x446   :  { %v6881_v25 = vmul.f32 %v7611_v19, %v6873_v15 }
 0x448   :  { %v6883_v20 = vsel %vm6882_vm0, %v6881_v25, 0.0 }
 0x449   :  { %6884 = vadd.xlane.f32.xlu0 %v6883_v20 }
 0x4d6   :  { %v6885_v18 = vpop.xlane.xlu0 %6884 }
 0x4d7   :  { %v6893_v0 = vadd.f32 %v7612_v16, %v6885_v18 }
 0x4d9   :  { %v7613_v21 = vmul.f32 -1.442695, %v6893_v0 }
 0x4db   :  { %8485 = vpow2.f32 %v7613_v21 }
 0x4e5   :  { %v8486_v27 = vpop.eup %8485 }
 0x4e6   :  { %v6897_v14 = vadd.f32 1.0, %v8486_v27 }
 0x4e8   :  { %8487 = vrcp.f32 %v6897_v14 }
 0x4f2   :  { %v8488_v40 = vpop.eup %8487 }
 0x4f3   :  { %6901 = vst.msk [vmem:[%s10604_s7] sm:$0x3] %vm6900_vm1, %v8488_v40 }
 0x4f4   :  { %6906 = vsyncpa [#allocation5], 1 }

</bundles_post_ra>
